<compile_context>
chip_gen: v6e
topology: v6e:2x2x1
jax: 0.10.0
libtpu: 0.0.40
codegen_flags: <defaults>
</compile_context>

<pallas_src>
import numpy as np
import jax
import jax.numpy as jnp
from jax import lax
from jax.experimental import pallas as pl
from jax.experimental.pallas import tpu as pltpu

# ----------------------------- configuration -------------------------------
IN_CHANNELS = 4
MAX_HIDDEN = 32          # maxHiddenChannels
NUM_BLOCKS = 2           # numBlocks
N, H, W = 2, 16, 16      # batch / spatial (torch input is NCHW: (2, 4, 16, 16))
N_LEVELS = NUM_BLOCKS + 1


# --------------------------- architecture helpers ---------------------------
def unet_channels():
    maxnb = int(np.log2(MAX_HIDDEN))
    assert maxnb > NUM_BLOCKS
    base = maxnb - NUM_BLOCKS
    down = [(IN_CHANNELS, 2 ** base)]
    down += [(2 ** (base + i), 2 ** (base + i + 1)) for i in range(NUM_BLOCKS)]
    c1 = [2 ** base] + [2 ** (base + i + 1) for i in range(NUM_BLOCKS)]
    up = [(2 ** (base + i) + 2 ** (base + i + 1), 2 ** (base + i))
          for i in range(NUM_BLOCKS - 1, -1, -1)]
    up.append((2 ** base + IN_CHANNELS, IN_CHANNELS))
    return down, c1, up


def bilinear_matrix(out_size, in_size):
    # nn.Upsample(scale_factor=2, mode='bilinear', align_corners=True):
    # src = dst * (in-1)/(out-1)
    a = np.zeros((out_size, in_size), np.float32)
    if in_size == 1:
        a[:, 0] = 1.0
        return a
    scale = (in_size - 1) / (out_size - 1)
    for j in range(out_size):
        s = j * scale
        i0 = min(int(np.floor(s)), in_size - 2)
        w1 = s - i0
        a[j, i0] += 1.0 - w1
        a[j, i0 + 1] += w1
    return a


def build_pool_mats():
    # 0/1 selection matrices: compact the 2x2-max field (anchored at even h,w)
    # down to the pooled grid, with the batch folded into the spatial axis.
    mats = []
    for lvl in range(N_LEVELS):
        hh, ww = H >> lvl, W >> lvl
        ho, wo = hh // 2, ww // 2
        p = np.zeros((N * hh * ww, N * ho * wo), np.float32)
        for b in range(N):
            for i in range(ho):
                for j in range(wo):
                    p[b * hh * ww + (2 * i) * ww + 2 * j,
                      b * ho * wo + i * wo + j] = 1.0
        mats.append(jnp.asarray(p))
    return mats


def build_upsample_mats():
    # Per decoder step: block-diag over batch of kron(A_h, A_w)^T so the bilinear
    # x2 upsample is a single lane-dense matmul  y(c,S_hi) = x(c,S_lo) @ M.
    mats = []
    for j in range(N_LEVELS):
        hs, ws = H >> (N_LEVELS - j), W >> (N_LEVELS - j)
        u = np.kron(bilinear_matrix(2 * hs, hs), bilinear_matrix(2 * ws, ws))
        s_lo, s_hi = hs * ws, 4 * hs * ws
        m = np.zeros((N * s_lo, N * s_hi), np.float32)
        for b in range(N):
            m[b * s_lo:(b + 1) * s_lo, b * s_hi:(b + 1) * s_hi] = u.T
        mats.append(jnp.asarray(m))
    return mats


# ----------------------------- fused Pallas kernel --------------------------
def _tap_masks(hh, ww, s_total):
    # (1, S) float masks per 3x3 tap: zero the lanes whose roll-based shift
    # wrapped across an image border (also covers the image-to-image boundary
    # since the batch is folded into the lane axis).  hh, ww are powers of two.
    lane = lax.broadcasted_iota(jnp.int32, (1, s_total), 1)
    p = int(np.log2(ww))
    w_idx = lane & (ww - 1)
    h_idx = (lane >> p) & (hh - 1)

    def onehot(cond):
        return jnp.where(cond, 1.0, 0.0).astype(jnp.float32)

    not_t, not_b = onehot(h_idx > 0), onehot(h_idx < hh - 1)
    not_l, not_r = onehot(w_idx > 0), onehot(w_idx < ww - 1)
    rows, cols = (not_t, None, not_b), (not_l, None, not_r)
    masks = []
    for dy in range(3):
        for dx in range(3):
            r, c = rows[dy], cols[dx]
            if r is None and c is None:
                masks.append(None)
            elif r is None:
                masks.append(c)
            elif c is None:
                masks.append(r)
            else:
                masks.append(r * c)
    return masks


def _make_unet_kernel(n_levels):
    def kernel(*args):
        pos = 0

        def take(k):
            nonlocal pos
            group = args[pos:pos + k]
            pos += k
            return group

        (x_ref,) = take(1)
        down_p = [take(4) for _ in range(n_levels)]
        c11_p = [take(2) for _ in range(n_levels)]
        up_p = [take(4) for _ in range(n_levels)]
        pool_m = list(take(n_levels))
        up_m = list(take(n_levels))
        (o_ref,) = take(1)
        skip_refs = list(take(n_levels - 1))

        # Per-resolution tap masks, computed once and shared by all encoder and
        # decoder convs at that resolution.
        masks = []
        for lvl in range(n_levels):
            hh, ww = H >> lvl, W >> lvl
            masks.append(_tap_masks(hh, ww, N * hh * ww))

        def shift(x, off):
            # y[:, s] = x[:, (s + off) mod S]; wrapped lanes are zeroed by masks.
            # TODO(synk): pltpu.roll (XLU lane rotate) is a lower-cost drop-in here.
            return x if off == 0 else jnp.roll(x, -off, axis=1)

        def conv3x3(x, w_ref, b_ref, lvl, relu):
            # x: (ci, S); w_ref: (9, co, ci); lane-dense (co, S) output.
            ww = W >> lvl
            acc = None
            for k in range(9):
                dy, dx = divmod(k, 3)
                t = shift(x, (dy - 1) * ww + (dx - 1))
                if masks[lvl][k] is not None:
                    t = t * masks[lvl][k]
                term = jnp.dot(w_ref[k], t, preferred_element_type=jnp.float32)
                acc = term if acc is None else acc + term
            y = acc + b_ref[...]                    # (co, 1) broadcasts over lanes
            return jnp.maximum(y, 0.0) if relu else y

        def double_conv(x, p, lvl):
            w1, b1, w2, b2 = p
            return conv3x3(conv3x3(x, w1, b1, lvl, True), w2, b2, lvl, True)

        def conv1x1(x, w_ref, b_ref, relu):
            y = jnp.dot(w_ref[...], x, preferred_element_type=jnp.float32) + b_ref[...]
            return jnp.maximum(y, 0.0) if relu else y

        def maxpool2(x, lvl):
            # 2x2 max via two shifted maxes, then compaction by a 0/1 matmul
            # (keeps spatial on lanes; no reshape relayout).
            ww = W >> lvl
            m1 = jnp.maximum(x, shift(x, 1))
            m2 = jnp.maximum(m1, shift(m1, ww))
            return jnp.dot(m2, pool_m[lvl][...], preferred_element_type=jnp.float32)

        # ------------------------------ encoder ------------------------------
        cur = x_ref[...]                             # (Cin, N*H*W)
        for i in range(n_levels):
            cur = double_conv(cur, down_p[i], lvl=i)
            cur = maxpool2(cur, lvl=i)
            wc, bc = c11_p[i]
            cur = conv1x1(cur, wc, bc, relu=(i > 0))   # first 1x1 has no ReLU
            if i < n_levels - 1:
                skip_refs[i][...] = cur                # pin skip in VMEM scratch
        # ------------------------------ decoder ------------------------------
        for j in range(n_levels):
            lvl = n_levels - 1 - j
            cur = jnp.dot(cur, up_m[j][...], preferred_element_type=jnp.float32)
            skip = x_ref[...] if lvl == 0 else skip_refs[lvl - 1][...]
            cur = jnp.concatenate([cur, skip], axis=0)   # torch.cat(dim=1)
            cur = double_conv(cur, up_p[j], lvl=lvl)
        o_ref[...] = cur

    return kernel


# ----------------------------- forward wrapper -------------------------------
def _zero_map(ndim):
    return lambda i: (0,) * ndim


def _skip_scratch_shapes():
    _, c1_ch, _ = unet_channels()
    shapes = []
    for i in range(N_LEVELS - 1):
        hh, ww = H >> (i + 1), W >> (i + 1)
        shapes.append(pltpu.VMEM((c1_ch[i], N * hh * ww), jnp.float32))
    return shapes


def unet_forward(x_nchw, params, pool_mats, up_mats):
    n, cin, h, w = x_nchw.shape
    assert (n, cin, h, w) == (N, IN_CHANNELS, H, W)
    assert h == w and (h & (h - 1)) == 0 and h % (2 ** N_LEVELS) == 0
    s0 = n * h * w
    # Channels-on-sublanes / (batch*H*W)-on-lanes slab (lane-dense I/O).
    xk = jnp.transpose(x_nchw, (1, 0, 2, 3)).reshape(cin, s0)

    flat, specs = [], []

    def add(a):
        a = jnp.asarray(a, jnp.float32)
        flat.append(a)
        specs.append(pl.BlockSpec(a.shape, _zero_map(a.ndim)))

    def add_conv3x3(wb):
        w_hwio, b = wb                              # (3,3,ci,co), (co,)
        ci, co = w_hwio.shape[2], w_hwio.shape[3]
        add(jnp.transpose(w_hwio.reshape(9, ci, co), (0, 2, 1)))   # (9, co, ci)
        add(b.reshape(co, 1))

    add(xk)
    for conv_a, conv_b in params["down"]:
        add_conv3x3(conv_a); add_conv3x3(conv_b)
    for wc, bc in params["conv1x1"]:
        add(wc.T); add(bc.reshape(-1, 1))           # (co, ci), (co, 1)
    for conv_a, conv_b in params["up"]:
        add_conv3x3(conv_a); add_conv3x3(conv_b)
    for p in pool_mats:
        add(p)
    for m in up_mats:
        add(m)

    out = pl.pallas_call(
        _make_unet_kernel(N_LEVELS),
        out_shape=jax.ShapeDtypeStruct((cin, s0), jnp.float32),
        grid=(1,),                                   # batch folded into lanes
        in_specs=specs,
        out_specs=pl.BlockSpec((cin, s0), _zero_map(2)),
        scratch_shapes=_skip_scratch_shapes(),
    )(*flat)
    return jnp.transpose(out.reshape(cin, n, h, w), (1, 0, 2, 3))   # back to NCHW


# ----------------------------- parameters -----------------------------------
def init_conv(key, kh, kw, cin, cout):
    kw_, kb_ = jax.random.split(key)
    fan_in = cin * kh * kw
    w = jax.random.normal(kw_, (kh, kw, cin, cout), jnp.float32) / np.sqrt(fan_in)
    b = jax.random.normal(kb_, (cout,), jnp.float32) * 0.01
    return w, b


def build_params(key):
    down_ch, c1_ch, up_ch = unet_channels()
    keys = iter(jax.random.split(key, 64))
    params = {"down": [], "conv1x1": [], "up": []}

    def dc_params(ci, co):
        return (init_conv(next(keys), 3, 3, ci, co),
                init_conv(next(keys), 3, 3, co, co))

    for ci, co in down_ch:
        params["down"].append(dc_params(ci, co))
    for c in c1_ch:
        w, b = init_conv(next(keys), 1, 1, c, c)
        params["conv1x1"].append((w.reshape(c, c), b))
    for ci, co in up_ch:
        params["up"].append(dc_params(ci, co))
    return params


# --------------------------- pure-JAX reference ------------------------------
def ref_conv3x3(x, w, b, relu):
    y = lax.conv_general_dilated(
        x, w, (1, 1), "SAME",
        dimension_numbers=("NHWC", "HWIO", "NHWC"),
        precision=lax.Precision.HIGHEST) + b.reshape(1, 1, 1, -1)
    return jnp.maximum(y, 0.0) if relu else y


def ref_conv1x1(x, w, b, relu):
    y = jnp.einsum("nhwc,cd->nhwd", x, w,
                   precision=lax.Precision.HIGHEST) + b.reshape(1, 1, 1, -1)
    return jnp.maximum(y, 0.0) if relu else y


def ref_maxpool(x):
    return lax.reduce_window(x, -jnp.inf, lax.max,
                             (1, 2, 2, 1), (1, 2, 2, 1), "VALID")


def ref_upsample(x):
    n, h, w, c = x.shape
    ah = jnp.asarray(bilinear_matrix(2 * h, h))
    aw = jnp.asarray(bilinear_matrix(2 * w, w))
    return jnp.einsum("ih,jw,nhwc->nijc", ah, aw, x,
                      precision=lax.Precision.HIGHEST)


def ref_forward(x, params):
    def dc(x, p):
        (w1, b1), (w2, b2) = p
        return ref_conv3x3(ref_conv3x3(x, w1, b1, True), w2, b2, True)

    ctx = [x]
    for i in range(N_LEVELS):
        x = dc(x, params["down"][i])
        x = ref_maxpool(x)
        w, b = params["conv1x1"][i]
        x = ref_conv1x1(x, w, b, relu=(i > 0))
        ctx.append(x)
    for i, term in enumerate(reversed(ctx[:-1])):
        x = ref_upsample(x)
        x = jnp.concatenate([x, term], axis=-1)
        x = dc(x, params["up"][i])
    return x


# ----------------------------------- main ------------------------------------
if __name__ == "__main__":
    root = jax.random.PRNGKey(0)
    k_x, k_p = jax.random.split(root)
    x = jax.random.normal(k_x, (N, IN_CHANNELS, H, W), jnp.float32)  # NCHW, as torch
    params = build_params(k_p)
    pool_mats = build_pool_mats()
    up_mats = build_upsample_mats()

    fwd = jax.jit(lambda xx: unet_forward(xx, params, pool_mats, up_mats))
    out = jax.block_until_ready(fwd(x))
    assert out.shape == (N, IN_CHANNELS, H, W), out.shape

    ref_nhwc = ref_forward(jnp.transpose(x, (0, 2, 3, 1)), params)
    ref = jnp.transpose(ref_nhwc, (0, 3, 1, 2))
    np.testing.assert_allclose(np.asarray(out), np.asarray(ref),
                               rtol=1e-2, atol=1e-3)
    print("KERNEL_OK")
</pallas_src>

<mosaic_0001>
module attributes {stable_mosaic.version = 11 : i64} {
  func.func @kernel(%arg0: i32, %arg1: memref<4x512xf32, #tpu.memory_space<vmem>>, %arg2: memref<9x8x4xf32, #tpu.memory_space<vmem>>, %arg3: memref<8x1xf32, #tpu.memory_space<vmem>>, %arg4: memref<9x8x8xf32, #tpu.memory_space<vmem>>, %arg5: memref<8x1xf32, #tpu.memory_space<vmem>>, %arg6: memref<9x16x8xf32, #tpu.memory_space<vmem>>, %arg7: memref<16x1xf32, #tpu.memory_space<vmem>>, %arg8: memref<9x16x16xf32, #tpu.memory_space<vmem>>, %arg9: memref<16x1xf32, #tpu.memory_space<vmem>>, %arg10: memref<9x32x16xf32, #tpu.memory_space<vmem>>, %arg11: memref<32x1xf32, #tpu.memory_space<vmem>>, %arg12: memref<9x32x32xf32, #tpu.memory_space<vmem>>, %arg13: memref<32x1xf32, #tpu.memory_space<vmem>>, %arg14: memref<8x8xf32, #tpu.memory_space<vmem>>, %arg15: memref<8x1xf32, #tpu.memory_space<vmem>>, %arg16: memref<16x16xf32, #tpu.memory_space<vmem>>, %arg17: memref<16x1xf32, #tpu.memory_space<vmem>>, %arg18: memref<32x32xf32, #tpu.memory_space<vmem>>, %arg19: memref<32x1xf32, #tpu.memory_space<vmem>>, %arg20: memref<9x16x48xf32, #tpu.memory_space<vmem>>, %arg21: memref<16x1xf32, #tpu.memory_space<vmem>>, %arg22: memref<9x16x16xf32, #tpu.memory_space<vmem>>, %arg23: memref<16x1xf32, #tpu.memory_space<vmem>>, %arg24: memref<9x8x24xf32, #tpu.memory_space<vmem>>, %arg25: memref<8x1xf32, #tpu.memory_space<vmem>>, %arg26: memref<9x8x8xf32, #tpu.memory_space<vmem>>, %arg27: memref<8x1xf32, #tpu.memory_space<vmem>>, %arg28: memref<9x4x12xf32, #tpu.memory_space<vmem>>, %arg29: memref<4x1xf32, #tpu.memory_space<vmem>>, %arg30: memref<9x4x4xf32, #tpu.memory_space<vmem>>, %arg31: memref<4x1xf32, #tpu.memory_space<vmem>>, %arg32: memref<512x128xf32, #tpu.memory_space<vmem>>, %arg33: memref<128x32xf32, #tpu.memory_space<vmem>>, %arg34: memref<32x8xf32, #tpu.memory_space<vmem>>, %arg35: memref<8x32xf32, #tpu.memory_space<vmem>>, %arg36: memref<32x128xf32, #tpu.memory_space<vmem>>, %arg37: memref<128x512xf32, #tpu.memory_space<vmem>>, %arg38: memref<4x512xf32, #tpu.memory_space<vmem>>, %arg39: memref<8x128xf32, #tpu.memory_space<vmem>>, %arg40: memref<16x32xf32, #tpu.memory_space<vmem>>) attributes {dimension_semantics = [#tpu.dimension_semantics<arbitrary>], iteration_bounds = array<i64: 1>, scalar_prefetch = 0 : i64, scratch_operands = 2 : i64, tpu.core_type = #tpu.core_type<tc>, window_params = [{pipeline_mode = #tpu.pipeline_mode<synchronous>, transform_indices = @transform_0, window_bounds = array<i64: 4, 512>}, {pipeline_mode = #tpu.pipeline_mode<synchronous>, transform_indices = @transform_1, window_bounds = array<i64: 9, 8, 4>}, {pipeline_mode = #tpu.pipeline_mode<synchronous>, transform_indices = @transform_2, window_bounds = array<i64: 8, 1>}, {pipeline_mode = #tpu.pipeline_mode<synchronous>, transform_indices = @transform_3, window_bounds = array<i64: 9, 8, 8>}, {pipeline_mode = #tpu.pipeline_mode<synchronous>, transform_indices = @transform_4, window_bounds = array<i64: 8, 1>}, {pipeline_mode = #tpu.pipeline_mode<synchronous>, transform_indices = @transform_5, window_bounds = array<i64: 9, 16, 8>}, {pipeline_mode = #tpu.pipeline_mode<synchronous>, transform_indices = @transform_6, window_bounds = array<i64: 16, 1>}, {pipeline_mode = #tpu.pipeline_mode<synchronous>, transform_indices = @transform_7, window_bounds = array<i64: 9, 16, 16>}, {pipeline_mode = #tpu.pipeline_mode<synchronous>, transform_indices = @transform_8, window_bounds = array<i64: 16, 1>}, {pipeline_mode = #tpu.pipeline_mode<synchronous>, transform_indices = @transform_9, window_bounds = array<i64: 9, 32, 16>}, {pipeline_mode = #tpu.pipeline_mode<synchronous>, transform_indices = @transform_10, window_bounds = array<i64: 32, 1>}, {pipeline_mode = #tpu.pipeline_mode<synchronous>, transform_indices = @transform_11, window_bounds = array<i64: 9, 32, 32>}, {pipeline_mode = #tpu.pipeline_mode<synchronous>, transform_indices = @transform_12, window_bounds = array<i64: 32, 1>}, {pipeline_mode = #tpu.pipeline_mode<synchronous>, transform_indices = @transform_13, window_bounds = array<i64: 8, 8>}, {pipeline_mode = #tpu.pipeline_mode<synchronous>, transform_indices = @transform_14, window_bounds = array<i64: 8, 1>}, {pipeline_mode = #tpu.pipeline_mode<synchronous>, transform_indices = @transform_15, window_bounds = array<i64: 16, 16>}, {pipeline_mode = #tpu.pipeline_mode<synchronous>, transform_indices = @transform_16, window_bounds = array<i64: 16, 1>}, {pipeline_mode = #tpu.pipeline_mode<synchronous>, transform_indices = @transform_17, window_bounds = array<i64: 32, 32>}, {pipeline_mode = #tpu.pipeline_mode<synchronous>, transform_indices = @transform_18, window_bounds = array<i64: 32, 1>}, {pipeline_mode = #tpu.pipeline_mode<synchronous>, transform_indices = @transform_19, window_bounds = array<i64: 9, 16, 48>}, {pipeline_mode = #tpu.pipeline_mode<synchronous>, transform_indices = @transform_20, window_bounds = array<i64: 16, 1>}, {pipeline_mode = #tpu.pipeline_mode<synchronous>, transform_indices = @transform_21, window_bounds = array<i64: 9, 16, 16>}, {pipeline_mode = #tpu.pipeline_mode<synchronous>, transform_indices = @transform_22, window_bounds = array<i64: 16, 1>}, {pipeline_mode = #tpu.pipeline_mode<synchronous>, transform_indices = @transform_23, window_bounds = array<i64: 9, 8, 24>}, {pipeline_mode = #tpu.pipeline_mode<synchronous>, transform_indices = @transform_24, window_bounds = array<i64: 8, 1>}, {pipeline_mode = #tpu.pipeline_mode<synchronous>, transform_indices = @transform_25, window_bounds = array<i64: 9, 8, 8>}, {pipeline_mode = #tpu.pipeline_mode<synchronous>, transform_indices = @transform_26, window_bounds = array<i64: 8, 1>}, {pipeline_mode = #tpu.pipeline_mode<synchronous>, transform_indices = @transform_27, window_bounds = array<i64: 9, 4, 12>}, {pipeline_mode = #tpu.pipeline_mode<synchronous>, transform_indices = @transform_28, window_bounds = array<i64: 4, 1>}, {pipeline_mode = #tpu.pipeline_mode<synchronous>, transform_indices = @transform_29, window_bounds = array<i64: 9, 4, 4>}, {pipeline_mode = #tpu.pipeline_mode<synchronous>, transform_indices = @transform_30, window_bounds = array<i64: 4, 1>}, {pipeline_mode = #tpu.pipeline_mode<synchronous>, transform_indices = @transform_31, window_bounds = array<i64: 512, 128>}, {pipeline_mode = #tpu.pipeline_mode<synchronous>, transform_indices = @transform_32, window_bounds = array<i64: 128, 32>}, {pipeline_mode = #tpu.pipeline_mode<synchronous>, transform_indices = @transform_33, window_bounds = array<i64: 32, 8>}, {pipeline_mode = #tpu.pipeline_mode<synchronous>, transform_indices = @transform_34, window_bounds = array<i64: 8, 32>}, {pipeline_mode = #tpu.pipeline_mode<synchronous>, transform_indices = @transform_35, window_bounds = array<i64: 32, 128>}, {pipeline_mode = #tpu.pipeline_mode<synchronous>, transform_indices = @transform_36, window_bounds = array<i64: 128, 512>}, {pipeline_mode = #tpu.pipeline_mode<synchronous>, transform_indices = @transform_37, window_bounds = array<i64: 4, 512>}]} {
    %0 = tpu.iota {dimensions = array<i32: 1>} : vector<1x512xi32>
    %c15_i32 = arith.constant 15 : i32
    %1 = vector.broadcast %c15_i32 : i32 to vector<1x512xi32>
    %2 = arith.andi %0, %1 : vector<1x512xi32>
    %c4_i32 = arith.constant 4 : i32
    %3 = vector.broadcast %c4_i32 : i32 to vector<1x512xi32>
    %4 = arith.shrsi %0, %3 : vector<1x512xi32>
    %c15_i32_0 = arith.constant 15 : i32
    %5 = vector.broadcast %c15_i32_0 : i32 to vector<1x512xi32>
    %6 = arith.andi %4, %5 : vector<1x512xi32>
    %c0_i32 = arith.constant 0 : i32
    %7 = vector.broadcast %c0_i32 : i32 to vector<1x512xi32>
    %8 = arith.cmpi sgt, %6, %7 : vector<1x512xi32>
    %cst = arith.constant 1.000000e+00 : f32
    %cst_1 = arith.constant 0.000000e+00 : f32
    %9 = vector.broadcast %cst : f32 to vector<1x512xf32>
    %10 = vector.broadcast %cst_1 : f32 to vector<1x512xf32>
    %11 = arith.select %8, %9, %10 : vector<1x512xi1>, vector<1x512xf32>
    %c15_i32_2 = arith.constant 15 : i32
    %12 = vector.broadcast %c15_i32_2 : i32 to vector<1x512xi32>
    %13 = arith.cmpi slt, %6, %12 : vector<1x512xi32>
    %cst_3 = arith.constant 1.000000e+00 : f32
    %cst_4 = arith.constant 0.000000e+00 : f32
    %14 = vector.broadcast %cst_3 : f32 to vector<1x512xf32>
    %15 = vector.broadcast %cst_4 : f32 to vector<1x512xf32>
    %16 = arith.select %13, %14, %15 : vector<1x512xi1>, vector<1x512xf32>
    %c0_i32_5 = arith.constant 0 : i32
    %17 = vector.broadcast %c0_i32_5 : i32 to vector<1x512xi32>
    %18 = arith.cmpi sgt, %2, %17 : vector<1x512xi32>
    %cst_6 = arith.constant 1.000000e+00 : f32
    %cst_7 = arith.constant 0.000000e+00 : f32
    %19 = vector.broadcast %cst_6 : f32 to vector<1x512xf32>
    %20 = vector.broadcast %cst_7 : f32 to vector<1x512xf32>
    %21 = arith.select %18, %19, %20 : vector<1x512xi1>, vector<1x512xf32>
    %c15_i32_8 = arith.constant 15 : i32
    %22 = vector.broadcast %c15_i32_8 : i32 to vector<1x512xi32>
    %23 = arith.cmpi slt, %2, %22 : vector<1x512xi32>
    %cst_9 = arith.constant 1.000000e+00 : f32
    %cst_10 = arith.constant 0.000000e+00 : f32
    %24 = vector.broadcast %cst_9 : f32 to vector<1x512xf32>
    %25 = vector.broadcast %cst_10 : f32 to vector<1x512xf32>
    %26 = arith.select %23, %24, %25 : vector<1x512xi1>, vector<1x512xf32>
    %27 = arith.mulf %11, %21 : vector<1x512xf32>
    %28 = arith.mulf %11, %26 : vector<1x512xf32>
    %29 = arith.mulf %16, %21 : vector<1x512xf32>
    %30 = arith.mulf %16, %26 : vector<1x512xf32>
    %31 = tpu.iota {dimensions = array<i32: 1>} : vector<1x128xi32>
    %c7_i32 = arith.constant 7 : i32
    %32 = vector.broadcast %c7_i32 : i32 to vector<1x128xi32>
    %33 = arith.andi %31, %32 : vector<1x128xi32>
    %c3_i32 = arith.constant 3 : i32
    %34 = vector.broadcast %c3_i32 : i32 to vector<1x128xi32>
    %35 = arith.shrsi %31, %34 : vector<1x128xi32>
    %c7_i32_11 = arith.constant 7 : i32
    %36 = vector.broadcast %c7_i32_11 : i32 to vector<1x128xi32>
    %37 = arith.andi %35, %36 : vector<1x128xi32>
    %c0_i32_12 = arith.constant 0 : i32
    %38 = vector.broadcast %c0_i32_12 : i32 to vector<1x128xi32>
    %39 = arith.cmpi sgt, %37, %38 : vector<1x128xi32>
    %cst_13 = arith.constant 1.000000e+00 : f32
    %cst_14 = arith.constant 0.000000e+00 : f32
    %40 = vector.broadcast %cst_13 : f32 to vector<1x128xf32>
    %41 = vector.broadcast %cst_14 : f32 to vector<1x128xf32>
    %42 = arith.select %39, %40, %41 : vector<1x128xi1>, vector<1x128xf32>
    %c7_i32_15 = arith.constant 7 : i32
    %43 = vector.broadcast %c7_i32_15 : i32 to vector<1x128xi32>
    %44 = arith.cmpi slt, %37, %43 : vector<1x128xi32>
    %cst_16 = arith.constant 1.000000e+00 : f32
    %cst_17 = arith.constant 0.000000e+00 : f32
    %45 = vector.broadcast %cst_16 : f32 to vector<1x128xf32>
    %46 = vector.broadcast %cst_17 : f32 to vector<1x128xf32>
    %47 = arith.select %44, %45, %46 : vector<1x128xi1>, vector<1x128xf32>
    %c0_i32_18 = arith.constant 0 : i32
    %48 = vector.broadcast %c0_i32_18 : i32 to vector<1x128xi32>
    %49 = arith.cmpi sgt, %33, %48 : vector<1x128xi32>
    %cst_19 = arith.constant 1.000000e+00 : f32
    %cst_20 = arith.constant 0.000000e+00 : f32
    %50 = vector.broadcast %cst_19 : f32 to vector<1x128xf32>
    %51 = vector.broadcast %cst_20 : f32 to vector<1x128xf32>
    %52 = arith.select %49, %50, %51 : vector<1x128xi1>, vector<1x128xf32>
    %c7_i32_21 = arith.constant 7 : i32
    %53 = vector.broadcast %c7_i32_21 : i32 to vector<1x128xi32>
    %54 = arith.cmpi slt, %33, %53 : vector<1x128xi32>
    %cst_22 = arith.constant 1.000000e+00 : f32
    %cst_23 = arith.constant 0.000000e+00 : f32
    %55 = vector.broadcast %cst_22 : f32 to vector<1x128xf32>
    %56 = vector.broadcast %cst_23 : f32 to vector<1x128xf32>
    %57 = arith.select %54, %55, %56 : vector<1x128xi1>, vector<1x128xf32>
    %58 = arith.mulf %42, %52 : vector<1x128xf32>
    %59 = arith.mulf %42, %57 : vector<1x128xf32>
    %60 = arith.mulf %47, %52 : vector<1x128xf32>
    %61 = arith.mulf %47, %57 : vector<1x128xf32>
    %62 = tpu.iota {dimensions = array<i32: 1>} : vector<1x32xi32>
    %c3_i32_24 = arith.constant 3 : i32
    %63 = vector.broadcast %c3_i32_24 : i32 to vector<1x32xi32>
    %64 = arith.andi %62, %63 : vector<1x32xi32>
    %c2_i32 = arith.constant 2 : i32
    %65 = vector.broadcast %c2_i32 : i32 to vector<1x32xi32>
    %66 = arith.shrsi %62, %65 : vector<1x32xi32>
    %c3_i32_25 = arith.constant 3 : i32
    %67 = vector.broadcast %c3_i32_25 : i32 to vector<1x32xi32>
    %68 = arith.andi %66, %67 : vector<1x32xi32>
    %c0_i32_26 = arith.constant 0 : i32
    %69 = vector.broadcast %c0_i32_26 : i32 to vector<1x32xi32>
    %70 = arith.cmpi sgt, %68, %69 : vector<1x32xi32>
    %cst_27 = arith.constant 1.000000e+00 : f32
    %cst_28 = arith.constant 0.000000e+00 : f32
    %71 = vector.broadcast %cst_27 : f32 to vector<1x32xf32>
    %72 = vector.broadcast %cst_28 : f32 to vector<1x32xf32>
    %73 = arith.select %70, %71, %72 : vector<1x32xi1>, vector<1x32xf32>
    %c3_i32_29 = arith.constant 3 : i32
    %74 = vector.broadcast %c3_i32_29 : i32 to vector<1x32xi32>
    %75 = arith.cmpi slt, %68, %74 : vector<1x32xi32>
    %cst_30 = arith.constant 1.000000e+00 : f32
    %cst_31 = arith.constant 0.000000e+00 : f32
    %76 = vector.broadcast %cst_30 : f32 to vector<1x32xf32>
    %77 = vector.broadcast %cst_31 : f32 to vector<1x32xf32>
    %78 = arith.select %75, %76, %77 : vector<1x32xi1>, vector<1x32xf32>
    %c0_i32_32 = arith.constant 0 : i32
    %79 = vector.broadcast %c0_i32_32 : i32 to vector<1x32xi32>
    %80 = arith.cmpi sgt, %64, %79 : vector<1x32xi32>
    %cst_33 = arith.constant 1.000000e+00 : f32
    %cst_34 = arith.constant 0.000000e+00 : f32
    %81 = vector.broadcast %cst_33 : f32 to vector<1x32xf32>
    %82 = vector.broadcast %cst_34 : f32 to vector<1x32xf32>
    %83 = arith.select %80, %81, %82 : vector<1x32xi1>, vector<1x32xf32>
    %c3_i32_35 = arith.constant 3 : i32
    %84 = vector.broadcast %c3_i32_35 : i32 to vector<1x32xi32>
    %85 = arith.cmpi slt, %64, %84 : vector<1x32xi32>
    %cst_36 = arith.constant 1.000000e+00 : f32
    %cst_37 = arith.constant 0.000000e+00 : f32
    %86 = vector.broadcast %cst_36 : f32 to vector<1x32xf32>
    %87 = vector.broadcast %cst_37 : f32 to vector<1x32xf32>
    %88 = arith.select %85, %86, %87 : vector<1x32xi1>, vector<1x32xf32>
    %89 = arith.mulf %73, %83 : vector<1x32xf32>
    %90 = arith.mulf %73, %88 : vector<1x32xf32>
    %91 = arith.mulf %78, %83 : vector<1x32xf32>
    %92 = arith.mulf %78, %88 : vector<1x32xf32>
    %c0 = arith.constant 0 : index
    %c0_38 = arith.constant 0 : index
    %93 = vector.load %arg1[%c0, %c0_38] : memref<4x512xf32, #tpu.memory_space<vmem>>, vector<4x512xf32>
    %94 = vector.extract_strided_slice %93 {offsets = [0, 495], sizes = [4, 17], strides = [1, 1]} : vector<4x512xf32> to vector<4x17xf32>
    %95 = vector.extract_strided_slice %93 {offsets = [0, 0], sizes = [4, 495], strides = [1, 1]} : vector<4x512xf32> to vector<4x495xf32>
    %96 = tpu.concatenate %94, %95 in 1 : vector<4x17xf32>, vector<4x495xf32> -> vector<4x512xf32>
    %97 = vector.broadcast %27 : vector<1x512xf32> to vector<4x512xf32>
    %98 = arith.mulf %96, %97 : vector<4x512xf32>
    %c0_39 = arith.constant 0 : index
    %c0_40 = arith.constant 0 : index
    %c0_41 = arith.constant 0 : index
    %99 = vector.load %arg2[%c0_39, %c0_40, %c0_41] : memref<9x8x4xf32, #tpu.memory_space<vmem>>, vector<1x8x4xf32>
    %100 = vector.shape_cast %99 : vector<1x8x4xf32> to vector<8x4xf32>
    %cst_42 = arith.constant dense<0.000000e+00> : vector<8x512xf32>
    %101 = tpu.matmul %100, %98, %cst_42 {dimension_numbers = #tpu.dot_dimension_numbers<[1], [0], [0], [1], [0, 0, 1, 1], [], []>} : vector<8x4xf32>, vector<4x512xf32>, vector<8x512xf32> -> vector<8x512xf32>
    %102 = vector.extract_strided_slice %93 {offsets = [0, 496], sizes = [4, 16], strides = [1, 1]} : vector<4x512xf32> to vector<4x16xf32>
    %103 = vector.extract_strided_slice %93 {offsets = [0, 0], sizes = [4, 496], strides = [1, 1]} : vector<4x512xf32> to vector<4x496xf32>
    %104 = tpu.concatenate %102, %103 in 1 : vector<4x16xf32>, vector<4x496xf32> -> vector<4x512xf32>
    %105 = vector.broadcast %11 : vector<1x512xf32> to vector<4x512xf32>
    %106 = arith.mulf %104, %105 : vector<4x512xf32>
    %c1 = arith.constant 1 : index
    %c0_43 = arith.constant 0 : index
    %c0_44 = arith.constant 0 : index
    %107 = vector.load %arg2[%c1, %c0_43, %c0_44] : memref<9x8x4xf32, #tpu.memory_space<vmem>>, vector<1x8x4xf32>
    %108 = vector.shape_cast %107 : vector<1x8x4xf32> to vector<8x4xf32>
    %cst_45 = arith.constant dense<0.000000e+00> : vector<8x512xf32>
    %109 = tpu.matmul %108, %106, %cst_45 {dimension_numbers = #tpu.dot_dimension_numbers<[1], [0], [0], [1], [0, 0, 1, 1], [], []>} : vector<8x4xf32>, vector<4x512xf32>, vector<8x512xf32> -> vector<8x512xf32>
    %110 = arith.addf %101, %109 : vector<8x512xf32>
    %111 = vector.extract_strided_slice %93 {offsets = [0, 497], sizes = [4, 15], strides = [1, 1]} : vector<4x512xf32> to vector<4x15xf32>
    %112 = vector.extract_strided_slice %93 {offsets = [0, 0], sizes = [4, 497], strides = [1, 1]} : vector<4x512xf32> to vector<4x497xf32>
    %113 = tpu.concatenate %111, %112 in 1 : vector<4x15xf32>, vector<4x497xf32> -> vector<4x512xf32>
    %114 = vector.broadcast %28 : vector<1x512xf32> to vector<4x512xf32>
    %115 = arith.mulf %113, %114 : vector<4x512xf32>
    %c2 = arith.constant 2 : index
    %c0_46 = arith.constant 0 : index
    %c0_47 = arith.constant 0 : index
    %116 = vector.load %arg2[%c2, %c0_46, %c0_47] : memref<9x8x4xf32, #tpu.memory_space<vmem>>, vector<1x8x4xf32>
    %117 = vector.shape_cast %116 : vector<1x8x4xf32> to vector<8x4xf32>
    %cst_48 = arith.constant dense<0.000000e+00> : vector<8x512xf32>
    %118 = tpu.matmul %117, %115, %cst_48 {dimension_numbers = #tpu.dot_dimension_numbers<[1], [0], [0], [1], [0, 0, 1, 1], [], []>} : vector<8x4xf32>, vector<4x512xf32>, vector<8x512xf32> -> vector<8x512xf32>
    %119 = arith.addf %110, %118 : vector<8x512xf32>
    %120 = vector.extract_strided_slice %93 {offsets = [0, 511], sizes = [4, 1], strides = [1, 1]} : vector<4x512xf32> to vector<4x1xf32>
    %121 = vector.extract_strided_slice %93 {offsets = [0, 0], sizes = [4, 511], strides = [1, 1]} : vector<4x512xf32> to vector<4x511xf32>
    %122 = tpu.concatenate %120, %121 in 1 : vector<4x1xf32>, vector<4x511xf32> -> vector<4x512xf32>
    %123 = vector.broadcast %21 : vector<1x512xf32> to vector<4x512xf32>
    %124 = arith.mulf %122, %123 : vector<4x512xf32>
    %c3 = arith.constant 3 : index
    %c0_49 = arith.constant 0 : index
    %c0_50 = arith.constant 0 : index
    %125 = vector.load %arg2[%c3, %c0_49, %c0_50] : memref<9x8x4xf32, #tpu.memory_space<vmem>>, vector<1x8x4xf32>
    %126 = vector.shape_cast %125 : vector<1x8x4xf32> to vector<8x4xf32>
    %cst_51 = arith.constant dense<0.000000e+00> : vector<8x512xf32>
    %127 = tpu.matmul %126, %124, %cst_51 {dimension_numbers = #tpu.dot_dimension_numbers<[1], [0], [0], [1], [0, 0, 1, 1], [], []>} : vector<8x4xf32>, vector<4x512xf32>, vector<8x512xf32> -> vector<8x512xf32>
    %128 = arith.addf %119, %127 : vector<8x512xf32>
    %c4 = arith.constant 4 : index
    %c0_52 = arith.constant 0 : index
    %c0_53 = arith.constant 0 : index
    %129 = vector.load %arg2[%c4, %c0_52, %c0_53] : memref<9x8x4xf32, #tpu.memory_space<vmem>>, vector<1x8x4xf32>
    %130 = vector.shape_cast %129 : vector<1x8x4xf32> to vector<8x4xf32>
    %cst_54 = arith.constant dense<0.000000e+00> : vector<8x512xf32>
    %131 = tpu.matmul %130, %93, %cst_54 {dimension_numbers = #tpu.dot_dimension_numbers<[1], [0], [0], [1], [0, 0, 1, 1], [], []>} : vector<8x4xf32>, vector<4x512xf32>, vector<8x512xf32> -> vector<8x512xf32>
    %132 = arith.addf %128, %131 : vector<8x512xf32>
    %133 = vector.extract_strided_slice %93 {offsets = [0, 1], sizes = [4, 511], strides = [1, 1]} : vector<4x512xf32> to vector<4x511xf32>
    %134 = vector.extract_strided_slice %93 {offsets = [0, 0], sizes = [4, 1], strides = [1, 1]} : vector<4x512xf32> to vector<4x1xf32>
    %135 = tpu.concatenate %133, %134 in 1 : vector<4x511xf32>, vector<4x1xf32> -> vector<4x512xf32>
    %136 = vector.broadcast %26 : vector<1x512xf32> to vector<4x512xf32>
    %137 = arith.mulf %135, %136 : vector<4x512xf32>
    %c5 = arith.constant 5 : index
    %c0_55 = arith.constant 0 : index
    %c0_56 = arith.constant 0 : index
    %138 = vector.load %arg2[%c5, %c0_55, %c0_56] : memref<9x8x4xf32, #tpu.memory_space<vmem>>, vector<1x8x4xf32>
    %139 = vector.shape_cast %138 : vector<1x8x4xf32> to vector<8x4xf32>
    %cst_57 = arith.constant dense<0.000000e+00> : vector<8x512xf32>
    %140 = tpu.matmul %139, %137, %cst_57 {dimension_numbers = #tpu.dot_dimension_numbers<[1], [0], [0], [1], [0, 0, 1, 1], [], []>} : vector<8x4xf32>, vector<4x512xf32>, vector<8x512xf32> -> vector<8x512xf32>
    %141 = arith.addf %132, %140 : vector<8x512xf32>
    %142 = vector.extract_strided_slice %93 {offsets = [0, 15], sizes = [4, 497], strides = [1, 1]} : vector<4x512xf32> to vector<4x497xf32>
    %143 = vector.extract_strided_slice %93 {offsets = [0, 0], sizes = [4, 15], strides = [1, 1]} : vector<4x512xf32> to vector<4x15xf32>
    %144 = tpu.concatenate %142, %143 in 1 : vector<4x497xf32>, vector<4x15xf32> -> vector<4x512xf32>
    %145 = vector.broadcast %29 : vector<1x512xf32> to vector<4x512xf32>
    %146 = arith.mulf %144, %145 : vector<4x512xf32>
    %c6 = arith.constant 6 : index
    %c0_58 = arith.constant 0 : index
    %c0_59 = arith.constant 0 : index
    %147 = vector.load %arg2[%c6, %c0_58, %c0_59] : memref<9x8x4xf32, #tpu.memory_space<vmem>>, vector<1x8x4xf32>
    %148 = vector.shape_cast %147 : vector<1x8x4xf32> to vector<8x4xf32>
    %cst_60 = arith.constant dense<0.000000e+00> : vector<8x512xf32>
    %149 = tpu.matmul %148, %146, %cst_60 {dimension_numbers = #tpu.dot_dimension_numbers<[1], [0], [0], [1], [0, 0, 1, 1], [], []>} : vector<8x4xf32>, vector<4x512xf32>, vector<8x512xf32> -> vector<8x512xf32>
    %150 = arith.addf %141, %149 : vector<8x512xf32>
    %151 = vector.extract_strided_slice %93 {offsets = [0, 16], sizes = [4, 496], strides = [1, 1]} : vector<4x512xf32> to vector<4x496xf32>
    %152 = vector.extract_strided_slice %93 {offsets = [0, 0], sizes = [4, 16], strides = [1, 1]} : vector<4x512xf32> to vector<4x16xf32>
    %153 = tpu.concatenate %151, %152 in 1 : vector<4x496xf32>, vector<4x16xf32> -> vector<4x512xf32>
    %154 = vector.broadcast %16 : vector<1x512xf32> to vector<4x512xf32>
    %155 = arith.mulf %153, %154 : vector<4x512xf32>
    %c7 = arith.constant 7 : index
    %c0_61 = arith.constant 0 : index
    %c0_62 = arith.constant 0 : index
    %156 = vector.load %arg2[%c7, %c0_61, %c0_62] : memref<9x8x4xf32, #tpu.memory_space<vmem>>, vector<1x8x4xf32>
    %157 = vector.shape_cast %156 : vector<1x8x4xf32> to vector<8x4xf32>
    %cst_63 = arith.constant dense<0.000000e+00> : vector<8x512xf32>
    %158 = tpu.matmul %157, %155, %cst_63 {dimension_numbers = #tpu.dot_dimension_numbers<[1], [0], [0], [1], [0, 0, 1, 1], [], []>} : vector<8x4xf32>, vector<4x512xf32>, vector<8x512xf32> -> vector<8x512xf32>
    %159 = arith.addf %150, %158 : vector<8x512xf32>
    %160 = vector.extract_strided_slice %93 {offsets = [0, 17], sizes = [4, 495], strides = [1, 1]} : vector<4x512xf32> to vector<4x495xf32>
    %161 = vector.extract_strided_slice %93 {offsets = [0, 0], sizes = [4, 17], strides = [1, 1]} : vector<4x512xf32> to vector<4x17xf32>
    %162 = tpu.concatenate %160, %161 in 1 : vector<4x495xf32>, vector<4x17xf32> -> vector<4x512xf32>
    %163 = vector.broadcast %30 : vector<1x512xf32> to vector<4x512xf32>
    %164 = arith.mulf %162, %163 : vector<4x512xf32>
    %c8 = arith.constant 8 : index
    %c0_64 = arith.constant 0 : index
    %c0_65 = arith.constant 0 : index
    %165 = vector.load %arg2[%c8, %c0_64, %c0_65] : memref<9x8x4xf32, #tpu.memory_space<vmem>>, vector<1x8x4xf32>
    %166 = vector.shape_cast %165 : vector<1x8x4xf32> to vector<8x4xf32>
    %cst_66 = arith.constant dense<0.000000e+00> : vector<8x512xf32>
    %167 = tpu.matmul %166, %164, %cst_66 {dimension_numbers = #tpu.dot_dimension_numbers<[1], [0], [0], [1], [0, 0, 1, 1], [], []>} : vector<8x4xf32>, vector<4x512xf32>, vector<8x512xf32> -> vector<8x512xf32>
    %168 = arith.addf %159, %167 : vector<8x512xf32>
    %c0_67 = arith.constant 0 : index
    %c0_68 = arith.constant 0 : index
    %169 = vector.load %arg3[%c0_67, %c0_68] : memref<8x1xf32, #tpu.memory_space<vmem>>, vector<8x1xf32>
    %170 = vector.broadcast %169 : vector<8x1xf32> to vector<8x512xf32>
    %171 = arith.addf %168, %170 : vector<8x512xf32>
    %cst_69 = arith.constant 0.000000e+00 : f32
    %172 = vector.broadcast %cst_69 : f32 to vector<8x512xf32>
    %173 = arith.maximumf %171, %172 : vector<8x512xf32>
    %174 = vector.extract_strided_slice %173 {offsets = [0, 495], sizes = [8, 17], strides = [1, 1]} : vector<8x512xf32> to vector<8x17xf32>
    %175 = vector.extract_strided_slice %173 {offsets = [0, 0], sizes = [8, 495], strides = [1, 1]} : vector<8x512xf32> to vector<8x495xf32>
    %176 = tpu.concatenate %174, %175 in 1 : vector<8x17xf32>, vector<8x495xf32> -> vector<8x512xf32>
    %177 = vector.broadcast %27 : vector<1x512xf32> to vector<8x512xf32>
    %178 = arith.mulf %176, %177 : vector<8x512xf32>
    %c0_70 = arith.constant 0 : index
    %c0_71 = arith.constant 0 : index
    %c0_72 = arith.constant 0 : index
    %179 = vector.load %arg4[%c0_70, %c0_71, %c0_72] : memref<9x8x8xf32, #tpu.memory_space<vmem>>, vector<1x8x8xf32>
    %180 = vector.shape_cast %179 : vector<1x8x8xf32> to vector<8x8xf32>
    %cst_73 = arith.constant dense<0.000000e+00> : vector<8x512xf32>
    %181 = tpu.matmul %180, %178, %cst_73 {dimension_numbers = #tpu.dot_dimension_numbers<[1], [0], [0], [1], [0, 0, 1, 1], [], []>} : vector<8x8xf32>, vector<8x512xf32>, vector<8x512xf32> -> vector<8x512xf32>
    %182 = vector.extract_strided_slice %173 {offsets = [0, 496], sizes = [8, 16], strides = [1, 1]} : vector<8x512xf32> to vector<8x16xf32>
    %183 = vector.extract_strided_slice %173 {offsets = [0, 0], sizes = [8, 496], strides = [1, 1]} : vector<8x512xf32> to vector<8x496xf32>
    %184 = tpu.concatenate %182, %183 in 1 : vector<8x16xf32>, vector<8x496xf32> -> vector<8x512xf32>
    %185 = vector.broadcast %11 : vector<1x512xf32> to vector<8x512xf32>
    %186 = arith.mulf %184, %185 : vector<8x512xf32>
    %c1_74 = arith.constant 1 : index
    %c0_75 = arith.constant 0 : index
    %c0_76 = arith.constant 0 : index
    %187 = vector.load %arg4[%c1_74, %c0_75, %c0_76] : memref<9x8x8xf32, #tpu.memory_space<vmem>>, vector<1x8x8xf32>
    %188 = vector.shape_cast %187 : vector<1x8x8xf32> to vector<8x8xf32>
    %cst_77 = arith.constant dense<0.000000e+00> : vector<8x512xf32>
    %189 = tpu.matmul %188, %186, %cst_77 {dimension_numbers = #tpu.dot_dimension_numbers<[1], [0], [0], [1], [0, 0, 1, 1], [], []>} : vector<8x8xf32>, vector<8x512xf32>, vector<8x512xf32> -> vector<8x512xf32>
    %190 = arith.addf %181, %189 : vector<8x512xf32>
    %191 = vector.extract_strided_slice %173 {offsets = [0, 497], sizes = [8, 15], strides = [1, 1]} : vector<8x512xf32> to vector<8x15xf32>
    %192 = vector.extract_strided_slice %173 {offsets = [0, 0], sizes = [8, 497], strides = [1, 1]} : vector<8x512xf32> to vector<8x497xf32>
    %193 = tpu.concatenate %191, %192 in 1 : vector<8x15xf32>, vector<8x497xf32> -> vector<8x512xf32>
    %194 = vector.broadcast %28 : vector<1x512xf32> to vector<8x512xf32>
    %195 = arith.mulf %193, %194 : vector<8x512xf32>
    %c2_78 = arith.constant 2 : index
    %c0_79 = arith.constant 0 : index
    %c0_80 = arith.constant 0 : index
    %196 = vector.load %arg4[%c2_78, %c0_79, %c0_80] : memref<9x8x8xf32, #tpu.memory_space<vmem>>, vector<1x8x8xf32>
    %197 = vector.shape_cast %196 : vector<1x8x8xf32> to vector<8x8xf32>
    %cst_81 = arith.constant dense<0.000000e+00> : vector<8x512xf32>
    %198 = tpu.matmul %197, %195, %cst_81 {dimension_numbers = #tpu.dot_dimension_numbers<[1], [0], [0], [1], [0, 0, 1, 1], [], []>} : vector<8x8xf32>, vector<8x512xf32>, vector<8x512xf32> -> vector<8x512xf32>
    %199 = arith.addf %190, %198 : vector<8x512xf32>
    %200 = vector.extract_strided_slice %173 {offsets = [0, 511], sizes = [8, 1], strides = [1, 1]} : vector<8x512xf32> to vector<8x1xf32>
    %201 = vector.extract_strided_slice %173 {offsets = [0, 0], sizes = [8, 511], strides = [1, 1]} : vector<8x512xf32> to vector<8x511xf32>
    %202 = tpu.concatenate %200, %201 in 1 : vector<8x1xf32>, vector<8x511xf32> -> vector<8x512xf32>
    %203 = vector.broadcast %21 : vector<1x512xf32> to vector<8x512xf32>
    %204 = arith.mulf %202, %203 : vector<8x512xf32>
    %c3_82 = arith.constant 3 : index
    %c0_83 = arith.constant 0 : index
    %c0_84 = arith.constant 0 : index
    %205 = vector.load %arg4[%c3_82, %c0_83, %c0_84] : memref<9x8x8xf32, #tpu.memory_space<vmem>>, vector<1x8x8xf32>
    %206 = vector.shape_cast %205 : vector<1x8x8xf32> to vector<8x8xf32>
    %cst_85 = arith.constant dense<0.000000e+00> : vector<8x512xf32>
    %207 = tpu.matmul %206, %204, %cst_85 {dimension_numbers = #tpu.dot_dimension_numbers<[1], [0], [0], [1], [0, 0, 1, 1], [], []>} : vector<8x8xf32>, vector<8x512xf32>, vector<8x512xf32> -> vector<8x512xf32>
    %208 = arith.addf %199, %207 : vector<8x512xf32>
    %c4_86 = arith.constant 4 : index
    %c0_87 = arith.constant 0 : index
    %c0_88 = arith.constant 0 : index
    %209 = vector.load %arg4[%c4_86, %c0_87, %c0_88] : memref<9x8x8xf32, #tpu.memory_space<vmem>>, vector<1x8x8xf32>
    %210 = vector.shape_cast %209 : vector<1x8x8xf32> to vector<8x8xf32>
    %cst_89 = arith.constant dense<0.000000e+00> : vector<8x512xf32>
    %211 = tpu.matmul %210, %173, %cst_89 {dimension_numbers = #tpu.dot_dimension_numbers<[1], [0], [0], [1], [0, 0, 1, 1], [], []>} : vector<8x8xf32>, vector<8x512xf32>, vector<8x512xf32> -> vector<8x512xf32>
    %212 = arith.addf %208, %211 : vector<8x512xf32>
    %213 = vector.extract_strided_slice %173 {offsets = [0, 1], sizes = [8, 511], strides = [1, 1]} : vector<8x512xf32> to vector<8x511xf32>
    %214 = vector.extract_strided_slice %173 {offsets = [0, 0], sizes = [8, 1], strides = [1, 1]} : vector<8x512xf32> to vector<8x1xf32>
    %215 = tpu.concatenate %213, %214 in 1 : vector<8x511xf32>, vector<8x1xf32> -> vector<8x512xf32>
    %216 = vector.broadcast %26 : vector<1x512xf32> to vector<8x512xf32>
    %217 = arith.mulf %215, %216 : vector<8x512xf32>
    %c5_90 = arith.constant 5 : index
    %c0_91 = arith.constant 0 : index
    %c0_92 = arith.constant 0 : index
    %218 = vector.load %arg4[%c5_90, %c0_91, %c0_92] : memref<9x8x8xf32, #tpu.memory_space<vmem>>, vector<1x8x8xf32>
    %219 = vector.shape_cast %218 : vector<1x8x8xf32> to vector<8x8xf32>
    %cst_93 = arith.constant dense<0.000000e+00> : vector<8x512xf32>
    %220 = tpu.matmul %219, %217, %cst_93 {dimension_numbers = #tpu.dot_dimension_numbers<[1], [0], [0], [1], [0, 0, 1, 1], [], []>} : vector<8x8xf32>, vector<8x512xf32>, vector<8x512xf32> -> vector<8x512xf32>
    %221 = arith.addf %212, %220 : vector<8x512xf32>
    %222 = vector.extract_strided_slice %173 {offsets = [0, 15], sizes = [8, 497], strides = [1, 1]} : vector<8x512xf32> to vector<8x497xf32>
    %223 = vector.extract_strided_slice %173 {offsets = [0, 0], sizes = [8, 15], strides = [1, 1]} : vector<8x512xf32> to vector<8x15xf32>
    %224 = tpu.concatenate %222, %223 in 1 : vector<8x497xf32>, vector<8x15xf32> -> vector<8x512xf32>
    %225 = vector.broadcast %29 : vector<1x512xf32> to vector<8x512xf32>
    %226 = arith.mulf %224, %225 : vector<8x512xf32>
    %c6_94 = arith.constant 6 : index
    %c0_95 = arith.constant 0 : index
    %c0_96 = arith.constant 0 : index
    %227 = vector.load %arg4[%c6_94, %c0_95, %c0_96] : memref<9x8x8xf32, #tpu.memory_space<vmem>>, vector<1x8x8xf32>
    %228 = vector.shape_cast %227 : vector<1x8x8xf32> to vector<8x8xf32>
    %cst_97 = arith.constant dense<0.000000e+00> : vector<8x512xf32>
    %229 = tpu.matmul %228, %226, %cst_97 {dimension_numbers = #tpu.dot_dimension_numbers<[1], [0], [0], [1], [0, 0, 1, 1], [], []>} : vector<8x8xf32>, vector<8x512xf32>, vector<8x512xf32> -> vector<8x512xf32>
    %230 = arith.addf %221, %229 : vector<8x512xf32>
    %231 = vector.extract_strided_slice %173 {offsets = [0, 16], sizes = [8, 496], strides = [1, 1]} : vector<8x512xf32> to vector<8x496xf32>
    %232 = vector.extract_strided_slice %173 {offsets = [0, 0], sizes = [8, 16], strides = [1, 1]} : vector<8x512xf32> to vector<8x16xf32>
    %233 = tpu.concatenate %231, %232 in 1 : vector<8x496xf32>, vector<8x16xf32> -> vector<8x512xf32>
    %234 = vector.broadcast %16 : vector<1x512xf32> to vector<8x512xf32>
    %235 = arith.mulf %233, %234 : vector<8x512xf32>
    %c7_98 = arith.constant 7 : index
    %c0_99 = arith.constant 0 : index
    %c0_100 = arith.constant 0 : index
    %236 = vector.load %arg4[%c7_98, %c0_99, %c0_100] : memref<9x8x8xf32, #tpu.memory_space<vmem>>, vector<1x8x8xf32>
    %237 = vector.shape_cast %236 : vector<1x8x8xf32> to vector<8x8xf32>
    %cst_101 = arith.constant dense<0.000000e+00> : vector<8x512xf32>
    %238 = tpu.matmul %237, %235, %cst_101 {dimension_numbers = #tpu.dot_dimension_numbers<[1], [0], [0], [1], [0, 0, 1, 1], [], []>} : vector<8x8xf32>, vector<8x512xf32>, vector<8x512xf32> -> vector<8x512xf32>
    %239 = arith.addf %230, %238 : vector<8x512xf32>
    %240 = vector.extract_strided_slice %173 {offsets = [0, 17], sizes = [8, 495], strides = [1, 1]} : vector<8x512xf32> to vector<8x495xf32>
    %241 = vector.extract_strided_slice %173 {offsets = [0, 0], sizes = [8, 17], strides = [1, 1]} : vector<8x512xf32> to vector<8x17xf32>
    %242 = tpu.concatenate %240, %241 in 1 : vector<8x495xf32>, vector<8x17xf32> -> vector<8x512xf32>
    %243 = vector.broadcast %30 : vector<1x512xf32> to vector<8x512xf32>
    %244 = arith.mulf %242, %243 : vector<8x512xf32>
    %c8_102 = arith.constant 8 : index
    %c0_103 = arith.constant 0 : index
    %c0_104 = arith.constant 0 : index
    %245 = vector.load %arg4[%c8_102, %c0_103, %c0_104] : memref<9x8x8xf32, #tpu.memory_space<vmem>>, vector<1x8x8xf32>
    %246 = vector.shape_cast %245 : vector<1x8x8xf32> to vector<8x8xf32>
    %cst_105 = arith.constant dense<0.000000e+00> : vector<8x512xf32>
    %247 = tpu.matmul %246, %244, %cst_105 {dimension_numbers = #tpu.dot_dimension_numbers<[1], [0], [0], [1], [0, 0, 1, 1], [], []>} : vector<8x8xf32>, vector<8x512xf32>, vector<8x512xf32> -> vector<8x512xf32>
    %248 = arith.addf %239, %247 : vector<8x512xf32>
    %c0_106 = arith.constant 0 : index
    %c0_107 = arith.constant 0 : index
    %249 = vector.load %arg5[%c0_106, %c0_107] : memref<8x1xf32, #tpu.memory_space<vmem>>, vector<8x1xf32>
    %250 = vector.broadcast %249 : vector<8x1xf32> to vector<8x512xf32>
    %251 = arith.addf %248, %250 : vector<8x512xf32>
    %cst_108 = arith.constant 0.000000e+00 : f32
    %252 = vector.broadcast %cst_108 : f32 to vector<8x512xf32>
    %253 = arith.maximumf %251, %252 : vector<8x512xf32>
    %254 = vector.extract_strided_slice %253 {offsets = [0, 1], sizes = [8, 511], strides = [1, 1]} : vector<8x512xf32> to vector<8x511xf32>
    %255 = vector.extract_strided_slice %253 {offsets = [0, 0], sizes = [8, 1], strides = [1, 1]} : vector<8x512xf32> to vector<8x1xf32>
    %256 = tpu.concatenate %254, %255 in 1 : vector<8x511xf32>, vector<8x1xf32> -> vector<8x512xf32>
    %257 = arith.maximumf %253, %256 : vector<8x512xf32>
    %258 = vector.extract_strided_slice %257 {offsets = [0, 16], sizes = [8, 496], strides = [1, 1]} : vector<8x512xf32> to vector<8x496xf32>
    %259 = vector.extract_strided_slice %257 {offsets = [0, 0], sizes = [8, 16], strides = [1, 1]} : vector<8x512xf32> to vector<8x16xf32>
    %260 = tpu.concatenate %258, %259 in 1 : vector<8x496xf32>, vector<8x16xf32> -> vector<8x512xf32>
    %261 = arith.maximumf %257, %260 : vector<8x512xf32>
    %c0_109 = arith.constant 0 : index
    %c0_110 = arith.constant 0 : index
    %262 = vector.load %arg32[%c0_109, %c0_110] : memref<512x128xf32, #tpu.memory_space<vmem>>, vector<512x128xf32>
    %cst_111 = arith.constant dense<0.000000e+00> : vector<8x128xf32>
    %263 = tpu.matmul %261, %262, %cst_111 {dimension_numbers = #tpu.dot_dimension_numbers<[1], [0], [0], [1], [0, 0, 1, 1], [], []>} : vector<8x512xf32>, vector<512x128xf32>, vector<8x128xf32> -> vector<8x128xf32>
    %c0_112 = arith.constant 0 : index
    %c0_113 = arith.constant 0 : index
    %264 = vector.load %arg14[%c0_112, %c0_113] : memref<8x8xf32, #tpu.memory_space<vmem>>, vector<8x8xf32>
    %cst_114 = arith.constant dense<0.000000e+00> : vector<8x128xf32>
    %265 = tpu.matmul %264, %263, %cst_114 {dimension_numbers = #tpu.dot_dimension_numbers<[1], [0], [0], [1], [0, 0, 1, 1], [], []>} : vector<8x8xf32>, vector<8x128xf32>, vector<8x128xf32> -> vector<8x128xf32>
    %c0_115 = arith.constant 0 : index
    %c0_116 = arith.constant 0 : index
    %266 = vector.load %arg15[%c0_115, %c0_116] : memref<8x1xf32, #tpu.memory_space<vmem>>, vector<8x1xf32>
    %267 = vector.broadcast %266 : vector<8x1xf32> to vector<8x128xf32>
    %268 = arith.addf %265, %267 : vector<8x128xf32>
    %c0_117 = arith.constant 0 : index
    %c0_118 = arith.constant 0 : index
    %269 = vector.load %arg39[%c0_117, %c0_118] : memref<8x128xf32, #tpu.memory_space<vmem>>, vector<8x128xf32>
    tpu.vector_store %arg39[%c0_117, %c0_118], %268 {strides = array<i32>} : memref<8x128xf32, #tpu.memory_space<vmem>>, vector<8x128xf32>,
    %270 = vector.extract_strided_slice %268 {offsets = [0, 119], sizes = [8, 9], strides = [1, 1]} : vector<8x128xf32> to vector<8x9xf32>
    %271 = vector.extract_strided_slice %268 {offsets = [0, 0], sizes = [8, 119], strides = [1, 1]} : vector<8x128xf32> to vector<8x119xf32>
    %272 = tpu.concatenate %270, %271 in 1 : vector<8x9xf32>, vector<8x119xf32> -> vector<8x128xf32>
    %273 = vector.broadcast %58 : vector<1x128xf32> to vector<8x128xf32>
    %274 = arith.mulf %272, %273 : vector<8x128xf32>
    %c0_119 = arith.constant 0 : index
    %c0_120 = arith.constant 0 : index
    %c0_121 = arith.constant 0 : index
    %275 = vector.load %arg6[%c0_119, %c0_120, %c0_121] : memref<9x16x8xf32, #tpu.memory_space<vmem>>, vector<1x16x8xf32>
    %276 = vector.shape_cast %275 : vector<1x16x8xf32> to vector<16x8xf32>
    %cst_122 = arith.constant dense<0.000000e+00> : vector<16x128xf32>
    %277 = tpu.matmul %276, %274, %cst_122 {dimension_numbers = #tpu.dot_dimension_numbers<[1], [0], [0], [1], [0, 0, 1, 1], [], []>} : vector<16x8xf32>, vector<8x128xf32>, vector<16x128xf32> -> vector<16x128xf32>
    %278 = vector.extract_strided_slice %268 {offsets = [0, 120], sizes = [8, 8], strides = [1, 1]} : vector<8x128xf32> to vector<8x8xf32>
    %279 = vector.extract_strided_slice %268 {offsets = [0, 0], sizes = [8, 120], strides = [1, 1]} : vector<8x128xf32> to vector<8x120xf32>
    %280 = tpu.concatenate %278, %279 in 1 : vector<8x8xf32>, vector<8x120xf32> -> vector<8x128xf32>
    %281 = vector.broadcast %42 : vector<1x128xf32> to vector<8x128xf32>
    %282 = arith.mulf %280, %281 : vector<8x128xf32>
    %c1_123 = arith.constant 1 : index
    %c0_124 = arith.constant 0 : index
    %c0_125 = arith.constant 0 : index
    %283 = vector.load %arg6[%c1_123, %c0_124, %c0_125] : memref<9x16x8xf32, #tpu.memory_space<vmem>>, vector<1x16x8xf32>
    %284 = vector.shape_cast %283 : vector<1x16x8xf32> to vector<16x8xf32>
    %cst_126 = arith.constant dense<0.000000e+00> : vector<16x128xf32>
    %285 = tpu.matmul %284, %282, %cst_126 {dimension_numbers = #tpu.dot_dimension_numbers<[1], [0], [0], [1], [0, 0, 1, 1], [], []>} : vector<16x8xf32>, vector<8x128xf32>, vector<16x128xf32> -> vector<16x128xf32>
    %286 = arith.addf %277, %285 : vector<16x128xf32>
    %287 = vector.extract_strided_slice %268 {offsets = [0, 121], sizes = [8, 7], strides = [1, 1]} : vector<8x128xf32> to vector<8x7xf32>
    %288 = vector.extract_strided_slice %268 {offsets = [0, 0], sizes = [8, 121], strides = [1, 1]} : vector<8x128xf32> to vector<8x121xf32>
    %289 = tpu.concatenate %287, %288 in 1 : vector<8x7xf32>, vector<8x121xf32> -> vector<8x128xf32>
    %290 = vector.broadcast %59 : vector<1x128xf32> to vector<8x128xf32>
    %291 = arith.mulf %289, %290 : vector<8x128xf32>
    %c2_127 = arith.constant 2 : index
    %c0_128 = arith.constant 0 : index
    %c0_129 = arith.constant 0 : index
    %292 = vector.load %arg6[%c2_127, %c0_128, %c0_129] : memref<9x16x8xf32, #tpu.memory_space<vmem>>, vector<1x16x8xf32>
    %293 = vector.shape_cast %292 : vector<1x16x8xf32> to vector<16x8xf32>
    %cst_130 = arith.constant dense<0.000000e+00> : vector<16x128xf32>
    %294 = tpu.matmul %293, %291, %cst_130 {dimension_numbers = #tpu.dot_dimension_numbers<[1], [0], [0], [1], [0, 0, 1, 1], [], []>} : vector<16x8xf32>, vector<8x128xf32>, vector<16x128xf32> -> vector<16x128xf32>
    %295 = arith.addf %286, %294 : vector<16x128xf32>
    %296 = vector.extract_strided_slice %268 {offsets = [0, 127], sizes = [8, 1], strides = [1, 1]} : vector<8x128xf32> to vector<8x1xf32>
    %297 = vector.extract_strided_slice %268 {offsets = [0, 0], sizes = [8, 127], strides = [1, 1]} : vector<8x128xf32> to vector<8x127xf32>
    %298 = tpu.concatenate %296, %297 in 1 : vector<8x1xf32>, vector<8x127xf32> -> vector<8x128xf32>
    %299 = vector.broadcast %52 : vector<1x128xf32> to vector<8x128xf32>
    %300 = arith.mulf %298, %299 : vector<8x128xf32>
    %c3_131 = arith.constant 3 : index
    %c0_132 = arith.constant 0 : index
    %c0_133 = arith.constant 0 : index
    %301 = vector.load %arg6[%c3_131, %c0_132, %c0_133] : memref<9x16x8xf32, #tpu.memory_space<vmem>>, vector<1x16x8xf32>
    %302 = vector.shape_cast %301 : vector<1x16x8xf32> to vector<16x8xf32>
    %cst_134 = arith.constant dense<0.000000e+00> : vector<16x128xf32>
    %303 = tpu.matmul %302, %300, %cst_134 {dimension_numbers = #tpu.dot_dimension_numbers<[1], [0], [0], [1], [0, 0, 1, 1], [], []>} : vector<16x8xf32>, vector<8x128xf32>, vector<16x128xf32> -> vector<16x128xf32>
    %304 = arith.addf %295, %303 : vector<16x128xf32>
    %c4_135 = arith.constant 4 : index
    %c0_136 = arith.constant 0 : index
    %c0_137 = arith.constant 0 : index
    %305 = vector.load %arg6[%c4_135, %c0_136, %c0_137] : memref<9x16x8xf32, #tpu.memory_space<vmem>>, vector<1x16x8xf32>
    %306 = vector.shape_cast %305 : vector<1x16x8xf32> to vector<16x8xf32>
    %cst_138 = arith.constant dense<0.000000e+00> : vector<16x128xf32>
    %307 = tpu.matmul %306, %268, %cst_138 {dimension_numbers = #tpu.dot_dimension_numbers<[1], [0], [0], [1], [0, 0, 1, 1], [], []>} : vector<16x8xf32>, vector<8x128xf32>, vector<16x128xf32> -> vector<16x128xf32>
    %308 = arith.addf %304, %307 : vector<16x128xf32>
    %309 = vector.extract_strided_slice %268 {offsets = [0, 1], sizes = [8, 127], strides = [1, 1]} : vector<8x128xf32> to vector<8x127xf32>
    %310 = vector.extract_strided_slice %268 {offsets = [0, 0], sizes = [8, 1], strides = [1, 1]} : vector<8x128xf32> to vector<8x1xf32>
    %311 = tpu.concatenate %309, %310 in 1 : vector<8x127xf32>, vector<8x1xf32> -> vector<8x128xf32>
    %312 = vector.broadcast %57 : vector<1x128xf32> to vector<8x128xf32>
    %313 = arith.mulf %311, %312 : vector<8x128xf32>
    %c5_139 = arith.constant 5 : index
    %c0_140 = arith.constant 0 : index
    %c0_141 = arith.constant 0 : index
    %314 = vector.load %arg6[%c5_139, %c0_140, %c0_141] : memref<9x16x8xf32, #tpu.memory_space<vmem>>, vector<1x16x8xf32>
    %315 = vector.shape_cast %314 : vector<1x16x8xf32> to vector<16x8xf32>
    %cst_142 = arith.constant dense<0.000000e+00> : vector<16x128xf32>
    %316 = tpu.matmul %315, %313, %cst_142 {dimension_numbers = #tpu.dot_dimension_numbers<[1], [0], [0], [1], [0, 0, 1, 1], [], []>} : vector<16x8xf32>, vector<8x128xf32>, vector<16x128xf32> -> vector<16x128xf32>
    %317 = arith.addf %308, %316 : vector<16x128xf32>
    %318 = vector.extract_strided_slice %268 {offsets = [0, 7], sizes = [8, 121], strides = [1, 1]} : vector<8x128xf32> to vector<8x121xf32>
    %319 = vector.extract_strided_slice %268 {offsets = [0, 0], sizes = [8, 7], strides = [1, 1]} : vector<8x128xf32> to vector<8x7xf32>
    %320 = tpu.concatenate %318, %319 in 1 : vector<8x121xf32>, vector<8x7xf32> -> vector<8x128xf32>
    %321 = vector.broadcast %60 : vector<1x128xf32> to vector<8x128xf32>
    %322 = arith.mulf %320, %321 : vector<8x128xf32>
    %c6_143 = arith.constant 6 : index
    %c0_144 = arith.constant 0 : index
    %c0_145 = arith.constant 0 : index
    %323 = vector.load %arg6[%c6_143, %c0_144, %c0_145] : memref<9x16x8xf32, #tpu.memory_space<vmem>>, vector<1x16x8xf32>
    %324 = vector.shape_cast %323 : vector<1x16x8xf32> to vector<16x8xf32>
    %cst_146 = arith.constant dense<0.000000e+00> : vector<16x128xf32>
    %325 = tpu.matmul %324, %322, %cst_146 {dimension_numbers = #tpu.dot_dimension_numbers<[1], [0], [0], [1], [0, 0, 1, 1], [], []>} : vector<16x8xf32>, vector<8x128xf32>, vector<16x128xf32> -> vector<16x128xf32>
    %326 = arith.addf %317, %325 : vector<16x128xf32>
    %327 = vector.extract_strided_slice %268 {offsets = [0, 8], sizes = [8, 120], strides = [1, 1]} : vector<8x128xf32> to vector<8x120xf32>
    %328 = vector.extract_strided_slice %268 {offsets = [0, 0], sizes = [8, 8], strides = [1, 1]} : vector<8x128xf32> to vector<8x8xf32>
    %329 = tpu.concatenate %327, %328 in 1 : vector<8x120xf32>, vector<8x8xf32> -> vector<8x128xf32>
    %330 = vector.broadcast %47 : vector<1x128xf32> to vector<8x128xf32>
    %331 = arith.mulf %329, %330 : vector<8x128xf32>
    %c7_147 = arith.constant 7 : index
    %c0_148 = arith.constant 0 : index
    %c0_149 = arith.constant 0 : index
    %332 = vector.load %arg6[%c7_147, %c0_148, %c0_149] : memref<9x16x8xf32, #tpu.memory_space<vmem>>, vector<1x16x8xf32>
    %333 = vector.shape_cast %332 : vector<1x16x8xf32> to vector<16x8xf32>
    %cst_150 = arith.constant dense<0.000000e+00> : vector<16x128xf32>
    %334 = tpu.matmul %333, %331, %cst_150 {dimension_numbers = #tpu.dot_dimension_numbers<[1], [0], [0], [1], [0, 0, 1, 1], [], []>} : vector<16x8xf32>, vector<8x128xf32>, vector<16x128xf32> -> vector<16x128xf32>
    %335 = arith.addf %326, %334 : vector<16x128xf32>
    %336 = vector.extract_strided_slice %268 {offsets = [0, 9], sizes = [8, 119], strides = [1, 1]} : vector<8x128xf32> to vector<8x119xf32>
    %337 = vector.extract_strided_slice %268 {offsets = [0, 0], sizes = [8, 9], strides = [1, 1]} : vector<8x128xf32> to vector<8x9xf32>
    %338 = tpu.concatenate %336, %337 in 1 : vector<8x119xf32>, vector<8x9xf32> -> vector<8x128xf32>
    %339 = vector.broadcast %61 : vector<1x128xf32> to vector<8x128xf32>
    %340 = arith.mulf %338, %339 : vector<8x128xf32>
    %c8_151 = arith.constant 8 : index
    %c0_152 = arith.constant 0 : index
    %c0_153 = arith.constant 0 : index
    %341 = vector.load %arg6[%c8_151, %c0_152, %c0_153] : memref<9x16x8xf32, #tpu.memory_space<vmem>>, vector<1x16x8xf32>
    %342 = vector.shape_cast %341 : vector<1x16x8xf32> to vector<16x8xf32>
    %cst_154 = arith.constant dense<0.000000e+00> : vector<16x128xf32>
    %343 = tpu.matmul %342, %340, %cst_154 {dimension_numbers = #tpu.dot_dimension_numbers<[1], [0], [0], [1], [0, 0, 1, 1], [], []>} : vector<16x8xf32>, vector<8x128xf32>, vector<16x128xf32> -> vector<16x128xf32>
    %344 = arith.addf %335, %343 : vector<16x128xf32>
    %c0_155 = arith.constant 0 : index
    %c0_156 = arith.constant 0 : index
    %345 = vector.load %arg7[%c0_155, %c0_156] : memref<16x1xf32, #tpu.memory_space<vmem>>, vector<16x1xf32>
    %346 = vector.broadcast %345 : vector<16x1xf32> to vector<16x128xf32>
    %347 = arith.addf %344, %346 : vector<16x128xf32>
    %cst_157 = arith.constant 0.000000e+00 : f32
    %348 = vector.broadcast %cst_157 : f32 to vector<16x128xf32>
    %349 = arith.maximumf %347, %348 : vector<16x128xf32>
    %350 = vector.extract_strided_slice %349 {offsets = [0, 119], sizes = [16, 9], strides = [1, 1]} : vector<16x128xf32> to vector<16x9xf32>
    %351 = vector.extract_strided_slice %349 {offsets = [0, 0], sizes = [16, 119], strides = [1, 1]} : vector<16x128xf32> to vector<16x119xf32>
    %352 = tpu.concatenate %350, %351 in 1 : vector<16x9xf32>, vector<16x119xf32> -> vector<16x128xf32>
    %353 = vector.broadcast %58 : vector<1x128xf32> to vector<16x128xf32>
    %354 = arith.mulf %352, %353 : vector<16x128xf32>
    %c0_158 = arith.constant 0 : index
    %c0_159 = arith.constant 0 : index
    %c0_160 = arith.constant 0 : index
    %355 = vector.load %arg8[%c0_158, %c0_159, %c0_160] : memref<9x16x16xf32, #tpu.memory_space<vmem>>, vector<1x16x16xf32>
    %356 = vector.shape_cast %355 : vector<1x16x16xf32> to vector<16x16xf32>
    %cst_161 = arith.constant dense<0.000000e+00> : vector<16x128xf32>
    %357 = tpu.matmul %356, %354, %cst_161 {dimension_numbers = #tpu.dot_dimension_numbers<[1], [0], [0], [1], [0, 0, 1, 1], [], []>} : vector<16x16xf32>, vector<16x128xf32>, vector<16x128xf32> -> vector<16x128xf32>
    %358 = vector.extract_strided_slice %349 {offsets = [0, 120], sizes = [16, 8], strides = [1, 1]} : vector<16x128xf32> to vector<16x8xf32>
    %359 = vector.extract_strided_slice %349 {offsets = [0, 0], sizes = [16, 120], strides = [1, 1]} : vector<16x128xf32> to vector<16x120xf32>
    %360 = tpu.concatenate %358, %359 in 1 : vector<16x8xf32>, vector<16x120xf32> -> vector<16x128xf32>
    %361 = vector.broadcast %42 : vector<1x128xf32> to vector<16x128xf32>
    %362 = arith.mulf %360, %361 : vector<16x128xf32>
    %c1_162 = arith.constant 1 : index
    %c0_163 = arith.constant 0 : index
    %c0_164 = arith.constant 0 : index
    %363 = vector.load %arg8[%c1_162, %c0_163, %c0_164] : memref<9x16x16xf32, #tpu.memory_space<vmem>>, vector<1x16x16xf32>
    %364 = vector.shape_cast %363 : vector<1x16x16xf32> to vector<16x16xf32>
    %cst_165 = arith.constant dense<0.000000e+00> : vector<16x128xf32>
    %365 = tpu.matmul %364, %362, %cst_165 {dimension_numbers = #tpu.dot_dimension_numbers<[1], [0], [0], [1], [0, 0, 1, 1], [], []>} : vector<16x16xf32>, vector<16x128xf32>, vector<16x128xf32> -> vector<16x128xf32>
    %366 = arith.addf %357, %365 : vector<16x128xf32>
    %367 = vector.extract_strided_slice %349 {offsets = [0, 121], sizes = [16, 7], strides = [1, 1]} : vector<16x128xf32> to vector<16x7xf32>
    %368 = vector.extract_strided_slice %349 {offsets = [0, 0], sizes = [16, 121], strides = [1, 1]} : vector<16x128xf32> to vector<16x121xf32>
    %369 = tpu.concatenate %367, %368 in 1 : vector<16x7xf32>, vector<16x121xf32> -> vector<16x128xf32>
    %370 = vector.broadcast %59 : vector<1x128xf32> to vector<16x128xf32>
    %371 = arith.mulf %369, %370 : vector<16x128xf32>
    %c2_166 = arith.constant 2 : index
    %c0_167 = arith.constant 0 : index
    %c0_168 = arith.constant 0 : index
    %372 = vector.load %arg8[%c2_166, %c0_167, %c0_168] : memref<9x16x16xf32, #tpu.memory_space<vmem>>, vector<1x16x16xf32>
    %373 = vector.shape_cast %372 : vector<1x16x16xf32> to vector<16x16xf32>
    %cst_169 = arith.constant dense<0.000000e+00> : vector<16x128xf32>
    %374 = tpu.matmul %373, %371, %cst_169 {dimension_numbers = #tpu.dot_dimension_numbers<[1], [0], [0], [1], [0, 0, 1, 1], [], []>} : vector<16x16xf32>, vector<16x128xf32>, vector<16x128xf32> -> vector<16x128xf32>
    %375 = arith.addf %366, %374 : vector<16x128xf32>
    %376 = vector.extract_strided_slice %349 {offsets = [0, 127], sizes = [16, 1], strides = [1, 1]} : vector<16x128xf32> to vector<16x1xf32>
    %377 = vector.extract_strided_slice %349 {offsets = [0, 0], sizes = [16, 127], strides = [1, 1]} : vector<16x128xf32> to vector<16x127xf32>
    %378 = tpu.concatenate %376, %377 in 1 : vector<16x1xf32>, vector<16x127xf32> -> vector<16x128xf32>
    %379 = vector.broadcast %52 : vector<1x128xf32> to vector<16x128xf32>
    %380 = arith.mulf %378, %379 : vector<16x128xf32>
    %c3_170 = arith.constant 3 : index
    %c0_171 = arith.constant 0 : index
    %c0_172 = arith.constant 0 : index
    %381 = vector.load %arg8[%c3_170, %c0_171, %c0_172] : memref<9x16x16xf32, #tpu.memory_space<vmem>>, vector<1x16x16xf32>
    %382 = vector.shape_cast %381 : vector<1x16x16xf32> to vector<16x16xf32>
    %cst_173 = arith.constant dense<0.000000e+00> : vector<16x128xf32>
    %383 = tpu.matmul %382, %380, %cst_173 {dimension_numbers = #tpu.dot_dimension_numbers<[1], [0], [0], [1], [0, 0, 1, 1], [], []>} : vector<16x16xf32>, vector<16x128xf32>, vector<16x128xf32> -> vector<16x128xf32>
    %384 = arith.addf %375, %383 : vector<16x128xf32>
    %c4_174 = arith.constant 4 : index
    %c0_175 = arith.constant 0 : index
    %c0_176 = arith.constant 0 : index
    %385 = vector.load %arg8[%c4_174, %c0_175, %c0_176] : memref<9x16x16xf32, #tpu.memory_space<vmem>>, vector<1x16x16xf32>
    %386 = vector.shape_cast %385 : vector<1x16x16xf32> to vector<16x16xf32>
    %cst_177 = arith.constant dense<0.000000e+00> : vector<16x128xf32>
    %387 = tpu.matmul %386, %349, %cst_177 {dimension_numbers = #tpu.dot_dimension_numbers<[1], [0], [0], [1], [0, 0, 1, 1], [], []>} : vector<16x16xf32>, vector<16x128xf32>, vector<16x128xf32> -> vector<16x128xf32>
    %388 = arith.addf %384, %387 : vector<16x128xf32>
    %389 = vector.extract_strided_slice %349 {offsets = [0, 1], sizes = [16, 127], strides = [1, 1]} : vector<16x128xf32> to vector<16x127xf32>
    %390 = vector.extract_strided_slice %349 {offsets = [0, 0], sizes = [16, 1], strides = [1, 1]} : vector<16x128xf32> to vector<16x1xf32>
    %391 = tpu.concatenate %389, %390 in 1 : vector<16x127xf32>, vector<16x1xf32> -> vector<16x128xf32>
    %392 = vector.broadcast %57 : vector<1x128xf32> to vector<16x128xf32>
    %393 = arith.mulf %391, %392 : vector<16x128xf32>
    %c5_178 = arith.constant 5 : index
    %c0_179 = arith.constant 0 : index
    %c0_180 = arith.constant 0 : index
    %394 = vector.load %arg8[%c5_178, %c0_179, %c0_180] : memref<9x16x16xf32, #tpu.memory_space<vmem>>, vector<1x16x16xf32>
    %395 = vector.shape_cast %394 : vector<1x16x16xf32> to vector<16x16xf32>
    %cst_181 = arith.constant dense<0.000000e+00> : vector<16x128xf32>
    %396 = tpu.matmul %395, %393, %cst_181 {dimension_numbers = #tpu.dot_dimension_numbers<[1], [0], [0], [1], [0, 0, 1, 1], [], []>} : vector<16x16xf32>, vector<16x128xf32>, vector<16x128xf32> -> vector<16x128xf32>
    %397 = arith.addf %388, %396 : vector<16x128xf32>
    %398 = vector.extract_strided_slice %349 {offsets = [0, 7], sizes = [16, 121], strides = [1, 1]} : vector<16x128xf32> to vector<16x121xf32>
    %399 = vector.extract_strided_slice %349 {offsets = [0, 0], sizes = [16, 7], strides = [1, 1]} : vector<16x128xf32> to vector<16x7xf32>
    %400 = tpu.concatenate %398, %399 in 1 : vector<16x121xf32>, vector<16x7xf32> -> vector<16x128xf32>
    %401 = vector.broadcast %60 : vector<1x128xf32> to vector<16x128xf32>
    %402 = arith.mulf %400, %401 : vector<16x128xf32>
    %c6_182 = arith.constant 6 : index
    %c0_183 = arith.constant 0 : index
    %c0_184 = arith.constant 0 : index
    %403 = vector.load %arg8[%c6_182, %c0_183, %c0_184] : memref<9x16x16xf32, #tpu.memory_space<vmem>>, vector<1x16x16xf32>
    %404 = vector.shape_cast %403 : vector<1x16x16xf32> to vector<16x16xf32>
    %cst_185 = arith.constant dense<0.000000e+00> : vector<16x128xf32>
    %405 = tpu.matmul %404, %402, %cst_185 {dimension_numbers = #tpu.dot_dimension_numbers<[1], [0], [0], [1], [0, 0, 1, 1], [], []>} : vector<16x16xf32>, vector<16x128xf32>, vector<16x128xf32> -> vector<16x128xf32>
    %406 = arith.addf %397, %405 : vector<16x128xf32>
    %407 = vector.extract_strided_slice %349 {offsets = [0, 8], sizes = [16, 120], strides = [1, 1]} : vector<16x128xf32> to vector<16x120xf32>
    %408 = vector.extract_strided_slice %349 {offsets = [0, 0], sizes = [16, 8], strides = [1, 1]} : vector<16x128xf32> to vector<16x8xf32>
    %409 = tpu.concatenate %407, %408 in 1 : vector<16x120xf32>, vector<16x8xf32> -> vector<16x128xf32>
    %410 = vector.broadcast %47 : vector<1x128xf32> to vector<16x128xf32>
    %411 = arith.mulf %409, %410 : vector<16x128xf32>
    %c7_186 = arith.constant 7 : index
    %c0_187 = arith.constant 0 : index
    %c0_188 = arith.constant 0 : index
    %412 = vector.load %arg8[%c7_186, %c0_187, %c0_188] : memref<9x16x16xf32, #tpu.memory_space<vmem>>, vector<1x16x16xf32>
    %413 = vector.shape_cast %412 : vector<1x16x16xf32> to vector<16x16xf32>
    %cst_189 = arith.constant dense<0.000000e+00> : vector<16x128xf32>
    %414 = tpu.matmul %413, %411, %cst_189 {dimension_numbers = #tpu.dot_dimension_numbers<[1], [0], [0], [1], [0, 0, 1, 1], [], []>} : vector<16x16xf32>, vector<16x128xf32>, vector<16x128xf32> -> vector<16x128xf32>
    %415 = arith.addf %406, %414 : vector<16x128xf32>
    %416 = vector.extract_strided_slice %349 {offsets = [0, 9], sizes = [16, 119], strides = [1, 1]} : vector<16x128xf32> to vector<16x119xf32>
    %417 = vector.extract_strided_slice %349 {offsets = [0, 0], sizes = [16, 9], strides = [1, 1]} : vector<16x128xf32> to vector<16x9xf32>
    %418 = tpu.concatenate %416, %417 in 1 : vector<16x119xf32>, vector<16x9xf32> -> vector<16x128xf32>
    %419 = vector.broadcast %61 : vector<1x128xf32> to vector<16x128xf32>
    %420 = arith.mulf %418, %419 : vector<16x128xf32>
    %c8_190 = arith.constant 8 : index
    %c0_191 = arith.constant 0 : index
    %c0_192 = arith.constant 0 : index
    %421 = vector.load %arg8[%c8_190, %c0_191, %c0_192] : memref<9x16x16xf32, #tpu.memory_space<vmem>>, vector<1x16x16xf32>
    %422 = vector.shape_cast %421 : vector<1x16x16xf32> to vector<16x16xf32>
    %cst_193 = arith.constant dense<0.000000e+00> : vector<16x128xf32>
    %423 = tpu.matmul %422, %420, %cst_193 {dimension_numbers = #tpu.dot_dimension_numbers<[1], [0], [0], [1], [0, 0, 1, 1], [], []>} : vector<16x16xf32>, vector<16x128xf32>, vector<16x128xf32> -> vector<16x128xf32>
    %424 = arith.addf %415, %423 : vector<16x128xf32>
    %c0_194 = arith.constant 0 : index
    %c0_195 = arith.constant 0 : index
    %425 = vector.load %arg9[%c0_194, %c0_195] : memref<16x1xf32, #tpu.memory_space<vmem>>, vector<16x1xf32>
    %426 = vector.broadcast %425 : vector<16x1xf32> to vector<16x128xf32>
    %427 = arith.addf %424, %426 : vector<16x128xf32>
    %cst_196 = arith.constant 0.000000e+00 : f32
    %428 = vector.broadcast %cst_196 : f32 to vector<16x128xf32>
    %429 = arith.maximumf %427, %428 : vector<16x128xf32>
    %430 = vector.extract_strided_slice %429 {offsets = [0, 1], sizes = [16, 127], strides = [1, 1]} : vector<16x128xf32> to vector<16x127xf32>
    %431 = vector.extract_strided_slice %429 {offsets = [0, 0], sizes = [16, 1], strides = [1, 1]} : vector<16x128xf32> to vector<16x1xf32>
    %432 = tpu.concatenate %430, %431 in 1 : vector<16x127xf32>, vector<16x1xf32> -> vector<16x128xf32>
    %433 = arith.maximumf %429, %432 : vector<16x128xf32>
    %434 = vector.extract_strided_slice %433 {offsets = [0, 8], sizes = [16, 120], strides = [1, 1]} : vector<16x128xf32> to vector<16x120xf32>
    %435 = vector.extract_strided_slice %433 {offsets = [0, 0], sizes = [16, 8], strides = [1, 1]} : vector<16x128xf32> to vector<16x8xf32>
    %436 = tpu.concatenate %434, %435 in 1 : vector<16x120xf32>, vector<16x8xf32> -> vector<16x128xf32>
    %437 = arith.maximumf %433, %436 : vector<16x128xf32>
    %c0_197 = arith.constant 0 : index
    %c0_198 = arith.constant 0 : index
    %438 = vector.load %arg33[%c0_197, %c0_198] : memref<128x32xf32, #tpu.memory_space<vmem>>, vector<128x32xf32>
    %cst_199 = arith.constant dense<0.000000e+00> : vector<16x32xf32>
    %439 = tpu.matmul %437, %438, %cst_199 {dimension_numbers = #tpu.dot_dimension_numbers<[1], [0], [0], [1], [0, 0, 1, 1], [], []>} : vector<16x128xf32>, vector<128x32xf32>, vector<16x32xf32> -> vector<16x32xf32>
    %c0_200 = arith.constant 0 : index
    %c0_201 = arith.constant 0 : index
    %440 = vector.load %arg16[%c0_200, %c0_201] : memref<16x16xf32, #tpu.memory_space<vmem>>, vector<16x16xf32>
    %cst_202 = arith.constant dense<0.000000e+00> : vector<16x32xf32>
    %441 = tpu.matmul %440, %439, %cst_202 {dimension_numbers = #tpu.dot_dimension_numbers<[1], [0], [0], [1], [0, 0, 1, 1], [], []>} : vector<16x16xf32>, vector<16x32xf32>, vector<16x32xf32> -> vector<16x32xf32>
    %c0_203 = arith.constant 0 : index
    %c0_204 = arith.constant 0 : index
    %442 = vector.load %arg17[%c0_203, %c0_204] : memref<16x1xf32, #tpu.memory_space<vmem>>, vector<16x1xf32>
    %443 = vector.broadcast %442 : vector<16x1xf32> to vector<16x32xf32>
    %444 = arith.addf %441, %443 : vector<16x32xf32>
    %cst_205 = arith.constant 0.000000e+00 : f32
    %445 = vector.broadcast %cst_205 : f32 to vector<16x32xf32>
    %446 = arith.maximumf %444, %445 : vector<16x32xf32>
    %c0_206 = arith.constant 0 : index
    %c0_207 = arith.constant 0 : index
    %447 = vector.load %arg40[%c0_206, %c0_207] : memref<16x32xf32, #tpu.memory_space<vmem>>, vector<16x32xf32>
    tpu.vector_store %arg40[%c0_206, %c0_207], %446 {strides = array<i32>} : memref<16x32xf32, #tpu.memory_space<vmem>>, vector<16x32xf32>,
    %448 = vector.extract_strided_slice %446 {offsets = [0, 27], sizes = [16, 5], strides = [1, 1]} : vector<16x32xf32> to vector<16x5xf32>
    %449 = vector.extract_strided_slice %446 {offsets = [0, 0], sizes = [16, 27], strides = [1, 1]} : vector<16x32xf32> to vector<16x27xf32>
    %450 = tpu.concatenate %448, %449 in 1 : vector<16x5xf32>, vector<16x27xf32> -> vector<16x32xf32>
    %451 = vector.broadcast %89 : vector<1x32xf32> to vector<16x32xf32>
    %452 = arith.mulf %450, %451 : vector<16x32xf32>
    %c0_208 = arith.constant 0 : index
    %c0_209 = arith.constant 0 : index
    %c0_210 = arith.constant 0 : index
    %453 = vector.load %arg10[%c0_208, %c0_209, %c0_210] : memref<9x32x16xf32, #tpu.memory_space<vmem>>, vector<1x32x16xf32>
    %454 = vector.shape_cast %453 : vector<1x32x16xf32> to vector<32x16xf32>
    %cst_211 = arith.constant dense<0.000000e+00> : vector<32x32xf32>
    %455 = tpu.matmul %454, %452, %cst_211 {dimension_numbers = #tpu.dot_dimension_numbers<[1], [0], [0], [1], [0, 0, 1, 1], [], []>} : vector<32x16xf32>, vector<16x32xf32>, vector<32x32xf32> -> vector<32x32xf32>
    %456 = vector.extract_strided_slice %446 {offsets = [0, 28], sizes = [16, 4], strides = [1, 1]} : vector<16x32xf32> to vector<16x4xf32>
    %457 = vector.extract_strided_slice %446 {offsets = [0, 0], sizes = [16, 28], strides = [1, 1]} : vector<16x32xf32> to vector<16x28xf32>
    %458 = tpu.concatenate %456, %457 in 1 : vector<16x4xf32>, vector<16x28xf32> -> vector<16x32xf32>
    %459 = vector.broadcast %73 : vector<1x32xf32> to vector<16x32xf32>
    %460 = arith.mulf %458, %459 : vector<16x32xf32>
    %c1_212 = arith.constant 1 : index
    %c0_213 = arith.constant 0 : index
    %c0_214 = arith.constant 0 : index
    %461 = vector.load %arg10[%c1_212, %c0_213, %c0_214] : memref<9x32x16xf32, #tpu.memory_space<vmem>>, vector<1x32x16xf32>
    %462 = vector.shape_cast %461 : vector<1x32x16xf32> to vector<32x16xf32>
    %cst_215 = arith.constant dense<0.000000e+00> : vector<32x32xf32>
    %463 = tpu.matmul %462, %460, %cst_215 {dimension_numbers = #tpu.dot_dimension_numbers<[1], [0], [0], [1], [0, 0, 1, 1], [], []>} : vector<32x16xf32>, vector<16x32xf32>, vector<32x32xf32> -> vector<32x32xf32>
    %464 = arith.addf %455, %463 : vector<32x32xf32>
    %465 = vector.extract_strided_slice %446 {offsets = [0, 29], sizes = [16, 3], strides = [1, 1]} : vector<16x32xf32> to vector<16x3xf32>
    %466 = vector.extract_strided_slice %446 {offsets = [0, 0], sizes = [16, 29], strides = [1, 1]} : vector<16x32xf32> to vector<16x29xf32>
    %467 = tpu.concatenate %465, %466 in 1 : vector<16x3xf32>, vector<16x29xf32> -> vector<16x32xf32>
    %468 = vector.broadcast %90 : vector<1x32xf32> to vector<16x32xf32>
    %469 = arith.mulf %467, %468 : vector<16x32xf32>
    %c2_216 = arith.constant 2 : index
    %c0_217 = arith.constant 0 : index
    %c0_218 = arith.constant 0 : index
    %470 = vector.load %arg10[%c2_216, %c0_217, %c0_218] : memref<9x32x16xf32, #tpu.memory_space<vmem>>, vector<1x32x16xf32>
    %471 = vector.shape_cast %470 : vector<1x32x16xf32> to vector<32x16xf32>
    %cst_219 = arith.constant dense<0.000000e+00> : vector<32x32xf32>
    %472 = tpu.matmul %471, %469, %cst_219 {dimension_numbers = #tpu.dot_dimension_numbers<[1], [0], [0], [1], [0, 0, 1, 1], [], []>} : vector<32x16xf32>, vector<16x32xf32>, vector<32x32xf32> -> vector<32x32xf32>
    %473 = arith.addf %464, %472 : vector<32x32xf32>
    %474 = vector.extract_strided_slice %446 {offsets = [0, 31], sizes = [16, 1], strides = [1, 1]} : vector<16x32xf32> to vector<16x1xf32>
    %475 = vector.extract_strided_slice %446 {offsets = [0, 0], sizes = [16, 31], strides = [1, 1]} : vector<16x32xf32> to vector<16x31xf32>
    %476 = tpu.concatenate %474, %475 in 1 : vector<16x1xf32>, vector<16x31xf32> -> vector<16x32xf32>
    %477 = vector.broadcast %83 : vector<1x32xf32> to vector<16x32xf32>
    %478 = arith.mulf %476, %477 : vector<16x32xf32>
    %c3_220 = arith.constant 3 : index
    %c0_221 = arith.constant 0 : index
    %c0_222 = arith.constant 0 : index
    %479 = vector.load %arg10[%c3_220, %c0_221, %c0_222] : memref<9x32x16xf32, #tpu.memory_space<vmem>>, vector<1x32x16xf32>
    %480 = vector.shape_cast %479 : vector<1x32x16xf32> to vector<32x16xf32>
    %cst_223 = arith.constant dense<0.000000e+00> : vector<32x32xf32>
    %481 = tpu.matmul %480, %478, %cst_223 {dimension_numbers = #tpu.dot_dimension_numbers<[1], [0], [0], [1], [0, 0, 1, 1], [], []>} : vector<32x16xf32>, vector<16x32xf32>, vector<32x32xf32> -> vector<32x32xf32>
    %482 = arith.addf %473, %481 : vector<32x32xf32>
    %c4_224 = arith.constant 4 : index
    %c0_225 = arith.constant 0 : index
    %c0_226 = arith.constant 0 : index
    %483 = vector.load %arg10[%c4_224, %c0_225, %c0_226] : memref<9x32x16xf32, #tpu.memory_space<vmem>>, vector<1x32x16xf32>
    %484 = vector.shape_cast %483 : vector<1x32x16xf32> to vector<32x16xf32>
    %cst_227 = arith.constant dense<0.000000e+00> : vector<32x32xf32>
    %485 = tpu.matmul %484, %446, %cst_227 {dimension_numbers = #tpu.dot_dimension_numbers<[1], [0], [0], [1], [0, 0, 1, 1], [], []>} : vector<32x16xf32>, vector<16x32xf32>, vector<32x32xf32> -> vector<32x32xf32>
    %486 = arith.addf %482, %485 : vector<32x32xf32>
    %487 = vector.extract_strided_slice %446 {offsets = [0, 1], sizes = [16, 31], strides = [1, 1]} : vector<16x32xf32> to vector<16x31xf32>
    %488 = vector.extract_strided_slice %446 {offsets = [0, 0], sizes = [16, 1], strides = [1, 1]} : vector<16x32xf32> to vector<16x1xf32>
    %489 = tpu.concatenate %487, %488 in 1 : vector<16x31xf32>, vector<16x1xf32> -> vector<16x32xf32>
    %490 = vector.broadcast %88 : vector<1x32xf32> to vector<16x32xf32>
    %491 = arith.mulf %489, %490 : vector<16x32xf32>
    %c5_228 = arith.constant 5 : index
    %c0_229 = arith.constant 0 : index
    %c0_230 = arith.constant 0 : index
    %492 = vector.load %arg10[%c5_228, %c0_229, %c0_230] : memref<9x32x16xf32, #tpu.memory_space<vmem>>, vector<1x32x16xf32>
    %493 = vector.shape_cast %492 : vector<1x32x16xf32> to vector<32x16xf32>
    %cst_231 = arith.constant dense<0.000000e+00> : vector<32x32xf32>
    %494 = tpu.matmul %493, %491, %cst_231 {dimension_numbers = #tpu.dot_dimension_numbers<[1], [0], [0], [1], [0, 0, 1, 1], [], []>} : vector<32x16xf32>, vector<16x32xf32>, vector<32x32xf32> -> vector<32x32xf32>
    %495 = arith.addf %486, %494 : vector<32x32xf32>
    %496 = vector.extract_strided_slice %446 {offsets = [0, 3], sizes = [16, 29], strides = [1, 1]} : vector<16x32xf32> to vector<16x29xf32>
    %497 = vector.extract_strided_slice %446 {offsets = [0, 0], sizes = [16, 3], strides = [1, 1]} : vector<16x32xf32> to vector<16x3xf32>
    %498 = tpu.concatenate %496, %497 in 1 : vector<16x29xf32>, vector<16x3xf32> -> vector<16x32xf32>
    %499 = vector.broadcast %91 : vector<1x32xf32> to vector<16x32xf32>
    %500 = arith.mulf %498, %499 : vector<16x32xf32>
    %c6_232 = arith.constant 6 : index
    %c0_233 = arith.constant 0 : index
    %c0_234 = arith.constant 0 : index
    %501 = vector.load %arg10[%c6_232, %c0_233, %c0_234] : memref<9x32x16xf32, #tpu.memory_space<vmem>>, vector<1x32x16xf32>
    %502 = vector.shape_cast %501 : vector<1x32x16xf32> to vector<32x16xf32>
    %cst_235 = arith.constant dense<0.000000e+00> : vector<32x32xf32>
    %503 = tpu.matmul %502, %500, %cst_235 {dimension_numbers = #tpu.dot_dimension_numbers<[1], [0], [0], [1], [0, 0, 1, 1], [], []>} : vector<32x16xf32>, vector<16x32xf32>, vector<32x32xf32> -> vector<32x32xf32>
    %504 = arith.addf %495, %503 : vector<32x32xf32>
    %505 = vector.extract_strided_slice %446 {offsets = [0, 4], sizes = [16, 28], strides = [1, 1]} : vector<16x32xf32> to vector<16x28xf32>
    %506 = vector.extract_strided_slice %446 {offsets = [0, 0], sizes = [16, 4], strides = [1, 1]} : vector<16x32xf32> to vector<16x4xf32>
    %507 = tpu.concatenate %505, %506 in 1 : vector<16x28xf32>, vector<16x4xf32> -> vector<16x32xf32>
    %508 = vector.broadcast %78 : vector<1x32xf32> to vector<16x32xf32>
    %509 = arith.mulf %507, %508 : vector<16x32xf32>
    %c7_236 = arith.constant 7 : index
    %c0_237 = arith.constant 0 : index
    %c0_238 = arith.constant 0 : index
    %510 = vector.load %arg10[%c7_236, %c0_237, %c0_238] : memref<9x32x16xf32, #tpu.memory_space<vmem>>, vector<1x32x16xf32>
    %511 = vector.shape_cast %510 : vector<1x32x16xf32> to vector<32x16xf32>
    %cst_239 = arith.constant dense<0.000000e+00> : vector<32x32xf32>
    %512 = tpu.matmul %511, %509, %cst_239 {dimension_numbers = #tpu.dot_dimension_numbers<[1], [0], [0], [1], [0, 0, 1, 1], [], []>} : vector<32x16xf32>, vector<16x32xf32>, vector<32x32xf32> -> vector<32x32xf32>
    %513 = arith.addf %504, %512 : vector<32x32xf32>
    %514 = vector.extract_strided_slice %446 {offsets = [0, 5], sizes = [16, 27], strides = [1, 1]} : vector<16x32xf32> to vector<16x27xf32>
    %515 = vector.extract_strided_slice %446 {offsets = [0, 0], sizes = [16, 5], strides = [1, 1]} : vector<16x32xf32> to vector<16x5xf32>
    %516 = tpu.concatenate %514, %515 in 1 : vector<16x27xf32>, vector<16x5xf32> -> vector<16x32xf32>
    %517 = vector.broadcast %92 : vector<1x32xf32> to vector<16x32xf32>
    %518 = arith.mulf %516, %517 : vector<16x32xf32>
    %c8_240 = arith.constant 8 : index
    %c0_241 = arith.constant 0 : index
    %c0_242 = arith.constant 0 : index
    %519 = vector.load %arg10[%c8_240, %c0_241, %c0_242] : memref<9x32x16xf32, #tpu.memory_space<vmem>>, vector<1x32x16xf32>
    %520 = vector.shape_cast %519 : vector<1x32x16xf32> to vector<32x16xf32>
    %cst_243 = arith.constant dense<0.000000e+00> : vector<32x32xf32>
    %521 = tpu.matmul %520, %518, %cst_243 {dimension_numbers = #tpu.dot_dimension_numbers<[1], [0], [0], [1], [0, 0, 1, 1], [], []>} : vector<32x16xf32>, vector<16x32xf32>, vector<32x32xf32> -> vector<32x32xf32>
    %522 = arith.addf %513, %521 : vector<32x32xf32>
    %c0_244 = arith.constant 0 : index
    %c0_245 = arith.constant 0 : index
    %523 = vector.load %arg11[%c0_244, %c0_245] : memref<32x1xf32, #tpu.memory_space<vmem>>, vector<32x1xf32>
    %524 = vector.broadcast %523 : vector<32x1xf32> to vector<32x32xf32>
    %525 = arith.addf %522, %524 : vector<32x32xf32>
    %cst_246 = arith.constant 0.000000e+00 : f32
    %526 = vector.broadcast %cst_246 : f32 to vector<32x32xf32>
    %527 = arith.maximumf %525, %526 : vector<32x32xf32>
    %528 = vector.extract_strided_slice %527 {offsets = [0, 27], sizes = [32, 5], strides = [1, 1]} : vector<32x32xf32> to vector<32x5xf32>
    %529 = vector.extract_strided_slice %527 {offsets = [0, 0], sizes = [32, 27], strides = [1, 1]} : vector<32x32xf32> to vector<32x27xf32>
    %530 = tpu.concatenate %528, %529 in 1 : vector<32x5xf32>, vector<32x27xf32> -> vector<32x32xf32>
    %531 = vector.broadcast %89 : vector<1x32xf32> to vector<32x32xf32>
    %532 = arith.mulf %530, %531 : vector<32x32xf32>
    %c0_247 = arith.constant 0 : index
    %c0_248 = arith.constant 0 : index
    %c0_249 = arith.constant 0 : index
    %533 = vector.load %arg12[%c0_247, %c0_248, %c0_249] : memref<9x32x32xf32, #tpu.memory_space<vmem>>, vector<1x32x32xf32>
    %534 = vector.shape_cast %533 : vector<1x32x32xf32> to vector<32x32xf32>
    %cst_250 = arith.constant dense<0.000000e+00> : vector<32x32xf32>
    %535 = tpu.matmul %534, %532, %cst_250 {dimension_numbers = #tpu.dot_dimension_numbers<[1], [0], [0], [1], [0, 0, 1, 1], [], []>} : vector<32x32xf32>, vector<32x32xf32>, vector<32x32xf32> -> vector<32x32xf32>
    %536 = vector.extract_strided_slice %527 {offsets = [0, 28], sizes = [32, 4], strides = [1, 1]} : vector<32x32xf32> to vector<32x4xf32>
    %537 = vector.extract_strided_slice %527 {offsets = [0, 0], sizes = [32, 28], strides = [1, 1]} : vector<32x32xf32> to vector<32x28xf32>
    %538 = tpu.concatenate %536, %537 in 1 : vector<32x4xf32>, vector<32x28xf32> -> vector<32x32xf32>
    %539 = vector.broadcast %73 : vector<1x32xf32> to vector<32x32xf32>
    %540 = arith.mulf %538, %539 : vector<32x32xf32>
    %c1_251 = arith.constant 1 : index
    %c0_252 = arith.constant 0 : index
    %c0_253 = arith.constant 0 : index
    %541 = vector.load %arg12[%c1_251, %c0_252, %c0_253] : memref<9x32x32xf32, #tpu.memory_space<vmem>>, vector<1x32x32xf32>
    %542 = vector.shape_cast %541 : vector<1x32x32xf32> to vector<32x32xf32>
    %cst_254 = arith.constant dense<0.000000e+00> : vector<32x32xf32>
    %543 = tpu.matmul %542, %540, %cst_254 {dimension_numbers = #tpu.dot_dimension_numbers<[1], [0], [0], [1], [0, 0, 1, 1], [], []>} : vector<32x32xf32>, vector<32x32xf32>, vector<32x32xf32> -> vector<32x32xf32>
    %544 = arith.addf %535, %543 : vector<32x32xf32>
    %545 = vector.extract_strided_slice %527 {offsets = [0, 29], sizes = [32, 3], strides = [1, 1]} : vector<32x32xf32> to vector<32x3xf32>
    %546 = vector.extract_strided_slice %527 {offsets = [0, 0], sizes = [32, 29], strides = [1, 1]} : vector<32x32xf32> to vector<32x29xf32>
    %547 = tpu.concatenate %545, %546 in 1 : vector<32x3xf32>, vector<32x29xf32> -> vector<32x32xf32>
    %548 = vector.broadcast %90 : vector<1x32xf32> to vector<32x32xf32>
    %549 = arith.mulf %547, %548 : vector<32x32xf32>
    %c2_255 = arith.constant 2 : index
    %c0_256 = arith.constant 0 : index
    %c0_257 = arith.constant 0 : index
    %550 = vector.load %arg12[%c2_255, %c0_256, %c0_257] : memref<9x32x32xf32, #tpu.memory_space<vmem>>, vector<1x32x32xf32>
    %551 = vector.shape_cast %550 : vector<1x32x32xf32> to vector<32x32xf32>
    %cst_258 = arith.constant dense<0.000000e+00> : vector<32x32xf32>
    %552 = tpu.matmul %551, %549, %cst_258 {dimension_numbers = #tpu.dot_dimension_numbers<[1], [0], [0], [1], [0, 0, 1, 1], [], []>} : vector<32x32xf32>, vector<32x32xf32>, vector<32x32xf32> -> vector<32x32xf32>
    %553 = arith.addf %544, %552 : vector<32x32xf32>
    %554 = vector.extract_strided_slice %527 {offsets = [0, 31], sizes = [32, 1], strides = [1, 1]} : vector<32x32xf32> to vector<32x1xf32>
    %555 = vector.extract_strided_slice %527 {offsets = [0, 0], sizes = [32, 31], strides = [1, 1]} : vector<32x32xf32> to vector<32x31xf32>
    %556 = tpu.concatenate %554, %555 in 1 : vector<32x1xf32>, vector<32x31xf32> -> vector<32x32xf32>
    %557 = vector.broadcast %83 : vector<1x32xf32> to vector<32x32xf32>
    %558 = arith.mulf %556, %557 : vector<32x32xf32>
    %c3_259 = arith.constant 3 : index
    %c0_260 = arith.constant 0 : index
    %c0_261 = arith.constant 0 : index
    %559 = vector.load %arg12[%c3_259, %c0_260, %c0_261] : memref<9x32x32xf32, #tpu.memory_space<vmem>>, vector<1x32x32xf32>
    %560 = vector.shape_cast %559 : vector<1x32x32xf32> to vector<32x32xf32>
    %cst_262 = arith.constant dense<0.000000e+00> : vector<32x32xf32>
    %561 = tpu.matmul %560, %558, %cst_262 {dimension_numbers = #tpu.dot_dimension_numbers<[1], [0], [0], [1], [0, 0, 1, 1], [], []>} : vector<32x32xf32>, vector<32x32xf32>, vector<32x32xf32> -> vector<32x32xf32>
    %562 = arith.addf %553, %561 : vector<32x32xf32>
    %c4_263 = arith.constant 4 : index
    %c0_264 = arith.constant 0 : index
    %c0_265 = arith.constant 0 : index
    %563 = vector.load %arg12[%c4_263, %c0_264, %c0_265] : memref<9x32x32xf32, #tpu.memory_space<vmem>>, vector<1x32x32xf32>
    %564 = vector.shape_cast %563 : vector<1x32x32xf32> to vector<32x32xf32>
    %cst_266 = arith.constant dense<0.000000e+00> : vector<32x32xf32>
    %565 = tpu.matmul %564, %527, %cst_266 {dimension_numbers = #tpu.dot_dimension_numbers<[1], [0], [0], [1], [0, 0, 1, 1], [], []>} : vector<32x32xf32>, vector<32x32xf32>, vector<32x32xf32> -> vector<32x32xf32>
    %566 = arith.addf %562, %565 : vector<32x32xf32>
    %567 = vector.extract_strided_slice %527 {offsets = [0, 1], sizes = [32, 31], strides = [1, 1]} : vector<32x32xf32> to vector<32x31xf32>
    %568 = vector.extract_strided_slice %527 {offsets = [0, 0], sizes = [32, 1], strides = [1, 1]} : vector<32x32xf32> to vector<32x1xf32>
    %569 = tpu.concatenate %567, %568 in 1 : vector<32x31xf32>, vector<32x1xf32> -> vector<32x32xf32>
    %570 = vector.broadcast %88 : vector<1x32xf32> to vector<32x32xf32>
    %571 = arith.mulf %569, %570 : vector<32x32xf32>
    %c5_267 = arith.constant 5 : index
    %c0_268 = arith.constant 0 : index
    %c0_269 = arith.constant 0 : index
    %572 = vector.load %arg12[%c5_267, %c0_268, %c0_269] : memref<9x32x32xf32, #tpu.memory_space<vmem>>, vector<1x32x32xf32>
    %573 = vector.shape_cast %572 : vector<1x32x32xf32> to vector<32x32xf32>
    %cst_270 = arith.constant dense<0.000000e+00> : vector<32x32xf32>
    %574 = tpu.matmul %573, %571, %cst_270 {dimension_numbers = #tpu.dot_dimension_numbers<[1], [0], [0], [1], [0, 0, 1, 1], [], []>} : vector<32x32xf32>, vector<32x32xf32>, vector<32x32xf32> -> vector<32x32xf32>
    %575 = arith.addf %566, %574 : vector<32x32xf32>
    %576 = vector.extract_strided_slice %527 {offsets = [0, 3], sizes = [32, 29], strides = [1, 1]} : vector<32x32xf32> to vector<32x29xf32>
    %577 = vector.extract_strided_slice %527 {offsets = [0, 0], sizes = [32, 3], strides = [1, 1]} : vector<32x32xf32> to vector<32x3xf32>
    %578 = tpu.concatenate %576, %577 in 1 : vector<32x29xf32>, vector<32x3xf32> -> vector<32x32xf32>
    %579 = vector.broadcast %91 : vector<1x32xf32> to vector<32x32xf32>
    %580 = arith.mulf %578, %579 : vector<32x32xf32>
    %c6_271 = arith.constant 6 : index
    %c0_272 = arith.constant 0 : index
    %c0_273 = arith.constant 0 : index
    %581 = vector.load %arg12[%c6_271, %c0_272, %c0_273] : memref<9x32x32xf32, #tpu.memory_space<vmem>>, vector<1x32x32xf32>
    %582 = vector.shape_cast %581 : vector<1x32x32xf32> to vector<32x32xf32>
    %cst_274 = arith.constant dense<0.000000e+00> : vector<32x32xf32>
    %583 = tpu.matmul %582, %580, %cst_274 {dimension_numbers = #tpu.dot_dimension_numbers<[1], [0], [0], [1], [0, 0, 1, 1], [], []>} : vector<32x32xf32>, vector<32x32xf32>, vector<32x32xf32> -> vector<32x32xf32>
    %584 = arith.addf %575, %583 : vector<32x32xf32>
    %585 = vector.extract_strided_slice %527 {offsets = [0, 4], sizes = [32, 28], strides = [1, 1]} : vector<32x32xf32> to vector<32x28xf32>
    %586 = vector.extract_strided_slice %527 {offsets = [0, 0], sizes = [32, 4], strides = [1, 1]} : vector<32x32xf32> to vector<32x4xf32>
    %587 = tpu.concatenate %585, %586 in 1 : vector<32x28xf32>, vector<32x4xf32> -> vector<32x32xf32>
    %588 = vector.broadcast %78 : vector<1x32xf32> to vector<32x32xf32>
    %589 = arith.mulf %587, %588 : vector<32x32xf32>
    %c7_275 = arith.constant 7 : index
    %c0_276 = arith.constant 0 : index
    %c0_277 = arith.constant 0 : index
    %590 = vector.load %arg12[%c7_275, %c0_276, %c0_277] : memref<9x32x32xf32, #tpu.memory_space<vmem>>, vector<1x32x32xf32>
    %591 = vector.shape_cast %590 : vector<1x32x32xf32> to vector<32x32xf32>
    %cst_278 = arith.constant dense<0.000000e+00> : vector<32x32xf32>
    %592 = tpu.matmul %591, %589, %cst_278 {dimension_numbers = #tpu.dot_dimension_numbers<[1], [0], [0], [1], [0, 0, 1, 1], [], []>} : vector<32x32xf32>, vector<32x32xf32>, vector<32x32xf32> -> vector<32x32xf32>
    %593 = arith.addf %584, %592 : vector<32x32xf32>
    %594 = vector.extract_strided_slice %527 {offsets = [0, 5], sizes = [32, 27], strides = [1, 1]} : vector<32x32xf32> to vector<32x27xf32>
    %595 = vector.extract_strided_slice %527 {offsets = [0, 0], sizes = [32, 5], strides = [1, 1]} : vector<32x32xf32> to vector<32x5xf32>
    %596 = tpu.concatenate %594, %595 in 1 : vector<32x27xf32>, vector<32x5xf32> -> vector<32x32xf32>
    %597 = vector.broadcast %92 : vector<1x32xf32> to vector<32x32xf32>
    %598 = arith.mulf %596, %597 : vector<32x32xf32>
    %c8_279 = arith.constant 8 : index
    %c0_280 = arith.constant 0 : index
    %c0_281 = arith.constant 0 : index
    %599 = vector.load %arg12[%c8_279, %c0_280, %c0_281] : memref<9x32x32xf32, #tpu.memory_space<vmem>>, vector<1x32x32xf32>
    %600 = vector.shape_cast %599 : vector<1x32x32xf32> to vector<32x32xf32>
    %cst_282 = arith.constant dense<0.000000e+00> : vector<32x32xf32>
    %601 = tpu.matmul %600, %598, %cst_282 {dimension_numbers = #tpu.dot_dimension_numbers<[1], [0], [0], [1], [0, 0, 1, 1], [], []>} : vector<32x32xf32>, vector<32x32xf32>, vector<32x32xf32> -> vector<32x32xf32>
    %602 = arith.addf %593, %601 : vector<32x32xf32>
    %c0_283 = arith.constant 0 : index
    %c0_284 = arith.constant 0 : index
    %603 = vector.load %arg13[%c0_283, %c0_284] : memref<32x1xf32, #tpu.memory_space<vmem>>, vector<32x1xf32>
    %604 = vector.broadcast %603 : vector<32x1xf32> to vector<32x32xf32>
    %605 = arith.addf %602, %604 : vector<32x32xf32>
    %cst_285 = arith.constant 0.000000e+00 : f32
    %606 = vector.broadcast %cst_285 : f32 to vector<32x32xf32>
    %607 = arith.maximumf %605, %606 : vector<32x32xf32>
    %608 = vector.extract_strided_slice %607 {offsets = [0, 1], sizes = [32, 31], strides = [1, 1]} : vector<32x32xf32> to vector<32x31xf32>
    %609 = vector.extract_strided_slice %607 {offsets = [0, 0], sizes = [32, 1], strides = [1, 1]} : vector<32x32xf32> to vector<32x1xf32>
    %610 = tpu.concatenate %608, %609 in 1 : vector<32x31xf32>, vector<32x1xf32> -> vector<32x32xf32>
    %611 = arith.maximumf %607, %610 : vector<32x32xf32>
    %612 = vector.extract_strided_slice %611 {offsets = [0, 4], sizes = [32, 28], strides = [1, 1]} : vector<32x32xf32> to vector<32x28xf32>
    %613 = vector.extract_strided_slice %611 {offsets = [0, 0], sizes = [32, 4], strides = [1, 1]} : vector<32x32xf32> to vector<32x4xf32>
    %614 = tpu.concatenate %612, %613 in 1 : vector<32x28xf32>, vector<32x4xf32> -> vector<32x32xf32>
    %615 = arith.maximumf %611, %614 : vector<32x32xf32>
    %c0_286 = arith.constant 0 : index
    %c0_287 = arith.constant 0 : index
    %616 = vector.load %arg34[%c0_286, %c0_287] : memref<32x8xf32, #tpu.memory_space<vmem>>, vector<32x8xf32>
    %cst_288 = arith.constant dense<0.000000e+00> : vector<32x8xf32>
    %617 = tpu.matmul %615, %616, %cst_288 {dimension_numbers = #tpu.dot_dimension_numbers<[1], [0], [0], [1], [0, 0, 1, 1], [], []>} : vector<32x32xf32>, vector<32x8xf32>, vector<32x8xf32> -> vector<32x8xf32>
    %c0_289 = arith.constant 0 : index
    %c0_290 = arith.constant 0 : index
    %618 = vector.load %arg18[%c0_289, %c0_290] : memref<32x32xf32, #tpu.memory_space<vmem>>, vector<32x32xf32>
    %cst_291 = arith.constant dense<0.000000e+00> : vector<32x8xf32>
    %619 = tpu.matmul %618, %617, %cst_291 {dimension_numbers = #tpu.dot_dimension_numbers<[1], [0], [0], [1], [0, 0, 1, 1], [], []>} : vector<32x32xf32>, vector<32x8xf32>, vector<32x8xf32> -> vector<32x8xf32>
    %c0_292 = arith.constant 0 : index
    %c0_293 = arith.constant 0 : index
    %620 = vector.load %arg19[%c0_292, %c0_293] : memref<32x1xf32, #tpu.memory_space<vmem>>, vector<32x1xf32>
    %621 = vector.broadcast %620 : vector<32x1xf32> to vector<32x8xf32>
    %622 = arith.addf %619, %621 : vector<32x8xf32>
    %cst_294 = arith.constant 0.000000e+00 : f32
    %623 = vector.broadcast %cst_294 : f32 to vector<32x8xf32>
    %624 = arith.maximumf %622, %623 : vector<32x8xf32>
    %c0_295 = arith.constant 0 : index
    %c0_296 = arith.constant 0 : index
    %625 = vector.load %arg35[%c0_295, %c0_296] : memref<8x32xf32, #tpu.memory_space<vmem>>, vector<8x32xf32>
    %cst_297 = arith.constant dense<0.000000e+00> : vector<32x32xf32>
    %626 = tpu.matmul %624, %625, %cst_297 {dimension_numbers = #tpu.dot_dimension_numbers<[1], [0], [0], [1], [0, 0, 1, 1], [], []>} : vector<32x8xf32>, vector<8x32xf32>, vector<32x32xf32> -> vector<32x32xf32>
    %c0_298 = arith.constant 0 : index
    %c0_299 = arith.constant 0 : index
    %627 = vector.load %arg40[%c0_298, %c0_299] : memref<16x32xf32, #tpu.memory_space<vmem>>, vector<16x32xf32>
    %628 = tpu.concatenate %626, %627 in 0 : vector<32x32xf32>, vector<16x32xf32> -> vector<48x32xf32>
    %629 = vector.extract_strided_slice %628 {offsets = [0, 27], sizes = [48, 5], strides = [1, 1]} : vector<48x32xf32> to vector<48x5xf32>
    %630 = vector.extract_strided_slice %628 {offsets = [0, 0], sizes = [48, 27], strides = [1, 1]} : vector<48x32xf32> to vector<48x27xf32>
    %631 = tpu.concatenate %629, %630 in 1 : vector<48x5xf32>, vector<48x27xf32> -> vector<48x32xf32>
    %632 = vector.broadcast %89 : vector<1x32xf32> to vector<48x32xf32>
    %633 = arith.mulf %631, %632 : vector<48x32xf32>
    %c0_300 = arith.constant 0 : index
    %c0_301 = arith.constant 0 : index
    %c0_302 = arith.constant 0 : index
    %634 = vector.load %arg20[%c0_300, %c0_301, %c0_302] : memref<9x16x48xf32, #tpu.memory_space<vmem>>, vector<1x16x48xf32>
    %635 = vector.shape_cast %634 : vector<1x16x48xf32> to vector<16x48xf32>
    %cst_303 = arith.constant dense<0.000000e+00> : vector<16x32xf32>
    %636 = tpu.matmul %635, %633, %cst_303 {dimension_numbers = #tpu.dot_dimension_numbers<[1], [0], [0], [1], [0, 0, 1, 1], [], []>} : vector<16x48xf32>, vector<48x32xf32>, vector<16x32xf32> -> vector<16x32xf32>
    %637 = vector.extract_strided_slice %628 {offsets = [0, 28], sizes = [48, 4], strides = [1, 1]} : vector<48x32xf32> to vector<48x4xf32>
    %638 = vector.extract_strided_slice %628 {offsets = [0, 0], sizes = [48, 28], strides = [1, 1]} : vector<48x32xf32> to vector<48x28xf32>
    %639 = tpu.concatenate %637, %638 in 1 : vector<48x4xf32>, vector<48x28xf32> -> vector<48x32xf32>
    %640 = vector.broadcast %73 : vector<1x32xf32> to vector<48x32xf32>
    %641 = arith.mulf %639, %640 : vector<48x32xf32>
    %c1_304 = arith.constant 1 : index
    %c0_305 = arith.constant 0 : index
    %c0_306 = arith.constant 0 : index
    %642 = vector.load %arg20[%c1_304, %c0_305, %c0_306] : memref<9x16x48xf32, #tpu.memory_space<vmem>>, vector<1x16x48xf32>
    %643 = vector.shape_cast %642 : vector<1x16x48xf32> to vector<16x48xf32>
    %cst_307 = arith.constant dense<0.000000e+00> : vector<16x32xf32>
    %644 = tpu.matmul %643, %641, %cst_307 {dimension_numbers = #tpu.dot_dimension_numbers<[1], [0], [0], [1], [0, 0, 1, 1], [], []>} : vector<16x48xf32>, vector<48x32xf32>, vector<16x32xf32> -> vector<16x32xf32>
    %645 = arith.addf %636, %644 : vector<16x32xf32>
    %646 = vector.extract_strided_slice %628 {offsets = [0, 29], sizes = [48, 3], strides = [1, 1]} : vector<48x32xf32> to vector<48x3xf32>
    %647 = vector.extract_strided_slice %628 {offsets = [0, 0], sizes = [48, 29], strides = [1, 1]} : vector<48x32xf32> to vector<48x29xf32>
    %648 = tpu.concatenate %646, %647 in 1 : vector<48x3xf32>, vector<48x29xf32> -> vector<48x32xf32>
    %649 = vector.broadcast %90 : vector<1x32xf32> to vector<48x32xf32>
    %650 = arith.mulf %648, %649 : vector<48x32xf32>
    %c2_308 = arith.constant 2 : index
    %c0_309 = arith.constant 0 : index
    %c0_310 = arith.constant 0 : index
    %651 = vector.load %arg20[%c2_308, %c0_309, %c0_310] : memref<9x16x48xf32, #tpu.memory_space<vmem>>, vector<1x16x48xf32>
    %652 = vector.shape_cast %651 : vector<1x16x48xf32> to vector<16x48xf32>
    %cst_311 = arith.constant dense<0.000000e+00> : vector<16x32xf32>
    %653 = tpu.matmul %652, %650, %cst_311 {dimension_numbers = #tpu.dot_dimension_numbers<[1], [0], [0], [1], [0, 0, 1, 1], [], []>} : vector<16x48xf32>, vector<48x32xf32>, vector<16x32xf32> -> vector<16x32xf32>
    %654 = arith.addf %645, %653 : vector<16x32xf32>
    %655 = vector.extract_strided_slice %628 {offsets = [0, 31], sizes = [48, 1], strides = [1, 1]} : vector<48x32xf32> to vector<48x1xf32>
    %656 = vector.extract_strided_slice %628 {offsets = [0, 0], sizes = [48, 31], strides = [1, 1]} : vector<48x32xf32> to vector<48x31xf32>
    %657 = tpu.concatenate %655, %656 in 1 : vector<48x1xf32>, vector<48x31xf32> -> vector<48x32xf32>
    %658 = vector.broadcast %83 : vector<1x32xf32> to vector<48x32xf32>
    %659 = arith.mulf %657, %658 : vector<48x32xf32>
    %c3_312 = arith.constant 3 : index
    %c0_313 = arith.constant 0 : index
    %c0_314 = arith.constant 0 : index
    %660 = vector.load %arg20[%c3_312, %c0_313, %c0_314] : memref<9x16x48xf32, #tpu.memory_space<vmem>>, vector<1x16x48xf32>
    %661 = vector.shape_cast %660 : vector<1x16x48xf32> to vector<16x48xf32>
    %cst_315 = arith.constant dense<0.000000e+00> : vector<16x32xf32>
    %662 = tpu.matmul %661, %659, %cst_315 {dimension_numbers = #tpu.dot_dimension_numbers<[1], [0], [0], [1], [0, 0, 1, 1], [], []>} : vector<16x48xf32>, vector<48x32xf32>, vector<16x32xf32> -> vector<16x32xf32>
    %663 = arith.addf %654, %662 : vector<16x32xf32>
    %c4_316 = arith.constant 4 : index
    %c0_317 = arith.constant 0 : index
    %c0_318 = arith.constant 0 : index
    %664 = vector.load %arg20[%c4_316, %c0_317, %c0_318] : memref<9x16x48xf32, #tpu.memory_space<vmem>>, vector<1x16x48xf32>
    %665 = vector.shape_cast %664 : vector<1x16x48xf32> to vector<16x48xf32>
    %cst_319 = arith.constant dense<0.000000e+00> : vector<16x32xf32>
    %666 = tpu.matmul %665, %628, %cst_319 {dimension_numbers = #tpu.dot_dimension_numbers<[1], [0], [0], [1], [0, 0, 1, 1], [], []>} : vector<16x48xf32>, vector<48x32xf32>, vector<16x32xf32> -> vector<16x32xf32>
    %667 = arith.addf %663, %666 : vector<16x32xf32>
    %668 = vector.extract_strided_slice %628 {offsets = [0, 1], sizes = [48, 31], strides = [1, 1]} : vector<48x32xf32> to vector<48x31xf32>
    %669 = vector.extract_strided_slice %628 {offsets = [0, 0], sizes = [48, 1], strides = [1, 1]} : vector<48x32xf32> to vector<48x1xf32>
    %670 = tpu.concatenate %668, %669 in 1 : vector<48x31xf32>, vector<48x1xf32> -> vector<48x32xf32>
    %671 = vector.broadcast %88 : vector<1x32xf32> to vector<48x32xf32>
    %672 = arith.mulf %670, %671 : vector<48x32xf32>
    %c5_320 = arith.constant 5 : index
    %c0_321 = arith.constant 0 : index
    %c0_322 = arith.constant 0 : index
    %673 = vector.load %arg20[%c5_320, %c0_321, %c0_322] : memref<9x16x48xf32, #tpu.memory_space<vmem>>, vector<1x16x48xf32>
    %674 = vector.shape_cast %673 : vector<1x16x48xf32> to vector<16x48xf32>
    %cst_323 = arith.constant dense<0.000000e+00> : vector<16x32xf32>
    %675 = tpu.matmul %674, %672, %cst_323 {dimension_numbers = #tpu.dot_dimension_numbers<[1], [0], [0], [1], [0, 0, 1, 1], [], []>} : vector<16x48xf32>, vector<48x32xf32>, vector<16x32xf32> -> vector<16x32xf32>
    %676 = arith.addf %667, %675 : vector<16x32xf32>
    %677 = vector.extract_strided_slice %628 {offsets = [0, 3], sizes = [48, 29], strides = [1, 1]} : vector<48x32xf32> to vector<48x29xf32>
    %678 = vector.extract_strided_slice %628 {offsets = [0, 0], sizes = [48, 3], strides = [1, 1]} : vector<48x32xf32> to vector<48x3xf32>
    %679 = tpu.concatenate %677, %678 in 1 : vector<48x29xf32>, vector<48x3xf32> -> vector<48x32xf32>
    %680 = vector.broadcast %91 : vector<1x32xf32> to vector<48x32xf32>
    %681 = arith.mulf %679, %680 : vector<48x32xf32>
    %c6_324 = arith.constant 6 : index
    %c0_325 = arith.constant 0 : index
    %c0_326 = arith.constant 0 : index
    %682 = vector.load %arg20[%c6_324, %c0_325, %c0_326] : memref<9x16x48xf32, #tpu.memory_space<vmem>>, vector<1x16x48xf32>
    %683 = vector.shape_cast %682 : vector<1x16x48xf32> to vector<16x48xf32>
    %cst_327 = arith.constant dense<0.000000e+00> : vector<16x32xf32>
    %684 = tpu.matmul %683, %681, %cst_327 {dimension_numbers = #tpu.dot_dimension_numbers<[1], [0], [0], [1], [0, 0, 1, 1], [], []>} : vector<16x48xf32>, vector<48x32xf32>, vector<16x32xf32> -> vector<16x32xf32>
    %685 = arith.addf %676, %684 : vector<16x32xf32>
    %686 = vector.extract_strided_slice %628 {offsets = [0, 4], sizes = [48, 28], strides = [1, 1]} : vector<48x32xf32> to vector<48x28xf32>
    %687 = vector.extract_strided_slice %628 {offsets = [0, 0], sizes = [48, 4], strides = [1, 1]} : vector<48x32xf32> to vector<48x4xf32>
    %688 = tpu.concatenate %686, %687 in 1 : vector<48x28xf32>, vector<48x4xf32> -> vector<48x32xf32>
    %689 = vector.broadcast %78 : vector<1x32xf32> to vector<48x32xf32>
    %690 = arith.mulf %688, %689 : vector<48x32xf32>
    %c7_328 = arith.constant 7 : index
    %c0_329 = arith.constant 0 : index
    %c0_330 = arith.constant 0 : index
    %691 = vector.load %arg20[%c7_328, %c0_329, %c0_330] : memref<9x16x48xf32, #tpu.memory_space<vmem>>, vector<1x16x48xf32>
    %692 = vector.shape_cast %691 : vector<1x16x48xf32> to vector<16x48xf32>
    %cst_331 = arith.constant dense<0.000000e+00> : vector<16x32xf32>
    %693 = tpu.matmul %692, %690, %cst_331 {dimension_numbers = #tpu.dot_dimension_numbers<[1], [0], [0], [1], [0, 0, 1, 1], [], []>} : vector<16x48xf32>, vector<48x32xf32>, vector<16x32xf32> -> vector<16x32xf32>
    %694 = arith.addf %685, %693 : vector<16x32xf32>
    %695 = vector.extract_strided_slice %628 {offsets = [0, 5], sizes = [48, 27], strides = [1, 1]} : vector<48x32xf32> to vector<48x27xf32>
    %696 = vector.extract_strided_slice %628 {offsets = [0, 0], sizes = [48, 5], strides = [1, 1]} : vector<48x32xf32> to vector<48x5xf32>
    %697 = tpu.concatenate %695, %696 in 1 : vector<48x27xf32>, vector<48x5xf32> -> vector<48x32xf32>
    %698 = vector.broadcast %92 : vector<1x32xf32> to vector<48x32xf32>
    %699 = arith.mulf %697, %698 : vector<48x32xf32>
    %c8_332 = arith.constant 8 : index
    %c0_333 = arith.constant 0 : index
    %c0_334 = arith.constant 0 : index
    %700 = vector.load %arg20[%c8_332, %c0_333, %c0_334] : memref<9x16x48xf32, #tpu.memory_space<vmem>>, vector<1x16x48xf32>
    %701 = vector.shape_cast %700 : vector<1x16x48xf32> to vector<16x48xf32>
    %cst_335 = arith.constant dense<0.000000e+00> : vector<16x32xf32>
    %702 = tpu.matmul %701, %699, %cst_335 {dimension_numbers = #tpu.dot_dimension_numbers<[1], [0], [0], [1], [0, 0, 1, 1], [], []>} : vector<16x48xf32>, vector<48x32xf32>, vector<16x32xf32> -> vector<16x32xf32>
    %703 = arith.addf %694, %702 : vector<16x32xf32>
    %c0_336 = arith.constant 0 : index
    %c0_337 = arith.constant 0 : index
    %704 = vector.load %arg21[%c0_336, %c0_337] : memref<16x1xf32, #tpu.memory_space<vmem>>, vector<16x1xf32>
    %705 = vector.broadcast %704 : vector<16x1xf32> to vector<16x32xf32>
    %706 = arith.addf %703, %705 : vector<16x32xf32>
    %cst_338 = arith.constant 0.000000e+00 : f32
    %707 = vector.broadcast %cst_338 : f32 to vector<16x32xf32>
    %708 = arith.maximumf %706, %707 : vector<16x32xf32>
    %709 = vector.extract_strided_slice %708 {offsets = [0, 27], sizes = [16, 5], strides = [1, 1]} : vector<16x32xf32> to vector<16x5xf32>
    %710 = vector.extract_strided_slice %708 {offsets = [0, 0], sizes = [16, 27], strides = [1, 1]} : vector<16x32xf32> to vector<16x27xf32>
    %711 = tpu.concatenate %709, %710 in 1 : vector<16x5xf32>, vector<16x27xf32> -> vector<16x32xf32>
    %712 = vector.broadcast %89 : vector<1x32xf32> to vector<16x32xf32>
    %713 = arith.mulf %711, %712 : vector<16x32xf32>
    %c0_339 = arith.constant 0 : index
    %c0_340 = arith.constant 0 : index
    %c0_341 = arith.constant 0 : index
    %714 = vector.load %arg22[%c0_339, %c0_340, %c0_341] : memref<9x16x16xf32, #tpu.memory_space<vmem>>, vector<1x16x16xf32>
    %715 = vector.shape_cast %714 : vector<1x16x16xf32> to vector<16x16xf32>
    %cst_342 = arith.constant dense<0.000000e+00> : vector<16x32xf32>
    %716 = tpu.matmul %715, %713, %cst_342 {dimension_numbers = #tpu.dot_dimension_numbers<[1], [0], [0], [1], [0, 0, 1, 1], [], []>} : vector<16x16xf32>, vector<16x32xf32>, vector<16x32xf32> -> vector<16x32xf32>
    %717 = vector.extract_strided_slice %708 {offsets = [0, 28], sizes = [16, 4], strides = [1, 1]} : vector<16x32xf32> to vector<16x4xf32>
    %718 = vector.extract_strided_slice %708 {offsets = [0, 0], sizes = [16, 28], strides = [1, 1]} : vector<16x32xf32> to vector<16x28xf32>
    %719 = tpu.concatenate %717, %718 in 1 : vector<16x4xf32>, vector<16x28xf32> -> vector<16x32xf32>
    %720 = vector.broadcast %73 : vector<1x32xf32> to vector<16x32xf32>
    %721 = arith.mulf %719, %720 : vector<16x32xf32>
    %c1_343 = arith.constant 1 : index
    %c0_344 = arith.constant 0 : index
    %c0_345 = arith.constant 0 : index
    %722 = vector.load %arg22[%c1_343, %c0_344, %c0_345] : memref<9x16x16xf32, #tpu.memory_space<vmem>>, vector<1x16x16xf32>
    %723 = vector.shape_cast %722 : vector<1x16x16xf32> to vector<16x16xf32>
    %cst_346 = arith.constant dense<0.000000e+00> : vector<16x32xf32>
    %724 = tpu.matmul %723, %721, %cst_346 {dimension_numbers = #tpu.dot_dimension_numbers<[1], [0], [0], [1], [0, 0, 1, 1], [], []>} : vector<16x16xf32>, vector<16x32xf32>, vector<16x32xf32> -> vector<16x32xf32>
    %725 = arith.addf %716, %724 : vector<16x32xf32>
    %726 = vector.extract_strided_slice %708 {offsets = [0, 29], sizes = [16, 3], strides = [1, 1]} : vector<16x32xf32> to vector<16x3xf32>
    %727 = vector.extract_strided_slice %708 {offsets = [0, 0], sizes = [16, 29], strides = [1, 1]} : vector<16x32xf32> to vector<16x29xf32>
    %728 = tpu.concatenate %726, %727 in 1 : vector<16x3xf32>, vector<16x29xf32> -> vector<16x32xf32>
    %729 = vector.broadcast %90 : vector<1x32xf32> to vector<16x32xf32>
    %730 = arith.mulf %728, %729 : vector<16x32xf32>
    %c2_347 = arith.constant 2 : index
    %c0_348 = arith.constant 0 : index
    %c0_349 = arith.constant 0 : index
    %731 = vector.load %arg22[%c2_347, %c0_348, %c0_349] : memref<9x16x16xf32, #tpu.memory_space<vmem>>, vector<1x16x16xf32>
    %732 = vector.shape_cast %731 : vector<1x16x16xf32> to vector<16x16xf32>
    %cst_350 = arith.constant dense<0.000000e+00> : vector<16x32xf32>
    %733 = tpu.matmul %732, %730, %cst_350 {dimension_numbers = #tpu.dot_dimension_numbers<[1], [0], [0], [1], [0, 0, 1, 1], [], []>} : vector<16x16xf32>, vector<16x32xf32>, vector<16x32xf32> -> vector<16x32xf32>
    %734 = arith.addf %725, %733 : vector<16x32xf32>
    %735 = vector.extract_strided_slice %708 {offsets = [0, 31], sizes = [16, 1], strides = [1, 1]} : vector<16x32xf32> to vector<16x1xf32>
    %736 = vector.extract_strided_slice %708 {offsets = [0, 0], sizes = [16, 31], strides = [1, 1]} : vector<16x32xf32> to vector<16x31xf32>
    %737 = tpu.concatenate %735, %736 in 1 : vector<16x1xf32>, vector<16x31xf32> -> vector<16x32xf32>
    %738 = vector.broadcast %83 : vector<1x32xf32> to vector<16x32xf32>
    %739 = arith.mulf %737, %738 : vector<16x32xf32>
    %c3_351 = arith.constant 3 : index
    %c0_352 = arith.constant 0 : index
    %c0_353 = arith.constant 0 : index
    %740 = vector.load %arg22[%c3_351, %c0_352, %c0_353] : memref<9x16x16xf32, #tpu.memory_space<vmem>>, vector<1x16x16xf32>
    %741 = vector.shape_cast %740 : vector<1x16x16xf32> to vector<16x16xf32>
    %cst_354 = arith.constant dense<0.000000e+00> : vector<16x32xf32>
    %742 = tpu.matmul %741, %739, %cst_354 {dimension_numbers = #tpu.dot_dimension_numbers<[1], [0], [0], [1], [0, 0, 1, 1], [], []>} : vector<16x16xf32>, vector<16x32xf32>, vector<16x32xf32> -> vector<16x32xf32>
    %743 = arith.addf %734, %742 : vector<16x32xf32>
    %c4_355 = arith.constant 4 : index
    %c0_356 = arith.constant 0 : index
    %c0_357 = arith.constant 0 : index
    %744 = vector.load %arg22[%c4_355, %c0_356, %c0_357] : memref<9x16x16xf32, #tpu.memory_space<vmem>>, vector<1x16x16xf32>
    %745 = vector.shape_cast %744 : vector<1x16x16xf32> to vector<16x16xf32>
    %cst_358 = arith.constant dense<0.000000e+00> : vector<16x32xf32>
    %746 = tpu.matmul %745, %708, %cst_358 {dimension_numbers = #tpu.dot_dimension_numbers<[1], [0], [0], [1], [0, 0, 1, 1], [], []>} : vector<16x16xf32>, vector<16x32xf32>, vector<16x32xf32> -> vector<16x32xf32>
    %747 = arith.addf %743, %746 : vector<16x32xf32>
    %748 = vector.extract_strided_slice %708 {offsets = [0, 1], sizes = [16, 31], strides = [1, 1]} : vector<16x32xf32> to vector<16x31xf32>
    %749 = vector.extract_strided_slice %708 {offsets = [0, 0], sizes = [16, 1], strides = [1, 1]} : vector<16x32xf32> to vector<16x1xf32>
    %750 = tpu.concatenate %748, %749 in 1 : vector<16x31xf32>, vector<16x1xf32> -> vector<16x32xf32>
    %751 = vector.broadcast %88 : vector<1x32xf32> to vector<16x32xf32>
    %752 = arith.mulf %750, %751 : vector<16x32xf32>
    %c5_359 = arith.constant 5 : index
    %c0_360 = arith.constant 0 : index
    %c0_361 = arith.constant 0 : index
    %753 = vector.load %arg22[%c5_359, %c0_360, %c0_361] : memref<9x16x16xf32, #tpu.memory_space<vmem>>, vector<1x16x16xf32>
    %754 = vector.shape_cast %753 : vector<1x16x16xf32> to vector<16x16xf32>
    %cst_362 = arith.constant dense<0.000000e+00> : vector<16x32xf32>
    %755 = tpu.matmul %754, %752, %cst_362 {dimension_numbers = #tpu.dot_dimension_numbers<[1], [0], [0], [1], [0, 0, 1, 1], [], []>} : vector<16x16xf32>, vector<16x32xf32>, vector<16x32xf32> -> vector<16x32xf32>
    %756 = arith.addf %747, %755 : vector<16x32xf32>
    %757 = vector.extract_strided_slice %708 {offsets = [0, 3], sizes = [16, 29], strides = [1, 1]} : vector<16x32xf32> to vector<16x29xf32>
    %758 = vector.extract_strided_slice %708 {offsets = [0, 0], sizes = [16, 3], strides = [1, 1]} : vector<16x32xf32> to vector<16x3xf32>
    %759 = tpu.concatenate %757, %758 in 1 : vector<16x29xf32>, vector<16x3xf32> -> vector<16x32xf32>
    %760 = vector.broadcast %91 : vector<1x32xf32> to vector<16x32xf32>
    %761 = arith.mulf %759, %760 : vector<16x32xf32>
    %c6_363 = arith.constant 6 : index
    %c0_364 = arith.constant 0 : index
    %c0_365 = arith.constant 0 : index
    %762 = vector.load %arg22[%c6_363, %c0_364, %c0_365] : memref<9x16x16xf32, #tpu.memory_space<vmem>>, vector<1x16x16xf32>
    %763 = vector.shape_cast %762 : vector<1x16x16xf32> to vector<16x16xf32>
    %cst_366 = arith.constant dense<0.000000e+00> : vector<16x32xf32>
    %764 = tpu.matmul %763, %761, %cst_366 {dimension_numbers = #tpu.dot_dimension_numbers<[1], [0], [0], [1], [0, 0, 1, 1], [], []>} : vector<16x16xf32>, vector<16x32xf32>, vector<16x32xf32> -> vector<16x32xf32>
    %765 = arith.addf %756, %764 : vector<16x32xf32>
    %766 = vector.extract_strided_slice %708 {offsets = [0, 4], sizes = [16, 28], strides = [1, 1]} : vector<16x32xf32> to vector<16x28xf32>
    %767 = vector.extract_strided_slice %708 {offsets = [0, 0], sizes = [16, 4], strides = [1, 1]} : vector<16x32xf32> to vector<16x4xf32>
    %768 = tpu.concatenate %766, %767 in 1 : vector<16x28xf32>, vector<16x4xf32> -> vector<16x32xf32>
    %769 = vector.broadcast %78 : vector<1x32xf32> to vector<16x32xf32>
    %770 = arith.mulf %768, %769 : vector<16x32xf32>
    %c7_367 = arith.constant 7 : index
    %c0_368 = arith.constant 0 : index
    %c0_369 = arith.constant 0 : index
    %771 = vector.load %arg22[%c7_367, %c0_368, %c0_369] : memref<9x16x16xf32, #tpu.memory_space<vmem>>, vector<1x16x16xf32>
    %772 = vector.shape_cast %771 : vector<1x16x16xf32> to vector<16x16xf32>
    %cst_370 = arith.constant dense<0.000000e+00> : vector<16x32xf32>
    %773 = tpu.matmul %772, %770, %cst_370 {dimension_numbers = #tpu.dot_dimension_numbers<[1], [0], [0], [1], [0, 0, 1, 1], [], []>} : vector<16x16xf32>, vector<16x32xf32>, vector<16x32xf32> -> vector<16x32xf32>
    %774 = arith.addf %765, %773 : vector<16x32xf32>
    %775 = vector.extract_strided_slice %708 {offsets = [0, 5], sizes = [16, 27], strides = [1, 1]} : vector<16x32xf32> to vector<16x27xf32>
    %776 = vector.extract_strided_slice %708 {offsets = [0, 0], sizes = [16, 5], strides = [1, 1]} : vector<16x32xf32> to vector<16x5xf32>
    %777 = tpu.concatenate %775, %776 in 1 : vector<16x27xf32>, vector<16x5xf32> -> vector<16x32xf32>
    %778 = vector.broadcast %92 : vector<1x32xf32> to vector<16x32xf32>
    %779 = arith.mulf %777, %778 : vector<16x32xf32>
    %c8_371 = arith.constant 8 : index
    %c0_372 = arith.constant 0 : index
    %c0_373 = arith.constant 0 : index
    %780 = vector.load %arg22[%c8_371, %c0_372, %c0_373] : memref<9x16x16xf32, #tpu.memory_space<vmem>>, vector<1x16x16xf32>
    %781 = vector.shape_cast %780 : vector<1x16x16xf32> to vector<16x16xf32>
    %cst_374 = arith.constant dense<0.000000e+00> : vector<16x32xf32>
    %782 = tpu.matmul %781, %779, %cst_374 {dimension_numbers = #tpu.dot_dimension_numbers<[1], [0], [0], [1], [0, 0, 1, 1], [], []>} : vector<16x16xf32>, vector<16x32xf32>, vector<16x32xf32> -> vector<16x32xf32>
    %783 = arith.addf %774, %782 : vector<16x32xf32>
    %c0_375 = arith.constant 0 : index
    %c0_376 = arith.constant 0 : index
    %784 = vector.load %arg23[%c0_375, %c0_376] : memref<16x1xf32, #tpu.memory_space<vmem>>, vector<16x1xf32>
    %785 = vector.broadcast %784 : vector<16x1xf32> to vector<16x32xf32>
    %786 = arith.addf %783, %785 : vector<16x32xf32>
    %cst_377 = arith.constant 0.000000e+00 : f32
    %787 = vector.broadcast %cst_377 : f32 to vector<16x32xf32>
    %788 = arith.maximumf %786, %787 : vector<16x32xf32>
    %c0_378 = arith.constant 0 : index
    %c0_379 = arith.constant 0 : index
    %789 = vector.load %arg36[%c0_378, %c0_379] : memref<32x128xf32, #tpu.memory_space<vmem>>, vector<32x128xf32>
    %cst_380 = arith.constant dense<0.000000e+00> : vector<16x128xf32>
    %790 = tpu.matmul %788, %789, %cst_380 {dimension_numbers = #tpu.dot_dimension_numbers<[1], [0], [0], [1], [0, 0, 1, 1], [], []>} : vector<16x32xf32>, vector<32x128xf32>, vector<16x128xf32> -> vector<16x128xf32>
    %c0_381 = arith.constant 0 : index
    %c0_382 = arith.constant 0 : index
    %791 = vector.load %arg39[%c0_381, %c0_382] : memref<8x128xf32, #tpu.memory_space<vmem>>, vector<8x128xf32>
    %792 = tpu.concatenate %790, %791 in 0 : vector<16x128xf32>, vector<8x128xf32> -> vector<24x128xf32>
    %793 = vector.extract_strided_slice %792 {offsets = [0, 119], sizes = [24, 9], strides = [1, 1]} : vector<24x128xf32> to vector<24x9xf32>
    %794 = vector.extract_strided_slice %792 {offsets = [0, 0], sizes = [24, 119], strides = [1, 1]} : vector<24x128xf32> to vector<24x119xf32>
    %795 = tpu.concatenate %793, %794 in 1 : vector<24x9xf32>, vector<24x119xf32> -> vector<24x128xf32>
    %796 = vector.broadcast %58 : vector<1x128xf32> to vector<24x128xf32>
    %797 = arith.mulf %795, %796 : vector<24x128xf32>
    %c0_383 = arith.constant 0 : index
    %c0_384 = arith.constant 0 : index
    %c0_385 = arith.constant 0 : index
    %798 = vector.load %arg24[%c0_383, %c0_384, %c0_385] : memref<9x8x24xf32, #tpu.memory_space<vmem>>, vector<1x8x24xf32>
    %799 = vector.shape_cast %798 : vector<1x8x24xf32> to vector<8x24xf32>
    %cst_386 = arith.constant dense<0.000000e+00> : vector<8x128xf32>
    %800 = tpu.matmul %799, %797, %cst_386 {dimension_numbers = #tpu.dot_dimension_numbers<[1], [0], [0], [1], [0, 0, 1, 1], [], []>} : vector<8x24xf32>, vector<24x128xf32>, vector<8x128xf32> -> vector<8x128xf32>
    %801 = vector.extract_strided_slice %792 {offsets = [0, 120], sizes = [24, 8], strides = [1, 1]} : vector<24x128xf32> to vector<24x8xf32>
    %802 = vector.extract_strided_slice %792 {offsets = [0, 0], sizes = [24, 120], strides = [1, 1]} : vector<24x128xf32> to vector<24x120xf32>
    %803 = tpu.concatenate %801, %802 in 1 : vector<24x8xf32>, vector<24x120xf32> -> vector<24x128xf32>
    %804 = vector.broadcast %42 : vector<1x128xf32> to vector<24x128xf32>
    %805 = arith.mulf %803, %804 : vector<24x128xf32>
    %c1_387 = arith.constant 1 : index
    %c0_388 = arith.constant 0 : index
    %c0_389 = arith.constant 0 : index
    %806 = vector.load %arg24[%c1_387, %c0_388, %c0_389] : memref<9x8x24xf32, #tpu.memory_space<vmem>>, vector<1x8x24xf32>
    %807 = vector.shape_cast %806 : vector<1x8x24xf32> to vector<8x24xf32>
    %cst_390 = arith.constant dense<0.000000e+00> : vector<8x128xf32>
    %808 = tpu.matmul %807, %805, %cst_390 {dimension_numbers = #tpu.dot_dimension_numbers<[1], [0], [0], [1], [0, 0, 1, 1], [], []>} : vector<8x24xf32>, vector<24x128xf32>, vector<8x128xf32> -> vector<8x128xf32>
    %809 = arith.addf %800, %808 : vector<8x128xf32>
    %810 = vector.extract_strided_slice %792 {offsets = [0, 121], sizes = [24, 7], strides = [1, 1]} : vector<24x128xf32> to vector<24x7xf32>
    %811 = vector.extract_strided_slice %792 {offsets = [0, 0], sizes = [24, 121], strides = [1, 1]} : vector<24x128xf32> to vector<24x121xf32>
    %812 = tpu.concatenate %810, %811 in 1 : vector<24x7xf32>, vector<24x121xf32> -> vector<24x128xf32>
    %813 = vector.broadcast %59 : vector<1x128xf32> to vector<24x128xf32>
    %814 = arith.mulf %812, %813 : vector<24x128xf32>
    %c2_391 = arith.constant 2 : index
    %c0_392 = arith.constant 0 : index
    %c0_393 = arith.constant 0 : index
    %815 = vector.load %arg24[%c2_391, %c0_392, %c0_393] : memref<9x8x24xf32, #tpu.memory_space<vmem>>, vector<1x8x24xf32>
    %816 = vector.shape_cast %815 : vector<1x8x24xf32> to vector<8x24xf32>
    %cst_394 = arith.constant dense<0.000000e+00> : vector<8x128xf32>
    %817 = tpu.matmul %816, %814, %cst_394 {dimension_numbers = #tpu.dot_dimension_numbers<[1], [0], [0], [1], [0, 0, 1, 1], [], []>} : vector<8x24xf32>, vector<24x128xf32>, vector<8x128xf32> -> vector<8x128xf32>
    %818 = arith.addf %809, %817 : vector<8x128xf32>
    %819 = vector.extract_strided_slice %792 {offsets = [0, 127], sizes = [24, 1], strides = [1, 1]} : vector<24x128xf32> to vector<24x1xf32>
    %820 = vector.extract_strided_slice %792 {offsets = [0, 0], sizes = [24, 127], strides = [1, 1]} : vector<24x128xf32> to vector<24x127xf32>
    %821 = tpu.concatenate %819, %820 in 1 : vector<24x1xf32>, vector<24x127xf32> -> vector<24x128xf32>
    %822 = vector.broadcast %52 : vector<1x128xf32> to vector<24x128xf32>
    %823 = arith.mulf %821, %822 : vector<24x128xf32>
    %c3_395 = arith.constant 3 : index
    %c0_396 = arith.constant 0 : index
    %c0_397 = arith.constant 0 : index
    %824 = vector.load %arg24[%c3_395, %c0_396, %c0_397] : memref<9x8x24xf32, #tpu.memory_space<vmem>>, vector<1x8x24xf32>
    %825 = vector.shape_cast %824 : vector<1x8x24xf32> to vector<8x24xf32>
    %cst_398 = arith.constant dense<0.000000e+00> : vector<8x128xf32>
    %826 = tpu.matmul %825, %823, %cst_398 {dimension_numbers = #tpu.dot_dimension_numbers<[1], [0], [0], [1], [0, 0, 1, 1], [], []>} : vector<8x24xf32>, vector<24x128xf32>, vector<8x128xf32> -> vector<8x128xf32>
    %827 = arith.addf %818, %826 : vector<8x128xf32>
    %c4_399 = arith.constant 4 : index
    %c0_400 = arith.constant 0 : index
    %c0_401 = arith.constant 0 : index
    %828 = vector.load %arg24[%c4_399, %c0_400, %c0_401] : memref<9x8x24xf32, #tpu.memory_space<vmem>>, vector<1x8x24xf32>
    %829 = vector.shape_cast %828 : vector<1x8x24xf32> to vector<8x24xf32>
    %cst_402 = arith.constant dense<0.000000e+00> : vector<8x128xf32>
    %830 = tpu.matmul %829, %792, %cst_402 {dimension_numbers = #tpu.dot_dimension_numbers<[1], [0], [0], [1], [0, 0, 1, 1], [], []>} : vector<8x24xf32>, vector<24x128xf32>, vector<8x128xf32> -> vector<8x128xf32>
    %831 = arith.addf %827, %830 : vector<8x128xf32>
    %832 = vector.extract_strided_slice %792 {offsets = [0, 1], sizes = [24, 127], strides = [1, 1]} : vector<24x128xf32> to vector<24x127xf32>
    %833 = vector.extract_strided_slice %792 {offsets = [0, 0], sizes = [24, 1], strides = [1, 1]} : vector<24x128xf32> to vector<24x1xf32>
    %834 = tpu.concatenate %832, %833 in 1 : vector<24x127xf32>, vector<24x1xf32> -> vector<24x128xf32>
    %835 = vector.broadcast %57 : vector<1x128xf32> to vector<24x128xf32>
    %836 = arith.mulf %834, %835 : vector<24x128xf32>
    %c5_403 = arith.constant 5 : index
    %c0_404 = arith.constant 0 : index
    %c0_405 = arith.constant 0 : index
    %837 = vector.load %arg24[%c5_403, %c0_404, %c0_405] : memref<9x8x24xf32, #tpu.memory_space<vmem>>, vector<1x8x24xf32>
    %838 = vector.shape_cast %837 : vector<1x8x24xf32> to vector<8x24xf32>
    %cst_406 = arith.constant dense<0.000000e+00> : vector<8x128xf32>
    %839 = tpu.matmul %838, %836, %cst_406 {dimension_numbers = #tpu.dot_dimension_numbers<[1], [0], [0], [1], [0, 0, 1, 1], [], []>} : vector<8x24xf32>, vector<24x128xf32>, vector<8x128xf32> -> vector<8x128xf32>
    %840 = arith.addf %831, %839 : vector<8x128xf32>
    %841 = vector.extract_strided_slice %792 {offsets = [0, 7], sizes = [24, 121], strides = [1, 1]} : vector<24x128xf32> to vector<24x121xf32>
    %842 = vector.extract_strided_slice %792 {offsets = [0, 0], sizes = [24, 7], strides = [1, 1]} : vector<24x128xf32> to vector<24x7xf32>
    %843 = tpu.concatenate %841, %842 in 1 : vector<24x121xf32>, vector<24x7xf32> -> vector<24x128xf32>
    %844 = vector.broadcast %60 : vector<1x128xf32> to vector<24x128xf32>
    %845 = arith.mulf %843, %844 : vector<24x128xf32>
    %c6_407 = arith.constant 6 : index
    %c0_408 = arith.constant 0 : index
    %c0_409 = arith.constant 0 : index
    %846 = vector.load %arg24[%c6_407, %c0_408, %c0_409] : memref<9x8x24xf32, #tpu.memory_space<vmem>>, vector<1x8x24xf32>
    %847 = vector.shape_cast %846 : vector<1x8x24xf32> to vector<8x24xf32>
    %cst_410 = arith.constant dense<0.000000e+00> : vector<8x128xf32>
    %848 = tpu.matmul %847, %845, %cst_410 {dimension_numbers = #tpu.dot_dimension_numbers<[1], [0], [0], [1], [0, 0, 1, 1], [], []>} : vector<8x24xf32>, vector<24x128xf32>, vector<8x128xf32> -> vector<8x128xf32>
    %849 = arith.addf %840, %848 : vector<8x128xf32>
    %850 = vector.extract_strided_slice %792 {offsets = [0, 8], sizes = [24, 120], strides = [1, 1]} : vector<24x128xf32> to vector<24x120xf32>
    %851 = vector.extract_strided_slice %792 {offsets = [0, 0], sizes = [24, 8], strides = [1, 1]} : vector<24x128xf32> to vector<24x8xf32>
    %852 = tpu.concatenate %850, %851 in 1 : vector<24x120xf32>, vector<24x8xf32> -> vector<24x128xf32>
    %853 = vector.broadcast %47 : vector<1x128xf32> to vector<24x128xf32>
    %854 = arith.mulf %852, %853 : vector<24x128xf32>
    %c7_411 = arith.constant 7 : index
    %c0_412 = arith.constant 0 : index
    %c0_413 = arith.constant 0 : index
    %855 = vector.load %arg24[%c7_411, %c0_412, %c0_413] : memref<9x8x24xf32, #tpu.memory_space<vmem>>, vector<1x8x24xf32>
    %856 = vector.shape_cast %855 : vector<1x8x24xf32> to vector<8x24xf32>
    %cst_414 = arith.constant dense<0.000000e+00> : vector<8x128xf32>
    %857 = tpu.matmul %856, %854, %cst_414 {dimension_numbers = #tpu.dot_dimension_numbers<[1], [0], [0], [1], [0, 0, 1, 1], [], []>} : vector<8x24xf32>, vector<24x128xf32>, vector<8x128xf32> -> vector<8x128xf32>
    %858 = arith.addf %849, %857 : vector<8x128xf32>
    %859 = vector.extract_strided_slice %792 {offsets = [0, 9], sizes = [24, 119], strides = [1, 1]} : vector<24x128xf32> to vector<24x119xf32>
    %860 = vector.extract_strided_slice %792 {offsets = [0, 0], sizes = [24, 9], strides = [1, 1]} : vector<24x128xf32> to vector<24x9xf32>
    %861 = tpu.concatenate %859, %860 in 1 : vector<24x119xf32>, vector<24x9xf32> -> vector<24x128xf32>
    %862 = vector.broadcast %61 : vector<1x128xf32> to vector<24x128xf32>
    %863 = arith.mulf %861, %862 : vector<24x128xf32>
    %c8_415 = arith.constant 8 : index
    %c0_416 = arith.constant 0 : index
    %c0_417 = arith.constant 0 : index
    %864 = vector.load %arg24[%c8_415, %c0_416, %c0_417] : memref<9x8x24xf32, #tpu.memory_space<vmem>>, vector<1x8x24xf32>
    %865 = vector.shape_cast %864 : vector<1x8x24xf32> to vector<8x24xf32>
    %cst_418 = arith.constant dense<0.000000e+00> : vector<8x128xf32>
    %866 = tpu.matmul %865, %863, %cst_418 {dimension_numbers = #tpu.dot_dimension_numbers<[1], [0], [0], [1], [0, 0, 1, 1], [], []>} : vector<8x24xf32>, vector<24x128xf32>, vector<8x128xf32> -> vector<8x128xf32>
    %867 = arith.addf %858, %866 : vector<8x128xf32>
    %c0_419 = arith.constant 0 : index
    %c0_420 = arith.constant 0 : index
    %868 = vector.load %arg25[%c0_419, %c0_420] : memref<8x1xf32, #tpu.memory_space<vmem>>, vector<8x1xf32>
    %869 = vector.broadcast %868 : vector<8x1xf32> to vector<8x128xf32>
    %870 = arith.addf %867, %869 : vector<8x128xf32>
    %cst_421 = arith.constant 0.000000e+00 : f32
    %871 = vector.broadcast %cst_421 : f32 to vector<8x128xf32>
    %872 = arith.maximumf %870, %871 : vector<8x128xf32>
    %873 = vector.extract_strided_slice %872 {offsets = [0, 119], sizes = [8, 9], strides = [1, 1]} : vector<8x128xf32> to vector<8x9xf32>
    %874 = vector.extract_strided_slice %872 {offsets = [0, 0], sizes = [8, 119], strides = [1, 1]} : vector<8x128xf32> to vector<8x119xf32>
    %875 = tpu.concatenate %873, %874 in 1 : vector<8x9xf32>, vector<8x119xf32> -> vector<8x128xf32>
    %876 = vector.broadcast %58 : vector<1x128xf32> to vector<8x128xf32>
    %877 = arith.mulf %875, %876 : vector<8x128xf32>
    %c0_422 = arith.constant 0 : index
    %c0_423 = arith.constant 0 : index
    %c0_424 = arith.constant 0 : index
    %878 = vector.load %arg26[%c0_422, %c0_423, %c0_424] : memref<9x8x8xf32, #tpu.memory_space<vmem>>, vector<1x8x8xf32>
    %879 = vector.shape_cast %878 : vector<1x8x8xf32> to vector<8x8xf32>
    %cst_425 = arith.constant dense<0.000000e+00> : vector<8x128xf32>
    %880 = tpu.matmul %879, %877, %cst_425 {dimension_numbers = #tpu.dot_dimension_numbers<[1], [0], [0], [1], [0, 0, 1, 1], [], []>} : vector<8x8xf32>, vector<8x128xf32>, vector<8x128xf32> -> vector<8x128xf32>
    %881 = vector.extract_strided_slice %872 {offsets = [0, 120], sizes = [8, 8], strides = [1, 1]} : vector<8x128xf32> to vector<8x8xf32>
    %882 = vector.extract_strided_slice %872 {offsets = [0, 0], sizes = [8, 120], strides = [1, 1]} : vector<8x128xf32> to vector<8x120xf32>
    %883 = tpu.concatenate %881, %882 in 1 : vector<8x8xf32>, vector<8x120xf32> -> vector<8x128xf32>
    %884 = vector.broadcast %42 : vector<1x128xf32> to vector<8x128xf32>
    %885 = arith.mulf %883, %884 : vector<8x128xf32>
    %c1_426 = arith.constant 1 : index
    %c0_427 = arith.constant 0 : index
    %c0_428 = arith.constant 0 : index
    %886 = vector.load %arg26[%c1_426, %c0_427, %c0_428] : memref<9x8x8xf32, #tpu.memory_space<vmem>>, vector<1x8x8xf32>
    %887 = vector.shape_cast %886 : vector<1x8x8xf32> to vector<8x8xf32>
    %cst_429 = arith.constant dense<0.000000e+00> : vector<8x128xf32>
    %888 = tpu.matmul %887, %885, %cst_429 {dimension_numbers = #tpu.dot_dimension_numbers<[1], [0], [0], [1], [0, 0, 1, 1], [], []>} : vector<8x8xf32>, vector<8x128xf32>, vector<8x128xf32> -> vector<8x128xf32>
    %889 = arith.addf %880, %888 : vector<8x128xf32>
    %890 = vector.extract_strided_slice %872 {offsets = [0, 121], sizes = [8, 7], strides = [1, 1]} : vector<8x128xf32> to vector<8x7xf32>
    %891 = vector.extract_strided_slice %872 {offsets = [0, 0], sizes = [8, 121], strides = [1, 1]} : vector<8x128xf32> to vector<8x121xf32>
    %892 = tpu.concatenate %890, %891 in 1 : vector<8x7xf32>, vector<8x121xf32> -> vector<8x128xf32>
    %893 = vector.broadcast %59 : vector<1x128xf32> to vector<8x128xf32>
    %894 = arith.mulf %892, %893 : vector<8x128xf32>
    %c2_430 = arith.constant 2 : index
    %c0_431 = arith.constant 0 : index
    %c0_432 = arith.constant 0 : index
    %895 = vector.load %arg26[%c2_430, %c0_431, %c0_432] : memref<9x8x8xf32, #tpu.memory_space<vmem>>, vector<1x8x8xf32>
    %896 = vector.shape_cast %895 : vector<1x8x8xf32> to vector<8x8xf32>
    %cst_433 = arith.constant dense<0.000000e+00> : vector<8x128xf32>
    %897 = tpu.matmul %896, %894, %cst_433 {dimension_numbers = #tpu.dot_dimension_numbers<[1], [0], [0], [1], [0, 0, 1, 1], [], []>} : vector<8x8xf32>, vector<8x128xf32>, vector<8x128xf32> -> vector<8x128xf32>
    %898 = arith.addf %889, %897 : vector<8x128xf32>
    %899 = vector.extract_strided_slice %872 {offsets = [0, 127], sizes = [8, 1], strides = [1, 1]} : vector<8x128xf32> to vector<8x1xf32>
    %900 = vector.extract_strided_slice %872 {offsets = [0, 0], sizes = [8, 127], strides = [1, 1]} : vector<8x128xf32> to vector<8x127xf32>
    %901 = tpu.concatenate %899, %900 in 1 : vector<8x1xf32>, vector<8x127xf32> -> vector<8x128xf32>
    %902 = vector.broadcast %52 : vector<1x128xf32> to vector<8x128xf32>
    %903 = arith.mulf %901, %902 : vector<8x128xf32>
    %c3_434 = arith.constant 3 : index
    %c0_435 = arith.constant 0 : index
    %c0_436 = arith.constant 0 : index
    %904 = vector.load %arg26[%c3_434, %c0_435, %c0_436] : memref<9x8x8xf32, #tpu.memory_space<vmem>>, vector<1x8x8xf32>
    %905 = vector.shape_cast %904 : vector<1x8x8xf32> to vector<8x8xf32>
    %cst_437 = arith.constant dense<0.000000e+00> : vector<8x128xf32>
    %906 = tpu.matmul %905, %903, %cst_437 {dimension_numbers = #tpu.dot_dimension_numbers<[1], [0], [0], [1], [0, 0, 1, 1], [], []>} : vector<8x8xf32>, vector<8x128xf32>, vector<8x128xf32> -> vector<8x128xf32>
    %907 = arith.addf %898, %906 : vector<8x128xf32>
    %c4_438 = arith.constant 4 : index
    %c0_439 = arith.constant 0 : index
    %c0_440 = arith.constant 0 : index
    %908 = vector.load %arg26[%c4_438, %c0_439, %c0_440] : memref<9x8x8xf32, #tpu.memory_space<vmem>>, vector<1x8x8xf32>
    %909 = vector.shape_cast %908 : vector<1x8x8xf32> to vector<8x8xf32>
    %cst_441 = arith.constant dense<0.000000e+00> : vector<8x128xf32>
    %910 = tpu.matmul %909, %872, %cst_441 {dimension_numbers = #tpu.dot_dimension_numbers<[1], [0], [0], [1], [0, 0, 1, 1], [], []>} : vector<8x8xf32>, vector<8x128xf32>, vector<8x128xf32> -> vector<8x128xf32>
    %911 = arith.addf %907, %910 : vector<8x128xf32>
    %912 = vector.extract_strided_slice %872 {offsets = [0, 1], sizes = [8, 127], strides = [1, 1]} : vector<8x128xf32> to vector<8x127xf32>
    %913 = vector.extract_strided_slice %872 {offsets = [0, 0], sizes = [8, 1], strides = [1, 1]} : vector<8x128xf32> to vector<8x1xf32>
    %914 = tpu.concatenate %912, %913 in 1 : vector<8x127xf32>, vector<8x1xf32> -> vector<8x128xf32>
    %915 = vector.broadcast %57 : vector<1x128xf32> to vector<8x128xf32>
    %916 = arith.mulf %914, %915 : vector<8x128xf32>
    %c5_442 = arith.constant 5 : index
    %c0_443 = arith.constant 0 : index
    %c0_444 = arith.constant 0 : index
    %917 = vector.load %arg26[%c5_442, %c0_443, %c0_444] : memref<9x8x8xf32, #tpu.memory_space<vmem>>, vector<1x8x8xf32>
    %918 = vector.shape_cast %917 : vector<1x8x8xf32> to vector<8x8xf32>
    %cst_445 = arith.constant dense<0.000000e+00> : vector<8x128xf32>
    %919 = tpu.matmul %918, %916, %cst_445 {dimension_numbers = #tpu.dot_dimension_numbers<[1], [0], [0], [1], [0, 0, 1, 1], [], []>} : vector<8x8xf32>, vector<8x128xf32>, vector<8x128xf32> -> vector<8x128xf32>
    %920 = arith.addf %911, %919 : vector<8x128xf32>
    %921 = vector.extract_strided_slice %872 {offsets = [0, 7], sizes = [8, 121], strides = [1, 1]} : vector<8x128xf32> to vector<8x121xf32>
    %922 = vector.extract_strided_slice %872 {offsets = [0, 0], sizes = [8, 7], strides = [1, 1]} : vector<8x128xf32> to vector<8x7xf32>
    %923 = tpu.concatenate %921, %922 in 1 : vector<8x121xf32>, vector<8x7xf32> -> vector<8x128xf32>
    %924 = vector.broadcast %60 : vector<1x128xf32> to vector<8x128xf32>
    %925 = arith.mulf %923, %924 : vector<8x128xf32>
    %c6_446 = arith.constant 6 : index
    %c0_447 = arith.constant 0 : index
    %c0_448 = arith.constant 0 : index
    %926 = vector.load %arg26[%c6_446, %c0_447, %c0_448] : memref<9x8x8xf32, #tpu.memory_space<vmem>>, vector<1x8x8xf32>
    %927 = vector.shape_cast %926 : vector<1x8x8xf32> to vector<8x8xf32>
    %cst_449 = arith.constant dense<0.000000e+00> : vector<8x128xf32>
    %928 = tpu.matmul %927, %925, %cst_449 {dimension_numbers = #tpu.dot_dimension_numbers<[1], [0], [0], [1], [0, 0, 1, 1], [], []>} : vector<8x8xf32>, vector<8x128xf32>, vector<8x128xf32> -> vector<8x128xf32>
    %929 = arith.addf %920, %928 : vector<8x128xf32>
    %930 = vector.extract_strided_slice %872 {offsets = [0, 8], sizes = [8, 120], strides = [1, 1]} : vector<8x128xf32> to vector<8x120xf32>
    %931 = vector.extract_strided_slice %872 {offsets = [0, 0], sizes = [8, 8], strides = [1, 1]} : vector<8x128xf32> to vector<8x8xf32>
    %932 = tpu.concatenate %930, %931 in 1 : vector<8x120xf32>, vector<8x8xf32> -> vector<8x128xf32>
    %933 = vector.broadcast %47 : vector<1x128xf32> to vector<8x128xf32>
    %934 = arith.mulf %932, %933 : vector<8x128xf32>
    %c7_450 = arith.constant 7 : index
    %c0_451 = arith.constant 0 : index
    %c0_452 = arith.constant 0 : index
    %935 = vector.load %arg26[%c7_450, %c0_451, %c0_452] : memref<9x8x8xf32, #tpu.memory_space<vmem>>, vector<1x8x8xf32>
    %936 = vector.shape_cast %935 : vector<1x8x8xf32> to vector<8x8xf32>
    %cst_453 = arith.constant dense<0.000000e+00> : vector<8x128xf32>
    %937 = tpu.matmul %936, %934, %cst_453 {dimension_numbers = #tpu.dot_dimension_numbers<[1], [0], [0], [1], [0, 0, 1, 1], [], []>} : vector<8x8xf32>, vector<8x128xf32>, vector<8x128xf32> -> vector<8x128xf32>
    %938 = arith.addf %929, %937 : vector<8x128xf32>
    %939 = vector.extract_strided_slice %872 {offsets = [0, 9], sizes = [8, 119], strides = [1, 1]} : vector<8x128xf32> to vector<8x119xf32>
    %940 = vector.extract_strided_slice %872 {offsets = [0, 0], sizes = [8, 9], strides = [1, 1]} : vector<8x128xf32> to vector<8x9xf32>
    %941 = tpu.concatenate %939, %940 in 1 : vector<8x119xf32>, vector<8x9xf32> -> vector<8x128xf32>
    %942 = vector.broadcast %61 : vector<1x128xf32> to vector<8x128xf32>
    %943 = arith.mulf %941, %942 : vector<8x128xf32>
    %c8_454 = arith.constant 8 : index
    %c0_455 = arith.constant 0 : index
    %c0_456 = arith.constant 0 : index
    %944 = vector.load %arg26[%c8_454, %c0_455, %c0_456] : memref<9x8x8xf32, #tpu.memory_space<vmem>>, vector<1x8x8xf32>
    %945 = vector.shape_cast %944 : vector<1x8x8xf32> to vector<8x8xf32>
    %cst_457 = arith.constant dense<0.000000e+00> : vector<8x128xf32>
    %946 = tpu.matmul %945, %943, %cst_457 {dimension_numbers = #tpu.dot_dimension_numbers<[1], [0], [0], [1], [0, 0, 1, 1], [], []>} : vector<8x8xf32>, vector<8x128xf32>, vector<8x128xf32> -> vector<8x128xf32>
    %947 = arith.addf %938, %946 : vector<8x128xf32>
    %c0_458 = arith.constant 0 : index
    %c0_459 = arith.constant 0 : index
    %948 = vector.load %arg27[%c0_458, %c0_459] : memref<8x1xf32, #tpu.memory_space<vmem>>, vector<8x1xf32>
    %949 = vector.broadcast %948 : vector<8x1xf32> to vector<8x128xf32>
    %950 = arith.addf %947, %949 : vector<8x128xf32>
    %cst_460 = arith.constant 0.000000e+00 : f32
    %951 = vector.broadcast %cst_460 : f32 to vector<8x128xf32>
    %952 = arith.maximumf %950, %951 : vector<8x128xf32>
    %c0_461 = arith.constant 0 : index
    %c0_462 = arith.constant 0 : index
    %953 = vector.load %arg37[%c0_461, %c0_462] : memref<128x512xf32, #tpu.memory_space<vmem>>, vector<128x512xf32>
    %cst_463 = arith.constant dense<0.000000e+00> : vector<8x512xf32>
    %954 = tpu.matmul %952, %953, %cst_463 {dimension_numbers = #tpu.dot_dimension_numbers<[1], [0], [0], [1], [0, 0, 1, 1], [], []>} : vector<8x128xf32>, vector<128x512xf32>, vector<8x512xf32> -> vector<8x512xf32>
    %c0_464 = arith.constant 0 : index
    %c0_465 = arith.constant 0 : index
    %955 = vector.load %arg1[%c0_464, %c0_465] : memref<4x512xf32, #tpu.memory_space<vmem>>, vector<4x512xf32>
    %956 = tpu.concatenate %954, %955 in 0 : vector<8x512xf32>, vector<4x512xf32> -> vector<12x512xf32>
    %957 = vector.extract_strided_slice %956 {offsets = [0, 495], sizes = [12, 17], strides = [1, 1]} : vector<12x512xf32> to vector<12x17xf32>
    %958 = vector.extract_strided_slice %956 {offsets = [0, 0], sizes = [12, 495], strides = [1, 1]} : vector<12x512xf32> to vector<12x495xf32>
    %959 = tpu.concatenate %957, %958 in 1 : vector<12x17xf32>, vector<12x495xf32> -> vector<12x512xf32>
    %960 = vector.broadcast %27 : vector<1x512xf32> to vector<12x512xf32>
    %961 = arith.mulf %959, %960 : vector<12x512xf32>
    %c0_466 = arith.constant 0 : index
    %c0_467 = arith.constant 0 : index
    %c0_468 = arith.constant 0 : index
    %962 = vector.load %arg28[%c0_466, %c0_467, %c0_468] : memref<9x4x12xf32, #tpu.memory_space<vmem>>, vector<1x4x12xf32>
    %963 = vector.shape_cast %962 : vector<1x4x12xf32> to vector<4x12xf32>
    %cst_469 = arith.constant dense<0.000000e+00> : vector<4x512xf32>
    %964 = tpu.matmul %963, %961, %cst_469 {dimension_numbers = #tpu.dot_dimension_numbers<[1], [0], [0], [1], [0, 0, 1, 1], [], []>} : vector<4x12xf32>, vector<12x512xf32>, vector<4x512xf32> -> vector<4x512xf32>
    %965 = vector.extract_strided_slice %956 {offsets = [0, 496], sizes = [12, 16], strides = [1, 1]} : vector<12x512xf32> to vector<12x16xf32>
    %966 = vector.extract_strided_slice %956 {offsets = [0, 0], sizes = [12, 496], strides = [1, 1]} : vector<12x512xf32> to vector<12x496xf32>
    %967 = tpu.concatenate %965, %966 in 1 : vector<12x16xf32>, vector<12x496xf32> -> vector<12x512xf32>
    %968 = vector.broadcast %11 : vector<1x512xf32> to vector<12x512xf32>
    %969 = arith.mulf %967, %968 : vector<12x512xf32>
    %c1_470 = arith.constant 1 : index
    %c0_471 = arith.constant 0 : index
    %c0_472 = arith.constant 0 : index
    %970 = vector.load %arg28[%c1_470, %c0_471, %c0_472] : memref<9x4x12xf32, #tpu.memory_space<vmem>>, vector<1x4x12xf32>
    %971 = vector.shape_cast %970 : vector<1x4x12xf32> to vector<4x12xf32>
    %cst_473 = arith.constant dense<0.000000e+00> : vector<4x512xf32>
    %972 = tpu.matmul %971, %969, %cst_473 {dimension_numbers = #tpu.dot_dimension_numbers<[1], [0], [0], [1], [0, 0, 1, 1], [], []>} : vector<4x12xf32>, vector<12x512xf32>, vector<4x512xf32> -> vector<4x512xf32>
    %973 = arith.addf %964, %972 : vector<4x512xf32>
    %974 = vector.extract_strided_slice %956 {offsets = [0, 497], sizes = [12, 15], strides = [1, 1]} : vector<12x512xf32> to vector<12x15xf32>
    %975 = vector.extract_strided_slice %956 {offsets = [0, 0], sizes = [12, 497], strides = [1, 1]} : vector<12x512xf32> to vector<12x497xf32>
    %976 = tpu.concatenate %974, %975 in 1 : vector<12x15xf32>, vector<12x497xf32> -> vector<12x512xf32>
    %977 = vector.broadcast %28 : vector<1x512xf32> to vector<12x512xf32>
    %978 = arith.mulf %976, %977 : vector<12x512xf32>
    %c2_474 = arith.constant 2 : index
    %c0_475 = arith.constant 0 : index
    %c0_476 = arith.constant 0 : index
    %979 = vector.load %arg28[%c2_474, %c0_475, %c0_476] : memref<9x4x12xf32, #tpu.memory_space<vmem>>, vector<1x4x12xf32>
    %980 = vector.shape_cast %979 : vector<1x4x12xf32> to vector<4x12xf32>
    %cst_477 = arith.constant dense<0.000000e+00> : vector<4x512xf32>
    %981 = tpu.matmul %980, %978, %cst_477 {dimension_numbers = #tpu.dot_dimension_numbers<[1], [0], [0], [1], [0, 0, 1, 1], [], []>} : vector<4x12xf32>, vector<12x512xf32>, vector<4x512xf32> -> vector<4x512xf32>
    %982 = arith.addf %973, %981 : vector<4x512xf32>
    %983 = vector.extract_strided_slice %956 {offsets = [0, 511], sizes = [12, 1], strides = [1, 1]} : vector<12x512xf32> to vector<12x1xf32>
    %984 = vector.extract_strided_slice %956 {offsets = [0, 0], sizes = [12, 511], strides = [1, 1]} : vector<12x512xf32> to vector<12x511xf32>
    %985 = tpu.concatenate %983, %984 in 1 : vector<12x1xf32>, vector<12x511xf32> -> vector<12x512xf32>
    %986 = vector.broadcast %21 : vector<1x512xf32> to vector<12x512xf32>
    %987 = arith.mulf %985, %986 : vector<12x512xf32>
    %c3_478 = arith.constant 3 : index
    %c0_479 = arith.constant 0 : index
    %c0_480 = arith.constant 0 : index
    %988 = vector.load %arg28[%c3_478, %c0_479, %c0_480] : memref<9x4x12xf32, #tpu.memory_space<vmem>>, vector<1x4x12xf32>
    %989 = vector.shape_cast %988 : vector<1x4x12xf32> to vector<4x12xf32>
    %cst_481 = arith.constant dense<0.000000e+00> : vector<4x512xf32>
    %990 = tpu.matmul %989, %987, %cst_481 {dimension_numbers = #tpu.dot_dimension_numbers<[1], [0], [0], [1], [0, 0, 1, 1], [], []>} : vector<4x12xf32>, vector<12x512xf32>, vector<4x512xf32> -> vector<4x512xf32>
    %991 = arith.addf %982, %990 : vector<4x512xf32>
    %c4_482 = arith.constant 4 : index
    %c0_483 = arith.constant 0 : index
    %c0_484 = arith.constant 0 : index
    %992 = vector.load %arg28[%c4_482, %c0_483, %c0_484] : memref<9x4x12xf32, #tpu.memory_space<vmem>>, vector<1x4x12xf32>
    %993 = vector.shape_cast %992 : vector<1x4x12xf32> to vector<4x12xf32>
    %cst_485 = arith.constant dense<0.000000e+00> : vector<4x512xf32>
    %994 = tpu.matmul %993, %956, %cst_485 {dimension_numbers = #tpu.dot_dimension_numbers<[1], [0], [0], [1], [0, 0, 1, 1], [], []>} : vector<4x12xf32>, vector<12x512xf32>, vector<4x512xf32> -> vector<4x512xf32>
    %995 = arith.addf %991, %994 : vector<4x512xf32>
    %996 = vector.extract_strided_slice %956 {offsets = [0, 1], sizes = [12, 511], strides = [1, 1]} : vector<12x512xf32> to vector<12x511xf32>
    %997 = vector.extract_strided_slice %956 {offsets = [0, 0], sizes = [12, 1], strides = [1, 1]} : vector<12x512xf32> to vector<12x1xf32>
    %998 = tpu.concatenate %996, %997 in 1 : vector<12x511xf32>, vector<12x1xf32> -> vector<12x512xf32>
    %999 = vector.broadcast %26 : vector<1x512xf32> to vector<12x512xf32>
    %1000 = arith.mulf %998, %999 : vector<12x512xf32>
    %c5_486 = arith.constant 5 : index
    %c0_487 = arith.constant 0 : index
    %c0_488 = arith.constant 0 : index
    %1001 = vector.load %arg28[%c5_486, %c0_487, %c0_488] : memref<9x4x12xf32, #tpu.memory_space<vmem>>, vector<1x4x12xf32>
    %1002 = vector.shape_cast %1001 : vector<1x4x12xf32> to vector<4x12xf32>
    %cst_489 = arith.constant dense<0.000000e+00> : vector<4x512xf32>
    %1003 = tpu.matmul %1002, %1000, %cst_489 {dimension_numbers = #tpu.dot_dimension_numbers<[1], [0], [0], [1], [0, 0, 1, 1], [], []>} : vector<4x12xf32>, vector<12x512xf32>, vector<4x512xf32> -> vector<4x512xf32>
    %1004 = arith.addf %995, %1003 : vector<4x512xf32>
    %1005 = vector.extract_strided_slice %956 {offsets = [0, 15], sizes = [12, 497], strides = [1, 1]} : vector<12x512xf32> to vector<12x497xf32>
    %1006 = vector.extract_strided_slice %956 {offsets = [0, 0], sizes = [12, 15], strides = [1, 1]} : vector<12x512xf32> to vector<12x15xf32>
    %1007 = tpu.concatenate %1005, %1006 in 1 : vector<12x497xf32>, vector<12x15xf32> -> vector<12x512xf32>
    %1008 = vector.broadcast %29 : vector<1x512xf32> to vector<12x512xf32>
    %1009 = arith.mulf %1007, %1008 : vector<12x512xf32>
    %c6_490 = arith.constant 6 : index
    %c0_491 = arith.constant 0 : index
    %c0_492 = arith.constant 0 : index
    %1010 = vector.load %arg28[%c6_490, %c0_491, %c0_492] : memref<9x4x12xf32, #tpu.memory_space<vmem>>, vector<1x4x12xf32>
    %1011 = vector.shape_cast %1010 : vector<1x4x12xf32> to vector<4x12xf32>
    %cst_493 = arith.constant dense<0.000000e+00> : vector<4x512xf32>
    %1012 = tpu.matmul %1011, %1009, %cst_493 {dimension_numbers = #tpu.dot_dimension_numbers<[1], [0], [0], [1], [0, 0, 1, 1], [], []>} : vector<4x12xf32>, vector<12x512xf32>, vector<4x512xf32> -> vector<4x512xf32>
    %1013 = arith.addf %1004, %1012 : vector<4x512xf32>
    %1014 = vector.extract_strided_slice %956 {offsets = [0, 16], sizes = [12, 496], strides = [1, 1]} : vector<12x512xf32> to vector<12x496xf32>
    %1015 = vector.extract_strided_slice %956 {offsets = [0, 0], sizes = [12, 16], strides = [1, 1]} : vector<12x512xf32> to vector<12x16xf32>
    %1016 = tpu.concatenate %1014, %1015 in 1 : vector<12x496xf32>, vector<12x16xf32> -> vector<12x512xf32>
    %1017 = vector.broadcast %16 : vector<1x512xf32> to vector<12x512xf32>
    %1018 = arith.mulf %1016, %1017 : vector<12x512xf32>
    %c7_494 = arith.constant 7 : index
    %c0_495 = arith.constant 0 : index
    %c0_496 = arith.constant 0 : index
    %1019 = vector.load %arg28[%c7_494, %c0_495, %c0_496] : memref<9x4x12xf32, #tpu.memory_space<vmem>>, vector<1x4x12xf32>
    %1020 = vector.shape_cast %1019 : vector<1x4x12xf32> to vector<4x12xf32>
    %cst_497 = arith.constant dense<0.000000e+00> : vector<4x512xf32>
    %1021 = tpu.matmul %1020, %1018, %cst_497 {dimension_numbers = #tpu.dot_dimension_numbers<[1], [0], [0], [1], [0, 0, 1, 1], [], []>} : vector<4x12xf32>, vector<12x512xf32>, vector<4x512xf32> -> vector<4x512xf32>
    %1022 = arith.addf %1013, %1021 : vector<4x512xf32>
    %1023 = vector.extract_strided_slice %956 {offsets = [0, 17], sizes = [12, 495], strides = [1, 1]} : vector<12x512xf32> to vector<12x495xf32>
    %1024 = vector.extract_strided_slice %956 {offsets = [0, 0], sizes = [12, 17], strides = [1, 1]} : vector<12x512xf32> to vector<12x17xf32>
    %1025 = tpu.concatenate %1023, %1024 in 1 : vector<12x495xf32>, vector<12x17xf32> -> vector<12x512xf32>
    %1026 = vector.broadcast %30 : vector<1x512xf32> to vector<12x512xf32>
    %1027 = arith.mulf %1025, %1026 : vector<12x512xf32>
    %c8_498 = arith.constant 8 : index
    %c0_499 = arith.constant 0 : index
    %c0_500 = arith.constant 0 : index
    %1028 = vector.load %arg28[%c8_498, %c0_499, %c0_500] : memref<9x4x12xf32, #tpu.memory_space<vmem>>, vector<1x4x12xf32>
    %1029 = vector.shape_cast %1028 : vector<1x4x12xf32> to vector<4x12xf32>
    %cst_501 = arith.constant dense<0.000000e+00> : vector<4x512xf32>
    %1030 = tpu.matmul %1029, %1027, %cst_501 {dimension_numbers = #tpu.dot_dimension_numbers<[1], [0], [0], [1], [0, 0, 1, 1], [], []>} : vector<4x12xf32>, vector<12x512xf32>, vector<4x512xf32> -> vector<4x512xf32>
    %1031 = arith.addf %1022, %1030 : vector<4x512xf32>
    %c0_502 = arith.constant 0 : index
    %c0_503 = arith.constant 0 : index
    %1032 = vector.load %arg29[%c0_502, %c0_503] : memref<4x1xf32, #tpu.memory_space<vmem>>, vector<4x1xf32>
    %1033 = vector.broadcast %1032 : vector<4x1xf32> to vector<4x512xf32>
    %1034 = arith.addf %1031, %1033 : vector<4x512xf32>
    %cst_504 = arith.constant 0.000000e+00 : f32
    %1035 = vector.broadcast %cst_504 : f32 to vector<4x512xf32>
    %1036 = arith.maximumf %1034, %1035 : vector<4x512xf32>
    %1037 = vector.extract_strided_slice %1036 {offsets = [0, 495], sizes = [4, 17], strides = [1, 1]} : vector<4x512xf32> to vector<4x17xf32>
    %1038 = vector.extract_strided_slice %1036 {offsets = [0, 0], sizes = [4, 495], strides = [1, 1]} : vector<4x512xf32> to vector<4x495xf32>
    %1039 = tpu.concatenate %1037, %1038 in 1 : vector<4x17xf32>, vector<4x495xf32> -> vector<4x512xf32>
    %1040 = vector.broadcast %27 : vector<1x512xf32> to vector<4x512xf32>
    %1041 = arith.mulf %1039, %1040 : vector<4x512xf32>
    %c0_505 = arith.constant 0 : index
    %c0_506 = arith.constant 0 : index
    %c0_507 = arith.constant 0 : index
    %1042 = vector.load %arg30[%c0_505, %c0_506, %c0_507] : memref<9x4x4xf32, #tpu.memory_space<vmem>>, vector<1x4x4xf32>
    %1043 = vector.shape_cast %1042 : vector<1x4x4xf32> to vector<4x4xf32>
    %cst_508 = arith.constant dense<0.000000e+00> : vector<4x512xf32>
    %1044 = tpu.matmul %1043, %1041, %cst_508 {dimension_numbers = #tpu.dot_dimension_numbers<[1], [0], [0], [1], [0, 0, 1, 1], [], []>} : vector<4x4xf32>, vector<4x512xf32>, vector<4x512xf32> -> vector<4x512xf32>
    %1045 = vector.extract_strided_slice %1036 {offsets = [0, 496], sizes = [4, 16], strides = [1, 1]} : vector<4x512xf32> to vector<4x16xf32>
    %1046 = vector.extract_strided_slice %1036 {offsets = [0, 0], sizes = [4, 496], strides = [1, 1]} : vector<4x512xf32> to vector<4x496xf32>
    %1047 = tpu.concatenate %1045, %1046 in 1 : vector<4x16xf32>, vector<4x496xf32> -> vector<4x512xf32>
    %1048 = vector.broadcast %11 : vector<1x512xf32> to vector<4x512xf32>
    %1049 = arith.mulf %1047, %1048 : vector<4x512xf32>
    %c1_509 = arith.constant 1 : index
    %c0_510 = arith.constant 0 : index
    %c0_511 = arith.constant 0 : index
    %1050 = vector.load %arg30[%c1_509, %c0_510, %c0_511] : memref<9x4x4xf32, #tpu.memory_space<vmem>>, vector<1x4x4xf32>
    %1051 = vector.shape_cast %1050 : vector<1x4x4xf32> to vector<4x4xf32>
    %cst_512 = arith.constant dense<0.000000e+00> : vector<4x512xf32>
    %1052 = tpu.matmul %1051, %1049, %cst_512 {dimension_numbers = #tpu.dot_dimension_numbers<[1], [0], [0], [1], [0, 0, 1, 1], [], []>} : vector<4x4xf32>, vector<4x512xf32>, vector<4x512xf32> -> vector<4x512xf32>
    %1053 = arith.addf %1044, %1052 : vector<4x512xf32>
    %1054 = vector.extract_strided_slice %1036 {offsets = [0, 497], sizes = [4, 15], strides = [1, 1]} : vector<4x512xf32> to vector<4x15xf32>
    %1055 = vector.extract_strided_slice %1036 {offsets = [0, 0], sizes = [4, 497], strides = [1, 1]} : vector<4x512xf32> to vector<4x497xf32>
    %1056 = tpu.concatenate %1054, %1055 in 1 : vector<4x15xf32>, vector<4x497xf32> -> vector<4x512xf32>
    %1057 = vector.broadcast %28 : vector<1x512xf32> to vector<4x512xf32>
    %1058 = arith.mulf %1056, %1057 : vector<4x512xf32>
    %c2_513 = arith.constant 2 : index
    %c0_514 = arith.constant 0 : index
    %c0_515 = arith.constant 0 : index
    %1059 = vector.load %arg30[%c2_513, %c0_514, %c0_515] : memref<9x4x4xf32, #tpu.memory_space<vmem>>, vector<1x4x4xf32>
    %1060 = vector.shape_cast %1059 : vector<1x4x4xf32> to vector<4x4xf32>
    %cst_516 = arith.constant dense<0.000000e+00> : vector<4x512xf32>
    %1061 = tpu.matmul %1060, %1058, %cst_516 {dimension_numbers = #tpu.dot_dimension_numbers<[1], [0], [0], [1], [0, 0, 1, 1], [], []>} : vector<4x4xf32>, vector<4x512xf32>, vector<4x512xf32> -> vector<4x512xf32>
    %1062 = arith.addf %1053, %1061 : vector<4x512xf32>
    %1063 = vector.extract_strided_slice %1036 {offsets = [0, 511], sizes = [4, 1], strides = [1, 1]} : vector<4x512xf32> to vector<4x1xf32>
    %1064 = vector.extract_strided_slice %1036 {offsets = [0, 0], sizes = [4, 511], strides = [1, 1]} : vector<4x512xf32> to vector<4x511xf32>
    %1065 = tpu.concatenate %1063, %1064 in 1 : vector<4x1xf32>, vector<4x511xf32> -> vector<4x512xf32>
    %1066 = vector.broadcast %21 : vector<1x512xf32> to vector<4x512xf32>
    %1067 = arith.mulf %1065, %1066 : vector<4x512xf32>
    %c3_517 = arith.constant 3 : index
    %c0_518 = arith.constant 0 : index
    %c0_519 = arith.constant 0 : index
    %1068 = vector.load %arg30[%c3_517, %c0_518, %c0_519] : memref<9x4x4xf32, #tpu.memory_space<vmem>>, vector<1x4x4xf32>
    %1069 = vector.shape_cast %1068 : vector<1x4x4xf32> to vector<4x4xf32>
    %cst_520 = arith.constant dense<0.000000e+00> : vector<4x512xf32>
    %1070 = tpu.matmul %1069, %1067, %cst_520 {dimension_numbers = #tpu.dot_dimension_numbers<[1], [0], [0], [1], [0, 0, 1, 1], [], []>} : vector<4x4xf32>, vector<4x512xf32>, vector<4x512xf32> -> vector<4x512xf32>
    %1071 = arith.addf %1062, %1070 : vector<4x512xf32>
    %c4_521 = arith.constant 4 : index
    %c0_522 = arith.constant 0 : index
    %c0_523 = arith.constant 0 : index
    %1072 = vector.load %arg30[%c4_521, %c0_522, %c0_523] : memref<9x4x4xf32, #tpu.memory_space<vmem>>, vector<1x4x4xf32>
    %1073 = vector.shape_cast %1072 : vector<1x4x4xf32> to vector<4x4xf32>
    %cst_524 = arith.constant dense<0.000000e+00> : vector<4x512xf32>
    %1074 = tpu.matmul %1073, %1036, %cst_524 {dimension_numbers = #tpu.dot_dimension_numbers<[1], [0], [0], [1], [0, 0, 1, 1], [], []>} : vector<4x4xf32>, vector<4x512xf32>, vector<4x512xf32> -> vector<4x512xf32>
    %1075 = arith.addf %1071, %1074 : vector<4x512xf32>
    %1076 = vector.extract_strided_slice %1036 {offsets = [0, 1], sizes = [4, 511], strides = [1, 1]} : vector<4x512xf32> to vector<4x511xf32>
    %1077 = vector.extract_strided_slice %1036 {offsets = [0, 0], sizes = [4, 1], strides = [1, 1]} : vector<4x512xf32> to vector<4x1xf32>
    %1078 = tpu.concatenate %1076, %1077 in 1 : vector<4x511xf32>, vector<4x1xf32> -> vector<4x512xf32>
    %1079 = vector.broadcast %26 : vector<1x512xf32> to vector<4x512xf32>
    %1080 = arith.mulf %1078, %1079 : vector<4x512xf32>
    %c5_525 = arith.constant 5 : index
    %c0_526 = arith.constant 0 : index
    %c0_527 = arith.constant 0 : index
    %1081 = vector.load %arg30[%c5_525, %c0_526, %c0_527] : memref<9x4x4xf32, #tpu.memory_space<vmem>>, vector<1x4x4xf32>
    %1082 = vector.shape_cast %1081 : vector<1x4x4xf32> to vector<4x4xf32>
    %cst_528 = arith.constant dense<0.000000e+00> : vector<4x512xf32>
    %1083 = tpu.matmul %1082, %1080, %cst_528 {dimension_numbers = #tpu.dot_dimension_numbers<[1], [0], [0], [1], [0, 0, 1, 1], [], []>} : vector<4x4xf32>, vector<4x512xf32>, vector<4x512xf32> -> vector<4x512xf32>
    %1084 = arith.addf %1075, %1083 : vector<4x512xf32>
    %1085 = vector.extract_strided_slice %1036 {offsets = [0, 15], sizes = [4, 497], strides = [1, 1]} : vector<4x512xf32> to vector<4x497xf32>
    %1086 = vector.extract_strided_slice %1036 {offsets = [0, 0], sizes = [4, 15], strides = [1, 1]} : vector<4x512xf32> to vector<4x15xf32>
    %1087 = tpu.concatenate %1085, %1086 in 1 : vector<4x497xf32>, vector<4x15xf32> -> vector<4x512xf32>
    %1088 = vector.broadcast %29 : vector<1x512xf32> to vector<4x512xf32>
    %1089 = arith.mulf %1087, %1088 : vector<4x512xf32>
    %c6_529 = arith.constant 6 : index
    %c0_530 = arith.constant 0 : index
    %c0_531 = arith.constant 0 : index
    %1090 = vector.load %arg30[%c6_529, %c0_530, %c0_531] : memref<9x4x4xf32, #tpu.memory_space<vmem>>, vector<1x4x4xf32>
    %1091 = vector.shape_cast %1090 : vector<1x4x4xf32> to vector<4x4xf32>
    %cst_532 = arith.constant dense<0.000000e+00> : vector<4x512xf32>
    %1092 = tpu.matmul %1091, %1089, %cst_532 {dimension_numbers = #tpu.dot_dimension_numbers<[1], [0], [0], [1], [0, 0, 1, 1], [], []>} : vector<4x4xf32>, vector<4x512xf32>, vector<4x512xf32> -> vector<4x512xf32>
    %1093 = arith.addf %1084, %1092 : vector<4x512xf32>
    %1094 = vector.extract_strided_slice %1036 {offsets = [0, 16], sizes = [4, 496], strides = [1, 1]} : vector<4x512xf32> to vector<4x496xf32>
    %1095 = vector.extract_strided_slice %1036 {offsets = [0, 0], sizes = [4, 16], strides = [1, 1]} : vector<4x512xf32> to vector<4x16xf32>
    %1096 = tpu.concatenate %1094, %1095 in 1 : vector<4x496xf32>, vector<4x16xf32> -> vector<4x512xf32>
    %1097 = vector.broadcast %16 : vector<1x512xf32> to vector<4x512xf32>
    %1098 = arith.mulf %1096, %1097 : vector<4x512xf32>
    %c7_533 = arith.constant 7 : index
    %c0_534 = arith.constant 0 : index
    %c0_535 = arith.constant 0 : index
    %1099 = vector.load %arg30[%c7_533, %c0_534, %c0_535] : memref<9x4x4xf32, #tpu.memory_space<vmem>>, vector<1x4x4xf32>
    %1100 = vector.shape_cast %1099 : vector<1x4x4xf32> to vector<4x4xf32>
    %cst_536 = arith.constant dense<0.000000e+00> : vector<4x512xf32>
    %1101 = tpu.matmul %1100, %1098, %cst_536 {dimension_numbers = #tpu.dot_dimension_numbers<[1], [0], [0], [1], [0, 0, 1, 1], [], []>} : vector<4x4xf32>, vector<4x512xf32>, vector<4x512xf32> -> vector<4x512xf32>
    %1102 = arith.addf %1093, %1101 : vector<4x512xf32>
    %1103 = vector.extract_strided_slice %1036 {offsets = [0, 17], sizes = [4, 495], strides = [1, 1]} : vector<4x512xf32> to vector<4x495xf32>
    %1104 = vector.extract_strided_slice %1036 {offsets = [0, 0], sizes = [4, 17], strides = [1, 1]} : vector<4x512xf32> to vector<4x17xf32>
    %1105 = tpu.concatenate %1103, %1104 in 1 : vector<4x495xf32>, vector<4x17xf32> -> vector<4x512xf32>
    %1106 = vector.broadcast %30 : vector<1x512xf32> to vector<4x512xf32>
    %1107 = arith.mulf %1105, %1106 : vector<4x512xf32>
    %c8_537 = arith.constant 8 : index
    %c0_538 = arith.constant 0 : index
    %c0_539 = arith.constant 0 : index
    %1108 = vector.load %arg30[%c8_537, %c0_538, %c0_539] : memref<9x4x4xf32, #tpu.memory_space<vmem>>, vector<1x4x4xf32>
    %1109 = vector.shape_cast %1108 : vector<1x4x4xf32> to vector<4x4xf32>
    %cst_540 = arith.constant dense<0.000000e+00> : vector<4x512xf32>
    %1110 = tpu.matmul %1109, %1107, %cst_540 {dimension_numbers = #tpu.dot_dimension_numbers<[1], [0], [0], [1], [0, 0, 1, 1], [], []>} : vector<4x4xf32>, vector<4x512xf32>, vector<4x512xf32> -> vector<4x512xf32>
    %1111 = arith.addf %1102, %1110 : vector<4x512xf32>
    %c0_541 = arith.constant 0 : index
    %c0_542 = arith.constant 0 : index
    %1112 = vector.load %arg31[%c0_541, %c0_542] : memref<4x1xf32, #tpu.memory_space<vmem>>, vector<4x1xf32>
    %1113 = vector.broadcast %1112 : vector<4x1xf32> to vector<4x512xf32>
    %1114 = arith.addf %1111, %1113 : vector<4x512xf32>
    %cst_543 = arith.constant 0.000000e+00 : f32
    %1115 = vector.broadcast %cst_543 : f32 to vector<4x512xf32>
    %1116 = arith.maximumf %1114, %1115 : vector<4x512xf32>
    %c0_544 = arith.constant 0 : index
    %c0_545 = arith.constant 0 : index
    %1117 = vector.load %arg38[%c0_544, %c0_545] : memref<4x512xf32, #tpu.memory_space<vmem>>, vector<4x512xf32>
    tpu.vector_store %arg38[%c0_544, %c0_545], %1116 {strides = array<i32>} : memref<4x512xf32, #tpu.memory_space<vmem>>, vector<4x512xf32>,
    return
  }
  func.func @transform_0(%arg0: i32) -> (i32, i32) {
    %c0_i32 = arith.constant 0 : i32
    %c0_i32_0 = arith.constant 0 : i32
    %c0_i32_1 = arith.constant 0 : i32
    return %c0_i32, %c0_i32_0 : i32, i32
  }
  func.func @transform_1(%arg0: i32) -> (i32, i32, i32) {
    %c0_i32 = arith.constant 0 : i32
    %c0_i32_0 = arith.constant 0 : i32
    %c0_i32_1 = arith.constant 0 : i32
    %c0_i32_2 = arith.constant 0 : i32
    return %c0_i32, %c0_i32_0, %c0_i32_1 : i32, i32, i32
  }
  func.func @transform_2(%arg0: i32) -> (i32, i32) {
    %c0_i32 = arith.constant 0 : i32
    %c0_i32_0 = arith.constant 0 : i32
    %c0_i32_1 = arith.constant 0 : i32
    return %c0_i32, %c0_i32_0 : i32, i32
  }
  func.func @transform_3(%arg0: i32) -> (i32, i32, i32) {
    %c0_i32 = arith.constant 0 : i32
    %c0_i32_0 = arith.constant 0 : i32
    %c0_i32_1 = arith.constant 0 : i32
    %c0_i32_2 = arith.constant 0 : i32
    return %c0_i32, %c0_i32_0, %c0_i32_1 : i32, i32, i32
  }
  func.func @transform_4(%arg0: i32) -> (i32, i32) {
    %c0_i32 = arith.constant 0 : i32
    %c0_i32_0 = arith.constant 0 : i32
    %c0_i32_1 = arith.constant 0 : i32
    return %c0_i32, %c0_i32_0 : i32, i32
  }
  func.func @transform_5(%arg0: i32) -> (i32, i32, i32) {
    %c0_i32 = arith.constant 0 : i32
    %c0_i32_0 = arith.constant 0 : i32
    %c0_i32_1 = arith.constant 0 : i32
    %c0_i32_2 = arith.constant 0 : i32
    return %c0_i32, %c0_i32_0, %c0_i32_1 : i32, i32, i32
  }
  func.func @transform_6(%arg0: i32) -> (i32, i32) {
    %c0_i32 = arith.constant 0 : i32
    %c0_i32_0 = arith.constant 0 : i32
    %c0_i32_1 = arith.constant 0 : i32
    return %c0_i32, %c0_i32_0 : i32, i32
  }
  func.func @transform_7(%arg0: i32) -> (i32, i32, i32) {
    %c0_i32 = arith.constant 0 : i32
    %c0_i32_0 = arith.constant 0 : i32
    %c0_i32_1 = arith.constant 0 : i32
    %c0_i32_2 = arith.constant 0 : i32
    return %c0_i32, %c0_i32_0, %c0_i32_1 : i32, i32, i32
  }
  func.func @transform_8(%arg0: i32) -> (i32, i32) {
    %c0_i32 = arith.constant 0 : i32
    %c0_i32_0 = arith.constant 0 : i32
    %c0_i32_1 = arith.constant 0 : i32
    return %c0_i32, %c0_i32_0 : i32, i32
  }
  func.func @transform_9(%arg0: i32) -> (i32, i32, i32) {
    %c0_i32 = arith.constant 0 : i32
    %c0_i32_0 = arith.constant 0 : i32
    %c0_i32_1 = arith.constant 0 : i32
    %c0_i32_2 = arith.constant 0 : i32
    return %c0_i32, %c0_i32_0, %c0_i32_1 : i32, i32, i32
  }
  func.func @transform_10(%arg0: i32) -> (i32, i32) {
    %c0_i32 = arith.constant 0 : i32
    %c0_i32_0 = arith.constant 0 : i32
    %c0_i32_1 = arith.constant 0 : i32
    return %c0_i32, %c0_i32_0 : i32, i32
  }
  func.func @transform_11(%arg0: i32) -> (i32, i32, i32) {
    %c0_i32 = arith.constant 0 : i32
    %c0_i32_0 = arith.constant 0 : i32
    %c0_i32_1 = arith.constant 0 : i32
    %c0_i32_2 = arith.constant 0 : i32
    return %c0_i32, %c0_i32_0, %c0_i32_1 : i32, i32, i32
  }
  func.func @transform_12(%arg0: i32) -> (i32, i32) {
    %c0_i32 = arith.constant 0 : i32
    %c0_i32_0 = arith.constant 0 : i32
    %c0_i32_1 = arith.constant 0 : i32
    return %c0_i32, %c0_i32_0 : i32, i32
  }
  func.func @transform_13(%arg0: i32) -> (i32, i32) {
    %c0_i32 = arith.constant 0 : i32
    %c0_i32_0 = arith.constant 0 : i32
    %c0_i32_1 = arith.constant 0 : i32
    return %c0_i32, %c0_i32_0 : i32, i32
  }
  func.func @transform_14(%arg0: i32) -> (i32, i32) {
    %c0_i32 = arith.constant 0 : i32
    %c0_i32_0 = arith.constant 0 : i32
    %c0_i32_1 = arith.constant 0 : i32
    return %c0_i32, %c0_i32_0 : i32, i32
  }
  func.func @transform_15(%arg0: i32) -> (i32, i32) {
    %c0_i32 = arith.constant 0 : i32
    %c0_i32_0 = arith.constant 0 : i32
    %c0_i32_1 = arith.constant 0 : i32
    return %c0_i32, %c0_i32_0 : i32, i32
  }
  func.func @transform_16(%arg0: i32) -> (i32, i32) {
    %c0_i32 = arith.constant 0 : i32
    %c0_i32_0 = arith.constant 0 : i32
    %c0_i32_1 = arith.constant 0 : i32
    return %c0_i32, %c0_i32_0 : i32, i32
  }
  func.func @transform_17(%arg0: i32) -> (i32, i32) {
    %c0_i32 = arith.constant 0 : i32
    %c0_i32_0 = arith.constant 0 : i32
    %c0_i32_1 = arith.constant 0 : i32
    return %c0_i32, %c0_i32_0 : i32, i32
  }
  func.func @transform_18(%arg0: i32) -> (i32, i32) {
    %c0_i32 = arith.constant 0 : i32
    %c0_i32_0 = arith.constant 0 : i32
    %c0_i32_1 = arith.constant 0 : i32
    return %c0_i32, %c0_i32_0 : i32, i32
  }
  func.func @transform_19(%arg0: i32) -> (i32, i32, i32) {
    %c0_i32 = arith.constant 0 : i32
    %c0_i32_0 = arith.constant 0 : i32
    %c0_i32_1 = arith.constant 0 : i32
    %c0_i32_2 = arith.constant 0 : i32
    return %c0_i32, %c0_i32_0, %c0_i32_1 : i32, i32, i32
  }
  func.func @transform_20(%arg0: i32) -> (i32, i32) {
    %c0_i32 = arith.constant 0 : i32
    %c0_i32_0 = arith.constant 0 : i32
    %c0_i32_1 = arith.constant 0 : i32
    return %c0_i32, %c0_i32_0 : i32, i32
  }
  func.func @transform_21(%arg0: i32) -> (i32, i32, i32) {
    %c0_i32 = arith.constant 0 : i32
    %c0_i32_0 = arith.constant 0 : i32
    %c0_i32_1 = arith.constant 0 : i32
    %c0_i32_2 = arith.constant 0 : i32
    return %c0_i32, %c0_i32_0, %c0_i32_1 : i32, i32, i32
  }
  func.func @transform_22(%arg0: i32) -> (i32, i32) {
    %c0_i32 = arith.constant 0 : i32
    %c0_i32_0 = arith.constant 0 : i32
    %c0_i32_1 = arith.constant 0 : i32
    return %c0_i32, %c0_i32_0 : i32, i32
  }
  func.func @transform_23(%arg0: i32) -> (i32, i32, i32) {
    %c0_i32 = arith.constant 0 : i32
    %c0_i32_0 = arith.constant 0 : i32
    %c0_i32_1 = arith.constant 0 : i32
    %c0_i32_2 = arith.constant 0 : i32
    return %c0_i32, %c0_i32_0, %c0_i32_1 : i32, i32, i32
  }
  func.func @transform_24(%arg0: i32) -> (i32, i32) {
    %c0_i32 = arith.constant 0 : i32
    %c0_i32_0 = arith.constant 0 : i32
    %c0_i32_1 = arith.constant 0 : i32
    return %c0_i32, %c0_i32_0 : i32, i32
  }
  func.func @transform_25(%arg0: i32) -> (i32, i32, i32) {
    %c0_i32 = arith.constant 0 : i32
    %c0_i32_0 = arith.constant 0 : i32
    %c0_i32_1 = arith.constant 0 : i32
    %c0_i32_2 = arith.constant 0 : i32
    return %c0_i32, %c0_i32_0, %c0_i32_1 : i32, i32, i32
  }
  func.func @transform_26(%arg0: i32) -> (i32, i32) {
    %c0_i32 = arith.constant 0 : i32
    %c0_i32_0 = arith.constant 0 : i32
    %c0_i32_1 = arith.constant 0 : i32
    return %c0_i32, %c0_i32_0 : i32, i32
  }
  func.func @transform_27(%arg0: i32) -> (i32, i32, i32) {
    %c0_i32 = arith.constant 0 : i32
    %c0_i32_0 = arith.constant 0 : i32
    %c0_i32_1 = arith.constant 0 : i32
    %c0_i32_2 = arith.constant 0 : i32
    return %c0_i32, %c0_i32_0, %c0_i32_1 : i32, i32, i32
  }
  func.func @transform_28(%arg0: i32) -> (i32, i32) {
    %c0_i32 = arith.constant 0 : i32
    %c0_i32_0 = arith.constant 0 : i32
    %c0_i32_1 = arith.constant 0 : i32
    return %c0_i32, %c0_i32_0 : i32, i32
  }
  func.func @transform_29(%arg0: i32) -> (i32, i32, i32) {
    %c0_i32 = arith.constant 0 : i32
    %c0_i32_0 = arith.constant 0 : i32
    %c0_i32_1 = arith.constant 0 : i32
    %c0_i32_2 = arith.constant 0 : i32
    return %c0_i32, %c0_i32_0, %c0_i32_1 : i32, i32, i32
  }
  func.func @transform_30(%arg0: i32) -> (i32, i32) {
    %c0_i32 = arith.constant 0 : i32
    %c0_i32_0 = arith.constant 0 : i32
    %c0_i32_1 = arith.constant 0 : i32
    return %c0_i32, %c0_i32_0 : i32, i32
  }
  func.func @transform_31(%arg0: i32) -> (i32, i32) {
    %c0_i32 = arith.constant 0 : i32
    %c0_i32_0 = arith.constant 0 : i32
    %c0_i32_1 = arith.constant 0 : i32
    return %c0_i32, %c0_i32_0 : i32, i32
  }
  func.func @transform_32(%arg0: i32) -> (i32, i32) {
    %c0_i32 = arith.constant 0 : i32
    %c0_i32_0 = arith.constant 0 : i32
    %c0_i32_1 = arith.constant 0 : i32
    return %c0_i32, %c0_i32_0 : i32, i32
  }
  func.func @transform_33(%arg0: i32) -> (i32, i32) {
    %c0_i32 = arith.constant 0 : i32
    %c0_i32_0 = arith.constant 0 : i32
    %c0_i32_1 = arith.constant 0 : i32
    return %c0_i32, %c0_i32_0 : i32, i32
  }
  func.func @transform_34(%arg0: i32) -> (i32, i32) {
    %c0_i32 = arith.constant 0 : i32
    %c0_i32_0 = arith.constant 0 : i32
    %c0_i32_1 = arith.constant 0 : i32
    return %c0_i32, %c0_i32_0 : i32, i32
  }
  func.func @transform_35(%arg0: i32) -> (i32, i32) {
    %c0_i32 = arith.constant 0 : i32
    %c0_i32_0 = arith.constant 0 : i32
    %c0_i32_1 = arith.constant 0 : i32
    return %c0_i32, %c0_i32_0 : i32, i32
  }
  func.func @transform_36(%arg0: i32) -> (i32, i32) {
    %c0_i32 = arith.constant 0 : i32
    %c0_i32_0 = arith.constant 0 : i32
    %c0_i32_1 = arith.constant 0 : i32
    return %c0_i32, %c0_i32_0 : i32, i32
  }
  func.func @transform_37(%arg0: i32) -> (i32, i32) {
    %c0_i32 = arith.constant 0 : i32
    %c0_i32_0 = arith.constant 0 : i32
    %c0_i32_1 = arith.constant 0 : i32
    return %c0_i32, %c0_i32_0 : i32, i32
  }
}

</mosaic_0001>

<bundles_post_ra>
// kernel: _lambda_.1
= control target key start
LH: loop header
LB: loop body
LE: loop exit
PB: predicated region body
PF: predicated region fallthrough
CT: control target
= control target key end

     0   :  { %s18706_s6 = smov 1   ;;  %s18707_s10 = smov 2   ;;  %s22059_s0 = inlined_call_operand.smem [shape: u32[38], index: -1, kind: input, shape index: {}] }
   0x1   :  { %s18819_s5 = sld [smem:[%s22059_s0]]   ;;  %s18708_s14 = smov 3  }
   0x2   :  { %s18824_s9 = sld [smem:[%s22059_s0 + %s18706_s6]]   ;;  %s18709_s18 = smov 4  }
   0x3   :  { %s18829_s13 = sld [smem:[%s22059_s0 + %s18707_s10]]   ;;  %s18710_s22 = smov 5  }
   0x4   :  { %s18834_s17 = sld [smem:[%s22059_s0 + %s18708_s14]]   ;;  %s18711_s26 = smov 6  }
   0x5   :  { %s18839_s21 = sld [smem:[%s22059_s0 + %s18709_s18]]   ;;  %s18712_s30 = smov 7  }
   0x6   :  { %s18844_s25 = sld [smem:[%s22059_s0 + %s18710_s22]]   ;;  %s18713_s4 = smov 8  }
   0x7   :  { %22172 = sst [smem:[#allocation71_spill]] %s18819_s5  ;;  %s18714_s10 = smov 9  }
   0x8   :  { %22173 = sst [smem:[#allocation72_spill]] %s18824_s9  ;;  %s18715_s15 = smov 10  }
   0x9   :  { %s18849_s29 = sld [smem:[%s22059_s0 + %s18711_s26]]   ;;  %s18716_s20 = smov 11  }
   0xa   :  { %22174 = sst [smem:[#allocation73_spill]] %s18834_s17  ;;  %s18717_s26 = smov 12  }
   0xb   :  { %s18854_s3 = sld [smem:[%s22059_s0 + %s18712_s30]]   ;;  %s18718_s1 = smov 13  }
   0xc   :  { %22175 = sst [smem:[#allocation74_spill]] %s18844_s25  ;;  %s18719_s7 = smov 14  }
   0xd   :  { %s18859_s8 = sld [smem:[%s22059_s0 + %s18713_s4]]   ;;  %s18721_s22 = smov 16  }
   0xe   :  { %s18864_s14 = sld [smem:[%s22059_s0 + %s18714_s10]]   ;;  %s18722_s28 = smov 17  }
   0xf   :  { %22176 = sst [smem:[#allocation75_spill]] %s18849_s29 }
  0x10   :  { %s18869_s19 = sld [smem:[%s22059_s0 + %s18715_s15]]   ;;  %s18720_s15 = smov 15  }
  0x11   :  { %s18874_s24 = sld [smem:[%s22059_s0 + %s18716_s20]]  }
  0x12   :  { %s18879_s30 = sld [smem:[%s22059_s0 + %s18717_s26]]  }
  0x13   :  { %22177 = sst [smem:[#allocation76_spill]] %s18859_s8 }
  0x14   :  { %22178 = sst [smem:[#allocation77_spill]] %s18864_s14 }
  0x15   :  { %s18884_s6 = sld [smem:[%s22059_s0 + %s18718_s1]]  }
  0x16   :  { %s18889_s12 = sld [smem:[%s22059_s0 + %s18719_s7]]   ;;  %s18723_s7 = smov 18  }
  0x17   :  { %22179 = sst [smem:[#allocation78_spill]] %s18874_s24 }
  0x18   :  { %s18894_s20 = sld [smem:[%s22059_s0 + %s18720_s15]]   ;;  %s18724_s15 = smov 19  }
  0x19   :  { %s18899_s27 = sld [smem:[%s22059_s0 + %s18721_s22]]   ;;  %s18725_s22 = smov 20  }
  0x1a   :  { %s18904_s4 = sld [smem:[%s22059_s0 + %s18722_s28]]   ;;  %s18726_s28 = smov 21  }
  0x1b   :  { %22180 = sst [smem:[#allocation79_spill]] %s18884_s6 }
  0x1c   :  { %s18909_s14 = sld [smem:[%s22059_s0 + %s18723_s7]]   ;;  %s18727_s7 = smov 22  }
  0x1d   :  { %s18914_s25 = sld [smem:[%s22059_s0 + %s18724_s15]]   ;;  %s18728_s15 = smov 23  }
  0x1e   :  { %22181 = sst [smem:[#allocation80_spill]] %s18894_s20 }
  0x1f   :  { %s18919_s5 = sld [smem:[%s22059_s0 + %s18725_s22]]   ;;  %s18729_s22 = smov 24  }
  0x20   :  { %22182 = sst [smem:[#allocation81_spill]] %s18904_s4 }
  0x21   :  { %s18924_s4 = sld [smem:[%s22059_s0 + %s18726_s28]]   ;;  %s18730_s28 = smov 25  }
  0x22   :  { %s18929_s20 = sld [smem:[%s22059_s0 + %s18727_s7]]   ;;  %s18731_s7 = smov 26  }
  0x23   :  { %22183 = sst [smem:[#allocation82_spill]] %s18914_s25 }
  0x24   :  { %s18934_s25 = sld [smem:[%s22059_s0 + %s18728_s15]]   ;;  %s18732_s15 = smov 27  }
  0x25   :  { %s18939_s6 = sld [smem:[%s22059_s0 + %s18729_s22]]   ;;  %s18733_s22 = smov 28  }
  0x26   :  { %s18949_s24 = sld [smem:[%s22059_s0 + %s18731_s7]]   ;;  %s18735_s7 = smov 30  }
  0x27   :  { %22184 = sst [smem:[#allocation83_spill]] %s18924_s4 }
  0x28   :  { %s18944_s4 = sld [smem:[%s22059_s0 + %s18730_s28]]   ;;  %s18734_s28 = smov 29  }
  0x29   :  { %s18959_s8 = sld [smem:[%s22059_s0 + %s18733_s22]]   ;;  %s18737_s22 = smov 32  }
  0x2a   :  { %22185 = sst [smem:[#allocation84_spill]] %s18934_s25 }
  0x2b   :  { %s18954_s25 = sld [smem:[%s22059_s0 + %s18732_s15]]   ;;  %s18736_s15 = smov 31  }
  0x2c   :  { %s18969_s29 = sld [smem:[%s22059_s0 + %s18735_s7]]   ;;  %s18739_s7 = smov 34  }
  0x2d   :  { %s18979_s17 = sld [smem:[%s22059_s0 + %s18737_s22]]   ;;  %s18741_s22 = smov 36  }
  0x2e   :  { %22186 = sst [smem:[#allocation85_spill]] %s18944_s4 }
  0x2f   :  { %s18964_s4 = sld [smem:[%s22059_s0 + %s18734_s28]]   ;;  %s18738_s28 = smov 33  }
  0x30   :  { %s18989_s9 = sld [smem:[%s22059_s0 + %s18739_s7]]  }
  0x31   :  { %22187 = sst [smem:[#allocation86_spill]] %s18954_s25 }
  0x32   :  { %s18974_s25 = sld [smem:[%s22059_s0 + %s18736_s15]]   ;;  %s18740_s15 = smov 35  }
  0x33   :  { %22190 = sst [smem:[#allocation89_spill]] %s18979_s17 }
  0x34   :  { %s18999_s17 = sld [smem:[%s22059_s0 + %s18741_s22]]  }
  0x35   :  { %22188 = sst [smem:[#allocation87_spill]] %s18964_s4 }
  0x36   :  { %s18984_s4 = sld [smem:[%s22059_s0 + %s18738_s28]]   ;;  %s18742_s28 = smov 37  }
  0x38   :  { %22189 = sst [smem:[#allocation88_spill]] %s18974_s25 }
  0x39   :  { %s18994_s25 = sld [smem:[%s22059_s0 + %s18740_s15]]  }
  0x3c   :  { %22191 = sst [smem:[#allocation90_spill]] %s18984_s4 }
  0x3d   :  { %s19004_s4 = sld [smem:[%s22059_s0 + %s18742_s28]]  }
  0x3e   :  { %80 = vsyncpa [#allocation5], 0 }
  0x3f   :  { %81 = vsyncpa [#allocation7], 0 }
  0x40   :  { %82 = vsyncpa [#allocation10], 0 }
  0x41   :  { %83 = vsyncpa [#allocation13], 0 }
  0x42   :  { %84 = vsyncpa [#allocation16], 0 }
  0x43   :  { %85 = vsyncpa [#allocation19], 0 }
  0x44   :  { %86 = vsyncpa [#allocation22], 0 }
  0x45   :  { %87 = vsyncpa [#allocation25], 0 }
  0x46   :  { %88 = vsyncpa [#allocation28], 0 }
  0x47   :  { %89 = vsyncpa [#allocation31], 0 }
  0x48   :  { %90 = vsyncpa [#allocation34], 0 }
  0x49   :  { %91 = vsyncpa [#allocation37], 0 }
  0x4a   :  { %92 = vsyncpa [#allocation40], 0 }
  0x4b   :  { %93 = vsyncpa [#allocation43], 0 }
  0x4c   :  { %94 = vsyncpa [#allocation46], 0 }
  0x4d   :  { %95 = vsyncpa [#allocation49], 0 }
  0x4e   :  { %96 = vsyncpa [#allocation52], 0  ;;  %s18743_s7 = smov [#allocation6]   ;;  %s18744_s10 = smov [#allocation9]  }
  0x4f   :  { %s117_s0 = sshll.u32 %s18743_s7, 4  ;;  %s139_s11 = sshll.u32 %s18744_s10, 4  ;;  %s118_s0 = int_to_ptr.vmem [resolvable:$true] %s117_s0  ;;  %s140_s11 = int_to_ptr.vmem [resolvable:$true] %s139_s11 }
  0x50   :  { %s18020_s15 = scalar_lea.vmem %s118_s0, 128  ;;  %p18025_p1 = scmp.lt.s32.totalorder %s118_s0, %s118_s0 }
  0x51   :  { %p18021_p0 = scmp.ne.s32.totalorder %s118_s0, %s18020_s15  ;;  %p18026_p2 = scmp.lt.s32.totalorder %s18020_s15, %s18020_s15 }
  0x53   :  { %p18027_p3 = por %p18026_p2, %p18025_p1 }
  0x55   :  { %p18028_p4 = pnand %p18027_p3, %p18021_p0 }
  0x57   :  { %18031 = shalt.err (!%p18028_p4)
}
  0x58   :  { %120 = dma.hbm_to_vmem [thread:$0]  %s18829_s13, 128, %s118_s0, [#allocation7]  }
  0x59   :  { %s18040_s16 = scalar_lea.vmem %s140_s11, 128  ;;  %p18045_p6 = scmp.lt.s32.totalorder %s140_s11, %s140_s11 }
  0x5a   :  { %p18041_p5 = scmp.ne.s32.totalorder %s140_s11, %s18040_s16  ;;  %p18046_p7 = scmp.lt.s32.totalorder %s18040_s16, %s18040_s16 }
  0x5c   :  { %p18047_p8 = por %p18046_p7, %p18045_p6 }
  0x5e   :  { %p18048_p9 = pnand %p18047_p8, %p18041_p5 }
  0x60   :  { %18051 = shalt.err (!%p18048_p9)
}
  0x61   :  { %142 = dma.hbm_to_vmem [thread:$0]  %s18839_s21, 128, %s140_s11, [#allocation10]  }
  0x62   :  { %s18745_s18 = smov [#allocation12]   ;;  %s18746_s23 = smov [#allocation15]  }
  0x63   :  { %s162_s22 = sshll.u32 %s18745_s18, 4  ;;  %s188_s26 = sshll.u32 %s18746_s23, 4  ;;  %s163_s22 = int_to_ptr.vmem [resolvable:$true] %s162_s22  ;;  %s189_s26 = int_to_ptr.vmem [resolvable:$true] %s188_s26 }
  0x64   :  { %s18060_s28 = scalar_lea.vmem %s163_s22, 2304  ;;  %p18065_p11 = scmp.lt.s32.totalorder %s163_s22, %s163_s22 }
  0x65   :  { %p18061_p10 = scmp.ne.s32.totalorder %s163_s22, %s18060_s28  ;;  %p18066_p12 = scmp.lt.s32.totalorder %s18060_s28, %s18060_s28 }
  0x67   :  { %p18067_p13 = por %p18066_p12, %p18065_p11 }
  0x69   :  { %p18068_p0 = pnand %p18067_p13, %p18061_p10 }
  0x6b   :  { %18071 = shalt.err (!%p18068_p0)
}
  0x6c   :  { %s18747_s13 = smov 128   ;;  %s18748_s1 = smov 8  }
  0x6d   :  { %168 = dma.hbm_to_vmem [thread:$0]  %s18854_s3, 2304, %s163_s22, [#allocation13], %s18747_s13, %s18747_s13, %s18748_s1  }
  0x6e   :  { %s18080_s21 = scalar_lea.vmem %s189_s26, 512  ;;  %p18085_p2 = scmp.lt.s32.totalorder %s189_s26, %s189_s26 }
  0x6f   :  { %p18081_p1 = scmp.ne.s32.totalorder %s189_s26, %s18080_s21  ;;  %p18086_p3 = scmp.lt.s32.totalorder %s18080_s21, %s18080_s21 }
  0x71   :  { %p18087_p4 = por %p18086_p3, %p18085_p2 }
  0x73   :  { %p18088_p5 = pnand %p18087_p4, %p18081_p1 }
  0x75   :  { %18091 = shalt.err (!%p18088_p5)
}
  0x76   :  { %194 = dma.hbm_to_vmem [thread:$0]  %s18869_s19, 512, %s189_s26, [#allocation16], %s18747_s13, %s18747_s13, %s18748_s1  }
  0x77   :  { %s18749_s2 = smov [#allocation18]   ;;  %s18750_s0 = smov [#allocation21]  }
  0x78   :  { %s212_s7 = sshll.u32 %s18749_s2, 4  ;;  %s235_s10 = sshll.u32 %s18750_s0, 4  ;;  %s213_s7 = int_to_ptr.vmem [resolvable:$true] %s212_s7  ;;  %s236_s10 = int_to_ptr.vmem [resolvable:$true] %s235_s10 }
  0x79   :  { %s18100_s11 = scalar_lea.vmem %s213_s7, 512  ;;  %p18105_p7 = scmp.lt.s32.totalorder %s213_s7, %s213_s7 }
  0x7a   :  { %p18101_p6 = scmp.ne.s32.totalorder %s213_s7, %s18100_s11  ;;  %p18106_p8 = scmp.lt.s32.totalorder %s18100_s11, %s18100_s11 }
  0x7c   :  { %p18107_p9 = por %p18106_p8, %p18105_p7 }
  0x7e   :  { %p18108_p10 = pnand %p18107_p9, %p18101_p6 }
  0x80   :  { %18111 = shalt.err (!%p18108_p10)
}
  0x81   :  { %218 = dma.hbm_to_vmem [thread:$0]  %s18879_s30, 512, %s213_s7, [#allocation19], %s18747_s13, %s18747_s13, %s18748_s1  }
  0x82   :  { %s18120_s3 = scalar_lea.vmem %s236_s10, 128  ;;  %p18125_p12 = scmp.lt.s32.totalorder %s236_s10, %s236_s10 }
  0x83   :  { %p18121_p11 = scmp.ne.s32.totalorder %s236_s10, %s18120_s3  ;;  %p18126_p13 = scmp.lt.s32.totalorder %s18120_s3, %s18120_s3 }
  0x85   :  { %p18127_p0 = por %p18126_p13, %p18125_p12 }
  0x87   :  { %p18128_p1 = pnand %p18127_p0, %p18121_p11 }
  0x89   :  { %18131 = shalt.err (!%p18128_p1)
}
  0x8a   :  { %238 = dma.hbm_to_vmem [thread:$0]  %s18889_s12, 128, %s236_s10, [#allocation22]  }
  0x8b   :  { %s18751_s19 = smov [#allocation24]   ;;  %s18752_s16 = smov [#allocation27]  }
  0x8c   :  { %s256_s15 = sshll.u32 %s18751_s19, 4  ;;  %s280_s18 = sshll.u32 %s18752_s16, 4  ;;  %s257_s15 = int_to_ptr.vmem [resolvable:$true] %s256_s15  ;;  %s281_s18 = int_to_ptr.vmem [resolvable:$true] %s280_s18 }
  0x8d   :  { %s18140_s22 = scalar_lea.vmem %s257_s15, 256  ;;  %p18145_p3 = scmp.lt.s32.totalorder %s257_s15, %s257_s15 }
  0x8e   :  { %p18141_p2 = scmp.ne.s32.totalorder %s257_s15, %s18140_s22  ;;  %p18146_p4 = scmp.lt.s32.totalorder %s18140_s22, %s18140_s22 }
  0x90   :  { %p18147_p5 = por %p18146_p4, %p18145_p3 }
  0x92   :  { %p18148_p6 = pnand %p18147_p5, %p18141_p2 }
  0x94   :  { %18151 = shalt.err (!%p18148_p6)
}
  0x95   :  { %262 = dma.hbm_to_vmem [thread:$0]  %s18899_s27, 256, %s257_s15, [#allocation25], %s18747_s13, %s18747_s13, %s18748_s1  }
  0x96   :  { %s18160_s30 = scalar_lea.vmem %s281_s18, 512  ;;  %p18165_p8 = scmp.lt.s32.totalorder %s281_s18, %s281_s18 }
  0x97   :  { %p18161_p7 = scmp.ne.s32.totalorder %s281_s18, %s18160_s30  ;;  %p18166_p9 = scmp.lt.s32.totalorder %s18160_s30, %s18160_s30 }
  0x99   :  { %p18167_p10 = por %p18166_p9, %p18165_p8 }
  0x9b   :  { %p18168_p11 = pnand %p18167_p10, %p18161_p7 }
  0x9d   :  { %18171 = shalt.err (!%p18168_p11)
}
  0x9e   :  { %286 = dma.hbm_to_vmem [thread:$0]  %s18909_s14, 512, %s281_s18, [#allocation28], %s18747_s13, %s18747_s13, %s18748_s1  }
  0x9f   :  { %s18753_s12 = smov [#allocation30]   ;;  %s18754_s26 = smov [#allocation33]  }
  0xa0   :  { %s304_s23 = sshll.u32 %s18753_s12, 4  ;;  %s328_s28 = sshll.u32 %s18754_s26, 4  ;;  %s305_s23 = int_to_ptr.vmem [resolvable:$true] %s304_s23  ;;  %s329_s28 = int_to_ptr.vmem [resolvable:$true] %s328_s28 }
  0xa1   :  { %s18180_s21 = scalar_lea.vmem %s305_s23, 256  ;;  %p18185_p13 = scmp.lt.s32.totalorder %s305_s23, %s305_s23 }
  0xa2   :  { %p18181_p12 = scmp.ne.s32.totalorder %s305_s23, %s18180_s21  ;;  %p18186_p0 = scmp.lt.s32.totalorder %s18180_s21, %s18180_s21 }
  0xa4   :  { %p18187_p1 = por %p18186_p0, %p18185_p13 }
  0xa6   :  { %p18188_p2 = pnand %p18187_p1, %p18181_p12 }
  0xa8   :  { %18191 = shalt.err (!%p18188_p2)
}
  0xa9   :  { %310 = dma.hbm_to_vmem [thread:$0]  %s18919_s5, 256, %s305_s23, [#allocation31], %s18747_s13, %s18747_s13, %s18748_s1  }
  0xaa   :  { %s18200_s27 = scalar_lea.vmem %s329_s28, 256  ;;  %p18205_p4 = scmp.lt.s32.totalorder %s329_s28, %s329_s28 }
  0xab   :  { %p18201_p3 = scmp.ne.s32.totalorder %s329_s28, %s18200_s27  ;;  %p18206_p5 = scmp.lt.s32.totalorder %s18200_s27, %s18200_s27 }
  0xad   :  { %p18207_p6 = por %p18206_p5, %p18205_p4 }
  0xaf   :  { %p18208_p7 = pnand %p18207_p6, %p18201_p3 }
  0xb1   :  { %18211 = shalt.err (!%p18208_p7)
}
  0xb2   :  { %334 = dma.hbm_to_vmem [thread:$0]  %s18929_s20, 256, %s329_s28, [#allocation34], %s18747_s13, %s18747_s13, %s18748_s1  }
  0xb3   :  { %s18755_s14 = smov [#allocation36]   ;;  %s18756_s7 = smov [#allocation39]  }
  0xb4   :  { %s353_s2 = sshll.u32 %s18755_s14, 4  ;;  %s375_s0 = sshll.u32 %s18756_s7, 4  ;;  %s354_s2 = int_to_ptr.vmem [resolvable:$true] %s353_s2  ;;  %s376_s0 = int_to_ptr.vmem [resolvable:$true] %s375_s0 }
  0xb5   :  { %s18220_s10 = scalar_lea.vmem %s354_s2, 128  ;;  %p18225_p9 = scmp.lt.s32.totalorder %s354_s2, %s354_s2 }
  0xb6   :  { %p18221_p8 = scmp.ne.s32.totalorder %s354_s2, %s18220_s10  ;;  %p18226_p10 = scmp.lt.s32.totalorder %s18220_s10, %s18220_s10 }
  0xb8   :  { %p18227_p11 = por %p18226_p10, %p18225_p9 }
  0xba   :  { %p18228_p12 = pnand %p18227_p11, %p18221_p8 }
  0xbc   :  { %18231 = shalt.err (!%p18228_p12)
}
  0xbd   :  { %356 = dma.hbm_to_vmem [thread:$0]  %s18939_s6, 128, %s354_s2, [#allocation37]  }
  0xbe   :  { %s18240_s5 = scalar_lea.vmem %s376_s0, 128  ;;  %p18245_p0 = scmp.lt.s32.totalorder %s376_s0, %s376_s0 }
  0xbf   :  { %p18241_p13 = scmp.ne.s32.totalorder %s376_s0, %s18240_s5  ;;  %p18246_p1 = scmp.lt.s32.totalorder %s18240_s5, %s18240_s5 }
  0xc1   :  { %p18247_p2 = por %p18246_p1, %p18245_p0 }
  0xc3   :  { %p18248_p3 = pnand %p18247_p2, %p18241_p13 }
  0xc5   :  { %18251 = shalt.err (!%p18248_p3)
}
  0xc6   :  { %378 = dma.hbm_to_vmem [thread:$0]  %s18949_s24, 128, %s376_s0, [#allocation40]  }
  0xc7   :  { %s18757_s20 = smov [#allocation42]   ;;  %s18758_s3 = smov [#allocation45]  }
  0xc8   :  { %s397_s11 = sshll.u32 %s18757_s20, 4  ;;  %s419_s19 = sshll.u32 %s18758_s3, 4  ;;  %s398_s11 = int_to_ptr.vmem [resolvable:$true] %s397_s11  ;;  %s420_s19 = int_to_ptr.vmem [resolvable:$true] %s419_s19 }
  0xc9   :  { %s18260_s15 = scalar_lea.vmem %s398_s11, 64  ;;  %p18265_p5 = scmp.lt.s32.totalorder %s398_s11, %s398_s11 }
  0xca   :  { %p18261_p4 = scmp.ne.s32.totalorder %s398_s11, %s18260_s15  ;;  %p18266_p6 = scmp.lt.s32.totalorder %s18260_s15, %s18260_s15 }
  0xcc   :  { %p18267_p7 = por %p18266_p6, %p18265_p5 }
  0xce   :  { %p18268_p8 = pnand %p18267_p7, %p18261_p4 }
  0xd0   :  { %18271 = shalt.err (!%p18268_p8)
}
  0xd1   :  { %400 = dma.hbm_to_vmem [thread:$0]  %s18959_s8, 64, %s398_s11, [#allocation43]  }
  0xd2   :  { %s18280_s6 = scalar_lea.vmem %s420_s19, 64  ;;  %p18285_p10 = scmp.lt.s32.totalorder %s420_s19, %s420_s19 }
  0xd3   :  { %p18281_p9 = scmp.ne.s32.totalorder %s420_s19, %s18280_s6  ;;  %p18286_p11 = scmp.lt.s32.totalorder %s18280_s6, %s18280_s6 }
  0xd5   :  { %p18287_p12 = por %p18286_p11, %p18285_p10 }
  0xd7   :  { %p18288_p13 = pnand %p18287_p12, %p18281_p9 }
  0xd9   :  { %18291 = shalt.err (!%p18288_p13)
}
  0xda   :  { %422 = dma.hbm_to_vmem [thread:$0]  %s18969_s29, 64, %s420_s19, [#allocation46]  }
  0xdb   :  { %s18759_s24 = smov [#allocation48]   ;;  %s18760_s18 = smov [#allocation51]  }
  0xdc   :  { %s440_s16 = sshll.u32 %s18759_s24, 4  ;;  %s465_s22 = sshll.u32 %s18760_s18, 4  ;;  %s441_s16 = int_to_ptr.vmem [resolvable:$true] %s440_s16  ;;  %s466_s22 = int_to_ptr.vmem [resolvable:$true] %s465_s22 }
  0xdd   :  { %s18300_s30 = scalar_lea.vmem %s441_s16, 2048  ;;  %p18305_p1 = scmp.lt.s32.totalorder %s441_s16, %s441_s16 }
  0xde   :  { %p18301_p0 = scmp.ne.s32.totalorder %s441_s16, %s18300_s30  ;;  %p18306_p2 = scmp.lt.s32.totalorder %s18300_s30, %s18300_s30 }
  0xe0   :  { %p18307_p3 = por %p18306_p2, %p18305_p1 }
  0xe2   :  { %p18308_p4 = pnand %p18307_p3, %p18301_p0 }
  0xe4   :  { %18311 = shalt.err (!%p18308_p4)
}
  0xe5   :  { %s22192_s8 = sld [smem:[#allocation89_spill]]  ;;  %s18320_s12 = scalar_lea.vmem %s466_s22, 128 }
  0xe6   :  { %p18321_p5 = scmp.ne.s32.totalorder %s466_s22, %s18320_s12  ;;  %p18325_p6 = scmp.lt.s32.totalorder %s466_s22, %s466_s22 }
  0xe7   :  { %p18326_p7 = scmp.lt.s32.totalorder %s18320_s12, %s18320_s12 }
  0xe9   :  { %p18327_p8 = por %p18326_p7, %p18325_p6 }
  0xeb   :  { %446 = dma.hbm_to_vmem [thread:$0]  %s22192_s8, 2048, %s441_s16, [#allocation49], %s18747_s13, %s18747_s13, %s18748_s1  }
  0xec   :  { %p18328_p9 = pnand %p18327_p8, %p18321_p5 }
  0xee   :  { %18331 = shalt.err (!%p18328_p9)
}
  0xef   :  { %468 = dma.hbm_to_vmem [thread:$0]  %s18989_s9, 128, %s466_s22, [#allocation52]  }
  0xf0   :  { %s18761_s29 = smov [#allocation4]   ;;  %s18762_s26 = smov [#allocation8]  }
  0xf1   :  { %s104_s23 = sshll.u32 %s18761_s29, 4  ;;  %s126_s28 = sshll.u32 %s18762_s26, 4  ;;  %s105_s23 = int_to_ptr.vmem [resolvable:$true] %s104_s23  ;;  %s127_s28 = int_to_ptr.vmem [resolvable:$true] %s126_s28 }
  0xf2   :  { %s18340_s21 = scalar_lea.vmem %s105_s23, 1152  ;;  %p18345_p11 = scmp.lt.s32.totalorder %s105_s23, %s105_s23 }
  0xf3   :  { %p18341_p10 = scmp.ne.s32.totalorder %s105_s23, %s18340_s21  ;;  %p18346_p12 = scmp.lt.s32.totalorder %s18340_s21, %s18340_s21 }
  0xf5   :  { %p18347_p13 = por %p18346_p12, %p18345_p11 }
  0xf7   :  { %p18348_p0 = pnand %p18347_p13, %p18341_p10 }
  0xf9   :  { %18351 = shalt.err (!%p18348_p0)
}
  0xfa   :  { %s22193_s27 = sld [smem:[#allocation72_spill]]  ;;  %s18360_s14 = scalar_lea.vmem %s127_s28, 1152 }
  0xfb   :  { %p18361_p1 = scmp.ne.s32.totalorder %s127_s28, %s18360_s14  ;;  %p18365_p2 = scmp.lt.s32.totalorder %s127_s28, %s127_s28 }
  0xfc   :  { %p18366_p3 = scmp.lt.s32.totalorder %s18360_s14, %s18360_s14 }
  0xfe   :  { %p18367_p4 = por %p18366_p3, %p18365_p2 }
 0x100   :  { %110 = dma.hbm_to_vmem [thread:$0]  %s22193_s27, 1152, %s105_s23, [#allocation5], %s18747_s13, %s18747_s13, %s18748_s1  }
 0x101   :  { %p18368_p5 = pnand %p18367_p4, %p18361_p1 }
 0x103   :  { %18371 = shalt.err (!%p18368_p5)
}
 0x104   :  { %s22194_s9 = sld [smem:[#allocation73_spill]]  ;;  %s18763_s2 = smov [#allocation11]  }
 0x105   :  { %s150_s7 = sshll.u32 %s18763_s2, 4  ;;  %s18764_s0 = smov [#allocation14]   ;;  %s151_s7 = int_to_ptr.vmem [resolvable:$true] %s150_s7 }
 0x106   :  { %s174_s10 = sshll.u32 %s18764_s0, 4  ;;  %s18380_s5 = scalar_lea.vmem %s151_s7, 256  ;;  %s175_s10 = int_to_ptr.vmem [resolvable:$true] %s174_s10 }
 0x107   :  { %p18381_p6 = scmp.ne.s32.totalorder %s151_s7, %s18380_s5  ;;  %p18385_p7 = scmp.lt.s32.totalorder %s151_s7, %s151_s7 }
 0x108   :  { %p18386_p8 = scmp.lt.s32.totalorder %s18380_s5, %s18380_s5 }
 0x10a   :  { %132 = dma.hbm_to_vmem [thread:$0]  %s22194_s9, 1152, %s127_s28, [#allocation7], %s18747_s13, %s18747_s13, %s18748_s1  }
 0x10b   :  { %p18387_p9 = por %p18386_p8, %p18385_p7 }
 0x10d   :  { %p18388_p10 = pnand %p18387_p9, %p18381_p6 }
 0x10f   :  { %18391 = shalt.err (!%p18388_p10)
}
 0x110   :  { %s22195_s20 = sld [smem:[#allocation75_spill]]  ;;  %s18400_s11 = scalar_lea.vmem %s175_s10, 256 }
 0x111   :  { %p18401_p11 = scmp.ne.s32.totalorder %s175_s10, %s18400_s11  ;;  %p18405_p12 = scmp.lt.s32.totalorder %s175_s10, %s175_s10 }
 0x112   :  { %p18406_p13 = scmp.lt.s32.totalorder %s18400_s11, %s18400_s11 }
 0x114   :  { %p18407_p0 = por %p18406_p13, %p18405_p12 }
 0x116   :  { %156 = dma.hbm_to_vmem [thread:$0]  %s22195_s20, 256, %s151_s7, [#allocation10], %s18747_s13, %s18747_s13, %s18748_s1  }
 0x117   :  { %p18408_p1 = pnand %p18407_p0, %p18401_p11 }
 0x119   :  { %18411 = shalt.err (!%p18408_p1)
}
 0x11a   :  { %s22196_s3 = sld [smem:[#allocation76_spill]]  ;;  %s18765_s19 = smov [#allocation17]  }
 0x11b   :  { %s200_s15 = sshll.u32 %s18765_s19, 4  ;;  %s18766_s6 = smov [#allocation20]   ;;  %s201_s15 = int_to_ptr.vmem [resolvable:$true] %s200_s15 }
 0x11c   :  { %s225_s24 = sshll.u32 %s18766_s6, 4  ;;  %s18420_s16 = scalar_lea.vmem %s201_s15, 4608  ;;  %s226_s24 = int_to_ptr.vmem [resolvable:$true] %s225_s24 }
 0x11d   :  { %p18421_p2 = scmp.ne.s32.totalorder %s201_s15, %s18420_s16  ;;  %p18425_p3 = scmp.lt.s32.totalorder %s201_s15, %s201_s15 }
 0x11e   :  { %p18426_p4 = scmp.lt.s32.totalorder %s18420_s16, %s18420_s16 }
 0x120   :  { %180 = dma.hbm_to_vmem [thread:$0]  %s22196_s3, 256, %s175_s10, [#allocation13], %s18747_s13, %s18747_s13, %s18748_s1  }
 0x121   :  { %p18427_p5 = por %p18426_p4, %p18425_p3 }
 0x123   :  { %p18428_p6 = pnand %p18427_p5, %p18421_p2 }
 0x125   :  { %18431 = shalt.err (!%p18428_p6)
}
 0x126   :  { %s22197_s18 = sld [smem:[#allocation78_spill]]  ;;  %s18440_s22 = scalar_lea.vmem %s226_s24, 128 }
 0x127   :  { %p18441_p7 = scmp.ne.s32.totalorder %s226_s24, %s18440_s22  ;;  %p18445_p8 = scmp.lt.s32.totalorder %s226_s24, %s226_s24 }
 0x128   :  { %p18446_p9 = scmp.lt.s32.totalorder %s18440_s22, %s18440_s22 }
 0x12a   :  { %p18447_p10 = por %p18446_p9, %p18445_p8 }
 0x12c   :  { %206 = dma.hbm_to_vmem [thread:$0]  %s22197_s18, 4608, %s201_s15, [#allocation16], %s18747_s13, %s18747_s13, %s18748_s1  }
 0x12d   :  { %p18448_p11 = pnand %p18447_p10, %p18441_p7 }
 0x12f   :  { %18451 = shalt.err (!%p18448_p11)
}
 0x130   :  { %s22198_s30 = sld [smem:[#allocation79_spill]]  ;;  %s18767_s8 = smov [#allocation23]  }
 0x131   :  { %s244_s12 = sshll.u32 %s18767_s8, 4  ;;  %s18768_s29 = smov [#allocation26]   ;;  %s245_s12 = int_to_ptr.vmem [resolvable:$true] %s244_s12 }
 0x132   :  { %s268_s23 = sshll.u32 %s18768_s29, 4  ;;  %s18460_s26 = scalar_lea.vmem %s245_s12, 256  ;;  %s269_s23 = int_to_ptr.vmem [resolvable:$true] %s268_s23 }
 0x133   :  { %p18461_p12 = scmp.ne.s32.totalorder %s245_s12, %s18460_s26  ;;  %p18465_p13 = scmp.lt.s32.totalorder %s245_s12, %s245_s12 }
 0x134   :  { %p18466_p0 = scmp.lt.s32.totalorder %s18460_s26, %s18460_s26 }
 0x136   :  { %228 = dma.hbm_to_vmem [thread:$0]  %s22198_s30, 128, %s226_s24, [#allocation19]  }
 0x137   :  { %p18467_p1 = por %p18466_p0, %p18465_p13 }
 0x139   :  { %p18468_p2 = pnand %p18467_p1, %p18461_p12 }
 0x13b   :  { %18471 = shalt.err (!%p18468_p2)
}
 0x13c   :  { %s22199_s28 = sld [smem:[#allocation80_spill]]  ;;  %s18480_s21 = scalar_lea.vmem %s269_s23, 512 }
 0x13d   :  { %p18481_p3 = scmp.ne.s32.totalorder %s269_s23, %s18480_s21  ;;  %p18485_p4 = scmp.lt.s32.totalorder %s269_s23, %s269_s23 }
 0x13e   :  { %p18486_p5 = scmp.lt.s32.totalorder %s18480_s21, %s18480_s21 }
 0x140   :  { %p18487_p6 = por %p18486_p5, %p18485_p4 }
 0x142   :  { %250 = dma.hbm_to_vmem [thread:$0]  %s22199_s28, 256, %s245_s12, [#allocation22], %s18747_s13, %s18747_s13, %s18748_s1  }
 0x143   :  { %p18488_p7 = pnand %p18487_p6, %p18481_p3 }
 0x145   :  { %18491 = shalt.err (!%p18488_p7)
}
 0x146   :  { %s22200_s27 = sld [smem:[#allocation81_spill]]  ;;  %s18769_s14 = smov [#allocation29]  }
 0x147   :  { %s292_s9 = sshll.u32 %s18769_s14, 4  ;;  %s18770_s2 = smov [#allocation32]   ;;  %s293_s9 = int_to_ptr.vmem [resolvable:$true] %s292_s9 }
 0x148   :  { %s316_s7 = sshll.u32 %s18770_s2, 4  ;;  %s18500_s0 = scalar_lea.vmem %s293_s9, 2304  ;;  %s317_s7 = int_to_ptr.vmem [resolvable:$true] %s316_s7 }
 0x149   :  { %p18501_p8 = scmp.ne.s32.totalorder %s293_s9, %s18500_s0  ;;  %p18505_p9 = scmp.lt.s32.totalorder %s293_s9, %s293_s9 }
 0x14a   :  { %p18506_p10 = scmp.lt.s32.totalorder %s18500_s0, %s18500_s0 }
 0x14c   :  { %274 = dma.hbm_to_vmem [thread:$0]  %s22200_s27, 512, %s269_s23, [#allocation25], %s18747_s13, %s18747_s13, %s18748_s1  }
 0x14d   :  { %p18507_p11 = por %p18506_p10, %p18505_p9 }
 0x14f   :  { %p18508_p12 = pnand %p18507_p11, %p18501_p8 }
 0x151   :  { %18511 = shalt.err (!%p18508_p12)
}
 0x152   :  { %s22201_s10 = sld [smem:[#allocation82_spill]]  ;;  %s18520_s5 = scalar_lea.vmem %s317_s7, 2304 }
 0x153   :  { %p18521_p13 = scmp.ne.s32.totalorder %s317_s7, %s18520_s5  ;;  %p18525_p0 = scmp.lt.s32.totalorder %s317_s7, %s317_s7 }
 0x154   :  { %p18526_p1 = scmp.lt.s32.totalorder %s18520_s5, %s18520_s5 }
 0x156   :  { %p18527_p2 = por %p18526_p1, %p18525_p0 }
 0x158   :  { %298 = dma.hbm_to_vmem [thread:$0]  %s22201_s10, 2304, %s293_s9, [#allocation28], %s18747_s13, %s18747_s13, %s18748_s1  }
 0x159   :  { %p18528_p3 = pnand %p18527_p2, %p18521_p13 }
 0x15b   :  { %18531 = shalt.err (!%p18528_p3)
}
 0x15c   :  { %s22202_s20 = sld [smem:[#allocation83_spill]]  ;;  %s18771_s11 = smov [#allocation35]  }
 0x15d   :  { %s340_s3 = sshll.u32 %s18771_s11, 4  ;;  %s18772_s19 = smov [#allocation38]   ;;  %s341_s3 = int_to_ptr.vmem [resolvable:$true] %s340_s3 }
 0x15e   :  { %s362_s15 = sshll.u32 %s18772_s19, 4  ;;  %s18540_s6 = scalar_lea.vmem %s341_s3, 1152  ;;  %s363_s15 = int_to_ptr.vmem [resolvable:$true] %s362_s15 }
 0x15f   :  { %p18541_p4 = scmp.ne.s32.totalorder %s341_s3, %s18540_s6  ;;  %p18545_p5 = scmp.lt.s32.totalorder %s341_s3, %s341_s3 }
 0x160   :  { %p18546_p6 = scmp.lt.s32.totalorder %s18540_s6, %s18540_s6 }
 0x162   :  { %322 = dma.hbm_to_vmem [thread:$0]  %s22202_s20, 2304, %s317_s7, [#allocation31], %s18747_s13, %s18747_s13, %s18748_s1  }
 0x163   :  { %p18547_p7 = por %p18546_p6, %p18545_p5 }
 0x165   :  { %p18548_p8 = pnand %p18547_p7, %p18541_p4 }
 0x167   :  { %18551 = shalt.err (!%p18548_p8)
}
 0x168   :  { %s22203_s24 = sld [smem:[#allocation84_spill]]  ;;  %s18560_s16 = scalar_lea.vmem %s363_s15, 1152 }
 0x169   :  { %p18561_p9 = scmp.ne.s32.totalorder %s363_s15, %s18560_s16  ;;  %p18565_p10 = scmp.lt.s32.totalorder %s363_s15, %s363_s15 }
 0x16a   :  { %p18566_p11 = scmp.lt.s32.totalorder %s18560_s16, %s18560_s16 }
 0x16c   :  { %p18567_p12 = por %p18566_p11, %p18565_p10 }
 0x16e   :  { %346 = dma.hbm_to_vmem [thread:$0]  %s22203_s24, 1152, %s341_s3, [#allocation34], %s18747_s13, %s18747_s13, %s18748_s1  }
 0x16f   :  { %p18568_p13 = pnand %p18567_p12, %p18561_p9 }
 0x171   :  { %18571 = shalt.err (!%p18568_p13)
}
 0x172   :  { %s22204_s18 = sld [smem:[#allocation85_spill]]  ;;  %s18773_s22 = smov [#allocation41]  }
 0x173   :  { %s384_s30 = sshll.u32 %s18773_s22, 4  ;;  %s385_s30 = int_to_ptr.vmem [resolvable:$true] %s384_s30 }
 0x174   :  { %s18580_s8 = scalar_lea.vmem %s385_s30, 576  ;;  %p18585_p1 = scmp.lt.s32.totalorder %s385_s30, %s385_s30 }
 0x175   :  { %p18581_p0 = scmp.ne.s32.totalorder %s385_s30, %s18580_s8  ;;  %p18586_p2 = scmp.lt.s32.totalorder %s18580_s8, %s18580_s8 }
 0x177   :  { %p18587_p3 = por %p18586_p2, %p18585_p1 }
 0x178   :  { %368 = dma.hbm_to_vmem [thread:$0]  %s22204_s18, 1152, %s363_s15, [#allocation37], %s18747_s13, %s18747_s13, %s18748_s1  }
 0x179   :  { %p18588_p4 = pnand %p18587_p3, %p18581_p0 }
 0x17b   :  { %18591 = shalt.err (!%p18588_p4)
}
 0x17c   :  { %s18774_s12 = smov 64   ;;  %s22205_s29 = sld [smem:[#allocation86_spill]] }
 0x17d   :  { %s18775_s23 = smov 4   ;;  %s18776_s26 = smov [#allocation44]  }
 0x17e   :  { %s406_s28 = sshll.u32 %s18776_s26, 4  ;;  %s18777_s21 = smov [#allocation47]   ;;  %s407_s28 = int_to_ptr.vmem [resolvable:$true] %s406_s28 }
 0x17f   :  { %s428_s27 = sshll.u32 %s18777_s21, 4  ;;  %s18600_s14 = scalar_lea.vmem %s407_s28, 576  ;;  %s429_s27 = int_to_ptr.vmem [resolvable:$true] %s428_s27 }
 0x180   :  { %p18601_p5 = scmp.ne.s32.totalorder %s407_s28, %s18600_s14  ;;  %p18605_p6 = scmp.lt.s32.totalorder %s407_s28, %s407_s28 }
 0x181   :  { %p18606_p7 = scmp.lt.s32.totalorder %s18600_s14, %s18600_s14 }
 0x182   :  { %390 = dma.hbm_to_vmem [thread:$0]  %s22205_s29, 576, %s385_s30, [#allocation40], %s18774_s12, %s18774_s12, %s18775_s23  }
 0x183   :  { %p18607_p8 = por %p18606_p7, %p18605_p6 }
 0x185   :  { %p18608_p9 = pnand %p18607_p8, %p18601_p5 }
 0x187   :  { %18611 = shalt.err (!%p18608_p9)
}
 0x188   :  { %s22206_s9 = sld [smem:[#allocation87_spill]]  ;;  %s18620_s2 = scalar_lea.vmem %s429_s27, 8192 }
 0x189   :  { %p18621_p10 = scmp.ne.s32.totalorder %s429_s27, %s18620_s2  ;;  %p18625_p11 = scmp.lt.s32.totalorder %s429_s27, %s429_s27 }
 0x18a   :  { %p18626_p12 = scmp.lt.s32.totalorder %s18620_s2, %s18620_s2 }
 0x18c   :  { %p18627_p13 = por %p18626_p12, %p18625_p11 }
 0x18e   :  { %412 = dma.hbm_to_vmem [thread:$0]  %s22206_s9, 576, %s407_s28, [#allocation43], %s18774_s12, %s18774_s12, %s18775_s23  }
 0x18f   :  { %p18628_p0 = pnand %p18627_p13, %p18621_p10 }
 0x191   :  { %18631 = shalt.err (!%p18628_p0)
}
 0x192   :  { %s22207_s7 = sld [smem:[#allocation88_spill]]  ;;  %s18778_s0 = smov [#allocation50]  }
 0x193   :  { %s452_s10 = sshll.u32 %s18778_s0, 4  ;;  %s18779_s5 = smov [#allocation53]   ;;  %s453_s10 = int_to_ptr.vmem [resolvable:$true] %s452_s10 }
 0x194   :  { %s476_s20 = sshll.u32 %s18779_s5, 4  ;;  %s18640_s11 = scalar_lea.vmem %s453_s10, 512  ;;  %s477_s20 = int_to_ptr.vmem [resolvable:$true] %s476_s20 }
 0x195   :  { %p18641_p1 = scmp.ne.s32.totalorder %s453_s10, %s18640_s11  ;;  %p18645_p2 = scmp.lt.s32.totalorder %s453_s10, %s453_s10 }
 0x196   :  { %p18646_p3 = scmp.lt.s32.totalorder %s18640_s11, %s18640_s11 }
 0x198   :  { %434 = dma.hbm_to_vmem [thread:$0]  %s22207_s7, 8192, %s429_s27, [#allocation46], %s18747_s13, %s18747_s13, %s18748_s1  }
 0x199   :  { %p18647_p4 = por %p18646_p3, %p18645_p2 }
 0x19b   :  { %p18648_p5 = pnand %p18647_p4, %p18641_p1 }
 0x19d   :  { %18651 = shalt.err (!%p18648_p5)
}
 0x19e   :  { %s22208_s3 = sld [smem:[#allocation90_spill]]  ;;  %s18660_s19 = scalar_lea.vmem %s477_s20, 8192 }
 0x19f   :  { %p18661_p6 = scmp.ne.s32.totalorder %s477_s20, %s18660_s19  ;;  %p18665_p7 = scmp.lt.s32.totalorder %s477_s20, %s477_s20 }
 0x1a0   :  { %p18666_p8 = scmp.lt.s32.totalorder %s18660_s19, %s18660_s19 }
 0x1a2   :  { %p18667_p9 = por %p18666_p8, %p18665_p7 }
 0x1a4   :  { %458 = dma.hbm_to_vmem [thread:$0]  %s22208_s3, 512, %s453_s10, [#allocation49], %s18747_s13, %s18747_s13, %s18748_s1  }
 0x1a5   :  { %p18668_p10 = pnand %p18667_p9, %p18661_p6 }
 0x1a7   :  { %18671 = shalt.err (!%p18668_p10)
}
 0x1a8   :  { %s18780_s15 = smov 512   ;;  %s18781_s6 = smov 32  }
 0x1a9   :  { %482 = dma.hbm_to_vmem [thread:$0]  %s18999_s17, 8192, %s477_s20, [#allocation52], %s18780_s15, %s18780_s15, %s18781_s6  }
 0x1aa   :  { %18672 = dma.done.wait [#allocation5], 1152  }
 0x1ab   :  { %18673 = vsyncadd [#allocation5], 4294966144 }
 0x1ac   :  { %18674 = dma.done.wait [#allocation7], 1280  }
 0x1ad   :  { %18675 = vsyncadd [#allocation7], 4294966016 }
 0x1ae   :  { %18676 = dma.done.wait [#allocation10], 384  }
 0x1af   :  { %18677 = vsyncadd [#allocation10], 4294966912 }
 0x1b0   :  { %18678 = dma.done.wait [#allocation13], 2560  }
 0x1b1   :  { %18679 = vsyncadd [#allocation13], 4294964736 }
 0x1b2   :  { %18680 = dma.done.wait [#allocation16], 5120  }
 0x1b3   :  { %18681 = vsyncadd [#allocation16], 4294962176 }
 0x1b4   :  { %18682 = dma.done.wait [#allocation19], 640  }
 0x1b5   :  { %18683 = vsyncadd [#allocation19], 4294966656 }
 0x1b6   :  { %18684 = dma.done.wait [#allocation22], 384  }
 0x1b7   :  { %18685 = vsyncadd [#allocation22], 4294966912 }
 0x1b8   :  { %18686 = dma.done.wait [#allocation25], 768  }
 0x1b9   :  { %18687 = vsyncadd [#allocation25], 4294966528 }
 0x1ba   :  { %18688 = dma.done.wait [#allocation28], 2816  }
 0x1bb   :  { %18689 = vsyncadd [#allocation28], 4294964480 }
 0x1bc   :  { %18690 = dma.done.wait [#allocation31], 2560  }
 0x1bd   :  { %18691 = vsyncadd [#allocation31], 4294964736 }
 0x1be   :  { %18692 = dma.done.wait [#allocation34], 1408  }
 0x1bf   :  { %18693 = vsyncadd [#allocation34], 4294965888 }
 0x1c0   :  { %18694 = dma.done.wait [#allocation37], 1280  }
 0x1c1   :  { %18695 = vsyncadd [#allocation37], 4294966016 }
 0x1c2   :  { %18696 = dma.done.wait [#allocation40], 704  }
 0x1c3   :  { %18697 = vsyncadd [#allocation40], 4294966592 }
 0x1c4   :  { %18698 = dma.done.wait [#allocation43], 640  }
 0x1c5   :  { %18699 = vsyncadd [#allocation43], 4294966656 }
 0x1c6   :  { %18700 = dma.done.wait [#allocation46], 8256  }
 0x1c7   :  { %18701 = vsyncadd [#allocation46], 4294959040 }
 0x1c8   :  { %18702 = dma.done.wait [#allocation49], 2560  }
 0x1c9   :  { %18703 = vsyncadd [#allocation49], 4294964736 }
 0x1ca   :  { %18704 = dma.done.wait [#allocation52], 8320  }
 0x1cb   :  { %18705 = vsyncadd [#allocation52], 4294958976  ;;  %s22209_s17 = sld [smem:[#allocation71_spill]]  ;;  %v22063_v0 = vmov 0.0   ;;  %s18783_s13 = smov 16   ;;  %v18790_v5 = vmov 0   ;;  %v582_v7 = vlaneseq }
 0x1cc   :  { %811 = vmatprep.mubr.f32.mxu0 %v22063_v0  ;;  %882 = vmatprep.mubr.f32.mxu1 %v22063_v0  ;;  %s18784_s24 = smov 17   ;;  %s18785_s16 = smov 15   ;;  %v2315_v6 = vld [vmem:[#allocation6] sm:$0xff]  ;;  %vm715_vm1 = vcmask 130048   ;;  %vm734_vm7 = vcmask 1043456   ;;  %vm692_vm10 = vcmask 138240  }
 0x1cd   :  { %s18786_s18 = smov 1   ;;  %s18787_s22 = smov 127   ;;  %17976 = vset.pattern.permute.xlu0 %v18790_v5  ;;  %17997 = vset.pattern.permute.xlu1 %v18790_v5  ;;  %v19184_v8 = vand.u32 127, %v582_v7  ;;  %vm730_vm11 = vcmask 31744   ;;  %v729_v48 = vld [vmem:[#allocation4 + $0x8] sm:$0xff]  ;;  %v1417_v59 = vld [vmem:[#allocation4 + $0x20] sm:$0xff] }
 0x1ce   :  { %s18788_s30 = smov 113   ;;  %s18789_s8 = smov 112  }
 0x1cf   :  { %s22085_s12 = smov 111   ;;  %22210 = vst [vmem:[#allocation91_spill] sm:$0xff] %v19184_v8  ;;  %v586_v9 = vadd.s32 384, %v19184_v8  ;;  %v584_v11 = vadd.s32 128, %v19184_v8  ;;  %v585_v12 = vadd.s32 256, %v19184_v8  ;;  %v591_v16 = vshra.s32 %v19184_v8, 4 }
 0x1d0   :  { %v587_v24 = vand.u32 15, %v19184_v8  ;;  %s22258_s29 = sld [smem:[#allocation74_spill]]  ;;  %s18793_s26 = smov 9  }
 0x1d1   :  { %v19107_v1 = vld [vmem:[%s22209_s17 + $0x8] sm:$0xff]  ;;  %v19110_v2 = vld [vmem:[%s22209_s17] sm:$0xff]  ;;  %v594_v10 = vshra.s32 %v586_v9, 4  ;;  %v592_v14 = vshra.s32 %v584_v11, 4  ;;  %v593_v15 = vshra.s32 %v585_v12, 4  ;;  %v590_v17 = vand.u32 15, %v586_v9 }
 0x1d2   :  { %713 = vrot.lane.b32.xlu1 %v19107_v1, %s18783_s13  ;;  %709 = vrot.lane.b32.xlu0 %v19110_v2, %s18783_s13  ;;  %v19118_v3 = vcombine.high %v19107_v1, %v19107_v1  ;;  %v19126_v4 = vcombine.high %v19110_v2, %v19110_v2  ;;  %v588_v20 = vand.u32 15, %v584_v11  ;;  %v589_v22 = vand.u32 15, %v585_v12  ;;  %v705_v9 = vld [vmem:[#allocation4] sm:$0xff]  ;;  %s18794_s28 = smov 7   ;;  %s18795_s21 = smov 121  }
 0x1d3   :  { %v19189_v13 = vand.u32 15, %v594_v10  ;;  %v19193_v21 = vand.u32 15, %v592_v14  ;;  %v19195_v23 = vand.u32 15, %v593_v15  ;;  %v19198_v25 = vand.u32 15, %v591_v16  ;;  %s18796_s27 = smov 119   ;;  %s18797_s14 = smov 120  }
 0x1d4   :  { %vm618_vm2 = vcmp.gt.s32.totalorder %v590_v17, 0  ;;  %vm616_vm4 = vcmp.gt.s32.totalorder %v588_v20, 0  ;;  %vm617_vm6 = vcmp.gt.s32.totalorder %v589_v22, 0  ;;  %vm615_vm9 = vcmp.gt.s32.totalorder %v587_v24, 0  ;;  %s22269_s9 = sld [smem:[#allocation77_spill]]  ;;  %s18798_s2 = smov 100  }
 0x1d5   :  { %vm602_vm0 = vcmp.gt.s32.totalorder %v19189_v13, 0  ;;  %vm600_vm3 = vcmp.gt.s32.totalorder %v19193_v21, 0  ;;  %vm601_vm5 = vcmp.gt.s32.totalorder %v19195_v23, 0  ;;  %vm599_vm8 = vcmp.gt.s32.totalorder %v19198_v25, 0  ;;  %s18799_s7 = smov 5   ;;  %s18800_s0 = smov 101  }
 0x1d6   :  { %686 = vrot.lane.b32.xlu1 %v19110_v2, %s18784_s24  ;;  %706 = vrot.lane.b32.xlu0 %v19118_v3, %s18783_s13  ;;  %v19201_v26 = vsel %vm602_vm0, 1.0, %v22063_v0  ;;  %v19208_v30 = vsel %vm618_vm2, 1.0, %v22063_v0  ;;  %v19212_v32 = vsel %vm600_vm3, 1.0, %v22063_v0  ;;  %v19215_v33 = vsel %vm616_vm4, 1.0, %v22063_v0  ;;  %s18801_s10 = smov 3   ;;  %s18802_s5 = smov 99  }
 0x1d7   :  { %22211 = vst [vmem:[#allocation92_spill] sm:$0xff] %v19201_v26  ;;  %22212 = vst [vmem:[#allocation93_spill] sm:$0xff] %v19208_v30  ;;  %v19218_v34 = vsel %vm601_vm5, 1.0, %v22063_v0  ;;  %v19221_v35 = vsel %vm617_vm6, 1.0, %v22063_v0  ;;  %v19226_v37 = vsel %vm599_vm8, 1.0, %v22063_v0  ;;  %v19229_v38 = vsel %vm615_vm9, 1.0, %v22063_v0 }
 0x1d8   :  { %22213 = vst [vmem:[#allocation94_spill] sm:$0xff] %v19212_v32  ;;  %22214 = vst [vmem:[#allocation95_spill] sm:$0xff] %v19215_v33  ;;  %v19235_v43 = vmul.f32 %v19208_v30, %v19201_v26  ;;  %v19239_v44 = vmul.f32 %v19215_v33, %v19212_v32  ;;  %v19245_v47 = vmul.f32 %v19221_v35, %v19218_v34  ;;  %vm19252_vm12 = vcmp.lt.s32.totalorder %v590_v17, 15  ;;  %s18803_s20 = smov 97   ;;  %s18804_s11 = smov 31  }
 0x1d9   :  { %22215 = vst [vmem:[#allocation96_spill] sm:$0xff] %v19218_v34  ;;  %22216 = vst [vmem:[#allocation97_spill] sm:$0xff] %v19221_v35  ;;  %v19249_v49 = vmul.f32 %v19229_v38, %v19226_v37  ;;  %vm19258_vm13 = vcmp.lt.s32.totalorder %v589_v22, 15  ;;  %vm624_vm14 = vcmp.lt.s32.totalorder %v588_v20, 15  ;;  %vm19267_vm15 = vcmp.lt.s32.totalorder %v587_v24, 15  ;;  %s18805_s3 = smov 29  }
 0x1da   :  { %681 = vrot.lane.b32.xlu0 %v19118_v3, %s18784_s24  ;;  %711 = vrot.lane.b32.xlu1 %v19126_v4, %s18783_s13  ;;  %22217 = vst [vmem:[#allocation98_spill] sm:$0xff] %v19226_v37  ;;  %22218 = vst [vmem:[#allocation99_spill] sm:$0xff] %v19229_v38  ;;  %v19280_v63 = vsel %vm19252_vm12, 1.0, %v22063_v0  ;;  %v19289_v7 = vsel %vm624_vm14, 1.0, %v22063_v0  ;;  %v19297_v11 = vsel %vm19267_vm15, 1.0, %v22063_v0  ;;  %vm1055_vm0 = vcmask 121856  }
 0x1db   :  { %22219 = vst [vmem:[#allocation100_spill] sm:$0xff] %v19235_v43  ;;  %22220 = vst [vmem:[#allocation101_spill] sm:$0xff] %v19239_v44  ;;  %v19303_v14 = vmul.f32 %v19289_v7, %v19212_v32  ;;  %v19311_v16 = vmul.f32 %v19280_v63, %v19201_v26  ;;  %v19317_v17 = vmul.f32 %v19297_v11, %v19226_v37  ;;  %vm1240_vm2 = vcmask 7168   ;;  %s18806_s19 = smov 125   ;;  %s18807_s15 = smov 28  }
 0x1dc   :  { %22221 = vst [vmem:[#allocation102_spill] sm:$0xff] %v19245_v47  ;;  %22222 = vst [vmem:[#allocation103_spill] sm:$0xff] %v19249_v49  ;;  %vm22153_vm3 = vcmask 1039360   ;;  %vm610_vm4 = vcmp.lt.s32.totalorder %v19189_v13, 15  ;;  %vm609_vm5 = vcmp.lt.s32.totalorder %v19195_v23, 15  ;;  %vm608_vm6 = vcmp.lt.s32.totalorder %v19193_v21, 15 }
 0x1dd   :  { %22229 = vst [vmem:[#allocation104_spill] sm:$0xff] %v19280_v63  ;;  %22231 = vst [vmem:[#allocation106_spill] sm:$0xff] %v19289_v7  ;;  %vm607_vm8 = vcmp.lt.s32.totalorder %v19198_v25, 15  ;;  %vm22089_vm9 = vcmask 924672   ;;  %vm22088_vm12 = vcmask 916480   ;;  %vm2378_vm14 = vcmask 64512  }
 0x1de   :  { %688 = vrot.lane.b32.xlu0 %v19126_v4, %s18784_s24  ;;  %690 = vrot.lane.b32.xlu1 %v19107_v1, %s18784_s24  ;;  %22232 = vst [vmem:[#allocation107_spill] sm:$0xff] %v19297_v11  ;;  %22233 = vst [vmem:[#allocation108_spill] sm:$0xff] %v19303_v14  ;;  %v19397_v23 = vsel %vm607_vm8, 1.0, %v22063_v0  ;;  %vm18792_vm15 = vmmov 0   ;;  %s18808_s6 = smov 124  }
 0x1df   :  { %22235 = vst [vmem:[#allocation110_spill] sm:$0xff] %v19311_v16  ;;  %22236 = vst [vmem:[#allocation111_spill] sm:$0xff] %v19317_v17 }
 0x1e0   :  { %22240 = vst [vmem:[#allocation115_spill] sm:$0xff] %v19397_v23 }
 0x1e2   :  { %1046 = vrot.lane.b32.xlu0 %v19118_v3, %s18785_s16  ;;  %1049 = vrot.lane.b32.xlu1 %v19110_v2, %s18785_s16 }
 0x1e6   :  { %1051 = vrot.lane.b32.xlu0 %v19126_v4, %s18785_s16  ;;  %1053 = vrot.lane.b32.xlu1 %v19107_v1, %s18785_s16 }
 0x1ea   :  { %1231 = vrot.lane.b32.xlu0 %v19118_v3, %s18786_s18  ;;  %1234 = vrot.lane.b32.xlu1 %v19110_v2, %s18786_s18 }
 0x1ee   :  { %1236 = vrot.lane.b32.xlu0 %v19126_v4, %s18786_s18  ;;  %1238 = vrot.lane.b32.xlu1 %v19107_v1, %s18786_s18 }
 0x1f2   :  { %1575 = vrot.lane.b32.xlu0 %v19110_v2, %s18787_s22  ;;  %1577 = vrot.lane.b32.xlu1 %v19126_v4, %s18787_s22 }
 0x1f6   :  { %1579 = vrot.lane.b32.xlu0 %v19107_v1, %s18787_s22  ;;  %1581 = vrot.lane.b32.xlu1 %v19118_v3, %s18787_s22 }
 0x1fa   :  { %1760 = vrot.lane.b32.xlu0 %v19110_v2, %s18788_s30  ;;  %1762 = vrot.lane.b32.xlu1 %v19126_v4, %s18788_s30 }
 0x1fe   :  { %1764 = vrot.lane.b32.xlu0 %v19107_v1, %s18788_s30  ;;  %1766 = vrot.lane.b32.xlu1 %v19118_v3, %s18788_s30 }
 0x202   :  { %1945 = vrot.lane.b32.xlu0 %v19110_v2, %s18789_s8  ;;  %1947 = vrot.lane.b32.xlu1 %v19126_v4, %s18789_s8 }
 0x206   :  { %1949 = vrot.lane.b32.xlu0 %v19107_v1, %s18789_s8  ;;  %1951 = vrot.lane.b32.xlu1 %v19118_v3, %s18789_s8 }
 0x20a   :  { %2130 = vrot.lane.b32.xlu0 %v19110_v2, %s22085_s12  ;;  %2132 = vrot.lane.b32.xlu1 %v19126_v4, %s22085_s12 }
 0x20e   :  { %2134 = vrot.lane.b32.xlu0 %v19107_v1, %s22085_s12  ;;  %2136 = vrot.lane.b32.xlu1 %v19118_v3, %s22085_s12 }
 0x212   :  { %2318 = vperm.xlu0 %17976, %v2315_v6   ;;  %v19286_v6 = vsel %vm19258_vm13, 1.0, %v22063_v0  ;;  %vm22087_vm13 = vcmask 908288  }
 0x213   :  { %22230 = vst [vmem:[#allocation105_spill] sm:$0xff] %v19286_v6  ;;  %v19307_v15 = vmul.f32 %v19286_v6, %v19218_v34 }
 0x215   :  { %22234 = vst [vmem:[#allocation109_spill] sm:$0xff] %v19307_v15 }
 0x244   :  { %v714_v18 = vpop.permute.xlu1 %713  ;;  %v710_v19 = vpop.permute.xlu0 %709 }
 0x248   :  { %v687_v27 = vpop.permute.xlu1 %686  ;;  %v707_v28 = vpop.permute.xlu0 %706 }
 0x249   :  { %v718_v29 = vsel %vm715_vm1, %v714_v18, %v707_v28  ;;  %v723_v36 = vsel %vm715_vm1, %v707_v28, %v710_v19 }
 0x24a   :  { %v727_v31 = vmul.f32 %v718_v29, %v19201_v26  ;;  %v724_v50 = vmul.f32 %v723_v36, %v19226_v37 }
 0x24c   :  { %16253 = vmatprep.subr.msk.mxu1 %vm734_vm7, %v727_v31  ;;  %v682_v39 = vpop.permute.xlu0 %681  ;;  %v712_v40 = vpop.permute.xlu1 %711 }
 0x24d   :  { %v717_v41 = vsel %vm715_vm1, %v712_v40, %v714_v18  ;;  %v716_v42 = vsel %vm715_vm1, %v710_v19, %v712_v40  ;;  %v700_v52 = vsel %vm692_vm10, %v682_v39, %v687_v27 }
 0x24e   :  { %v725_v45 = vmul.f32 %v716_v42, %v19212_v32  ;;  %v726_v46 = vmul.f32 %v717_v41, %v19218_v34  ;;  %v701_v5 = vmul.f32 %v700_v52, %v19249_v49 }
 0x250   :  { %v689_v53 = vpop.permute.xlu0 %688  ;;  %16250 = vmatprep.subr.msk.mxu0 %vm734_vm7, %v725_v45  ;;  %16254 = vmatpush1.msk.msra.mxu1 %vm734_vm7, %v726_v46  ;;  %v691_v55 = vpop.permute.xlu1 %690 }
 0x251   :  { %v693_v56 = vsel %vm692_vm10, %v687_v27, %v689_v53  ;;  %v694_v57 = vsel %vm692_vm10, %v689_v53, %v691_v55  ;;  %v695_v58 = vsel %vm692_vm10, %v691_v55, %v682_v39  ;;  %16251 = vmatpush1.msk.msra.mxu0 %vm734_vm7, %v724_v50  ;;  %16255 = vmatmul.mubr.msk.f32.vlgmr.msra.gmra.mxu1 %vm730_vm11, %v729_v48  ;;  %v1069_v39 = vld [vmem:[#allocation4 + $0x10] sm:$0xff] }
 0x252   :  { %v702_v60 = vmul.f32 %v693_v56, %v19239_v44  ;;  %v703_v61 = vmul.f32 %v694_v57, %v19245_v47  ;;  %v704_v62 = vmul.f32 %v695_v58, %v19235_v43  ;;  %16252 = vmatmul.mubr.msk.f32.vlgmr.msra.gmra.mxu0 %vm730_vm11, %v729_v48  ;;  %1039 = vmatprep.mubr.f32.mxu1 %v22063_v0  ;;  %v1254_v56 = vld [vmem:[#allocation4 + $0x18] sm:$0xff] }
 0x253   :  { %968 = vmatprep.mubr.f32.mxu0 %v22063_v0 }
 0x254   :  { %v1047_v10 = vpop.permute.xlu0 %1046  ;;  %16256 = vmatprep.subr.msk.mxu0 %vm734_vm7, %v702_v60  ;;  %16259 = vmatprep.subr.msk.mxu1 %vm734_vm7, %v704_v62  ;;  %v1050_v12 = vpop.permute.xlu1 %1049 }
 0x255   :  { %16257 = vmatpush1.msk.msra.mxu0 %vm734_vm7, %v701_v5  ;;  %16260 = vmatpush1.msk.msra.mxu1 %vm734_vm7, %v703_v61  ;;  %v1063_v18 = vsel %vm1055_vm0, %v1047_v10, %v1050_v12 }
 0x256   :  { %16258 = vmatmul.mubr.msk.f32.vlgmr.msra.gmra.mxu0 %vm730_vm11, %v705_v9  ;;  %16261 = vmatmul.mubr.msk.f32.vlgmr.msra.gmra.mxu1 %vm730_vm11, %v705_v9  ;;  %v1064_v36 = vmul.f32 %v1063_v18, %v19317_v17 }
 0x257   :  { %1149 = vmatprep.mubr.f32.mxu0 %v22063_v0  ;;  %1220 = vmatprep.mubr.f32.mxu1 %v22063_v0 }
 0x258   :  { %v1052_v19 = vpop.permute.xlu0 %1051  ;;  %v1054_v20 = vpop.permute.xlu1 %1053 }
 0x259   :  { %v1056_v22 = vsel %vm1055_vm0, %v1050_v12, %v1052_v19  ;;  %v1057_v24 = vsel %vm1055_vm0, %v1052_v19, %v1054_v20  ;;  %v1058_v27 = vsel %vm1055_vm0, %v1054_v20, %v1047_v10  ;;  %v19377_v12 = vsel %vm610_vm4, 1.0, %v22063_v0  ;;  %v1598_v19 = vld [vmem:[#allocation4 + $0x28] sm:$0xff] }
 0x25a   :  { %v1065_v28 = vmul.f32 %v1056_v22, %v19303_v14  ;;  %v1066_v29 = vmul.f32 %v1057_v24, %v19307_v15  ;;  %v1067_v31 = vmul.f32 %v1058_v27, %v19311_v16  ;;  %22237 = vst [vmem:[#allocation112_spill] sm:$0xff] %v19377_v12  ;;  %v19390_v20 = vsel %vm608_vm6, 1.0, %v22063_v0 }
 0x25b   :  { %22239 = vst [vmem:[#allocation114_spill] sm:$0xff] %v19390_v20  ;;  %v19404_v21 = vmul.f32 %v19215_v33, %v19390_v20  ;;  %v19413_v25 = vmul.f32 %v19208_v30, %v19377_v12  ;;  %v19417_v27 = vmul.f32 %v19229_v38, %v19397_v23 }
 0x25c   :  { %v1232_v40 = vpop.permute.xlu0 %1231  ;;  %16262 = vmatprep.subr.msk.mxu0 %vm734_vm7, %v1065_v28  ;;  %16265 = vmatprep.subr.msk.mxu1 %vm734_vm7, %v1067_v31  ;;  %v1235_v41 = vpop.permute.xlu1 %1234 }
 0x25d   :  { %16263 = vmatpush1.msk.msra.mxu0 %vm734_vm7, %v1064_v36  ;;  %16266 = vmatpush1.msk.msra.mxu1 %vm734_vm7, %v1066_v29  ;;  %v1248_v42 = vsel %vm1240_vm2, %v1232_v40, %v1235_v41  ;;  %22241 = vst [vmem:[#allocation116_spill] sm:$0xff] %v19404_v21  ;;  %22243 = vst [vmem:[#allocation118_spill] sm:$0xff] %v19413_v25 }
 0x25e   :  { %16264 = vmatmul.mubr.msk.f32.vlgmr.msra.gmra.mxu0 %vm730_vm11, %v1069_v39  ;;  %16267 = vmatmul.mubr.msk.f32.vlgmr.msra.gmra.mxu1 %vm730_vm11, %v1069_v39  ;;  %v1249_v55 = vmul.f32 %v1248_v42, %v19229_v38  ;;  %22244 = vst [vmem:[#allocation119_spill] sm:$0xff] %v19417_v27 }
 0x25f   :  { %1334 = vmatprep.mubr.f32.mxu0 %v22063_v0  ;;  %1405 = vmatprep.mubr.f32.mxu1 %v22063_v0 }
 0x260   :  { %v1237_v45 = vpop.permute.xlu0 %1236  ;;  %v1239_v46 = vpop.permute.xlu1 %1238 }
 0x261   :  { %v1241_v48 = vsel %vm1240_vm2, %v1235_v41, %v1237_v45  ;;  %v1242_v50 = vsel %vm1240_vm2, %v1237_v45, %v1239_v46  ;;  %v1243_v51 = vsel %vm1240_vm2, %v1239_v46, %v1232_v40 }
 0x262   :  { %v1250_v52 = vmul.f32 %v1241_v48, %v19215_v33  ;;  %v1251_v53 = vmul.f32 %v1242_v50, %v19221_v35  ;;  %v1252_v54 = vmul.f32 %v1243_v51, %v19208_v30  ;;  %v1783_v48 = vld [vmem:[#allocation4 + $0x30] sm:$0xff] }
 0x264   :  { %v1576_v57 = vpop.permute.xlu0 %1575  ;;  %16268 = vmatprep.subr.msk.mxu0 %vm734_vm7, %v1250_v52  ;;  %16271 = vmatprep.subr.msk.mxu1 %vm734_vm7, %v1252_v54  ;;  %v1578_v58 = vpop.permute.xlu1 %1577 }
 0x265   :  { %16269 = vmatpush1.msk.msra.mxu0 %vm734_vm7, %v1249_v55  ;;  %16272 = vmatpush1.msk.msra.mxu1 %vm734_vm7, %v1251_v53  ;;  %v1584_v60 = vsel %vm22153_vm3, %v1576_v57, %v1578_v58 }
 0x266   :  { %16270 = vmatmul.mubr.msk.f32.vlgmr.msra.gmra.mxu0 %vm730_vm11, %v1254_v56  ;;  %16273 = vmatmul.mubr.msk.f32.vlgmr.msra.gmra.mxu1 %vm730_vm11, %v1254_v56  ;;  %v1593_v18 = vmul.f32 %v1584_v60, %v19297_v11 }
 0x267   :  { %16274 = vmatprep.subr.msk.mxu0 %vm734_vm7, %v19126_v4  ;;  %1493 = vmatprep.mubr.f32.mxu0 %v22063_v0 }
 0x268   :  { %v1580_v61 = vpop.permute.xlu0 %1579  ;;  %v1582_v62 = vpop.permute.xlu1 %1581  ;;  %16275 = vmatpush1.msk.msra.mxu0 %vm734_vm7, %v19110_v2  ;;  %16277 = vmatprep.subr.msk.mxu1 %vm734_vm7, %v19118_v3 }
 0x269   :  { %v1585_v4 = vsel %vm22153_vm3, %v1578_v58, %v1580_v61  ;;  %v1586_v5 = vsel %vm22153_vm3, %v1580_v61, %v1582_v62  ;;  %v1592_v9 = vsel %vm22153_vm3, %v1582_v62, %v1576_v57  ;;  %16278 = vmatpush1.msk.msra.mxu1 %vm734_vm7, %v19107_v1  ;;  %1564 = vmatprep.mubr.f32.mxu1 %v22063_v0  ;;  %v19382_v1 = vsel %vm609_vm5, 1.0, %v22063_v0  ;;  %v1968_v62 = vld [vmem:[#allocation4 + $0x38] sm:$0xff] }
 0x26a   :  { %v1594_v2 = vmul.f32 %v1585_v4, %v19289_v7  ;;  %v1595_v10 = vmul.f32 %v1586_v5, %v19286_v6  ;;  %v1596_v3 = vmul.f32 %v1592_v9, %v19280_v63  ;;  %16276 = vmatmul.mubr.msk.f32.vlgmr.msra.gmra.mxu0 %vm730_vm11, %v1417_v59  ;;  %16279 = vmatmul.mubr.msk.f32.vlgmr.msra.gmra.mxu1 %vm730_vm11, %v1417_v59 }
 0x26b   :  { %22238 = vst [vmem:[#allocation113_spill] sm:$0xff] %v19382_v1  ;;  %1678 = vmatprep.mubr.f32.mxu0 %v22063_v0  ;;  %1749 = vmatprep.mubr.f32.mxu1 %v22063_v0  ;;  %v19409_v24 = vmul.f32 %v19221_v35, %v19382_v1  ;;  %v19453_v9 = vmul.f32 %v19289_v7, %v19390_v20 }
 0x26c   :  { %v1761_v13 = vpop.permute.xlu0 %1760  ;;  %16280 = vmatprep.subr.msk.mxu0 %vm734_vm7, %v1594_v2  ;;  %16283 = vmatprep.subr.msk.mxu1 %vm734_vm7, %v1596_v3  ;;  %v1763_v22 = vpop.permute.xlu1 %1762  ;;  %v19457_v2 = vmul.f32 %v19286_v6, %v19382_v1  ;;  %v19465_v3 = vmul.f32 %v19297_v11, %v19397_v23 }
 0x26d   :  { %16281 = vmatpush1.msk.msra.mxu0 %vm734_vm7, %v1593_v18  ;;  %16284 = vmatpush1.msk.msra.mxu1 %vm734_vm7, %v1595_v10  ;;  %22242 = vst [vmem:[#allocation117_spill] sm:$0xff] %v19409_v24  ;;  %v1769_v28 = vsel %vm22089_vm9, %v1761_v13, %v1763_v22  ;;  %22245 = vst [vmem:[#allocation120_spill] sm:$0xff] %v19453_v9  ;;  %v19461_v10 = vmul.f32 %v19280_v63, %v19377_v12 }
 0x26e   :  { %16282 = vmatmul.mubr.msk.f32.vlgmr.msra.gmra.mxu0 %vm730_vm11, %v1598_v19  ;;  %16285 = vmatmul.mubr.msk.f32.vlgmr.msra.gmra.mxu1 %vm730_vm11, %v1598_v19  ;;  %v1778_v46 = vmul.f32 %v1769_v28, %v19417_v27  ;;  %22246 = vst [vmem:[#allocation121_spill] sm:$0xff] %v19457_v2  ;;  %22248 = vst [vmem:[#allocation123_spill] sm:$0xff] %v19465_v3 }
 0x26f   :  { %1863 = vmatprep.mubr.f32.mxu0 %v22063_v0  ;;  %1934 = vmatprep.mubr.f32.mxu1 %v22063_v0  ;;  %22247 = vst [vmem:[#allocation122_spill] sm:$0xff] %v19461_v10 }
 0x270   :  { %v1765_v29 = vpop.permute.xlu0 %1764  ;;  %v1767_v31 = vpop.permute.xlu1 %1766 }
 0x271   :  { %v1770_v36 = vsel %vm22089_vm9, %v1763_v22, %v1765_v29  ;;  %v1771_v39 = vsel %vm22089_vm9, %v1765_v29, %v1767_v31  ;;  %v1777_v40 = vsel %vm22089_vm9, %v1767_v31, %v1761_v13 }
 0x272   :  { %v1779_v41 = vmul.f32 %v1770_v36, %v19404_v21  ;;  %v1780_v42 = vmul.f32 %v1771_v39, %v19409_v24  ;;  %v1781_v45 = vmul.f32 %v1777_v40, %v19413_v25 }
 0x274   :  { %v1946_v50 = vpop.permute.xlu0 %1945  ;;  %16286 = vmatprep.subr.msk.mxu0 %vm734_vm7, %v1779_v41  ;;  %16289 = vmatprep.subr.msk.mxu1 %vm734_vm7, %v1781_v45  ;;  %v1948_v51 = vpop.permute.xlu1 %1947  ;;  %v2153_v41 = vld [vmem:[#allocation4 + $0x40] sm:$0xff] }
 0x275   :  { %16287 = vmatpush1.msk.msra.mxu0 %vm734_vm7, %v1778_v46  ;;  %16290 = vmatpush1.msk.msra.mxu1 %vm734_vm7, %v1780_v42  ;;  %v1954_v52 = vsel %vm22088_vm12, %v1946_v50, %v1948_v51 }
 0x276   :  { %16288 = vmatmul.mubr.msk.f32.vlgmr.msra.gmra.mxu0 %vm730_vm11, %v1783_v48  ;;  %16291 = vmatmul.mubr.msk.f32.vlgmr.msra.gmra.mxu1 %vm730_vm11, %v1783_v48  ;;  %v1963_v61 = vmul.f32 %v1954_v52, %v19397_v23 }
 0x277   :  { %2048 = vmatprep.mubr.f32.mxu0 %v22063_v0  ;;  %2119 = vmatprep.mubr.f32.mxu1 %v22063_v0 }
 0x278   :  { %v1950_v53 = vpop.permute.xlu0 %1949  ;;  %v1952_v54 = vpop.permute.xlu1 %1951 }
 0x279   :  { %v1955_v55 = vsel %vm22088_vm12, %v1948_v51, %v1950_v53  ;;  %v1956_v56 = vsel %vm22088_vm12, %v1950_v53, %v1952_v54  ;;  %v1962_v57 = vsel %vm22088_vm12, %v1952_v54, %v1946_v50 }
 0x27a   :  { %v1964_v58 = vmul.f32 %v1955_v55, %v19390_v20  ;;  %v1965_v59 = vmul.f32 %v1956_v56, %v19382_v1  ;;  %v1966_v60 = vmul.f32 %v1962_v57, %v19377_v12 }
 0x27c   :  { %v2131_v4 = vpop.permute.xlu0 %2130  ;;  %16292 = vmatprep.subr.msk.mxu0 %vm734_vm7, %v1964_v58  ;;  %16295 = vmatprep.subr.msk.mxu1 %vm734_vm7, %v1966_v60  ;;  %v2133_v5 = vpop.permute.xlu1 %2132 }
 0x27d   :  { %16293 = vmatpush1.msk.msra.mxu0 %vm734_vm7, %v1963_v61  ;;  %16296 = vmatpush1.msk.msra.mxu1 %vm734_vm7, %v1965_v59  ;;  %v2139_v18 = vsel %vm22087_vm13, %v2131_v4, %v2133_v5 }
 0x27e   :  { %16294 = vmatmul.mubr.msk.f32.vlgmr.msra.gmra.mxu0 %vm730_vm11, %v1968_v62  ;;  %16297 = vmatmul.mubr.msk.f32.vlgmr.msra.gmra.mxu1 %vm730_vm11, %v1968_v62  ;;  %v2148_v40 = vmul.f32 %v2139_v18, %v19465_v3 }
 0x27f   :  { %2233 = vmatprep.mubr.f32.mxu0 %v22063_v0  ;;  %2304 = vmatprep.mubr.f32.mxu1 %v22063_v0 }
 0x280   :  { %v2135_v19 = vpop.permute.xlu0 %2134  ;;  %v2137_v13 = vpop.permute.xlu1 %2136 }
 0x281   :  { %v2140_v22 = vsel %vm22087_vm13, %v2133_v5, %v2135_v19  ;;  %v2141_v28 = vsel %vm22087_vm13, %v2135_v19, %v2137_v13  ;;  %v2147_v29 = vsel %vm22087_vm13, %v2137_v13, %v2131_v4 }
 0x282   :  { %v2149_v31 = vmul.f32 %v2140_v22, %v19453_v9  ;;  %v2150_v36 = vmul.f32 %v2141_v28, %v19457_v2  ;;  %v2151_v39 = vmul.f32 %v2147_v29, %v19461_v10 }
 0x284   :  { %16298 = vmatprep.subr.msk.mxu0 %vm734_vm7, %v2149_v31  ;;  %16301 = vmatprep.subr.msk.mxu1 %vm734_vm7, %v2151_v39 }
 0x285   :  { %16299 = vmatpush1.msk.msra.mxu0 %vm734_vm7, %v2148_v40  ;;  %16302 = vmatpush1.msk.msra.mxu1 %vm734_vm7, %v2150_v36 }
 0x286   :  { %16300 = vmatmul.mubr.msk.f32.vlgmr.msra.gmra.mxu0 %vm730_vm11, %v2153_v41  ;;  %16303 = vmatmul.mubr.msk.f32.vlgmr.msra.gmra.mxu1 %vm730_vm11, %v2153_v41 }
 0x287   :  { %2446 = vmatprep.mubr.f32.mxu0 %v22063_v0  ;;  %2517 = vmatprep.mubr.f32.mxu1 %v22063_v0 }
 0x311   :  { %v884_v42 = vpop.f32.mrf.mxu1 }
 0x312   :  { %v813_v45 = vpop.f32.mrf.mxu0 }
 0x313   :  { %v886_v46 = vpop.f32.mrf.mxu1 }
 0x314   :  { %v815_v48 = vpop.f32.mrf.mxu0 }
 0x316   :  { %v970_v50 = vpop.f32.mrf.mxu0  ;;  %v1041_v51 = vpop.f32.mrf.mxu1 }
 0x317   :  { %v971_v19 = vadd.f32 %v970_v50, %v813_v45  ;;  %v1042_v13 = vadd.f32 %v1041_v51, %v884_v42 }
 0x318   :  { %v972_v52 = vpop.f32.mrf.mxu0  ;;  %v1043_v53 = vpop.f32.mrf.mxu1 }
 0x319   :  { %v973_v10 = vadd.f32 %v972_v52, %v815_v48  ;;  %v1044_v2 = vadd.f32 %v1043_v53, %v886_v46  ;;  %v2319_v48 = vpop.permute.xlu0 %2318 }
 0x31e   :  { %v1151_v54 = vpop.f32.mrf.mxu0  ;;  %v1222_v55 = vpop.f32.mrf.mxu1 }
 0x31f   :  { %v1227_v29 = vadd.f32 %v1151_v54, %v971_v19  ;;  %v1229_v31 = vadd.f32 %v1222_v55, %v1042_v13 }
 0x320   :  { %v1153_v56 = vpop.f32.mrf.mxu0  ;;  %v1224_v57 = vpop.f32.mrf.mxu1 }
 0x321   :  { %v1228_v24 = vadd.f32 %v1153_v56, %v973_v10  ;;  %v1230_v42 = vadd.f32 %v1224_v57, %v1044_v2 }
 0x326   :  { %v1336_v58 = vpop.f32.mrf.mxu0  ;;  %v1407_v59 = vpop.f32.mrf.mxu1 }
 0x327   :  { %v1412_v40 = vadd.f32 %v1336_v58, %v1227_v29  ;;  %v1414_v41 = vadd.f32 %v1407_v59, %v1229_v31 }
 0x328   :  { %v1338_v60 = vpop.f32.mrf.mxu0  ;;  %v1409_v61 = vpop.f32.mrf.mxu1 }
 0x329   :  { %v1413_v54 = vadd.f32 %v1338_v60, %v1228_v24  ;;  %v1415_v59 = vadd.f32 %v1409_v61, %v1230_v42 }
 0x32a   :  { %v1495_v62 = vpop.f32.mrf.mxu0  ;;  %v1566_v4 = vpop.f32.mrf.mxu1 }
 0x32b   :  { %v1571_v3 = vadd.f32 %v1495_v62, %v1412_v40  ;;  %v1573_v1 = vadd.f32 %v1566_v4, %v1414_v41 }
 0x32c   :  { %v1497_v5 = vpop.f32.mrf.mxu0  ;;  %v1568_v18 = vpop.f32.mrf.mxu1 }
 0x32d   :  { %v1572_v53 = vadd.f32 %v1497_v5, %v1413_v54  ;;  %v1574_v10 = vadd.f32 %v1568_v18, %v1415_v59 }
 0x32e   :  { %v1680_v22 = vpop.f32.mrf.mxu0  ;;  %v1751_v28 = vpop.f32.mrf.mxu1 }
 0x32f   :  { %v1756_v50 = vadd.f32 %v1680_v22, %v1571_v3  ;;  %v1758_v51 = vadd.f32 %v1751_v28, %v1573_v1 }
 0x330   :  { %v1682_v36 = vpop.f32.mrf.mxu0  ;;  %v1753_v39 = vpop.f32.mrf.mxu1 }
 0x331   :  { %v1757_v56 = vadd.f32 %v1682_v36, %v1572_v53  ;;  %v3852_v36 = vld [vmem:[#allocation9] sm:$0xff] }
 0x336   :  { %v1865_v0 = vpop.f32.mrf.mxu0  ;;  %v1936_v8 = vpop.f32.mrf.mxu1 }
 0x337   :  { %v1941_v55 = vadd.f32 %v1865_v0, %v1756_v50  ;;  %v1943_v19 = vadd.f32 %v1936_v8, %v1758_v51  ;;  %v1759_v8 = vadd.f32 %v1753_v39, %v1574_v10 }
 0x338   :  { %v1867_v9 = vpop.f32.mrf.mxu0  ;;  %v1938_v23 = vpop.f32.mrf.mxu1 }
 0x339   :  { %v1942_v2 = vadd.f32 %v1867_v9, %v1757_v56 }
 0x33e   :  { %v2050_v12 = vpop.f32.mrf.mxu0  ;;  %v2121_v45 = vpop.f32.mrf.mxu1 }
 0x33f   :  { %v2126_v29 = vadd.f32 %v2050_v12, %v1941_v55  ;;  %v2128_v31 = vadd.f32 %v2121_v45, %v1943_v19  ;;  %v1944_v12 = vadd.f32 %v1938_v23, %v1759_v8 }
 0x340   :  { %v2052_v13 = vpop.f32.mrf.mxu0  ;;  %v2123_v58 = vpop.f32.mrf.mxu1 }
 0x341   :  { %v2127_v24 = vadd.f32 %v2052_v13, %v1942_v2  ;;  %v2129_v5 = vadd.f32 %v2123_v58, %v1944_v12 }
 0x346   :  { %v2235_v46 = vpop.f32.mrf.mxu0  ;;  %v2306_v52 = vpop.f32.mrf.mxu1 }
 0x347   :  { %v2311_v62 = vadd.f32 %v2235_v46, %v2126_v29  ;;  %v2313_v4 = vadd.f32 %v2306_v52, %v2128_v31 }
 0x348   :  { %v2237_v0 = vpop.f32.mrf.mxu0  ;;  %v2308_v61 = vpop.f32.mrf.mxu1 }
 0x349   :  { %v2321_v40 = vadd.f32 %v2319_v48, %v2311_v62  ;;  %v2323_v3 = vadd.f32 %v2319_v48, %v2313_v4  ;;  %v2312_v60 = vadd.f32 %v2237_v0, %v2127_v24  ;;  %v2314_v18 = vadd.f32 %v2308_v61, %v2129_v5  ;;  %v2377_v24 = vld [vmem:[#allocation8 + $0x8] sm:$0xff] }
 0x34b   :  { %v19485_v1 = vmax.f32 %v2321_v40, 0.0  ;;  %v19491_v57 = vmax.f32 %v2323_v3, 0.0  ;;  %v2322_v9 = vadd.f32 %v2319_v48, %v2312_v60  ;;  %v2324_v22 = vadd.f32 %v2319_v48, %v2314_v18 }
 0x34d   :  { %3164 = vrot.lane.b32.xlu0 %v19485_v1, %s18787_s22  ;;  %2358 = vrot.lane.b32.xlu1 %v19485_v1, %s18783_s13  ;;  %v19501_v23 = vmax.f32 %v2322_v9, 0.0  ;;  %v19507_v28 = vmax.f32 %v2324_v22, 0.0 }
 0x351   :  { %3168 = vrot.lane.b32.xlu0 %v19491_v57, %s18787_s22  ;;  %2362 = vrot.lane.b32.xlu1 %v19491_v57, %s18783_s13 }
 0x355   :  { %3336 = vrot.lane.b32.xlu0 %v19485_v1, %s18788_s30  ;;  %2336 = vrot.lane.b32.xlu1 %v19485_v1, %s18784_s24 }
 0x359   :  { %2360 = vrot.lane.b32.xlu0 %v19501_v23, %s18783_s13  ;;  %2340 = vrot.lane.b32.xlu1 %v19491_v57, %s18784_s24 }
 0x35d   :  { %2672 = vrot.lane.b32.xlu1 %v19485_v1, %s18785_s16  ;;  %2330 = vrot.lane.b32.xlu0 %v19507_v28, %s18784_s24 }
 0x361   :  { %2676 = vrot.lane.b32.xlu1 %v19491_v57, %s18785_s16  ;;  %2338 = vrot.lane.b32.xlu0 %v19501_v23, %s18784_s24 }
 0x365   :  { %2844 = vrot.lane.b32.xlu1 %v19485_v1, %s18786_s18  ;;  %2669 = vrot.lane.b32.xlu0 %v19507_v28, %s18785_s16 }
 0x369   :  { %2848 = vrot.lane.b32.xlu1 %v19491_v57, %s18786_s18  ;;  %2674 = vrot.lane.b32.xlu0 %v19501_v23, %s18785_s16 }
 0x36d   :  { %2841 = vrot.lane.b32.xlu0 %v19507_v28, %s18786_s18  ;;  %2355 = vrot.lane.b32.xlu1 %v19507_v28, %s18783_s13 }
 0x371   :  { %2846 = vrot.lane.b32.xlu0 %v19501_v23, %s18786_s18  ;;  %3166 = vrot.lane.b32.xlu1 %v19501_v23, %s18787_s22 }
 0x375   :  { %3340 = vrot.lane.b32.xlu0 %v19491_v57, %s18788_s30  ;;  %3170 = vrot.lane.b32.xlu1 %v19507_v28, %s18787_s22 }
 0x379   :  { %3508 = vrot.lane.b32.xlu0 %v19485_v1, %s18789_s8  ;;  %3338 = vrot.lane.b32.xlu1 %v19501_v23, %s18788_s30 }
 0x37d   :  { %3512 = vrot.lane.b32.xlu0 %v19491_v57, %s18789_s8  ;;  %3342 = vrot.lane.b32.xlu1 %v19507_v28, %s18788_s30 }
 0x381   :  { %3680 = vrot.lane.b32.xlu0 %v19485_v1, %s22085_s12  ;;  %3510 = vrot.lane.b32.xlu1 %v19501_v23, %s18789_s8 }
 0x385   :  { %3684 = vrot.lane.b32.xlu0 %v19491_v57, %s22085_s12  ;;  %3514 = vrot.lane.b32.xlu1 %v19507_v28, %s18789_s8 }
 0x389   :  { %3855 = vperm.xlu0 %17976, %v3852_v36   ;;  %3682 = vrot.lane.b32.xlu1 %v19501_v23, %s22085_s12 }
 0x38d   :  { %3686 = vrot.lane.b32.xlu1 %v19507_v28, %s22085_s12  ;;  %s18810_s12 = smov 123  }
 0x3bf   :  { %v19557_v39 = vpop.permute.xlu0 %3164  ;;  %v2359_v41 = vpop.permute.xlu1 %2358 }
 0x3c3   :  { %v19559_v45 = vpop.permute.xlu0 %3168  ;;  %v2363_v42 = vpop.permute.xlu1 %2362 }
 0x3c7   :  { %v19561_v50 = vpop.permute.xlu0 %3336  ;;  %v2337_v51 = vpop.permute.xlu1 %2336 }
 0x3cb   :  { %v2361_v54 = vpop.permute.xlu0 %2360  ;;  %v2341_v55 = vpop.permute.xlu1 %2340 }
 0x3cc   :  { %v2364_v19 = vsel %vm715_vm1, %v2359_v41, %v2361_v54  ;;  %v2365_v10 = vsel %vm715_vm1, %v2361_v54, %v2363_v42 }
 0x3cd   :  { %v2373_v13 = vmul.f32 %v2364_v19, %v19212_v32  ;;  %v2374_v61 = vmul.f32 %v2365_v10, %v19218_v34 }
 0x3cf   :  { %v2331_v58 = vpop.permute.xlu0 %2330  ;;  %2412 = vmatprep.subr.mxu0 %v2373_v13  ;;  %v2673_v59 = vpop.permute.xlu1 %2672  ;;  %v2354_v13 = vld [vmem:[#allocation8] sm:$0xff] }
 0x3d0   :  { %v2349_v3 = vsel %vm692_vm10, %v2331_v58, %v2337_v51  ;;  %v2344_v12 = vsel %vm692_vm10, %v2341_v55, %v2331_v58 }
 0x3d1   :  { %v2350_v36 = vmul.f32 %v2349_v3, %v19249_v49 }
 0x3d3   :  { %v2339_v29 = vpop.permute.xlu0 %2338  ;;  %v2677_v31 = vpop.permute.xlu1 %2676 }
 0x3d4   :  { %v2342_v56 = vsel %vm692_vm10, %v2337_v51, %v2339_v29  ;;  %v2343_v5 = vsel %vm692_vm10, %v2339_v29, %v2341_v55  ;;  %v2353_v51 = vmul.f32 %v2344_v12, %v19235_v43  ;;  %v2863_v12 = vld [vmem:[#allocation8 + $0x18] sm:$0xff] }
 0x3d5   :  { %v2351_v22 = vmul.f32 %v2342_v56, %v19239_v44  ;;  %v2352_v55 = vmul.f32 %v2343_v5, %v19245_v47  ;;  %v22249_v56 = vmov 0.0  }
 0x3d7   :  { %v2670_v48 = vpop.permute.xlu0 %2669  ;;  %v2845_v46 = vpop.permute.xlu1 %2844 }
 0x3db   :  { %v2675_v52 = vpop.permute.xlu0 %2674  ;;  %v2849_v53 = vpop.permute.xlu1 %2848 }
 0x3dc   :  { %v2678_v60 = vsel %vm1055_vm0, %v2673_v59, %v2675_v52  ;;  %v2679_v58 = vsel %vm1055_vm0, %v2675_v52, %v2677_v31 }
 0x3dd   :  { %v2687_v54 = vmul.f32 %v2678_v60, %v19303_v14  ;;  %v2688_v52 = vmul.f32 %v2679_v58, %v19307_v15 }
 0x3df   :  { %v2842_v62 = vpop.permute.xlu0 %2841  ;;  %v2356_v4 = vpop.permute.xlu1 %2355 }
 0x3e0   :  { %v2366_v40 = vsel %vm715_vm1, %v2363_v42, %v2356_v4  ;;  %v2371_v2 = vsel %vm715_vm1, %v2356_v4, %v2359_v41  ;;  %v2680_v41 = vsel %vm1055_vm0, %v2677_v31, %v2670_v48  ;;  %v2685_v42 = vsel %vm1055_vm0, %v2670_v48, %v2673_v59 }
 0x3e1   :  { %v2372_v0 = vmul.f32 %v2371_v2, %v19226_v37  ;;  %v2375_v8 = vmul.f32 %v2366_v40, %v19201_v26  ;;  %v2689_v59 = vmul.f32 %v2680_v41, %v19311_v16  ;;  %v2686_v4 = vmul.f32 %v2685_v42, %v19317_v17  ;;  %v2691_v2 = vld [vmem:[#allocation8 + $0x10] sm:$0xff] }
 0x3e2   :  { %v2852_v10 = vsel %vm1240_vm2, %v2849_v53, %v2842_v62  ;;  %v2857_v40 = vsel %vm1240_vm2, %v2842_v62, %v2845_v46 }
 0x3e3   :  { %v2847_v9 = vpop.permute.xlu0 %2846  ;;  %2413 = vmatpush1.msra.mxu0 %v2372_v0  ;;  %2483 = vmatprep.subr.mxu1 %v2375_v8  ;;  %v3167_v18 = vpop.permute.xlu1 %3166  ;;  %v2861_v0 = vmul.f32 %v2852_v10, %v19208_v30  ;;  %v2858_v62 = vmul.f32 %v2857_v40, %v19229_v38  ;;  %v22251_v40 = vld [vmem:[#allocation117_spill] sm:$0xff] }
 0x3e4   :  { %16304 = vmatmul.mubr.msk.f32.vlgmr.msra.gmra.mxu0 %vm2378_vm14, %v2377_v24  ;;  %2484 = vmatpush1.msra.mxu1 %v2374_v61  ;;  %v2850_v19 = vsel %vm1240_vm2, %v2845_v46, %v2847_v9  ;;  %v2851_v3 = vsel %vm1240_vm2, %v2847_v9, %v2849_v53  ;;  %v3173_v53 = vsel %vm22153_vm3, %v3167_v18, %v19559_v45 }
 0x3e5   :  { %2557 = vmatprep.subr.mxu0 %v2351_v22  ;;  %16305 = vmatmul.mubr.msk.f32.vlgmr.msra.gmra.mxu1 %vm2378_vm14, %v2377_v24  ;;  %v2859_v31 = vmul.f32 %v2850_v19, %v19215_v33  ;;  %v2860_v24 = vmul.f32 %v2851_v3, %v19221_v35  ;;  %v3172_v9 = vsel %vm22153_vm3, %v19557_v39, %v3167_v18  ;;  %v3186_v19 = vld [vmem:[#allocation8 + $0x28] sm:$0xff] }
 0x3e6   :  { %2558 = vmatpush1.msra.mxu0 %v2350_v36  ;;  %2628 = vmatprep.subr.mxu1 %v2353_v51  ;;  %v3182_v22 = vmul.f32 %v3173_v53, %v19289_v7  ;;  %v3014_v36 = vld [vmem:[#allocation8 + $0x20] sm:$0xff]  ;;  %v3181_v18 = vmul.f32 %v3172_v9, %v19297_v11  ;;  %v22253_v53 = vld [vmem:[#allocation120_spill] sm:$0xff] }
 0x3e7   :  { %2725 = vmatprep.subr.mxu0 %v2687_v54  ;;  %v19587_v29 = vpop.permute.xlu0 %3340  ;;  %v3171_v48 = vpop.permute.xlu1 %3170  ;;  %2629 = vmatpush1.msra.mxu1 %v2352_v55 }
 0x3e8   :  { %2591 = vmatprep.mubr.f32.mxu0 %v22249_v56  ;;  %2796 = vmatprep.subr.mxu1 %v2689_v59  ;;  %v3180_v5 = vsel %vm22153_vm3, %v3171_v48, %v19557_v39  ;;  %v3174_v41 = vsel %vm22153_vm3, %v19559_v45, %v3171_v48 }
 0x3e9   :  { %16306 = vmatmul.mubr.msk.f32.vlgmr.msra.gmra.mxu0 %vm2378_vm14, %v2354_v13  ;;  %2662 = vmatprep.mubr.f32.mxu1 %v22249_v56  ;;  %v3183_v54 = vmul.f32 %v3174_v41, %v19286_v6 }
 0x3ea   :  { %2726 = vmatpush1.msra.mxu0 %v2686_v4  ;;  %16307 = vmatmul.mubr.msk.f32.vlgmr.msra.gmra.mxu1 %vm2378_vm14, %v2354_v13  ;;  %v22250_v4 = vld [vmem:[#allocation112_spill] sm:$0xff] }
 0x3eb   :  { %2897 = vmatprep.subr.mxu0 %v2859_v31  ;;  %v3509_v8 = vpop.permute.xlu0 %3508  ;;  %v3339_v46 = vpop.permute.xlu1 %3338  ;;  %2797 = vmatpush1.msra.mxu1 %v2688_v52  ;;  %v3358_v52 = vld [vmem:[#allocation8 + $0x30] sm:$0xff] }
 0x3ec   :  { %2759 = vmatprep.mubr.f32.mxu0 %v22249_v56  ;;  %2968 = vmatprep.subr.mxu1 %v2861_v0 }
 0x3ed   :  { %16308 = vmatmul.mubr.msk.f32.vlgmr.msra.gmra.mxu0 %vm2378_vm14, %v2691_v2  ;;  %2830 = vmatprep.mubr.f32.mxu1 %v22249_v56 }
 0x3ee   :  { %2898 = vmatpush1.msra.mxu0 %v2858_v62  ;;  %16309 = vmatmul.mubr.msk.f32.vlgmr.msra.gmra.mxu1 %vm2378_vm14, %v2691_v2 }
 0x3ef   :  { %3048 = vmatprep.subr.mxu0 %v19501_v23  ;;  %v3513_v60 = vpop.permute.xlu0 %3512  ;;  %v3343_v61 = vpop.permute.xlu1 %3342  ;;  %2969 = vmatpush1.msra.mxu1 %v2860_v24  ;;  %v3345_v23 = vsel %vm22089_vm9, %v3339_v46, %v19587_v29 }
 0x3f0   :  { %2931 = vmatprep.mubr.f32.mxu0 %v22249_v56  ;;  %3119 = vmatprep.subr.mxu1 %v19507_v28  ;;  %v3184_v28 = vmul.f32 %v3180_v5, %v19280_v63  ;;  %v3352_v42 = vsel %vm22089_vm9, %v3343_v61, %v19561_v50  ;;  %v3354_v51 = vmul.f32 %v3345_v23, %v19404_v21  ;;  %v22255_v5 = vld [vmem:[#allocation123_spill] sm:$0xff] }
 0x3f1   :  { %16310 = vmatmul.mubr.msk.f32.vlgmr.msra.gmra.mxu0 %vm2378_vm14, %v2863_v12  ;;  %3002 = vmatprep.mubr.f32.mxu1 %v22249_v56 }
 0x3f2   :  { %3049 = vmatpush1.msra.mxu0 %v19485_v1  ;;  %16311 = vmatmul.mubr.msk.f32.vlgmr.msra.gmra.mxu1 %vm2378_vm14, %v2863_v12  ;;  %v3344_v1 = vsel %vm22089_vm9, %v19561_v50, %v3339_v46  ;;  %v3356_v50 = vmul.f32 %v3352_v42, %v19413_v25 }
 0x3f3   :  { %3220 = vmatprep.subr.mxu0 %v3182_v22  ;;  %v3511_v39 = vpop.permute.xlu1 %3510  ;;  %3120 = vmatpush1.msra.mxu1 %v19491_v57  ;;  %v3681_v45 = vpop.permute.xlu0 %3680  ;;  %v3346_v57 = vsel %vm22089_vm9, %v19587_v29, %v3343_v61  ;;  %v3353_v58 = vmul.f32 %v3344_v1, %v19417_v27  ;;  %v22254_v61 = vld [vmem:[#allocation113_spill] sm:$0xff]  ;;  %v3702_v1 = vld [vmem:[#allocation8 + $0x40] sm:$0xff]  ;;  %vm7051_vm9 = vcmask 220160  }
 0x3f4   :  { %3082 = vmatprep.mubr.f32.mxu0 %v22249_v56  ;;  %3291 = vmatprep.subr.mxu1 %v3184_v28  ;;  %v3517_v55 = vsel %vm22088_vm12, %v3511_v39, %v3513_v60  ;;  %v3516_v48 = vsel %vm22088_vm12, %v3509_v8, %v3511_v39  ;;  %v3355_v31 = vmul.f32 %v3346_v57, %v22251_v40  ;;  %v3530_v22 = vld [vmem:[#allocation8 + $0x38] sm:$0xff] }
 0x3f5   :  { %16312 = vmatmul.mubr.msk.f32.vlgmr.msra.gmra.mxu0 %vm2378_vm14, %v3014_v36  ;;  %3153 = vmatprep.mubr.f32.mxu1 %v22249_v56  ;;  %v3526_v29 = vmul.f32 %v3517_v55, %v19390_v20  ;;  %v22256_v28 = vld [vmem:[#allocation121_spill] sm:$0xff] }
 0x3f6   :  { %3221 = vmatpush1.msra.mxu0 %v3181_v18  ;;  %16313 = vmatmul.mubr.msk.f32.vlgmr.msra.gmra.mxu1 %vm2378_vm14, %v3014_v36  ;;  %v22257_v18 = vld [vmem:[#allocation122_spill] sm:$0xff] }
 0x3f7   :  { %3392 = vmatprep.subr.mxu0 %v3354_v51  ;;  %v3515_v13 = vpop.permute.xlu1 %3514  ;;  %3292 = vmatpush1.msra.mxu1 %v3183_v54  ;;  %v3685_v2 = vpop.permute.xlu0 %3684 }
 0x3f8   :  { %3254 = vmatprep.mubr.f32.mxu0 %v22249_v56  ;;  %v3524_v59 = vsel %vm22088_vm12, %v3515_v13, %v3509_v8  ;;  %3463 = vmatprep.subr.mxu1 %v3356_v50  ;;  %v3518_v3 = vsel %vm22088_vm12, %v3513_v60, %v3515_v13  ;;  %v22252_v8 = vld [vmem:[#allocation115_spill] sm:$0xff] }
 0x3f9   :  { %16314 = vmatmul.mubr.msk.f32.vlgmr.msra.gmra.mxu0 %vm2378_vm14, %v3186_v19  ;;  %v3528_v10 = vmul.f32 %v3524_v59, %v22250_v4  ;;  %3325 = vmatprep.mubr.f32.mxu1 %v22249_v56  ;;  %v3525_v46 = vmul.f32 %v3516_v48, %v22252_v8  ;;  %v3527_v60 = vmul.f32 %v3518_v3, %v22254_v61 }
 0x3fa   :  { %3393 = vmatpush1.msra.mxu0 %v3353_v58  ;;  %16315 = vmatmul.mubr.msk.f32.vlgmr.msra.gmra.mxu1 %vm2378_vm14, %v3186_v19 }
 0x3fb   :  { %3564 = vmatprep.subr.mxu0 %v3526_v29  ;;  %v3683_v0 = vpop.permute.xlu1 %3682  ;;  %3464 = vmatpush1.msra.mxu1 %v3355_v31 }
 0x3fc   :  { %3426 = vmatprep.mubr.f32.mxu0 %v22249_v56  ;;  %v3688_v62 = vsel %vm22087_vm13, %v3681_v45, %v3683_v0  ;;  %v3689_v24 = vsel %vm22087_vm13, %v3683_v0, %v3685_v2  ;;  %3635 = vmatprep.subr.mxu1 %v3528_v10 }
 0x3fd   :  { %16316 = vmatmul.mubr.msk.f32.vlgmr.msra.gmra.mxu0 %vm2378_vm14, %v3358_v52  ;;  %v3698_v12 = vmul.f32 %v3689_v24, %v22253_v53  ;;  %v3697_v9 = vmul.f32 %v3688_v62, %v22255_v5  ;;  %3497 = vmatprep.mubr.f32.mxu1 %v22249_v56 }
 0x3fe   :  { %3565 = vmatpush1.msra.mxu0 %v3525_v46  ;;  %16317 = vmatmul.mubr.msk.f32.vlgmr.msra.gmra.mxu1 %vm2378_vm14, %v3358_v52 }
 0x3ff   :  { %3598 = vmatprep.mubr.f32.mxu0 %v22249_v56  ;;  %v3687_v23 = vpop.permute.xlu1 %3686  ;;  %3636 = vmatpush1.msra.mxu1 %v3527_v60 }
 0x400   :  { %3736 = vmatprep.subr.mxu0 %v3698_v12  ;;  %v3690_v36 = vsel %vm22087_vm13, %v3685_v2, %v3687_v23  ;;  %v3696_v41 = vsel %vm22087_vm13, %v3687_v23, %v3681_v45  ;;  %3669 = vmatprep.mubr.f32.mxu1 %v22249_v56  ;;  %vm6331_vm13 = vcmask 23552  }
 0x401   :  { %v3699_v39 = vmul.f32 %v3690_v36, %v22256_v28  ;;  %16318 = vmatmul.mubr.msk.f32.vlgmr.msra.gmra.mxu0 %vm2378_vm14, %v3530_v22  ;;  %v3700_v42 = vmul.f32 %v3696_v41, %v22257_v18 }
 0x402   :  { %3737 = vmatpush1.msra.mxu0 %v3697_v9  ;;  %3770 = vmatprep.mubr.f32.mxu0 %v22249_v56 }
 0x403   :  { %16319 = vmatmul.mubr.msk.f32.vlgmr.msra.gmra.mxu1 %vm2378_vm14, %v3530_v22  ;;  %3807 = vmatprep.subr.mxu1 %v3700_v42 }
 0x404   :  { %3808 = vmatpush1.msra.mxu1 %v3699_v39  ;;  %3841 = vmatprep.mubr.f32.mxu1 %v22249_v56 }
 0x405   :  { %16320 = vmatmul.mubr.msk.f32.vlgmr.msra.gmra.mxu0 %vm2378_vm14, %v3702_v1 }
 0x407   :  { %16321 = vmatmul.mubr.msk.f32.vlgmr.msra.gmra.mxu1 %vm2378_vm14, %v3702_v1 }
 0x4a4   :  { %v2448_v45 = vpop.f32.mrf.mxu0 }
 0x4a5   :  { %v2519_v51 = vpop.f32.mrf.mxu1 }
 0x4a6   :  { %v2450_v54 = vpop.f32.mrf.mxu0 }
 0x4a7   :  { %v2521_v55 = vpop.f32.mrf.mxu1 }
 0x4a9   :  { %v2593_v19 = vpop.f32.mrf.mxu0 }
 0x4aa   :  { %v2664_v57 = vpop.f32.mrf.mxu1  ;;  %v2594_v62 = vadd.f32 %v2593_v19, %v2448_v45 }
 0x4ab   :  { %v2595_v50 = vpop.f32.mrf.mxu0  ;;  %v2665_v60 = vadd.f32 %v2664_v57, %v2519_v51 }
 0x4ac   :  { %v2666_v13 = vpop.f32.mrf.mxu1  ;;  %v2596_v9 = vadd.f32 %v2595_v50, %v2450_v54 }
 0x4ad   :  { %v2761_v58 = vpop.f32.mrf.mxu0  ;;  %v2667_v41 = vadd.f32 %v2666_v13, %v2521_v55 }
 0x4ae   :  { %v2832_v59 = vpop.f32.mrf.mxu1  ;;  %v2837_v22 = vadd.f32 %v2761_v58, %v2594_v62 }
 0x4af   :  { %v2763_v48 = vpop.f32.mrf.mxu0  ;;  %v2839_v39 = vadd.f32 %v2832_v59, %v2665_v60  ;;  %v3856_v60 = vpop.permute.xlu0 %3855 }
 0x4b0   :  { %v2834_v29 = vpop.f32.mrf.mxu1  ;;  %v2838_v42 = vadd.f32 %v2763_v48, %v2596_v9 }
 0x4b1   :  { %v2933_v10 = vpop.f32.mrf.mxu0  ;;  %v2840_v53 = vadd.f32 %v2834_v29, %v2667_v41  ;;  %v3979_v41 = vld [vmem:[#allocation47 + $0x1f8] sm:$0xff] }
 0x4b2   :  { %v3004_v31 = vpop.f32.mrf.mxu1  ;;  %v3009_v1 = vadd.f32 %v2933_v10, %v2837_v22  ;;  %16692 = vmatprep.subr.mxu1 %v3979_v41  ;;  %v3956_v41 = vld [vmem:[#allocation47 + $0x140] sm:$0xff] }
 0x4b3   :  { %v2935_v52 = vpop.f32.mrf.mxu0  ;;  %v3011_v18 = vadd.f32 %v3004_v31, %v2839_v39  ;;  %v3931_v39 = vld [vmem:[#allocation47 + $0x78] sm:$0xff] }
 0x4b4   :  { %v3006_v2 = vpop.f32.mrf.mxu1  ;;  %v3010_v61 = vadd.f32 %v2935_v52, %v2838_v42  ;;  %v3963_v42 = vld [vmem:[#allocation47 + $0x178] sm:$0xff] }
 0x4b5   :  { %v3084_v3 = vpop.f32.mrf.mxu0  ;;  %v3012_v45 = vadd.f32 %v3006_v2, %v2840_v53  ;;  %16693 = vmatpush3.msra.mxu1 %v3963_v42  ;;  %v3971_v42 = vld [vmem:[#allocation47 + $0x1b8] sm:$0xff] }
 0x4b6   :  { %v3155_v0 = vpop.f32.mrf.mxu1  ;;  %v3160_v20 = vadd.f32 %v3084_v3, %v3009_v1  ;;  %v3946_v1 = vld [vmem:[#allocation47 + $0xf0] sm:$0xff] }
 0x4b7   :  { %v3086_v46 = vpop.f32.mrf.mxu0  ;;  %v3162_v19 = vadd.f32 %v3155_v0, %v3011_v18 }
 0x4b8   :  { %v3157_v24 = vpop.f32.mrf.mxu1  ;;  %v3161_v40 = vadd.f32 %v3086_v46, %v3010_v61 }
 0x4b9   :  { %v3256_v12 = vpop.f32.mrf.mxu0  ;;  %v3163_v50 = vadd.f32 %v3157_v24, %v3012_v45  ;;  %v3978_v45 = vld [vmem:[#allocation47 + $0x1f0] sm:$0xff] }
 0x4ba   :  { %v3327_v23 = vpop.f32.mrf.mxu1  ;;  %v3332_v51 = vadd.f32 %v3256_v12, %v3160_v20  ;;  %16694 = vmatprep.subr.mxu1 %v3978_v45  ;;  %v3955_v45 = vld [vmem:[#allocation47 + $0x138] sm:$0xff] }
 0x4bb   :  { %v3258_v36 = vpop.f32.mrf.mxu0  ;;  %v3334_v58 = vadd.f32 %v3327_v23, %v3162_v19 }
 0x4bc   :  { %v3329_v28 = vpop.f32.mrf.mxu1  ;;  %v3333_v55 = vadd.f32 %v3258_v36, %v3161_v40  ;;  %v3947_v36 = vld [vmem:[#allocation47 + $0xf8] sm:$0xff] }
 0x4bd   :  { %v3428_v5 = vpop.f32.mrf.mxu0  ;;  %v3335_v10 = vadd.f32 %v3329_v28, %v3163_v50  ;;  %16657 = vmatprep.subr.mxu0 %v3947_v36  ;;  %v3962_v50 = vld [vmem:[#allocation47 + $0x170] sm:$0xff]  ;;  %v3924_v36 = vld [vmem:[#allocation47 + $0x40] sm:$0xff] }
 0x4be   :  { %v3499_v8 = vpop.f32.mrf.mxu1  ;;  %v3504_v13 = vadd.f32 %v3428_v5, %v3332_v51  ;;  %16658 = vmatpush3.msra.mxu0 %v3931_v39  ;;  %16695 = vmatpush3.msra.mxu1 %v3962_v50  ;;  %v3939_v39 = vld [vmem:[#allocation47 + $0xb8] sm:$0xff]  ;;  %v3922_v50 = vld [vmem:[#allocation47 + $0x30] sm:$0xff] }
 0x4bf   :  { %v3430_v4 = vpop.f32.mrf.mxu0  ;;  %v3506_v62 = vadd.f32 %v3499_v8, %v3334_v58  ;;  %v3945_v58 = vld [vmem:[#allocation47 + $0xe8] sm:$0xff]  ;;  %16659 = vmatprep.subr.mxu0 %v3946_v1  ;;  %v3923_v1 = vld [vmem:[#allocation47 + $0x38] sm:$0xff] }
 0x4c0   :  { %v3501_v54 = vpop.f32.mrf.mxu1  ;;  %v3505_v29 = vadd.f32 %v3430_v4, %v3333_v55  ;;  %v3977_v55 = vld [vmem:[#allocation47 + $0x1e8] sm:$0xff] }
 0x4c1   :  { %v3600_v57 = vpop.f32.mrf.mxu0  ;;  %v3507_v9 = vadd.f32 %v3501_v54, %v3335_v10  ;;  %v3944_v10 = vld [vmem:[#allocation47 + $0xe0] sm:$0xff]  ;;  %16696 = vmatprep.subr.mxu1 %v3977_v55  ;;  %v3937_v55 = vld [vmem:[#allocation47 + $0xa8] sm:$0xff] }
 0x4c2   :  { %v3676_v31 = vadd.f32 %v3600_v57, %v3504_v13  ;;  %v3930_v57 = vld [vmem:[#allocation47 + $0x70] sm:$0xff] }
 0x4c3   :  { %v3671_v59 = vpop.f32.mrf.mxu1  ;;  %v3602_v48 = vpop.f32.mrf.mxu0  ;;  %16660 = vmatpush3.msra.mxu0 %v3930_v57  ;;  %v3970_v57 = vld [vmem:[#allocation47 + $0x1b0] sm:$0xff] }
 0x4c4   :  { %v3678_v53 = vadd.f32 %v3671_v59, %v3506_v62  ;;  %v3677_v18 = vadd.f32 %v3602_v48, %v3505_v29  ;;  %v3929_v59 = vld [vmem:[#allocation47 + $0x68] sm:$0xff]  ;;  %16661 = vmatprep.subr.mxu0 %v3945_v58  ;;  %v3976_v62 = vld [vmem:[#allocation47 + $0x1e0] sm:$0xff]  ;;  %v3954_v58 = vld [vmem:[#allocation47 + $0x130] sm:$0xff] }
 0x4c5   :  { %v3673_v52 = vpop.f32.mrf.mxu1  ;;  %v3772_v3 = vpop.f32.mrf.mxu0  ;;  %v3961_v48 = vld [vmem:[#allocation47 + $0x168] sm:$0xff]  ;;  %v3928_v29 = vld [vmem:[#allocation47 + $0x60] sm:$0xff]  ;;  %16662 = vmatpush3.msra.mxu0 %v3929_v59 }
 0x4c6   :  { %v3848_v61 = vadd.f32 %v3772_v3, %v3676_v31  ;;  %v3679_v0 = vadd.f32 %v3673_v52, %v3507_v9  ;;  %v3960_v31 = vld [vmem:[#allocation47 + $0x160] sm:$0xff]  ;;  %16697 = vmatpush3.msra.mxu1 %v3961_v48  ;;  %v3943_v52 = vld [vmem:[#allocation47 + $0xd8] sm:$0xff]  ;;  %16663 = vmatprep.subr.mxu0 %v3944_v10  ;;  %v3921_v59 = vld [vmem:[#allocation47 + $0x28] sm:$0xff] }
 0x4c7   :  { %v3843_v20 = vpop.f32.mrf.mxu1  ;;  %v3774_v2 = vpop.f32.mrf.mxu0  ;;  %v3975_v3 = vld [vmem:[#allocation47 + $0x1d8] sm:$0xff]  ;;  %16698 = vmatprep.subr.mxu1 %v3976_v62  ;;  %16664 = vmatpush3.msra.mxu0 %v3928_v29  ;;  %v3953_v48 = vld [vmem:[#allocation47 + $0x128] sm:$0xff]  ;;  %v3936_v10 = vld [vmem:[#allocation47 + $0xa0] sm:$0xff] }
 0x4c8   :  { %v19675_v46 = vadd.f32 %v3856_v60, %v3848_v61  ;;  %v3850_v40 = vadd.f32 %v3843_v20, %v3678_v53  ;;  %v3849_v5 = vadd.f32 %v3774_v2, %v3677_v18  ;;  %v3959_v9 = vld [vmem:[#allocation47 + $0x158] sm:$0xff]  ;;  %16699 = vmatpush3.msra.mxu1 %v3960_v31  ;;  %v3942_v53 = vld [vmem:[#allocation47 + $0xd0] sm:$0xff]  ;;  %16665 = vmatprep.subr.mxu0 %v3943_v52  ;;  %v3941_v2 = vld [vmem:[#allocation47 + $0xc8] sm:$0xff] }
 0x4c9   :  { %v3845_v24 = vpop.f32.mrf.mxu1  ;;  %v3974_v18 = vld [vmem:[#allocation47 + $0x1d0] sm:$0xff]  ;;  %16700 = vmatprep.subr.mxu1 %v3975_v3  ;;  %v3968_v62 = vld [vmem:[#allocation47 + $0x1a0] sm:$0xff]  ;;  %v3935_v52 = vld [vmem:[#allocation47 + $0x98] sm:$0xff] }
 0x4ca   :  { %v19677_v12 = vadd.f32 %v3856_v60, %v3850_v40  ;;  %v19679_v8 = vadd.f32 %v3856_v60, %v3849_v5  ;;  %v3851_v4 = vadd.f32 %v3845_v24, %v3679_v0  ;;  %v3862_v28 = vmax.f32 %v19675_v46, 0.0  ;;  %v3926_v61 = vld [vmem:[#allocation47 + $0x50] sm:$0xff]  ;;  %16701 = vmatpush3.msra.mxu1 %v3959_v9  ;;  %v3973_v0 = vld [vmem:[#allocation47 + $0x1c8] sm:$0xff]  ;;  %v3940_v24 = vld [vmem:[#allocation47 + $0xc0] sm:$0xff] }
 0x4cb   :  { %v3958_v20 = vld [vmem:[#allocation47 + $0x150] sm:$0xff]  ;;  %16702 = vmatprep.subr.mxu1 %v3974_v18  ;;  %v3925_v40 = vld [vmem:[#allocation47 + $0x48] sm:$0xff]  ;;  %v3920_v29 = vld [vmem:[#allocation47 + $0x20] sm:$0xff] }
 0x4cc   :  { %v3863_v22 = vmax.f32 %v19679_v8, 0.0  ;;  %v19683_v23 = vadd.f32 %v3856_v60, %v3851_v4  ;;  %v3864_v19 = vmax.f32 %v19677_v12, 0.0  ;;  %v3927_v60 = vld [vmem:[#allocation47 + $0x58] sm:$0xff]  ;;  %v3957_v5 = vld [vmem:[#allocation47 + $0x148] sm:$0xff]  ;;  %16703 = vmatpush3.msra.mxu1 %v3958_v20  ;;  %v3972_v4 = vld [vmem:[#allocation47 + $0x1c0] sm:$0xff] }
 0x4cd   :  { %16666 = vmatpush3.msra.mxu0 %v3927_v60  ;;  %16704 = vmatprep.subr.mxu1 %v3973_v0  ;;  %v3952_v31 = vld [vmem:[#allocation47 + $0x120] sm:$0xff]  ;;  %v3967_v3 = vld [vmem:[#allocation47 + $0x198] sm:$0xff]  ;;  %v3966_v18 = vld [vmem:[#allocation47 + $0x190] sm:$0xff] }
 0x4ce   :  { %v3865_v51 = vmax.f32 %v19683_v23, 0.0  ;;  %v17977_v54 = vpack.i.bf16 %v3863_v22, %v3862_v28  ;;  %16667 = vmatprep.subr.mxu0 %v3942_v53  ;;  %16705 = vmatpush3.msra.mxu1 %v3957_v5  ;;  %v3919_v60 = vld [vmem:[#allocation47 + $0x18] sm:$0xff]  ;;  %v3934_v53 = vld [vmem:[#allocation47 + $0x90] sm:$0xff]  ;;  %v3965_v0 = vld [vmem:[#allocation47 + $0x188] sm:$0xff] }
 0x4cf   :  { %16668 = vmatpush3.msra.mxu0 %v3926_v61  ;;  %16706 = vmatprep.subr.mxu1 %v3972_v4  ;;  %v3951_v9 = vld [vmem:[#allocation47 + $0x118] sm:$0xff]  ;;  %v3918_v61 = vld [vmem:[#allocation47 + $0x10] sm:$0xff]  ;;  %v3932_v4 = vld [vmem:[#allocation47 + $0x80] sm:$0xff] }
 0x4d0   :  { %17978 = vrot.lane.b32.xlu1 %v17977_v54, %s18787_s22  ;;  %v17982_v13 = vpack.i.bf16 %v3865_v51, %v3864_v19  ;;  %16669 = vmatprep.subr.mxu0 %v3941_v2  ;;  %v3938_v54 = vld [vmem:[#allocation47 + $0xb0] sm:$0xff]  ;;  %v3933_v2 = vld [vmem:[#allocation47 + $0x88] sm:$0xff] }
 0x4d1   :  { %16670 = vmatpush3.msra.mxu0 %v3925_v40  ;;  %16707 = vmatpush3.msra.mxu1 %v3956_v41  ;;  %v3950_v20 = vld [vmem:[#allocation47 + $0x110] sm:$0xff]  ;;  %v3917_v40 = vld [vmem:[#allocation47 + $0x8] sm:$0xff] }
 0x4d2   :  { %17983 = vrot.lane.b32.xlu0 %v17982_v13, %s18787_s22  ;;  %16671 = vmatprep.subr.mxu0 %v3940_v24  ;;  %v3969_v13 = vld [vmem:[#allocation47 + $0x1a8] sm:$0xff] }
 0x4d3   :  { %16672 = vmatpush3.msra.mxu0 %v3924_v36  ;;  %16708 = vmatprep.subr.mxu1 %v3971_v42  ;;  %v3949_v24 = vld [vmem:[#allocation47 + $0x108] sm:$0xff]  ;;  %v3964_v36 = vld [vmem:[#allocation47 + $0x180] sm:$0xff] }
 0x4d4   :  { %16673 = vmatprep.subr.mxu0 %v3939_v39  ;;  %16709 = vmatpush3.msra.mxu1 %v3955_v45  ;;  %v3916_v42 = vld [vmem:[#allocation47] sm:$0xff] }
 0x4d5   :  { %16674 = vmatpush3.msra.mxu0 %v3923_v1  ;;  %16710 = vmatprep.subr.mxu1 %v3970_v57  ;;  %v3948_v45 = vld [vmem:[#allocation47 + $0x100] sm:$0xff] }
 0x4d6   :  { %16675 = vmatprep.subr.mxu0 %v3938_v54  ;;  %16711 = vmatpush3.msra.mxu1 %v3954_v58 }
 0x4d7   :  { %16676 = vmatpush3.msra.mxu0 %v3922_v50  ;;  %16712 = vmatprep.subr.mxu1 %v3969_v13 }
 0x4d8   :  { %16677 = vmatprep.subr.mxu0 %v3937_v55  ;;  %16713 = vmatpush3.msra.mxu1 %v3953_v48 }
 0x4d9   :  { %16678 = vmatpush3.msra.mxu0 %v3921_v59  ;;  %16714 = vmatprep.subr.mxu1 %v3968_v62 }
 0x4da   :  { %16679 = vmatprep.subr.mxu0 %v3936_v10  ;;  %16715 = vmatpush3.msra.mxu1 %v3952_v31 }
 0x4db   :  { %16680 = vmatpush3.msra.mxu0 %v3920_v29  ;;  %16716 = vmatprep.subr.mxu1 %v3967_v3 }
 0x4dc   :  { %16681 = vmatprep.subr.mxu0 %v3935_v52  ;;  %16717 = vmatpush3.msra.mxu1 %v3951_v9 }
 0x4dd   :  { %16682 = vmatpush3.msra.mxu0 %v3919_v60  ;;  %16718 = vmatprep.subr.mxu1 %v3966_v18 }
 0x4de   :  { %16683 = vmatprep.subr.mxu0 %v3934_v53  ;;  %16719 = vmatpush3.msra.mxu1 %v3950_v20 }
 0x4df   :  { %16684 = vmatpush3.msra.mxu0 %v3918_v61  ;;  %16720 = vmatprep.subr.mxu1 %v3965_v0  ;;  %v4121_v61 = vld [vmem:[#allocation21] sm:$0xff] }
 0x4e0   :  { %16685 = vmatprep.subr.mxu0 %v3933_v2  ;;  %16721 = vmatpush3.msra.mxu1 %v3949_v24 }
 0x4e1   :  { %16686 = vmatpush3.msra.mxu0 %v3917_v40  ;;  %16722 = vmatprep.subr.mxu1 %v3964_v36  ;;  %v4120_v36 = vld [vmem:[#allocation20] sm:$0xff] }
 0x4e2   :  { %16687 = vmatprep.subr.mxu0 %v3932_v4  ;;  %16723 = vmatpush3.msra.mxu1 %v3948_v45 }
 0x4e3   :  { %16688 = vmatpush3.msra.mxu0 %v3916_v42 }
 0x4e4   :  { %17129 = vmatprep.subr.mxu0 %v22249_v56 }
 0x542   :  { %v17979_v5 = vpop.permute.xlu1 %17978 }
 0x543   :  { %v17981_v41 = vunpack.i.h.bf16 %v17979_v5  ;;  %v17980_v39 = vunpack.i.l.bf16 %v17979_v5 }
 0x544   :  { %v17984_v1 = vpop.permute.xlu0 %17983 }
 0x545   :  { %v17986_v54 = vunpack.i.h.bf16 %v17984_v1  ;;  %v17985_v57 = vunpack.i.l.bf16 %v17984_v1  ;;  %v3878_v50 = vsel %vm22153_vm3, %v17980_v39, %v17981_v41 }
 0x546   :  { %v3887_v58 = vmax.f32 %v3862_v28, %v3878_v50  ;;  %v5004_v50 = vld [vmem:[#allocation11 + $0x8] sm:$0xff] }
 0x547   :  { %v3880_v55 = vsel %vm22153_vm3, %v17985_v57, %v17986_v54  ;;  %v3886_v13 = vsel %vm22153_vm3, %v17986_v54, %v17980_v39  ;;  %v3879_v59 = vsel %vm22153_vm3, %v17981_v41, %v17985_v57  ;;  %v16323_v41 = vld [vmem:[%s22258_s29 + $0x10] sm:$0xff]  ;;  %v4206_v39 = vld [vmem:[%s22258_s29] sm:$0xff]  ;;  %vm8940_vm3 = vcmask 392192  }
 0x548   :  { %v3889_v48 = vmax.f32 %v3864_v19, %v3880_v55  ;;  %v3890_v10 = vmax.f32 %v3865_v51, %v3886_v13  ;;  %v3888_v62 = vmax.f32 %v3863_v22, %v3879_v59  ;;  %v5003_v57 = vld [vmem:[#allocation11] sm:$0xff] }
 0x54a   :  { %v17992_v29 = vpack.i.bf16 %v3890_v10, %v3889_v48  ;;  %v17987_v46 = vpack.i.bf16 %v3888_v62, %v3887_v58 }
 0x54c   :  { %17993 = vrot.lane.b32.xlu0 %v17992_v29, %s18789_s8  ;;  %17988 = vrot.lane.b32.xlu1 %v17987_v46, %s18789_s8 }
 0x550   :  { %4124 = vperm.xlu1 %17997, %v4121_v61   ;;  %v16330_v61 = vld [vmem:[%s22258_s29 + $0x28] sm:$0xff] }
 0x5be   :  { %v17994_v28 = vpop.permute.xlu0 %17993  ;;  %v17989_v31 = vpop.permute.xlu1 %17988 }
 0x5bf   :  { %v17996_v52 = vunpack.i.h.bf16 %v17994_v28  ;;  %v17995_v3 = vunpack.i.l.bf16 %v17994_v28  ;;  %v17991_v60 = vunpack.i.h.bf16 %v17989_v31  ;;  %v17990_v9 = vunpack.i.l.bf16 %v17989_v31 }
 0x5c1   :  { %v3905_v12 = vsel %vm22088_vm12, %v17995_v3, %v17996_v52  ;;  %v3903_v23 = vsel %vm22088_vm12, %v17990_v9, %v17991_v60  ;;  %v3904_v19 = vsel %vm22088_vm12, %v17991_v60, %v17995_v3  ;;  %v3911_v8 = vsel %vm22088_vm12, %v17996_v52, %v17990_v9  ;;  %v16324_v60 = vld [vmem:[%s22258_s29 + $0x18] sm:$0xff]  ;;  %v4207_v9 = vld [vmem:[%s22258_s29 + $0x8] sm:$0xff] }
 0x5c2   :  { %v3913_v22 = vmax.f32 %v3888_v62, %v3904_v19  ;;  %v3915_v51 = vmax.f32 %v3890_v10, %v3911_v8  ;;  %v3912_v53 = vmax.f32 %v3887_v58, %v3903_v23  ;;  %v3914_v18 = vmax.f32 %v3889_v48, %v3905_v12  ;;  %v22260_v58 = vld [vmem:[#allocation91_spill] sm:$0xff]  ;;  %v16333_v23 = vld [vmem:[%s22258_s29 + $0x30] sm:$0xff]  ;;  %v16329_v19 = vld [vmem:[%s22258_s29 + $0x20] sm:$0xff] }
 0x5c3   :  { %v648_v55 = vshra.s32 %v22260_v58, 3  ;;  %v647_v13 = vand.u32 7, %v22260_v58  ;;  %vm6928_vm12 = vcmask 228352  }
 0x5c4   :  { %4044 = vmatprep.mubr.f32.mxu0 %v3913_v22  ;;  %4114 = vmatprep.mubr.f32.mxu1 %v3915_v51 }
 0x5c5   :  { %4045 = vmatmul.mubr.f32.vlgmr.msra.gmra.mxu0 %v3912_v53  ;;  %4115 = vmatmul.mubr.f32.vlgmr.msra.gmra.mxu1 %v3914_v18  ;;  %v649_v59 = vand.u32 7, %v648_v55  ;;  %vm654_vm5 = vcmp.gt.s32.totalorder %v647_v13, 0  ;;  %vm656_vm6 = vcmp.lt.s32.totalorder %v647_v13, 7  ;;  %v16349_v55 = vld [vmem:[%s22258_s29 + $0x70] sm:$0xff]  ;;  %v16346_v13 = vld [vmem:[%s22258_s29 + $0x68] sm:$0xff] }
 0x5c6   :  { %17131 = vmatprep.mubr.msk.f32.mxu0 %vm18792_vm15, %v22249_v56  ;;  %17136 = vmatprep.mubr.msk.f32.mxu1 %vm2378_vm14, %v16323_v41  ;;  %v19747_v10 = vsel %vm654_vm5, 1.0, %v22249_v56  ;;  %v19754_v29 = vsel %vm656_vm6, 1.0, %v22249_v56  ;;  %v16338_v41 = vld [vmem:[%s22258_s29 + $0x48] sm:$0xff] }
 0x5c7   :  { %vm650_vm4 = vcmp.gt.s32.totalorder %v649_v59, 0  ;;  %22262 = vst [vmem:[#allocation125_spill] sm:$0xff] %v19747_v10  ;;  %22264 = vst [vmem:[#allocation127_spill] sm:$0xff] %v19754_v29  ;;  %vm652_vm8 = vcmp.lt.s32.totalorder %v649_v59, 7  ;;  %v16350_v59 = vld [vmem:[%s22258_s29 + $0x78] sm:$0xff] }
 0x5c8   :  { %v19744_v48 = vsel %vm650_vm4, 1.0, %v22249_v56  ;;  %v19765_v12 = vsel %vm652_vm8, 1.0, %v22249_v56  ;;  %vm6078_vm4 = vcmask 261120   ;;  %vm6095_vm8 = vcmask 39936  }
 0x5c9   :  { %22261 = vst [vmem:[#allocation91_spill] sm:$0xff] %v19744_v48  ;;  %v19751_v62 = vmul.f32 %v19747_v10, %v19744_v48  ;;  %v19760_v3 = vmul.f32 %v19754_v29, %v19744_v48  ;;  %22266 = vst [vmem:[#allocation129_spill] sm:$0xff] %v19765_v12  ;;  %v19775_v18 = vmul.f32 %v19747_v10, %v19765_v12 }
 0x5cb   :  { %v4125_v42 = vpop.permute.xlu1 %4124  ;;  %22263 = vst [vmem:[#allocation126_spill] sm:$0xff] %v19751_v62  ;;  %22265 = vst [vmem:[#allocation128_spill] sm:$0xff] %v19760_v3 }
 0x5cc   :  { %22267 = vst [vmem:[#allocation130_spill] sm:$0xff] %v19775_v18 }
 0x685   :  { %v16689_v20 = vpop.f32.mrf.mxu0  ;;  %v16724_v2 = vpop.f32.mrf.mxu1 }
 0x687   :  { %v16690_v0 = vpop.f32.mrf.mxu0  ;;  %v16725_v40 = vpop.f32.mrf.mxu1 }
 0x688   :  { %v16691_v5 = vadd.f32 %v16690_v0, %v16689_v20  ;;  %v16726_v24 = vadd.f32 %v16725_v40, %v16724_v2  ;;  %v16334_v20 = vld [vmem:[%s22258_s29 + $0x38] sm:$0xff]  ;;  %v16341_v2 = vld [vmem:[%s22258_s29 + $0x50] sm:$0xff] }
 0x68a   :  { %v4117_v4 = vadd.f32 %v16726_v24, %v16691_v5 }
 0x68c   :  { %17130 = vmatpush3.msra.mxu0 %v4117_v4  ;;  %v19788_v4 = vmul.f32 %v19754_v29, %v19765_v12 }
 0x68d   :  { %17132 = vmatmul.mubr.msk.f32.vlgmr.msra.gmra.mxu0 %vm2378_vm14, %v4120_v36  ;;  %v16337_v36 = vld [vmem:[%s22258_s29 + $0x40] sm:$0xff] }
 0x68e   :  { %17141 = vmatprep.mubr.msk.f32.mxu0 %vm2378_vm14, %v4206_v39  ;;  %22268 = vst [vmem:[#allocation131_spill] sm:$0xff] %v19788_v4  ;;  %v16342_v39 = vld [vmem:[%s22258_s29 + $0x58] sm:$0xff] }
 0x74d   :  { %v4196_v1 = vpop.f32.mrf.mxu0 }
 0x74e   :  { %v19723_v45 = vadd.f32 %v4196_v1, %v4125_v42 }
 0x74f   :  { %v17133_v54 = vpop.f32.mrf.mxu0 }
 0x750   :  { %22259 = vst [vmem:[#allocation124_spill] sm:$0xff] %v19723_v45  ;;  %4202 = vrot.lane.b32.xlu1 %v19723_v45, %s18793_s26  ;;  %4208 = vrot.lane.b32.xlu0 %v19723_v45, %s18748_s1 }
 0x754   :  { %4467 = vrot.lane.b32.xlu1 %v19723_v45, %s18786_s18  ;;  %4377 = vrot.lane.b32.xlu0 %v19723_v45, %s18794_s28 }
 0x758   :  { %4733 = vrot.lane.b32.xlu1 %v19723_v45, %s18795_s21  ;;  %4643 = vrot.lane.b32.xlu0 %v19723_v45, %s18787_s22 }
 0x75c   :  { %4913 = vrot.lane.b32.xlu1 %v19723_v45, %s18796_s27  ;;  %4823 = vrot.lane.b32.xlu0 %v19723_v45, %s18797_s14 }
 0x760   :  { %5007 = vperm.xlu1 %17997, %v5003_v57   ;;  %5012 = vperm.xlu0 %17976, %v5004_v50   ;;  %v16345_v50 = vld [vmem:[%s22258_s29 + $0x60] sm:$0xff] }
 0x7c2   :  { %v4203_v46 = vpop.permute.xlu1 %4202  ;;  %v4209_v28 = vpop.permute.xlu0 %4208 }
 0x7c3   :  { %v4205_v31 = vmul.f32 %v4203_v46, %v19751_v62  ;;  %v4211_v52 = vmul.f32 %v4209_v28, %v19744_v48  ;;  %v16353_v46 = vld [vmem:[%s22258_s29 + $0x80] sm:$0xff]  ;;  %v16354_v28 = vld [vmem:[%s22258_s29 + $0x88] sm:$0xff]  ;;  %s18809_s29 = smov 27  }
 0x7c5   :  { %17134 = vmatprep.subr.mxu1 %v4211_v52  ;;  %17139 = vmatprep.subr.mxu0 %v4205_v31 }
 0x7c6   :  { %17140 = vmatpush3.msra.mxu0 %v4205_v31  ;;  %v4468_v8 = vpop.permute.xlu1 %4467  ;;  %17135 = vmatpush3.msra.mxu1 %v4211_v52  ;;  %v4378_v22 = vpop.permute.xlu0 %4377 }
 0x7c7   :  { %v4470_v51 = vmul.f32 %v4468_v8, %v19747_v10  ;;  %v4380_v53 = vmul.f32 %v4378_v22, %v19760_v3  ;;  %17137 = vmatmul.mubr.msk.f32.vlgmr.msra.gmra.mxu1 %vm2378_vm14, %v16324_v60  ;;  %17142 = vmatmul.mubr.msk.f32.vlgmr.msra.gmra.mxu0 %vm2378_vm14, %v4207_v9 }
 0x7c8   :  { %17151 = vmatprep.mubr.msk.f32.mxu0 %vm2378_vm14, %v16333_v23  ;;  %17146 = vmatprep.mubr.msk.f32.mxu1 %vm2378_vm14, %v16329_v19 }
 0x7c9   :  { %17144 = vmatprep.subr.mxu1 %v4380_v53  ;;  %17149 = vmatprep.subr.mxu0 %v4470_v51 }
 0x7ca   :  { %17150 = vmatpush3.msra.mxu0 %v4470_v51  ;;  %v4734_v0 = vpop.permute.xlu1 %4733  ;;  %17145 = vmatpush3.msra.mxu1 %v4380_v53  ;;  %v4644_v40 = vpop.permute.xlu0 %4643 }
 0x7cb   :  { %v4736_v5 = vmul.f32 %v4734_v0, %v19775_v18  ;;  %v4646_v24 = vmul.f32 %v4644_v40, %v19754_v29  ;;  %17147 = vmatmul.mubr.msk.f32.vlgmr.msra.gmra.mxu1 %vm2378_vm14, %v16330_v61  ;;  %17152 = vmatmul.mubr.msk.f32.vlgmr.msra.gmra.mxu0 %vm2378_vm14, %v16334_v20 }
 0x7cc   :  { %17154 = vmatprep.subr.mxu1 %v19723_v45  ;;  %17161 = vmatprep.mubr.msk.f32.mxu0 %vm2378_vm14, %v16341_v2 }
 0x7cd   :  { %17155 = vmatpush3.msra.mxu1 %v19723_v45  ;;  %17159 = vmatprep.subr.mxu0 %v4646_v24 }
 0x7ce   :  { %17164 = vmatprep.subr.mxu1 %v4736_v5  ;;  %v4914_v42 = vpop.permute.xlu1 %4913  ;;  %17156 = vmatprep.mubr.msk.f32.mxu1 %vm2378_vm14, %v16337_v36  ;;  %v4824_v1 = vpop.permute.xlu0 %4823 }
 0x7cf   :  { %v4916_v54 = vmul.f32 %v4914_v42, %v19788_v4  ;;  %17160 = vmatpush3.msra.mxu0 %v4646_v24  ;;  %v4826_v57 = vmul.f32 %v4824_v1, %v19765_v12  ;;  %17157 = vmatmul.mubr.msk.f32.vlgmr.msra.gmra.mxu1 %vm2378_vm14, %v16338_v41 }
 0x7d0   :  { %17162 = vmatmul.mubr.msk.f32.vlgmr.msra.gmra.mxu0 %vm2378_vm14, %v16342_v39  ;;  %17165 = vmatpush3.msra.mxu1 %v4736_v5 }
 0x7d1   :  { %17169 = vmatprep.subr.mxu0 %v4826_v57  ;;  %17174 = vmatprep.subr.mxu1 %v4916_v54 }
 0x7d2   :  { %17166 = vmatprep.mubr.msk.f32.mxu1 %vm2378_vm14, %v16345_v50  ;;  %17170 = vmatpush3.msra.mxu0 %v4826_v57 }
 0x7d3   :  { %17171 = vmatprep.mubr.msk.f32.mxu0 %vm2378_vm14, %v16349_v55  ;;  %17167 = vmatmul.mubr.msk.f32.vlgmr.msra.gmra.mxu1 %vm2378_vm14, %v16346_v13 }
 0x7d4   :  { %17172 = vmatmul.mubr.msk.f32.vlgmr.msra.gmra.mxu0 %vm2378_vm14, %v16350_v59  ;;  %17175 = vmatpush3.msra.mxu1 %v4916_v54 }
 0x7d5   :  { %17176 = vmatprep.mubr.msk.f32.mxu1 %vm2378_vm14, %v16353_v46 }
 0x7d7   :  { %17177 = vmatmul.mubr.msk.f32.vlgmr.msra.gmra.mxu1 %vm2378_vm14, %v16354_v28 }
 0x887   :  { %v17138_v31 = vpop.f32.mrf.mxu1  ;;  %v17143_v52 = vpop.f32.mrf.mxu0 }
 0x888   :  { %v4374_v23 = vadd.f32 %v17143_v52, %v17138_v31 }
 0x889   :  { %v4287_v60 = vpop.f32.mrf.mxu1  ;;  %v4368_v9 = vpop.f32.mrf.mxu0 }
 0x88a   :  { %v4369_v22 = vadd.f32 %v4368_v9, %v4287_v60  ;;  %v5013_v60 = vpop.permute.xlu0 %5012 }
 0x88b   :  { %v17148_v19 = vpop.f32.mrf.mxu1  ;;  %v17153_v8 = vpop.f32.mrf.mxu0 }
 0x88c   :  { %v4466_v51 = vadd.f32 %v17148_v19, %v4374_v23  ;;  %v5029_v23 = vld [vmem:[#allocation12] sm:$0xff] }
 0x88d   :  { %v4456_v53 = vpop.f32.mrf.mxu1  ;;  %v4546_v61 = vpop.f32.mrf.mxu0  ;;  %17190 = vmatprep.mubr.msk.f32.mxu1 %vm715_vm1, %v5029_v23 }
 0x88e   :  { %v4556_v20 = vadd.f32 %v17153_v8, %v4466_v51  ;;  %v4465_v2 = vadd.f32 %v4456_v53, %v4369_v22  ;;  %v5008_v22 = vpop.permute.xlu1 %5007 }
 0x88f   :  { %v17158_v0 = vpop.f32.mrf.mxu1 }
 0x890   :  { %v4555_v40 = vadd.f32 %v4546_v61, %v4465_v2  ;;  %v4642_v5 = vadd.f32 %v17158_v0, %v4556_v20  ;;  %v17163_v24 = vpop.f32.mrf.mxu0  ;;  %v5040_v61 = vld [vmem:[#allocation12 + $0x10] sm:$0xff]  ;;  %v5855_v2 = vld [vmem:[#allocation14 + $0x8] sm:$0xff] }
 0x891   :  { %v4632_v36 = vpop.f32.mrf.mxu1  ;;  %17183 = vmatprep.mubr.msk.f32.mxu0 %vm715_vm1, %v5040_v61  ;;  %v5854_v0 = vld [vmem:[#allocation14] sm:$0xff] }
 0x892   :  { %v4732_v41 = vadd.f32 %v17163_v24, %v4642_v5  ;;  %v4641_v39 = vadd.f32 %v4632_v36, %v4555_v40  ;;  %v4722_v42 = vpop.f32.mrf.mxu0 }
 0x893   :  { %v17168_v1 = vpop.f32.mrf.mxu1 }
 0x894   :  { %v4731_v54 = vadd.f32 %v4722_v42, %v4641_v39  ;;  %v4822_v57 = vadd.f32 %v17168_v1, %v4732_v41  ;;  %v17173_v50 = vpop.f32.mrf.mxu0  ;;  %v5030_v1 = vld [vmem:[#allocation12 + $0x8] sm:$0xff] }
 0x895   :  { %v4812_v55 = vpop.f32.mrf.mxu1 }
 0x896   :  { %v4912_v13 = vadd.f32 %v17173_v50, %v4822_v57  ;;  %v4821_v59 = vadd.f32 %v4812_v55, %v4731_v54  ;;  %v4902_v46 = vpop.f32.mrf.mxu0  ;;  %v5307_v54 = vld [vmem:[#allocation12 + $0x30] sm:$0xff] }
 0x897   :  { %v17178_v28 = vpop.f32.mrf.mxu1 }
 0x898   :  { %v4911_v31 = vadd.f32 %v4902_v46, %v4821_v59  ;;  %v5002_v52 = vadd.f32 %v17178_v28, %v4912_v13 }
 0x899   :  { %v4992_v9 = vpop.f32.mrf.mxu1 }
 0x89a   :  { %v5016_v19 = vadd.f32 %v5013_v60, %v5002_v52  ;;  %v5001_v8 = vadd.f32 %v4992_v9, %v4911_v31  ;;  %v5041_v31 = vld [vmem:[#allocation12 + $0x18] sm:$0xff] }
 0x89b   :  { %v5308_v60 = vld [vmem:[#allocation12 + $0x38] sm:$0xff] }
 0x89c   :  { %v19814_v51 = vmax.f32 %v5016_v19, 0.0  ;;  %v5015_v53 = vadd.f32 %v5008_v22, %v5001_v8  ;;  %v5213_v22 = vld [vmem:[#allocation12 + $0x20] sm:$0xff] }
 0x89e   :  { %5023 = vrot.lane.b32.xlu1 %v19814_v51, %s18793_s26  ;;  %5033 = vrot.lane.b32.xlu0 %v19814_v51, %s18748_s1  ;;  %v19820_v20 = vmax.f32 %v5015_v53, 0.0  ;;  %v5214_v53 = vld [vmem:[#allocation12 + $0x28] sm:$0xff] }
 0x8a2   :  { %5206 = vrot.lane.b32.xlu0 %v19814_v51, %s18794_s28  ;;  %5021 = vrot.lane.b32.xlu1 %v19820_v20, %s18793_s26 }
 0x8a6   :  { %5300 = vrot.lane.b32.xlu0 %v19814_v51, %s18786_s18  ;;  %5204 = vrot.lane.b32.xlu1 %v19820_v20, %s18794_s28 }
 0x8aa   :  { %5298 = vrot.lane.b32.xlu1 %v19820_v20, %s18786_s18  ;;  %5031 = vrot.lane.b32.xlu0 %v19820_v20, %s18748_s1 }
 0x8ae   :  { %5478 = vrot.lane.b32.xlu1 %v19820_v20, %s18787_s22  ;;  %5480 = vrot.lane.b32.xlu0 %v19814_v51, %s18787_s22 }
 0x8b2   :  { %5572 = vrot.lane.b32.xlu1 %v19820_v20, %s18795_s21  ;;  %5574 = vrot.lane.b32.xlu0 %v19814_v51, %s18795_s21 }
 0x8b6   :  { %5666 = vrot.lane.b32.xlu1 %v19820_v20, %s18797_s14  ;;  %5668 = vrot.lane.b32.xlu0 %v19814_v51, %s18797_s14 }
 0x8ba   :  { %5760 = vrot.lane.b32.xlu1 %v19820_v20, %s18796_s27  ;;  %5762 = vrot.lane.b32.xlu0 %v19814_v51, %s18796_s27 }
 0x8be   :  { %5863 = vperm.xlu1 %17997, %v5855_v2   ;;  %5858 = vperm.xlu0 %17976, %v5854_v0  }
 0x910   :  { %v5024_v40 = vpop.permute.xlu1 %5023  ;;  %v5034_v5 = vpop.permute.xlu0 %5033 }
 0x911   :  { %v5028_v24 = vmul.f32 %v5024_v40, %v19751_v62  ;;  %v5038_v36 = vmul.f32 %v5034_v5, %v19744_v48  ;;  %v5393_v40 = vld [vmem:[#allocation12 + $0x40] sm:$0xff]  ;;  %v5487_v5 = vld [vmem:[#allocation12 + $0x50] sm:$0xff] }
 0x913   :  { %17179 = vmatprep.subr.mxu0 %v5038_v36  ;;  %17186 = vmatprep.subr.mxu1 %v5028_v24 }
 0x914   :  { %17180 = vmatpush3.msra.mxu0 %v5038_v36  ;;  %17187 = vmatpush3.msra.mxu1 %v5028_v24  ;;  %v5207_v41 = vpop.permute.xlu0 %5206  ;;  %v5022_v39 = vpop.permute.xlu1 %5021  ;;  %v5394_v24 = vld [vmem:[#allocation12 + $0x48] sm:$0xff] }
 0x915   :  { %v5027_v42 = vmul.f32 %v5022_v39, %v19751_v62  ;;  %v5211_v52 = vmul.f32 %v5207_v41, %v19760_v3 }
 0x917   :  { %17188 = vmatprep.subr.mxu1 %v5027_v42 }
 0x918   :  { %v5301_v57 = vpop.permute.xlu0 %5300  ;;  %17189 = vmatpush3.msra.mxu1 %v5027_v42  ;;  %v5205_v50 = vpop.permute.xlu1 %5204  ;;  %v5488_v42 = vld [vmem:[#allocation12 + $0x58] sm:$0xff] }
 0x919   :  { %v5305_v55 = vmul.f32 %v5301_v57, %v19747_v10  ;;  %17191 = vmatmul.mubr.msk.f32.vlgmr.msra.gmra.mxu1 %vm715_vm1, %v5030_v1  ;;  %v5210_v19 = vmul.f32 %v5205_v50, %v19760_v3  ;;  %v5582_v57 = vld [vmem:[#allocation12 + $0x68] sm:$0xff] }
 0x91a   :  { %17204 = vmatprep.mubr.msk.f32.mxu1 %vm715_vm1, %v5307_v54 }
 0x91b   :  { %17200 = vmatprep.subr.mxu1 %v5305_v55 }
 0x91c   :  { %17201 = vmatpush3.msra.mxu1 %v5305_v55  ;;  %v5299_v13 = vpop.permute.xlu1 %5298  ;;  %v5032_v59 = vpop.permute.xlu0 %5031  ;;  %v5675_v55 = vld [vmem:[#allocation12 + $0x70] sm:$0xff] }
 0x91d   :  { %v5304_v46 = vmul.f32 %v5299_v13, %v19747_v10  ;;  %v5037_v28 = vmul.f32 %v5032_v59, %v19744_v48 }
 0x91f   :  { %17181 = vmatprep.subr.mxu0 %v5037_v28  ;;  %17202 = vmatprep.subr.mxu1 %v5304_v46 }
 0x920   :  { %17203 = vmatpush3.msra.mxu1 %v5304_v46  ;;  %v5479_v9 = vpop.permute.xlu1 %5478  ;;  %17182 = vmatpush3.msra.mxu0 %v5037_v28  ;;  %v5481_v23 = vpop.permute.xlu0 %5480  ;;  %v5676_v46 = vld [vmem:[#allocation12 + $0x78] sm:$0xff]  ;;  %v5769_v28 = vld [vmem:[#allocation12 + $0x80] sm:$0xff] }
 0x921   :  { %v5485_v8 = vmul.f32 %v5481_v23, %v19754_v29  ;;  %17184 = vmatmul.mubr.msk.f32.vlgmr.msra.gmra.mxu0 %vm715_vm1, %v5041_v31  ;;  %17193 = vmatprep.subr.mxu0 %v5211_v52  ;;  %v5484_v61 = vmul.f32 %v5479_v9, %v19754_v29 }
 0x922   :  { %17194 = vmatpush3.msra.mxu0 %v5211_v52  ;;  %17205 = vmatmul.mubr.msk.f32.vlgmr.msra.gmra.mxu1 %vm715_vm1, %v5308_v60  ;;  %v5770_v52 = vld [vmem:[#allocation12 + $0x88] sm:$0xff] }
 0x923   :  { %17195 = vmatprep.subr.mxu0 %v5210_v19  ;;  %17214 = vmatprep.subr.mxu1 %v5485_v8 }
 0x924   :  { %v5573_v2 = vpop.permute.xlu1 %5572  ;;  %17196 = vmatpush3.msra.mxu0 %v5210_v19  ;;  %17197 = vmatprep.mubr.msk.f32.mxu0 %vm715_vm1, %v5213_v22  ;;  %v5575_v0 = vpop.permute.xlu0 %5574 }
 0x925   :  { %17215 = vmatpush3.msra.mxu1 %v5485_v8  ;;  %17198 = vmatmul.mubr.msk.f32.vlgmr.msra.gmra.mxu0 %vm715_vm1, %v5214_v53  ;;  %v5579_v36 = vmul.f32 %v5575_v0, %v19775_v18  ;;  %v5578_v54 = vmul.f32 %v5573_v2, %v19775_v18 }
 0x926   :  { %17207 = vmatprep.subr.mxu0 %v19814_v51  ;;  %17216 = vmatprep.subr.mxu1 %v5484_v61 }
 0x927   :  { %17208 = vmatpush3.msra.mxu0 %v19814_v51  ;;  %17217 = vmatpush3.msra.mxu1 %v5484_v61  ;;  %v5581_v51 = vld [vmem:[#allocation12 + $0x60] sm:$0xff] }
 0x928   :  { %17209 = vmatprep.subr.mxu0 %v19820_v20  ;;  %v5667_v41 = vpop.permute.xlu1 %5666  ;;  %17211 = vmatprep.mubr.msk.f32.mxu0 %vm715_vm1, %v5393_v40  ;;  %v5669_v39 = vpop.permute.xlu0 %5668 }
 0x929   :  { %17210 = vmatpush3.msra.mxu0 %v19820_v20  ;;  %v5673_v1 = vmul.f32 %v5669_v39, %v19765_v12  ;;  %17218 = vmatprep.mubr.msk.f32.mxu1 %vm715_vm1, %v5487_v5  ;;  %v5672_v20 = vmul.f32 %v5667_v41, %v19765_v12 }
 0x92a   :  { %17212 = vmatmul.mubr.msk.f32.vlgmr.msra.gmra.mxu0 %vm715_vm1, %v5394_v24  ;;  %17221 = vmatprep.subr.mxu0 %v5579_v36 }
 0x92b   :  { %17222 = vmatpush3.msra.mxu0 %v5579_v36  ;;  %17219 = vmatmul.mubr.msk.f32.vlgmr.msra.gmra.mxu1 %vm715_vm1, %v5488_v42 }
 0x92c   :  { %17223 = vmatprep.subr.mxu0 %v5578_v54  ;;  %17228 = vmatprep.subr.mxu1 %v5673_v1  ;;  %v5763_v50 = vpop.permute.xlu0 %5762  ;;  %v5761_v13 = vpop.permute.xlu1 %5760 }
 0x92d   :  { %17224 = vmatpush3.msra.mxu0 %v5578_v54  ;;  %17225 = vmatprep.mubr.msk.f32.mxu0 %vm715_vm1, %v5581_v51  ;;  %v5767_v59 = vmul.f32 %v5763_v50, %v19788_v4  ;;  %v5766_v31 = vmul.f32 %v5761_v13, %v19788_v4 }
 0x92e   :  { %17229 = vmatpush3.msra.mxu1 %v5673_v1  ;;  %17226 = vmatmul.mubr.msk.f32.vlgmr.msra.gmra.mxu0 %vm715_vm1, %v5582_v57 }
 0x92f   :  { %17230 = vmatprep.subr.mxu1 %v5672_v20  ;;  %17232 = vmatprep.mubr.msk.f32.mxu1 %vm715_vm1, %v5675_v55 }
 0x930   :  { %17231 = vmatpush3.msra.mxu1 %v5672_v20  ;;  %17235 = vmatprep.subr.mxu0 %v5767_v59 }
 0x931   :  { %17233 = vmatmul.mubr.msk.f32.vlgmr.msra.gmra.mxu1 %vm715_vm1, %v5676_v46  ;;  %17236 = vmatpush3.msra.mxu0 %v5767_v59 }
 0x932   :  { %17237 = vmatprep.subr.mxu0 %v5766_v31  ;;  %17239 = vmatprep.mubr.msk.f32.mxu0 %vm715_vm1, %v5769_v28 }
 0x933   :  { %17238 = vmatpush3.msra.mxu0 %v5766_v31 }
 0x934   :  { %17240 = vmatmul.mubr.msk.f32.vlgmr.msra.gmra.mxu0 %vm715_vm1, %v5770_v52 }
 0x9d9   :  { %v17192_v60 = vpop.f32.mrf.mxu1 }
 0x9db   :  { %v5195_v23 = vpop.f32.mrf.mxu1 }
 0x9e1   :  { %v17185_v9 = vpop.f32.mrf.mxu0 }
 0x9e2   :  { %v5201_v19 = vadd.f32 %v17192_v60, %v17185_v9  ;;  %v17206_v22 = vpop.f32.mrf.mxu1 }
 0x9e3   :  { %v5114_v8 = vpop.f32.mrf.mxu0 }
 0x9e4   :  { %v5196_v61 = vadd.f32 %v5195_v23, %v5114_v8  ;;  %v5381_v40 = vpop.f32.mrf.mxu1  ;;  %v5864_v23 = vpop.permute.xlu1 %5863 }
 0x9e5   :  { %v17199_v53 = vpop.f32.mrf.mxu0 }
 0x9e6   :  { %v5297_v2 = vadd.f32 %v17199_v53, %v5201_v19  ;;  %v5859_v53 = vpop.permute.xlu0 %5858 }
 0x9e7   :  { %v5287_v0 = vpop.f32.mrf.mxu0 }
 0x9e8   :  { %v5296_v5 = vadd.f32 %v5287_v0, %v5196_v61  ;;  %v5391_v24 = vadd.f32 %v17206_v22, %v5297_v2 }
 0x9ea   :  { %v5390_v36 = vadd.f32 %v5381_v40, %v5296_v5  ;;  %v17213_v41 = vpop.f32.mrf.mxu0  ;;  %v5905_v5 = vld [vmem:[#allocation48 + $0x78] sm:$0xff] }
 0x9eb   :  { %v5477_v39 = vadd.f32 %v17213_v41, %v5391_v24  ;;  %v17220_v42 = vpop.f32.mrf.mxu1  ;;  %v5904_v24 = vld [vmem:[#allocation48 + $0x70] sm:$0xff]  ;;  %17242 = vmatprep.subr.mxu1 %v5905_v5  ;;  %v5903_v41 = vld [vmem:[#allocation48 + $0x68] sm:$0xff] }
 0x9ec   :  { %v5467_v1 = vpop.f32.mrf.mxu0  ;;  %17243 = vmatpush3.msra.mxu1 %v5905_v5 }
 0x9ed   :  { %v5476_v54 = vadd.f32 %v5467_v1, %v5390_v36  ;;  %v5571_v51 = vadd.f32 %v17220_v42, %v5477_v39  ;;  %v5561_v57 = vpop.f32.mrf.mxu1  ;;  %v5984_v36 = vld [vmem:[#allocation24 + $0x8] sm:$0xff]  ;;  %17244 = vmatprep.subr.mxu1 %v5904_v24  ;;  %v5902_v39 = vld [vmem:[#allocation48 + $0x60] sm:$0xff]  ;;  %v5901_v42 = vld [vmem:[#allocation48 + $0x58] sm:$0xff] }
 0x9ee   :  { %v17227_v50 = vpop.f32.mrf.mxu0  ;;  %17245 = vmatpush3.msra.mxu1 %v5904_v24  ;;  %v5900_v1 = vld [vmem:[#allocation48 + $0x50] sm:$0xff] }
 0x9ef   :  { %v5570_v55 = vadd.f32 %v5561_v57, %v5476_v54  ;;  %v5665_v20 = vadd.f32 %v17227_v50, %v5571_v51  ;;  %17246 = vmatprep.subr.mxu1 %v5903_v41  ;;  %v5899_v54 = vld [vmem:[#allocation48 + $0x48] sm:$0xff]  ;;  %v5898_v51 = vld [vmem:[#allocation48 + $0x40] sm:$0xff]  ;;  %v5897_v57 = vld [vmem:[#allocation48 + $0x38] sm:$0xff] }
 0x9f0   :  { %v5655_v13 = vpop.f32.mrf.mxu0  ;;  %17247 = vmatpush3.msra.mxu1 %v5903_v41  ;;  %v5896_v50 = vld [vmem:[#allocation48 + $0x30] sm:$0xff] }
 0x9f1   :  { %v5664_v59 = vadd.f32 %v5655_v13, %v5570_v55  ;;  %v17234_v46 = vpop.f32.mrf.mxu1  ;;  %17248 = vmatprep.subr.mxu1 %v5902_v39  ;;  %v5895_v55 = vld [vmem:[#allocation48 + $0x28] sm:$0xff]  ;;  %v5893_v13 = vld [vmem:[#allocation48 + $0x18] sm:$0xff]  ;;  %v5981_v24 = vld [vmem:[#allocation23] sm:$0xff] }
 0x9f2   :  { %v5759_v28 = vadd.f32 %v17234_v46, %v5665_v20  ;;  %17249 = vmatpush3.msra.mxu1 %v5902_v39  ;;  %v5894_v20 = vld [vmem:[#allocation48 + $0x20] sm:$0xff]  ;;  %v5891_v46 = vld [vmem:[#allocation48 + $0x8] sm:$0xff]  ;;  %17281 = vmatprep.mubr.msk.f32.mxu0 %vm715_vm1, %v5981_v24 }
 0x9f3   :  { %v5749_v31 = vpop.f32.mrf.mxu1  ;;  %17250 = vmatprep.subr.mxu1 %v5901_v42 }
 0x9f4   :  { %v17241_v52 = vpop.f32.mrf.mxu0  ;;  %v5758_v60 = vadd.f32 %v5749_v31, %v5664_v59  ;;  %17251 = vmatpush3.msra.mxu1 %v5901_v42  ;;  %v5892_v59 = vld [vmem:[#allocation48 + $0x10] sm:$0xff] }
 0x9f5   :  { %v5853_v9 = vadd.f32 %v17241_v52, %v5759_v28  ;;  %17252 = vmatprep.subr.mxu1 %v5900_v1  ;;  %v5890_v28 = vld [vmem:[#allocation48] sm:$0xff] }
 0x9f6   :  { %v5843_v19 = vpop.f32.mrf.mxu0  ;;  %17253 = vmatpush3.msra.mxu1 %v5900_v1 }
 0x9f7   :  { %v5867_v8 = vadd.f32 %v5864_v23, %v5853_v9  ;;  %v5852_v22 = vadd.f32 %v5843_v19, %v5758_v60  ;;  %17254 = vmatprep.subr.mxu1 %v5899_v54 }
 0x9f8   :  { %17255 = vmatpush3.msra.mxu1 %v5899_v54 }
 0x9f9   :  { %v5866_v61 = vadd.f32 %v5859_v53, %v5852_v22  ;;  %v5869_v2 = vmax.f32 %v5867_v8, 0.0  ;;  %17256 = vmatprep.subr.mxu1 %v5898_v51  ;;  %v5983_v8 = vld [vmem:[#allocation24] sm:$0xff] }
 0x9fa   :  { %17257 = vmatpush3.msra.mxu1 %v5898_v51 }
 0x9fb   :  { %v5868_v0 = vmax.f32 %v5866_v61, 0.0  ;;  %17258 = vmatprep.subr.mxu1 %v5897_v57 }
 0x9fc   :  { %17259 = vmatpush3.msra.mxu1 %v5897_v57 }
 0x9fd   :  { %v17998_v40 = vpack.i.bf16 %v5869_v2, %v5868_v0  ;;  %17260 = vmatprep.subr.mxu1 %v5896_v50 }
 0x9fe   :  { %17261 = vmatpush3.msra.mxu1 %v5896_v50 }
 0x9ff   :  { %17999 = vrot.lane.b32.xlu0 %v17998_v40, %s18787_s22  ;;  %17262 = vmatprep.subr.mxu1 %v5895_v55 }
 0xa00   :  { %17263 = vmatpush3.msra.mxu1 %v5895_v55  ;;  %v16377_v55 = vld [vmem:[%s22269_s9 + $0x20] sm:$0xff] }
 0xa01   :  { %17264 = vmatprep.subr.mxu1 %v5894_v20 }
 0xa02   :  { %17265 = vmatpush3.msra.mxu1 %v5894_v20  ;;  %v16405_v20 = vld [vmem:[%s22269_s9 + $0x80] sm:$0xff] }
 0xa03   :  { %5992 = vperm.xlu0 %17976, %v5984_v36   ;;  %17266 = vmatprep.subr.mxu1 %v5893_v13 }
 0xa04   :  { %17267 = vmatpush3.msra.mxu1 %v5893_v13  ;;  %v16406_v13 = vld [vmem:[%s22269_s9 + $0x88] sm:$0xff] }
 0xa05   :  { %17268 = vmatprep.subr.mxu1 %v5892_v59 }
 0xa06   :  { %17269 = vmatpush3.msra.mxu1 %v5892_v59  ;;  %v16407_v59 = vld [vmem:[%s22269_s9 + $0x90] sm:$0xff] }
 0xa07   :  { %17270 = vmatprep.subr.mxu1 %v5891_v46 }
 0xa08   :  { %17271 = vmatpush3.msra.mxu1 %v5891_v46  ;;  %v16408_v46 = vld [vmem:[%s22269_s9 + $0x98] sm:$0xff] }
 0xa09   :  { %17272 = vmatprep.subr.mxu1 %v5890_v28 }
 0xa0a   :  { %17273 = vmatpush3.msra.mxu1 %v5890_v28  ;;  %v16421_v28 = vld [vmem:[%s22269_s9 + $0xc0] sm:$0xff] }
 0xa71   :  { %v18000_v31 = vpop.permute.xlu0 %17999 }
 0xa72   :  { %v18002_v52 = vunpack.i.h.bf16 %v18000_v31  ;;  %v18001_v60 = vunpack.i.l.bf16 %v18000_v31  ;;  %v7164_v31 = vld [vmem:[#allocation15 + $0x10] sm:$0xff] }
 0xa74   :  { %v5879_v9 = vmax.f32 %v5869_v2, %v18002_v52  ;;  %v5878_v23 = vmax.f32 %v5868_v0, %v18001_v60  ;;  %v5982_v2 = vld [vmem:[#allocation23 + $0x8] sm:$0xff]  ;;  %v7162_v60 = vld [vmem:[#allocation15] sm:$0xff] }
 0xa75   :  { %v7165_v52 = vld [vmem:[#allocation15 + $0x18] sm:$0xff] }
 0xa76   :  { %v18003_v19 = vpack.i.bf16 %v5879_v9, %v5878_v23 }
 0xa78   :  { %18004 = vrot.lane.b32.xlu1 %v18003_v19, %s18797_s14 }
 0xa7c   :  { %5987 = vperm.xlu1 %17997, %v5983_v8  }
 0xa7e   :  { %v5993_v0 = vpop.permute.xlu0 %5992 }
 0xaea   :  { %v18005_v22 = vpop.permute.xlu1 %18004 }
 0xaeb   :  { %v18007_v53 = vunpack.i.h.bf16 %v18005_v22  ;;  %v18006_v61 = vunpack.i.l.bf16 %v18005_v22 }
 0xaed   :  { %v5889_v40 = vmax.f32 %v5879_v9, %v18007_v53  ;;  %v5888_v5 = vmax.f32 %v5878_v23, %v18006_v61  ;;  %v7163_v9 = vld [vmem:[#allocation15 + $0x8] sm:$0xff]  ;;  %v663_v23 = vshra.s32 %v22260_v58, 2 }
 0xaef   :  { %17274 = vmatprep.mubr.f32.mxu1 %v5888_v5  ;;  %v664_v19 = vand.u32 3, %v663_v23 }
 0xaf0   :  { %17275 = vmatmul.mubr.f32.vlgmr.msra.gmra.mxu1 %v5889_v40 }
 0xaf1   :  { %17328 = vmatprep.mubr.msk.f32.mxu1 %vm715_vm1, %v16405_v20  ;;  %vm665_vm5 = vcmp.gt.s32.totalorder %v664_v19, 0  ;;  %v16378_v20 = vld [vmem:[%s22269_s9 + $0x28] sm:$0xff] }
 0xaf2   :  { %v19939_v8 = vsel %vm665_vm5, 1.0, %v22249_v56 }
 0xaf7   :  { %v5988_v1 = vpop.permute.xlu1 %5987 }
 0xbb0   :  { %v17276_v36 = vpop.f32.mrf.mxu1 }
 0xbb1   :  { %17277 = vmatprep.subr.mxu0 %v17276_v36 }
 0xbb2   :  { %v5972_v41 = vpop.f32.mrf.mxu1  ;;  %17278 = vmatpush3.msra.mxu0 %v17276_v36  ;;  %v662_v36 = vand.u32 3, %v22260_v58 }
 0xbb3   :  { %17279 = vmatprep.subr.mxu0 %v5972_v41 }
 0xbb4   :  { %17280 = vmatpush3.msra.mxu0 %v5972_v41  ;;  %vm669_vm6 = vcmp.gt.s32.totalorder %v662_v36, 0  ;;  %vm671_vm5 = vcmp.lt.s32.totalorder %v662_v36, 3 }
 0xbb5   :  { %17282 = vmatmul.mubr.msk.f32.vlgmr.msra.gmra.mxu0 %vm715_vm1, %v5982_v2 }
 0xbb6   :  { %17288 = vmatprep.mubr.msk.f32.mxu0 %vm715_vm1, %v16377_v55 }
 0xc75   :  { %v17283_v39 = vpop.f32.mrf.mxu0 }
 0xc76   :  { %v6073_v42 = vadd.f32 %v17283_v39, %v5993_v0 }
 0xc77   :  { %v6067_v54 = vpop.f32.mrf.mxu0 }
 0xc78   :  { %v6077_v51 = vmax.f32 %v6073_v42, 0.0  ;;  %v6068_v57 = vadd.f32 %v6067_v54, %v5988_v1  ;;  %v19945_v42 = vsel %vm669_vm6, 1.0, %v22249_v56  ;;  %vm667_vm6 = vcmp.lt.s32.totalorder %v664_v19, 3  ;;  %v6100_v19 = vld [vmem:[%s22269_s9] sm:$0xff] }
 0xc79   :  { %v19949_v54 = vmul.f32 %v19945_v42, %v19939_v8 }
 0xc7a   :  { %v6076_v50 = vmax.f32 %v6068_v57, 0.0  ;;  %6112 = vrot.lane.b32.xlu1 %v6077_v51, %s18775_s23  ;;  %6106 = vrot.lane.b32.xlu0 %v6077_v51, %s18798_s2  ;;  %6080 = vst.msk [vmem:[#allocation3 + $0x8] sm:$0xff] %vm6078_vm4, %v6077_v51 }
 0xc7b   :  { %17324 = vmatprep.subr.mxu1 %v6077_v51 }
 0xc7c   :  { %17325 = vmatpush3.msra.mxu1 %v6077_v51  ;;  %6079 = vst.msk [vmem:[#allocation3] sm:$0xff] %vm6078_vm4, %v6076_v50 }
 0xc7d   :  { %17326 = vmatprep.subr.mxu1 %v6076_v50 }
 0xc7e   :  { %17327 = vmatpush3.msra.mxu1 %v6076_v50  ;;  %6091 = vrot.lane.b32.xlu1 %v6077_v51, %s18799_s7 }
 0xc7f   :  { %6085 = vrot.lane.b32.xlu0 %v6077_v51, %s18800_s0  ;;  %17329 = vmatmul.mubr.msk.f32.vlgmr.msra.gmra.mxu1 %vm715_vm1, %v16406_v13 }
 0xc80   :  { %17331 = vmatprep.mubr.msk.f32.mxu1 %vm715_vm1, %v16407_v59 }
 0xc82   :  { %6327 = vrot.lane.b32.xlu1 %v6077_v51, %s18801_s10 }
 0xc83   :  { %6321 = vrot.lane.b32.xlu0 %v6077_v51, %s18802_s5  ;;  %17332 = vmatmul.mubr.msk.f32.gmra.mxu1 %vm715_vm1, %v16408_v46  ;;  %v16379_v46 = vld [vmem:[%s22269_s9 + $0x30] sm:$0xff] }
 0xc84   :  { %17348 = vmatprep.mubr.msk.f32.mxu1 %vm715_vm1, %v16421_v28  ;;  %v19962_v28 = vsel %vm671_vm5, 1.0, %v22249_v56  ;;  %vm6805_vm5 = vcmask 236544  }
 0xc86   :  { %6450 = vrot.lane.b32.xlu1 %v6077_v51, %s18786_s18 }
 0xc87   :  { %6444 = vrot.lane.b32.xlu0 %v6077_v51, %s18803_s20 }
 0xc8a   :  { %6110 = vrot.lane.b32.xlu1 %v6076_v50, %s18775_s23 }
 0xc8b   :  { %6104 = vrot.lane.b32.xlu0 %v6076_v50, %s18798_s2 }
 0xc8e   :  { %6678 = vrot.lane.b32.xlu1 %v6077_v51, %s18804_s11 }
 0xc8f   :  { %6672 = vrot.lane.b32.xlu0 %v6077_v51, %s18787_s22 }
 0xc92   :  { %6089 = vrot.lane.b32.xlu1 %v6076_v50, %s18799_s7 }
 0xc93   :  { %6083 = vrot.lane.b32.xlu0 %v6076_v50, %s18800_s0 }
 0xc96   :  { %6801 = vrot.lane.b32.xlu1 %v6077_v51, %s18805_s3 }
 0xc97   :  { %6795 = vrot.lane.b32.xlu0 %v6077_v51, %s18806_s19 }
 0xc9a   :  { %6325 = vrot.lane.b32.xlu1 %v6076_v50, %s18801_s10 }
 0xc9b   :  { %6319 = vrot.lane.b32.xlu0 %v6076_v50, %s18802_s5 }
 0xc9e   :  { %6924 = vrot.lane.b32.xlu1 %v6077_v51, %s18807_s15 }
 0xc9f   :  { %6918 = vrot.lane.b32.xlu0 %v6077_v51, %s18808_s6 }
 0xca2   :  { %6448 = vrot.lane.b32.xlu1 %v6076_v50, %s18786_s18 }
 0xca3   :  { %6442 = vrot.lane.b32.xlu0 %v6076_v50, %s18803_s20 }
 0xca6   :  { %7047 = vrot.lane.b32.xlu1 %v6077_v51, %s18809_s29 }
 0xca7   :  { %7041 = vrot.lane.b32.xlu0 %v6077_v51, %s18810_s12 }
 0xcaa   :  { %6676 = vrot.lane.b32.xlu1 %v6076_v50, %s18804_s11 }
 0xcab   :  { %6670 = vrot.lane.b32.xlu0 %v6076_v50, %s18787_s22 }
 0xcae   :  { %6799 = vrot.lane.b32.xlu1 %v6076_v50, %s18805_s3 }
 0xcaf   :  { %6793 = vrot.lane.b32.xlu0 %v6076_v50, %s18806_s19 }
 0xcb2   :  { %6922 = vrot.lane.b32.xlu1 %v6076_v50, %s18807_s15 }
 0xcb3   :  { %6916 = vrot.lane.b32.xlu0 %v6076_v50, %s18808_s6 }
 0xcb6   :  { %7045 = vrot.lane.b32.xlu1 %v6076_v50, %s18809_s29 }
 0xcb7   :  { %7039 = vrot.lane.b32.xlu0 %v6076_v50, %s18810_s12 }
 0xcba   :  { %7178 = vperm.xlu1 %17997, %v7164_v31   ;;  %v19966_v31 = vsel %vm667_vm6, 1.0, %v22249_v56  ;;  %vm6682_vm6 = vcmask 252928  }
 0xcbb   :  { %7183 = vperm.xlu0 %17976, %v7165_v52   ;;  %22270 = vst [vmem:[#allocation132_spill] sm:$0xff] %v19966_v31 }
 0xcbe   :  { %7168 = vperm.xlu1 %17997, %v7162_v60   ;;  %v16380_v60 = vld [vmem:[%s22269_s9 + $0x38] sm:$0xff] }
 0xcbf   :  { %7173 = vperm.xlu0 %17976, %v7163_v9   ;;  %v19972_v9 = vmul.f32 %v19962_v28, %v19939_v8 }
 0xcec   :  { %v6113_v22 = vpop.permute.xlu1 %6112  ;;  %v6107_v53 = vpop.permute.xlu0 %6106 }
 0xced   :  { %v6117_v61 = vsel %vm730_vm11, %v6107_v53, %v6113_v22 }
 0xcee   :  { %v6119_v40 = vmul.f32 %v6117_v61, %v19939_v8 }
 0xcf0   :  { %v6092_v5 = vpop.permute.xlu1 %6091  ;;  %17284 = vmatprep.subr.mxu0 %v6119_v40 }
 0xcf1   :  { %v6086_v24 = vpop.permute.xlu0 %6085  ;;  %17285 = vmatpush3.msra.mxu0 %v6119_v40  ;;  %v19981_v40 = vmul.f32 %v19945_v42, %v19966_v31 }
 0xcf2   :  { %v6097_v57 = vsel %vm6095_vm8, %v6086_v24, %v6092_v5  ;;  %v6101_v24 = vld [vmem:[%s22269_s9 + $0x8] sm:$0xff] }
 0xcf3   :  { %v6099_v13 = vmul.f32 %v6097_v57, %v19949_v54 }
 0xcf4   :  { %v6328_v41 = vpop.permute.xlu1 %6327 }
 0xcf5   :  { %v6322_v2 = vpop.permute.xlu0 %6321 }
 0xcf6   :  { %v6333_v22 = vsel %vm6331_vm13, %v6322_v2, %v6328_v41  ;;  %v6102_v2 = vld [vmem:[%s22269_s9 + $0x10] sm:$0xff] }
 0xcf7   :  { %v6335_v36 = vmul.f32 %v6333_v22, %v19972_v9 }
 0xcf8   :  { %v6451_v0 = vpop.permute.xlu1 %6450 }
 0xcf9   :  { %v6445_v39 = vpop.permute.xlu0 %6444 }
 0xcfc   :  { %v6111_v1 = vpop.permute.xlu1 %6110 }
 0xcfd   :  { %v6105_v51 = vpop.permute.xlu0 %6104 }
 0xcfe   :  { %v6116_v58 = vsel %vm730_vm11, %v6105_v51, %v6111_v1 }
 0xcff   :  { %v6118_v50 = vmul.f32 %v6116_v58, %v19939_v8  ;;  %v6103_v58 = vld [vmem:[%s22269_s9 + $0x18] sm:$0xff] }
 0xd00   :  { %v19954_v55 = vpop.permute.xlu1 %6678 }
 0xd01   :  { %17286 = vmatprep.subr.mxu0 %v6118_v50  ;;  %v19958_v59 = vpop.permute.xlu0 %6672 }
 0xd02   :  { %17287 = vmatpush3.msra.mxu0 %v6118_v50 }
 0xd03   :  { %17289 = vmatmul.mubr.msk.f32.vlgmr.msra.gmra.mxu0 %vm715_vm1, %v16378_v20  ;;  %17294 = vmatprep.subr.mxu0 %v6099_v13  ;;  %v16389_v20 = vld [vmem:[%s22269_s9 + $0x40] sm:$0xff] }
 0xd04   :  { %17295 = vmatpush3.msra.mxu0 %v6099_v13  ;;  %v6090_v52 = vpop.permute.xlu1 %6089  ;;  %17291 = vmatprep.mubr.msk.f32.mxu0 %vm715_vm1, %v16379_v46  ;;  %v6455_v13 = vsel %vm1240_vm2, %v6445_v39, %v6451_v0  ;;  %v16392_v39 = vld [vmem:[%s22269_s9 + $0x58] sm:$0xff] }
 0xd05   :  { %v6084_v23 = vpop.permute.xlu0 %6083 }
 0xd06   :  { %v6096_v53 = vsel %vm6095_vm8, %v6084_v23, %v6090_v52  ;;  %v16390_v23 = vld [vmem:[%s22269_s9 + $0x48] sm:$0xff] }
 0xd07   :  { %v6098_v61 = vmul.f32 %v6096_v53, %v19949_v54  ;;  %17292 = vmatmul.mubr.msk.f32.gmra.mxu0 %vm715_vm1, %v16380_v60  ;;  %v16391_v53 = vld [vmem:[%s22269_s9 + $0x50] sm:$0xff] }
 0xd08   :  { %v6802_v5 = vpop.permute.xlu1 %6801  ;;  %17298 = vmatprep.mubr.msk.f32.mxu0 %vm715_vm1, %v6100_v19  ;;  %v6457_v19 = vmul.f32 %v6455_v13, %v19945_v42 }
 0xd09   :  { %17296 = vmatprep.subr.mxu0 %v6098_v61  ;;  %v6796_v41 = vpop.permute.xlu0 %6795 }
 0xd0a   :  { %v6807_v1 = vsel %vm6805_vm5, %v6796_v41, %v6802_v5  ;;  %17297 = vmatpush3.msra.mxu0 %v6098_v61  ;;  %v16397_v5 = vld [vmem:[%s22269_s9 + $0x60] sm:$0xff] }
 0xd0b   :  { %v6809_v51 = vmul.f32 %v6807_v1, %v19981_v40  ;;  %17299 = vmatmul.mubr.msk.f32.vlgmr.msra.gmra.mxu0 %vm715_vm1, %v6101_v24  ;;  %17304 = vmatprep.subr.mxu0 %v6335_v36  ;;  %v6684_v24 = vsel %vm6682_vm6, %v19958_v59, %v19954_v55  ;;  %v16398_v1 = vld [vmem:[%s22269_s9 + $0x68] sm:$0xff]  ;;  %v16400_v59 = vld [vmem:[%s22269_s9 + $0x78] sm:$0xff] }
 0xd0c   :  { %17305 = vmatpush3.msra.mxu0 %v6335_v36  ;;  %v6326_v57 = vpop.permute.xlu1 %6325  ;;  %17301 = vmatprep.mubr.msk.f32.mxu0 %vm715_vm1, %v6102_v2 }
 0xd0d   :  { %v6320_v50 = vpop.permute.xlu0 %6319  ;;  %17344 = vmatprep.subr.mxu1 %v6809_v51 }
 0xd0e   :  { %v6332_v46 = vsel %vm6331_vm13, %v6320_v50, %v6326_v57  ;;  %17345 = vmatpush3.msra.mxu1 %v6809_v51  ;;  %v6686_v51 = vmul.f32 %v6684_v24, %v19962_v28 }
 0xd0f   :  { %v6334_v52 = vmul.f32 %v6332_v46, %v19972_v9  ;;  %17302 = vmatmul.mubr.msk.f32.gmra.mxu0 %vm715_vm1, %v6103_v58  ;;  %v16399_v58 = vld [vmem:[%s22269_s9 + $0x70] sm:$0xff] }
 0xd10   :  { %v6925_v60 = vpop.permute.xlu1 %6924  ;;  %17308 = vmatprep.mubr.msk.f32.mxu0 %vm715_vm1, %v16389_v20  ;;  %v16413_v20 = vld [vmem:[%s22269_s9 + $0xa0] sm:$0xff] }
 0xd11   :  { %17306 = vmatprep.subr.mxu0 %v6334_v52  ;;  %v6919_v22 = vpop.permute.xlu0 %6918 }
 0xd12   :  { %17307 = vmatpush3.msra.mxu0 %v6334_v52  ;;  %v6930_v13 = vsel %vm6928_vm12, %v6919_v22, %v6925_v60  ;;  %v20029_v60 = vmul.f32 %v19962_v28, %v19966_v31 }
 0xd13   :  { %17309 = vmatmul.mubr.msk.f32.vlgmr.msra.gmra.mxu0 %vm715_vm1, %v16390_v23  ;;  %17314 = vmatprep.subr.mxu0 %v6457_v19 }
 0xd14   :  { %17315 = vmatpush3.msra.mxu0 %v6457_v19  ;;  %v6449_v0 = vpop.permute.xlu1 %6448  ;;  %17311 = vmatprep.mubr.msk.f32.mxu0 %vm715_vm1, %v16391_v53  ;;  %v16414_v19 = vld [vmem:[%s22269_s9 + $0xa8] sm:$0xff]  ;;  %v6932_v53 = vmul.f32 %v6930_v13, %v19966_v31  ;;  %22271 = vst [vmem:[#allocation133_spill] sm:$0xff] %v20029_v60 }
 0xd15   :  { %v6443_v61 = vpop.permute.xlu0 %6442 }
 0xd16   :  { %v6454_v36 = vsel %vm1240_vm2, %v6443_v61, %v6449_v0 }
 0xd17   :  { %v6456_v41 = vmul.f32 %v6454_v36, %v19945_v42  ;;  %17312 = vmatmul.mubr.msk.f32.gmra.mxu0 %vm715_vm1, %v16392_v39  ;;  %v16415_v39 = vld [vmem:[%s22269_s9 + $0xb0] sm:$0xff]  ;;  %v16416_v36 = vld [vmem:[%s22269_s9 + $0xb8] sm:$0xff] }
 0xd18   :  { %v7048_v2 = vpop.permute.xlu1 %7047  ;;  %17318 = vmatprep.mubr.msk.f32.mxu0 %vm715_vm1, %v16397_v5 }
 0xd19   :  { %17316 = vmatprep.subr.mxu0 %v6456_v41  ;;  %v7042_v57 = vpop.permute.xlu0 %7041 }
 0xd1a   :  { %17317 = vmatpush3.msra.mxu0 %v6456_v41  ;;  %v7053_v61 = vsel %vm7051_vm9, %v7042_v57, %v7048_v2  ;;  %v16422_v41 = vld [vmem:[%s22269_s9 + $0xc8] sm:$0xff] }
 0xd1b   :  { %17319 = vmatmul.mubr.msk.f32.vlgmr.msra.gmra.mxu0 %vm715_vm1, %v16398_v1  ;;  %17334 = vmatprep.subr.mxu0 %v6686_v51  ;;  %v7055_v2 = vmul.f32 %v7053_v61, %v20029_v60 }
 0xd1c   :  { %17335 = vmatpush3.msra.mxu0 %v6686_v51  ;;  %v6677_v55 = vpop.permute.xlu1 %6676  ;;  %17321 = vmatprep.mubr.msk.f32.mxu0 %vm715_vm1, %v16399_v58  ;;  %v16423_v51 = vld [vmem:[%s22269_s9 + $0xd0] sm:$0xff] }
 0xd1d   :  { %v6671_v50 = vpop.permute.xlu0 %6670 }
 0xd1e   :  { %v6683_v46 = vsel %vm6682_vm6, %v6671_v50, %v6677_v55  ;;  %v16429_v55 = vld [vmem:[%s22269_s9 + $0xe0] sm:$0xff]  ;;  %v16424_v50 = vld [vmem:[%s22269_s9 + $0xd8] sm:$0xff] }
 0xd1f   :  { %v6685_v52 = vmul.f32 %v6683_v46, %v19962_v28  ;;  %17322 = vmatmul.mubr.msk.f32.gmra.mxu0 %vm715_vm1, %v16400_v59  ;;  %v16431_v46 = vld [vmem:[%s22269_s9 + $0xf0] sm:$0xff] }
 0xd20   :  { %v6800_v23 = vpop.permute.xlu1 %6799  ;;  %17338 = vmatprep.mubr.msk.f32.mxu0 %vm715_vm1, %v16413_v20  ;;  %v16430_v20 = vld [vmem:[%s22269_s9 + $0xe8] sm:$0xff] }
 0xd21   :  { %17336 = vmatprep.subr.mxu0 %v6685_v52  ;;  %v6794_v0 = vpop.permute.xlu0 %6793 }
 0xd22   :  { %v6806_v22 = vsel %vm6805_vm5, %v6794_v0, %v6800_v23  ;;  %17337 = vmatpush3.msra.mxu0 %v6685_v52  ;;  %v16437_v52 = vld [vmem:[%s22269_s9 + $0x100] sm:$0xff]  ;;  %v16438_v0 = vld [vmem:[%s22269_s9 + $0x108] sm:$0xff] }
 0xd23   :  { %v6808_v5 = vmul.f32 %v6806_v22, %v19981_v40  ;;  %17339 = vmatmul.mubr.msk.f32.vlgmr.msra.gmra.mxu0 %vm715_vm1, %v16414_v19  ;;  %17354 = vmatprep.subr.mxu0 %v6932_v53  ;;  %v16440_v22 = vld [vmem:[%s22269_s9 + $0x118] sm:$0xff] }
 0xd24   :  { %17355 = vmatpush3.msra.mxu0 %v6932_v53  ;;  %v6923_v24 = vpop.permute.xlu1 %6922  ;;  %17341 = vmatprep.mubr.msk.f32.mxu0 %vm715_vm1, %v16415_v39  ;;  %v16432_v53 = vld [vmem:[%s22269_s9 + $0xf8] sm:$0xff]  ;;  %v16439_v39 = vld [vmem:[%s22269_s9 + $0x110] sm:$0xff] }
 0xd25   :  { %v6917_v1 = vpop.permute.xlu0 %6916  ;;  %17346 = vmatprep.subr.mxu1 %v6808_v5 }
 0xd26   :  { %v6929_v57 = vsel %vm6928_vm12, %v6917_v1, %v6923_v24  ;;  %17347 = vmatpush3.msra.mxu1 %v6808_v5 }
 0xd27   :  { %v6931_v58 = vmul.f32 %v6929_v57, %v19966_v31  ;;  %17342 = vmatmul.mubr.msk.f32.gmra.mxu0 %vm715_vm1, %v16416_v36  ;;  %17349 = vmatmul.mubr.msk.f32.vlgmr.msra.gmra.mxu1 %vm715_vm1, %v16422_v41 }
 0xd28   :  { %17364 = vmatprep.subr.mxu1 %v7055_v2  ;;  %v7046_v59 = vpop.permute.xlu1 %7045  ;;  %17351 = vmatprep.mubr.msk.f32.mxu1 %vm715_vm1, %v16423_v51 }
 0xd29   :  { %17365 = vmatpush3.msra.mxu1 %v7055_v2  ;;  %17356 = vmatprep.subr.mxu0 %v6931_v58  ;;  %v7040_v13 = vpop.permute.xlu0 %7039 }
 0xd2a   :  { %v7052_v23 = vsel %vm7051_vm9, %v7040_v13, %v7046_v59  ;;  %17357 = vmatpush3.msra.mxu0 %v6931_v58  ;;  %17358 = vmatprep.mubr.msk.f32.mxu0 %vm715_vm1, %v16429_v55 }
 0xd2b   :  { %v7054_v19 = vmul.f32 %v7052_v23, %v20029_v60  ;;  %17352 = vmatmul.mubr.msk.f32.gmra.mxu1 %vm715_vm1, %v16424_v50  ;;  %17359 = vmatmul.mubr.msk.f32.vlgmr.msra.gmra.mxu0 %vm715_vm1, %v16430_v20 }
 0xd2c   :  { %17361 = vmatprep.mubr.msk.f32.mxu0 %vm715_vm1, %v16431_v46  ;;  %17368 = vmatprep.mubr.msk.f32.mxu1 %vm715_vm1, %v16437_v52 }
 0xd2d   :  { %17366 = vmatprep.subr.mxu1 %v7054_v19 }
 0xd2e   :  { %17367 = vmatpush3.msra.mxu1 %v7054_v19 }
 0xd2f   :  { %17362 = vmatmul.mubr.msk.f32.gmra.mxu0 %vm715_vm1, %v16432_v53  ;;  %17369 = vmatmul.mubr.msk.f32.vlgmr.msra.gmra.mxu1 %vm715_vm1, %v16438_v0 }
 0xd30   :  { %17371 = vmatprep.mubr.msk.f32.mxu1 %vm715_vm1, %v16439_v39 }
 0xd33   :  { %17372 = vmatmul.mubr.msk.f32.gmra.mxu1 %vm715_vm1, %v16440_v22 }
 0xd36   :  { %v7184_v33 = vpop.permute.xlu0 %7183 }
 0xd3f   :  { %v17330_v59 = vpop.f32.mrf.mxu1 }
 0xd41   :  { %v6647_v46 = vpop.f32.mrf.mxu1 }
 0xd43   :  { %v20067_v19 = vpop.f32.mrf.mxu1 }
 0xd45   :  { %v6657_v21 = vpop.f32.mrf.mxu1 }
 0xdc3   :  { %v17290_v61 = vpop.f32.mrf.mxu0 }
 0xdc5   :  { %v6203_v5 = vpop.f32.mrf.mxu0 }
 0xdc7   :  { %v17293_v24 = vpop.f32.mrf.mxu0 }
 0xdc9   :  { %v6213_v36 = vpop.f32.mrf.mxu0 }
 0xdcb   :  { %v17300_v41 = vpop.f32.mrf.mxu0 }
 0xdcc   :  { %v6306_v39 = vadd.f32 %v17300_v41, %v17290_v61 }
 0xdcd   :  { %v6300_v1 = vpop.f32.mrf.mxu0 }
 0xdcf   :  { %v17303_v51 = vpop.f32.mrf.mxu0 }
 0xdd0   :  { %v6316_v2 = vadd.f32 %v17303_v51, %v17293_v24 }
 0xdd1   :  { %v6310_v57 = vpop.f32.mrf.mxu0 }
 0xdd2   :  { %v6311_v53 = vadd.f32 %v6310_v57, %v6213_v36 }
 0xdd3   :  { %v17310_v58 = vpop.f32.mrf.mxu0 }
 0xdd4   :  { %v6439_v24 = vadd.f32 %v17310_v58, %v6306_v39 }
 0xdd5   :  { %v6419_v55 = vpop.f32.mrf.mxu0 }
 0xdd7   :  { %v17313_v50 = vpop.f32.mrf.mxu0 }
 0xdd8   :  { %v20065_v20 = vadd.f32 %v17313_v50, %v6316_v2 }
 0xdd9   :  { %v6429_v13 = vpop.f32.mrf.mxu0 }
 0xdda   :  { %v6440_v22 = vadd.f32 %v6429_v13, %v6311_v53 }
 0xddb   :  { %v17320_v52 = vpop.f32.mrf.mxu0 }
 0xddc   :  { %v6561_v6 = vadd.f32 %v17320_v52, %v6439_v24  ;;  %v7174_v52 = vpop.permute.xlu0 %7173 }
 0xddd   :  { %v6541_v23 = vpop.f32.mrf.mxu0 }
 0xdde   :  { %v6667_v63 = vadd.f32 %v17330_v59, %v6561_v6 }
 0xddf   :  { %v17323_v0 = vpop.f32.mrf.mxu0 }
 0xde1   :  { %v6551_v27 = vpop.f32.mrf.mxu0 }
 0xde2   :  { %v6562_v51 = vadd.f32 %v6551_v27, %v6440_v22 }
 0xde3   :  { %v17340_v25 = vpop.f32.mrf.mxu0 }
 0xde4   :  { %v6668_v11 = vadd.f32 %v6657_v21, %v6562_v51  ;;  %v6790_v30 = vadd.f32 %v17340_v25, %v6667_v63 }
 0xde5   :  { %v6770_v7 = vpop.f32.mrf.mxu0 }
 0xde7   :  { %v17343_v2 = vpop.f32.mrf.mxu0  ;;  %v17350_v50 = vpop.f32.mrf.mxu1 }
 0xde8   :  { %v6913_v61 = vadd.f32 %v17350_v50, %v6790_v30 }
 0xde9   :  { %v6780_v38 = vpop.f32.mrf.mxu0  ;;  %v6893_v35 = vpop.f32.mrf.mxu1 }
 0xdea   :  { %v6791_v17 = vadd.f32 %v6780_v38, %v6668_v11  ;;  %v6301_v38 = vadd.f32 %v6300_v1, %v6203_v5  ;;  %v7179_v5 = vpop.permute.xlu1 %7178 }
 0xdeb   :  { %v17353_v36 = vpop.f32.mrf.mxu1  ;;  %v17360_v57 = vpop.f32.mrf.mxu0 }
 0xdec   :  { %v7036_v13 = vadd.f32 %v17360_v57, %v6913_v61  ;;  %v6438_v63 = vadd.f32 %v6419_v55, %v6301_v38 }
 0xded   :  { %v6903_v41 = vpop.f32.mrf.mxu1 }
 0xdee   :  { %v20069_v53 = vadd.f32 %v6903_v41, %v6791_v17  ;;  %v6560_v30 = vadd.f32 %v6541_v23, %v6438_v63  ;;  %v7016_v17 = vpop.f32.mrf.mxu0  ;;  %v6563_v23 = vadd.f32 %v17323_v0, %v20065_v20 }
 0xdef   :  { %v17370_v27 = vpop.f32.mrf.mxu1 }
 0xdf0   :  { %v7159_v58 = vadd.f32 %v17370_v27, %v7036_v13  ;;  %v6666_v6 = vadd.f32 %v6647_v46, %v6560_v30  ;;  %v6669_v22 = vadd.f32 %v20067_v19, %v6563_v23  ;;  %v17363_v51 = vpop.f32.mrf.mxu0  ;;  %v7267_v27 = vld [vmem:[#allocation17 + $0x20] sm:$0xff] }
 0xdf1   :  { %v7139_v1 = vpop.f32.mrf.mxu1  ;;  %17382 = vmatprep.mubr.msk.f32.mxu0 %vm6078_vm4, %v7267_v27 }
 0xdf2   :  { %v7187_v21 = vadd.f32 %v7174_v52, %v7159_v58  ;;  %v6789_v11 = vadd.f32 %v6770_v7, %v6666_v6  ;;  %v7169_v7 = vpop.permute.xlu1 %7168  ;;  %v6792_v24 = vadd.f32 %v17343_v2, %v6669_v22  ;;  %v7230_v58 = vld [vmem:[#allocation17] sm:$0xff] }
 0xdf3   :  { %v17373_v57 = vpop.f32.mrf.mxu1  ;;  %17396 = vmatprep.mubr.msk.f32.mxu1 %vm6078_vm4, %v7230_v58 }
 0xdf4   :  { %v20071_v39 = vmax.f32 %v7187_v21, 0.0  ;;  %v6912_v25 = vadd.f32 %v6893_v35, %v6789_v11  ;;  %v6915_v50 = vadd.f32 %v17353_v36, %v6792_v24  ;;  %v8400_v11 = vld [vmem:[#allocation18 + $0x8] sm:$0xff] }
 0xdf5   :  { %v7149_v2 = vpop.f32.mrf.mxu1 }
 0xdf6   :  { %7248 = vrot.lane.b32.xlu1 %v20071_v39, %s18775_s23  ;;  %7236 = vrot.lane.b32.xlu0 %v20071_v39, %s18798_s2  ;;  %v7035_v55 = vadd.f32 %v7016_v17, %v6912_v25  ;;  %v7038_v61 = vadd.f32 %v17363_v51, %v6915_v50  ;;  %v8399_v17 = vld [vmem:[#allocation18] sm:$0xff] }
 0xdf8   :  { %v7158_v59 = vadd.f32 %v7139_v1, %v7035_v55  ;;  %v7161_v20 = vadd.f32 %v17373_v57, %v7038_v61  ;;  %v8402_v1 = vld [vmem:[#allocation18 + $0x18] sm:$0xff]  ;;  %v8401_v55 = vld [vmem:[#allocation18 + $0x10] sm:$0xff] }
 0xdfa   :  { %7212 = vrot.lane.b32.xlu1 %v20071_v39, %s18799_s7  ;;  %7200 = vrot.lane.b32.xlu0 %v20071_v39, %s18800_s0  ;;  %v7186_v46 = vadd.f32 %v7169_v7, %v7158_v59  ;;  %v7189_v19 = vadd.f32 %v7184_v33, %v7161_v20  ;;  %v7026_v33 = vpop.f32.mrf.mxu0 }
 0xdfb   :  { %v7037_v36 = vadd.f32 %v7026_v33, %v20069_v53 }
 0xdfc   :  { %v20101_v35 = vmax.f32 %v7186_v46, 0.0  ;;  %v20133_v0 = vmax.f32 %v7189_v19, 0.0 }
 0xdfd   :  { %v7160_v41 = vadd.f32 %v7149_v2, %v7037_v36 }
 0xdfe   :  { %7479 = vrot.lane.b32.xlu1 %v20071_v39, %s18801_s10  ;;  %7467 = vrot.lane.b32.xlu0 %v20071_v39, %s18802_s5 }
 0xdff   :  { %v7188_v13 = vadd.f32 %v7179_v5, %v7160_v41 }
 0xe01   :  { %v20169_v53 = vmax.f32 %v7188_v13, 0.0 }
 0xe02   :  { %7617 = vrot.lane.b32.xlu1 %v20071_v39, %s18786_s18  ;;  %7605 = vrot.lane.b32.xlu0 %v20071_v39, %s18803_s20 }
 0xe06   :  { %7861 = vrot.lane.b32.xlu1 %v20071_v39, %s18804_s11  ;;  %7849 = vrot.lane.b32.xlu0 %v20071_v39, %s18787_s22 }
 0xe0a   :  { %7999 = vrot.lane.b32.xlu1 %v20071_v39, %s18805_s3  ;;  %7987 = vrot.lane.b32.xlu0 %v20071_v39, %s18806_s19 }
 0xe0e   :  { %8137 = vrot.lane.b32.xlu1 %v20071_v39, %s18807_s15  ;;  %8125 = vrot.lane.b32.xlu0 %v20071_v39, %s18808_s6 }
 0xe12   :  { %7246 = vrot.lane.b32.xlu1 %v20101_v35, %s18775_s23  ;;  %7234 = vrot.lane.b32.xlu0 %v20101_v35, %s18798_s2 }
 0xe16   :  { %7210 = vrot.lane.b32.xlu1 %v20101_v35, %s18799_s7  ;;  %7198 = vrot.lane.b32.xlu0 %v20101_v35, %s18800_s0 }
 0xe1a   :  { %7477 = vrot.lane.b32.xlu1 %v20101_v35, %s18801_s10  ;;  %7465 = vrot.lane.b32.xlu0 %v20101_v35, %s18802_s5 }
 0xe1e   :  { %7615 = vrot.lane.b32.xlu1 %v20101_v35, %s18786_s18  ;;  %7603 = vrot.lane.b32.xlu0 %v20101_v35, %s18803_s20 }
 0xe22   :  { %7859 = vrot.lane.b32.xlu1 %v20101_v35, %s18804_s11  ;;  %7847 = vrot.lane.b32.xlu0 %v20101_v35, %s18787_s22 }
 0xe26   :  { %7997 = vrot.lane.b32.xlu1 %v20101_v35, %s18805_s3  ;;  %7985 = vrot.lane.b32.xlu0 %v20101_v35, %s18806_s19 }
 0xe2a   :  { %8135 = vrot.lane.b32.xlu1 %v20101_v35, %s18807_s15  ;;  %8123 = vrot.lane.b32.xlu0 %v20101_v35, %s18808_s6 }
 0xe2e   :  { %7252 = vrot.lane.b32.xlu1 %v20133_v0, %s18775_s23  ;;  %7240 = vrot.lane.b32.xlu0 %v20133_v0, %s18798_s2 }
 0xe32   :  { %7216 = vrot.lane.b32.xlu1 %v20133_v0, %s18799_s7  ;;  %7204 = vrot.lane.b32.xlu0 %v20133_v0, %s18800_s0 }
 0xe36   :  { %7483 = vrot.lane.b32.xlu1 %v20133_v0, %s18801_s10  ;;  %7471 = vrot.lane.b32.xlu0 %v20133_v0, %s18802_s5 }
 0xe3a   :  { %7621 = vrot.lane.b32.xlu1 %v20133_v0, %s18786_s18  ;;  %7609 = vrot.lane.b32.xlu0 %v20133_v0, %s18803_s20 }
 0xe3e   :  { %7865 = vrot.lane.b32.xlu1 %v20133_v0, %s18804_s11  ;;  %7853 = vrot.lane.b32.xlu0 %v20133_v0, %s18787_s22 }
 0xe42   :  { %8003 = vrot.lane.b32.xlu1 %v20133_v0, %s18805_s3  ;;  %7991 = vrot.lane.b32.xlu0 %v20133_v0, %s18806_s19 }
 0xe46   :  { %8141 = vrot.lane.b32.xlu1 %v20133_v0, %s18807_s15  ;;  %8129 = vrot.lane.b32.xlu0 %v20133_v0, %s18808_s6 }
 0xe4a   :  { %8279 = vrot.lane.b32.xlu1 %v20133_v0, %s18809_s29  ;;  %8267 = vrot.lane.b32.xlu0 %v20133_v0, %s18810_s12 }
 0xe4e   :  { %7250 = vrot.lane.b32.xlu1 %v20169_v53, %s18775_s23  ;;  %7238 = vrot.lane.b32.xlu0 %v20169_v53, %s18798_s2 }
 0xe52   :  { %7214 = vrot.lane.b32.xlu1 %v20169_v53, %s18799_s7  ;;  %7202 = vrot.lane.b32.xlu0 %v20169_v53, %s18800_s0 }
 0xe56   :  { %7481 = vrot.lane.b32.xlu1 %v20169_v53, %s18801_s10  ;;  %7469 = vrot.lane.b32.xlu0 %v20169_v53, %s18802_s5 }
 0xe5a   :  { %7619 = vrot.lane.b32.xlu1 %v20169_v53, %s18786_s18  ;;  %7607 = vrot.lane.b32.xlu0 %v20169_v53, %s18803_s20 }
 0xe5e   :  { %8275 = vrot.lane.b32.xlu1 %v20071_v39, %s18809_s29  ;;  %8263 = vrot.lane.b32.xlu0 %v20071_v39, %s18810_s12 }
 0xe62   :  { %7863 = vrot.lane.b32.xlu1 %v20169_v53, %s18804_s11  ;;  %7851 = vrot.lane.b32.xlu0 %v20169_v53, %s18787_s22 }
 0xe66   :  { %8001 = vrot.lane.b32.xlu1 %v20169_v53, %s18805_s3  ;;  %7989 = vrot.lane.b32.xlu0 %v20169_v53, %s18806_s19 }
 0xe68   :  { %v20200_v52 = vpop.permute.xlu1 %7248  ;;  %v20202_v21 = vpop.permute.xlu0 %7236 }
 0xe69   :  { %v7259_v4 = vsel %vm730_vm11, %v20202_v21, %v20200_v52 }
 0xe6a   :  { %8139 = vrot.lane.b32.xlu1 %v20169_v53, %s18807_s15  ;;  %8127 = vrot.lane.b32.xlu0 %v20169_v53, %s18808_s6  ;;  %v7263_v10 = vmul.f32 %v7259_v4, %v19939_v8  ;;  %v7268_v4 = vld [vmem:[#allocation17 + $0x28] sm:$0xff] }
 0xe6c   :  { %v20208_v38 = vpop.permute.xlu1 %7212  ;;  %v20210_v63 = vpop.permute.xlu0 %7200 }
 0xe6d   :  { %v7223_v48 = vsel %vm6095_vm8, %v20210_v63, %v20208_v38  ;;  %v7270_v63 = vld [vmem:[#allocation17 + $0x38] sm:$0xff] }
 0xe6e   :  { %8277 = vrot.lane.b32.xlu1 %v20169_v53, %s18809_s29  ;;  %8265 = vrot.lane.b32.xlu0 %v20169_v53, %s18810_s12 }
 0xe70   :  { %v20216_v30 = vpop.permute.xlu1 %7479  ;;  %v20218_v6 = vpop.permute.xlu0 %7467 }
 0xe72   :  { %8273 = vrot.lane.b32.xlu1 %v20101_v35, %s18809_s29  ;;  %8261 = vrot.lane.b32.xlu0 %v20101_v35, %s18810_s12 }
 0xe74   :  { %v20224_v25 = vpop.permute.xlu1 %7617  ;;  %v20226_v5 = vpop.permute.xlu0 %7605 }
 0xe76   :  { %8410 = vperm.xlu1 %17997, %v8400_v11   ;;  %8405 = vperm.xlu0 %17976, %v8399_v17  }
 0xe78   :  { %v20228_v59 = vpop.permute.xlu1 %7861  ;;  %v20230_v7 = vpop.permute.xlu0 %7849 }
 0xe7a   :  { %8420 = vperm.xlu1 %17997, %v8402_v1   ;;  %8415 = vperm.xlu0 %17976, %v8401_v55  }
 0xe7c   :  { %v20232_v46 = vpop.permute.xlu1 %7999  ;;  %v20234_v23 = vpop.permute.xlu0 %7987 }
 0xe80   :  { %v20236_v22 = vpop.permute.xlu1 %8137  ;;  %v20238_v24 = vpop.permute.xlu0 %8125 }
 0xe84   :  { %v7247_v51 = vpop.permute.xlu1 %7246  ;;  %v7235_v50 = vpop.permute.xlu0 %7234 }
 0xe85   :  { %v7258_v29 = vsel %vm730_vm11, %v7235_v50, %v7247_v51  ;;  %v7227_v50 = vmul.f32 %v7223_v48, %v19949_v54  ;;  %v7490_v48 = vsel %vm6331_vm13, %v20218_v6, %v20216_v30 }
 0xe86   :  { %v7262_v52 = vmul.f32 %v7258_v29, %v19939_v8  ;;  %v7494_v30 = vmul.f32 %v7490_v48, %v19972_v9 }
 0xe88   :  { %v7211_v57 = vpop.permute.xlu1 %7210  ;;  %v7199_v61 = vpop.permute.xlu0 %7198 }
 0xe89   :  { %v7222_v51 = vsel %vm6095_vm8, %v7199_v61, %v7211_v57  ;;  %v7231_v57 = vld [vmem:[#allocation17 + $0x8] sm:$0xff] }
 0xe8c   :  { %v20240_v20 = vpop.permute.xlu1 %7477  ;;  %v20242_v19 = vpop.permute.xlu0 %7465 }
 0xe8d   :  { %v7489_v61 = vsel %vm6331_vm13, %v20242_v19, %v20240_v20 }
 0xe8e   :  { %v7493_v6 = vmul.f32 %v7489_v61, %v19972_v9 }
 0xe90   :  { %v20244_v33 = vpop.permute.xlu1 %7615  ;;  %v20246_v2 = vpop.permute.xlu0 %7603 }
 0xe94   :  { %v20248_v36 = vpop.permute.xlu1 %7859  ;;  %v20250_v41 = vpop.permute.xlu0 %7847 }
 0xe95   :  { %v7871_v61 = vsel %vm6682_vm6, %v20250_v41, %v20248_v36  ;;  %v8010_v41 = vsel %vm6805_vm5, %v20234_v23, %v20232_v46 }
 0xe96   :  { %v7875_v36 = vmul.f32 %v7871_v61, %v19962_v28  ;;  %v8014_v46 = vmul.f32 %v8010_v41, %v19981_v40 }
 0xe98   :  { %v20252_v13 = vpop.permute.xlu1 %7997  ;;  %v20254_v27 = vpop.permute.xlu0 %7985 }
 0xe9c   :  { %v20256_v58 = vpop.permute.xlu1 %8135  ;;  %v20258_v11 = vpop.permute.xlu0 %8123 }
 0xea0   :  { %v7253_v17 = vpop.permute.xlu1 %7252  ;;  %v7241_v1 = vpop.permute.xlu0 %7240 }
 0xea1   :  { %v7261_v55 = vsel %vm730_vm11, %v7241_v1, %v7253_v17 }
 0xea2   :  { %v7265_v15 = vmul.f32 %v7261_v55, %v19939_v8 }
 0xea4   :  { %v7217_v14 = vpop.permute.xlu1 %7216  ;;  %17374 = vmatprep.subr.mxu0 %v7265_v15  ;;  %v7205_v16 = vpop.permute.xlu0 %7204 }
 0xea5   :  { %v7225_v49 = vsel %vm6095_vm8, %v7205_v16, %v7217_v14  ;;  %17375 = vmatpush3.msra.mxu0 %v7265_v15 }
 0xea6   :  { %v7229_v47 = vmul.f32 %v7225_v49, %v19949_v54 }
 0xea8   :  { %v7484_v44 = vpop.permute.xlu1 %7483  ;;  %17388 = vmatprep.subr.mxu1 %v7229_v47  ;;  %v7472_v43 = vpop.permute.xlu0 %7471 }
 0xea9   :  { %17389 = vmatpush3.msra.mxu1 %v7229_v47  ;;  %v7492_v21 = vsel %vm6331_vm13, %v7472_v43, %v7484_v44  ;;  %v7226_v43 = vmul.f32 %v7222_v51, %v19949_v54  ;;  %v7233_v51 = vld [vmem:[#allocation17 + $0x18] sm:$0xff] }
 0xeac   :  { %v7622_v26 = vpop.permute.xlu1 %7621  ;;  %v7610_v34 = vpop.permute.xlu0 %7609 }
 0xeb0   :  { %v20264_v32 = vpop.permute.xlu1 %7865  ;;  %v20266_v37 = vpop.permute.xlu0 %7853 }
 0xeb4   :  { %v20268_v17 = vpop.permute.xlu1 %8003  ;;  %v20270_v1 = vpop.permute.xlu0 %7991 }
 0xeb8   :  { %v20272_v55 = vpop.permute.xlu1 %8141  ;;  %v20274_v14 = vpop.permute.xlu0 %8129 }
 0xebc   :  { %v20276_v15 = vpop.permute.xlu1 %8279  ;;  %v20278_v49 = vpop.permute.xlu0 %8267 }
 0xec0   :  { %v7251_v16 = vpop.permute.xlu1 %7250  ;;  %v7239_v47 = vpop.permute.xlu0 %7238 }
 0xec1   :  { %v7260_v12 = vsel %vm730_vm11, %v7239_v47, %v7251_v16 }
 0xec2   :  { %v7264_v18 = vmul.f32 %v7260_v12, %v19939_v8 }
 0xec4   :  { %v7215_v62 = vpop.permute.xlu1 %7214  ;;  %17376 = vmatprep.subr.mxu0 %v7264_v18  ;;  %v7203_v3 = vpop.permute.xlu0 %7202 }
 0xec5   :  { %v7224_v56 = vsel %vm6095_vm8, %v7203_v3, %v7215_v62  ;;  %17377 = vmatpush3.msra.mxu0 %v7264_v18  ;;  %v7496_v62 = vmul.f32 %v7492_v21, %v19972_v9  ;;  %v7628_v21 = vsel %vm1240_vm2, %v20226_v5, %v20224_v25 }
 0xec6   :  { %v7228_v12 = vmul.f32 %v7224_v56, %v19949_v54  ;;  %17378 = vmatprep.subr.mxu0 %v7263_v10  ;;  %v7269_v56 = vld [vmem:[#allocation17 + $0x30] sm:$0xff] }
 0xec7   :  { %17379 = vmatpush3.msra.mxu0 %v7263_v10  ;;  %v7630_v10 = vsel %vm1240_vm2, %v7610_v34, %v7622_v26 }
 0xec8   :  { %v7482_v16 = vpop.permute.xlu1 %7481  ;;  %17380 = vmatprep.subr.mxu0 %v7262_v52  ;;  %17390 = vmatprep.subr.mxu1 %v7228_v12  ;;  %v7470_v38 = vpop.permute.xlu0 %7469  ;;  %v7634_v26 = vmul.f32 %v7630_v10, %v19945_v42  ;;  %v7872_v10 = vsel %vm6682_vm6, %v20230_v7, %v20228_v59 }
 0xec9   :  { %v7491_v3 = vsel %vm6331_vm13, %v7470_v38, %v7482_v16  ;;  %17381 = vmatpush3.msra.mxu0 %v7262_v52  ;;  %17391 = vmatpush3.msra.mxu1 %v7228_v12  ;;  %v7232_v52 = vld [vmem:[#allocation17 + $0x10] sm:$0xff]  ;;  %v7498_v12 = vld [vmem:[#allocation17 + $0x40] sm:$0xff]  ;;  %v7632_v16 = vmul.f32 %v7628_v21, %v19945_v42  ;;  %v7876_v59 = vmul.f32 %v7872_v10, %v19962_v28 }
 0xeca   :  { %v7495_v44 = vmul.f32 %v7491_v3, %v19972_v9  ;;  %17383 = vmatmul.mubr.msk.f32.vlgmr.msra.gmra.mxu0 %vm6078_vm4, %v7268_v4  ;;  %17392 = vmatprep.subr.mxu1 %v7227_v50  ;;  %v7499_v4 = vld [vmem:[#allocation17 + $0x48] sm:$0xff]  ;;  %v7636_v3 = vld [vmem:[#allocation17 + $0x60] sm:$0xff] }
 0xecb   :  { %17402 = vmatprep.subr.mxu0 %v7496_v62  ;;  %17393 = vmatpush3.msra.mxu1 %v7227_v50  ;;  %v7627_v50 = vsel %vm1240_vm2, %v20246_v2, %v20244_v33  ;;  %v7500_v33 = vld [vmem:[#allocation17 + $0x50] sm:$0xff]  ;;  %v7874_v2 = vsel %vm6682_vm6, %v20266_v37, %v20264_v32 }
 0xecc   :  { %17403 = vmatpush3.msra.mxu0 %v7496_v62  ;;  %v7620_v29 = vpop.permute.xlu1 %7619  ;;  %17394 = vmatprep.subr.mxu1 %v7226_v43  ;;  %v7608_v18 = vpop.permute.xlu0 %7607  ;;  %v7631_v38 = vmul.f32 %v7627_v50, %v19945_v42  ;;  %v8018_v50 = vld [vmem:[#allocation17 + $0xc0] sm:$0xff] }
 0xecd   :  { %17404 = vmatprep.subr.mxu0 %v7495_v44  ;;  %v7629_v47 = vsel %vm1240_vm2, %v7608_v18, %v7620_v29  ;;  %17385 = vmatprep.mubr.msk.f32.mxu0 %vm6078_vm4, %v7269_v56  ;;  %v7878_v56 = vmul.f32 %v7874_v2, %v19962_v28  ;;  %v8012_v29 = vsel %vm6805_vm5, %v20270_v1, %v20268_v17  ;;  %v7742_v18 = vld [vmem:[#allocation17 + $0x80] sm:$0xff] }
 0xece   :  { %v7633_v34 = vmul.f32 %v7629_v47, %v19945_v42  ;;  %17395 = vmatpush3.msra.mxu1 %v7226_v43  ;;  %17405 = vmatpush3.msra.mxu0 %v7495_v44  ;;  %v7501_v43 = vld [vmem:[#allocation17 + $0x58] sm:$0xff]  ;;  %v7637_v44 = vld [vmem:[#allocation17 + $0x68] sm:$0xff]  ;;  %v8150_v47 = vsel %vm6928_vm12, %v20274_v14, %v20272_v55 }
 0xecf   :  { %17386 = vmatmul.mubr.msk.f32.gmra.mxu0 %vm6078_vm4, %v7270_v63  ;;  %17397 = vmatmul.mubr.msk.f32.vlgmr.msra.gmra.mxu1 %vm6078_vm4, %v7231_v57  ;;  %v7639_v63 = vld [vmem:[#allocation17 + $0x78] sm:$0xff]  ;;  %v7743_v57 = vld [vmem:[#allocation17 + $0x88] sm:$0xff]  ;;  %v8154_v23 = vmul.f32 %v8150_v47, %v19966_v31 }
 0xed0   :  { %17406 = vmatprep.subr.mxu0 %v7494_v30  ;;  %17416 = vmatprep.subr.mxu1 %v7634_v26  ;;  %v20316_v20 = vpop.permute.xlu1 %8275  ;;  %v20318_v19 = vpop.permute.xlu0 %8263 }
 0xed1   :  { %17407 = vmatpush3.msra.mxu0 %v7494_v30  ;;  %17417 = vmatpush3.msra.mxu1 %v7634_v26  ;;  %v7880_v26 = vld [vmem:[#allocation17 + $0xa0] sm:$0xff] }
 0xed2   :  { %17408 = vmatprep.subr.mxu0 %v7493_v6  ;;  %17418 = vmatprep.subr.mxu1 %v7633_v34 }
 0xed3   :  { %17399 = vmatprep.mubr.msk.f32.mxu1 %vm6078_vm4, %v7232_v52  ;;  %17409 = vmatpush3.msra.mxu0 %v7493_v6  ;;  %v7881_v6 = vld [vmem:[#allocation17 + $0xa8] sm:$0xff]  ;;  %v8009_v52 = vsel %vm6805_vm5, %v20254_v27, %v20252_v13  ;;  %v7882_v27 = vld [vmem:[#allocation17 + $0xb0] sm:$0xff] }
 0xed4   :  { %17410 = vmatprep.mubr.msk.f32.mxu0 %vm6078_vm4, %v7498_v12  ;;  %17419 = vmatpush3.msra.mxu1 %v7633_v34  ;;  %v7864_v25 = vpop.permute.xlu1 %7863  ;;  %v7852_v5 = vpop.permute.xlu0 %7851  ;;  %v7745_v34 = vld [vmem:[#allocation17 + $0x98] sm:$0xff]  ;;  %v8013_v13 = vmul.f32 %v8009_v52, %v19981_v40  ;;  %v8148_v12 = vsel %vm6928_vm12, %v20238_v24, %v20236_v22 }
 0xed5   :  { %17400 = vmatmul.mubr.msk.f32.gmra.mxu1 %vm6078_vm4, %v7233_v51  ;;  %17411 = vmatmul.mubr.msk.f32.vlgmr.msra.gmra.mxu0 %vm6078_vm4, %v7499_v4  ;;  %v7873_v62 = vsel %vm6682_vm6, %v7852_v5, %v7864_v25  ;;  %v8288_v51 = vsel %vm7051_vm9, %v20278_v49, %v20276_v15  ;;  %v8019_v25 = vld [vmem:[#allocation17 + $0xc8] sm:$0xff]  ;;  %v8147_v5 = vsel %vm6928_vm12, %v20258_v11, %v20256_v58  ;;  %v8020_v11 = vld [vmem:[#allocation17 + $0xd0] sm:$0xff] }
 0xed6   :  { %17420 = vmatprep.subr.mxu1 %v7632_v16  ;;  %17430 = vmatprep.subr.mxu0 %v20133_v0  ;;  %v7877_v48 = vmul.f32 %v7873_v62, %v19962_v28  ;;  %v8152_v22 = vmul.f32 %v8148_v12, %v19966_v31  ;;  %v8292_v24 = vmul.f32 %v8288_v51, %v20029_v60  ;;  %v8156_v62 = vld [vmem:[#allocation17 + $0xe0] sm:$0xff] }
 0xed7   :  { %17421 = vmatpush3.msra.mxu1 %v7632_v16  ;;  %17431 = vmatpush3.msra.mxu0 %v20133_v0  ;;  %v7638_v0 = vld [vmem:[#allocation17 + $0x70] sm:$0xff]  ;;  %v7883_v16 = vld [vmem:[#allocation17 + $0xb8] sm:$0xff]  ;;  %v8151_v58 = vmul.f32 %v8147_v5, %v19966_v31 }
 0xed8   :  { %17422 = vmatprep.subr.mxu1 %v7631_v38  ;;  %17432 = vmatprep.subr.mxu0 %v20169_v53  ;;  %v8002_v32 = vpop.permute.xlu1 %8001  ;;  %v7990_v37 = vpop.permute.xlu0 %7989 }
 0xed9   :  { %17413 = vmatprep.mubr.msk.f32.mxu0 %vm6078_vm4, %v7500_v33  ;;  %17423 = vmatpush3.msra.mxu1 %v7631_v38  ;;  %v8286_v33 = vsel %vm7051_vm9, %v20318_v19, %v20316_v20  ;;  %v8294_v20 = vld [vmem:[#allocation17 + $0x100] sm:$0xff]  ;;  %v8159_v19 = vld [vmem:[#allocation17 + $0xf8] sm:$0xff] }
 0xeda   :  { %17424 = vmatprep.mubr.msk.f32.mxu1 %vm6078_vm4, %v7636_v3  ;;  %17433 = vmatpush3.msra.mxu0 %v20169_v53  ;;  %v8011_v53 = vsel %vm6805_vm5, %v7990_v37, %v8002_v32  ;;  %v8021_v3 = vld [vmem:[#allocation17 + $0xd8] sm:$0xff]  ;;  %v8295_v32 = vld [vmem:[#allocation17 + $0x108] sm:$0xff]  ;;  %v8296_v37 = vld [vmem:[#allocation17 + $0x110] sm:$0xff] }
 0xedb   :  { %17414 = vmatmul.mubr.msk.f32.gmra.mxu0 %vm6078_vm4, %v7501_v43  ;;  %17425 = vmatmul.mubr.msk.f32.vlgmr.msra.gmra.mxu1 %vm6078_vm4, %v7637_v44  ;;  %v8015_v7 = vmul.f32 %v8011_v53, %v19981_v40  ;;  %v8157_v43 = vld [vmem:[#allocation17 + $0xe8] sm:$0xff]  ;;  %v8158_v44 = vld [vmem:[#allocation17 + $0xf0] sm:$0xff] }
 0xedc   :  { %17434 = vmatprep.subr.mxu0 %v20071_v39  ;;  %17444 = vmatprep.subr.mxu1 %v7878_v56  ;;  %v8140_v17 = vpop.permute.xlu1 %8139  ;;  %v8128_v1 = vpop.permute.xlu0 %8127 }
 0xedd   :  { %17435 = vmatpush3.msra.mxu0 %v20071_v39  ;;  %17445 = vmatpush3.msra.mxu1 %v7878_v56  ;;  %v8016_v39 = vmul.f32 %v8012_v29, %v19981_v40  ;;  %v8149_v30 = vsel %vm6928_vm12, %v8128_v1, %v8140_v17  ;;  %v8290_v56 = vmul.f32 %v8286_v33, %v20029_v60 }
 0xede   :  { %17436 = vmatprep.subr.mxu0 %v20101_v35  ;;  %17446 = vmatprep.subr.mxu1 %v7877_v48  ;;  %v8153_v55 = vmul.f32 %v8149_v30, %v19966_v31 }
 0xedf   :  { %17427 = vmatprep.mubr.msk.f32.mxu1 %vm6078_vm4, %v7638_v0  ;;  %17437 = vmatpush3.msra.mxu0 %v20101_v35  ;;  %v7744_v35 = vld [vmem:[#allocation17 + $0x90] sm:$0xff]  ;;  %v8297_v0 = vld [vmem:[#allocation17 + $0x118] sm:$0xff] }
 0xee0   :  { %17438 = vmatprep.mubr.msk.f32.mxu0 %vm6078_vm4, %v7742_v18  ;;  %17447 = vmatpush3.msra.mxu1 %v7877_v48  ;;  %v8278_v14 = vpop.permute.xlu1 %8277  ;;  %v8266_v21 = vpop.permute.xlu0 %8265 }
 0xee1   :  { %17428 = vmatmul.mubr.msk.f32.gmra.mxu1 %vm6078_vm4, %v7639_v63  ;;  %17439 = vmatmul.mubr.msk.f32.vlgmr.msra.gmra.mxu0 %vm6078_vm4, %v7743_v57  ;;  %v8287_v4 = vsel %vm7051_vm9, %v8266_v21, %v8278_v14 }
 0xee2   :  { %17448 = vmatprep.subr.mxu1 %v7876_v59  ;;  %17458 = vmatprep.subr.mxu0 %v8016_v39  ;;  %v8291_v15 = vmul.f32 %v8287_v4, %v20029_v60 }
 0xee3   :  { %17449 = vmatpush3.msra.mxu1 %v7876_v59  ;;  %17459 = vmatpush3.msra.mxu0 %v8016_v39 }
 0xee4   :  { %17450 = vmatprep.subr.mxu1 %v7875_v36  ;;  %17460 = vmatprep.subr.mxu0 %v8015_v7  ;;  %v8274_v49 = vpop.permute.xlu1 %8273  ;;  %v8262_v38 = vpop.permute.xlu0 %8261 }
 0xee5   :  { %17441 = vmatprep.mubr.msk.f32.mxu0 %vm6078_vm4, %v7744_v35  ;;  %17451 = vmatpush3.msra.mxu1 %v7875_v36  ;;  %v8285_v2 = vsel %vm7051_vm9, %v8262_v38, %v8274_v49 }
 0xee6   :  { %17452 = vmatprep.mubr.msk.f32.mxu1 %vm6078_vm4, %v7880_v26  ;;  %17461 = vmatpush3.msra.mxu0 %v8015_v7  ;;  %v8289_v48 = vmul.f32 %v8285_v2, %v20029_v60 }
 0xee7   :  { %17442 = vmatmul.mubr.msk.f32.gmra.mxu0 %vm6078_vm4, %v7745_v34  ;;  %17453 = vmatmul.mubr.msk.f32.vlgmr.msra.gmra.mxu1 %vm6078_vm4, %v7881_v6 }
 0xee8   :  { %17462 = vmatprep.subr.mxu0 %v8014_v46  ;;  %17472 = vmatprep.subr.mxu1 %v8154_v23 }
 0xee9   :  { %17463 = vmatpush3.msra.mxu0 %v8014_v46  ;;  %17473 = vmatpush3.msra.mxu1 %v8154_v23 }
 0xeea   :  { %17464 = vmatprep.subr.mxu0 %v8013_v13  ;;  %17474 = vmatprep.subr.mxu1 %v8153_v55 }
 0xeeb   :  { %17455 = vmatprep.mubr.msk.f32.mxu1 %vm6078_vm4, %v7882_v27  ;;  %17465 = vmatpush3.msra.mxu0 %v8013_v13 }
 0xeec   :  { %17466 = vmatprep.mubr.msk.f32.mxu0 %vm6078_vm4, %v8018_v50  ;;  %17475 = vmatpush3.msra.mxu1 %v8153_v55 }
 0xeed   :  { %17456 = vmatmul.mubr.msk.f32.gmra.mxu1 %vm6078_vm4, %v7883_v16  ;;  %17467 = vmatmul.mubr.msk.f32.vlgmr.msra.gmra.mxu0 %vm6078_vm4, %v8019_v25 }
 0xeee   :  { %17476 = vmatprep.subr.mxu1 %v8152_v22  ;;  %17486 = vmatprep.subr.mxu0 %v8292_v24 }
 0xeef   :  { %17477 = vmatpush3.msra.mxu1 %v8152_v22  ;;  %17487 = vmatpush3.msra.mxu0 %v8292_v24 }
 0xef0   :  { %17478 = vmatprep.subr.mxu1 %v8151_v58  ;;  %17488 = vmatprep.subr.mxu0 %v8291_v15 }
 0xef1   :  { %17469 = vmatprep.mubr.msk.f32.mxu0 %vm6078_vm4, %v8020_v11  ;;  %17479 = vmatpush3.msra.mxu1 %v8151_v58 }
 0xef2   :  { %17480 = vmatprep.mubr.msk.f32.mxu1 %vm6078_vm4, %v8156_v62  ;;  %17489 = vmatpush3.msra.mxu0 %v8291_v15 }
 0xef3   :  { %17470 = vmatmul.mubr.msk.f32.gmra.mxu0 %vm6078_vm4, %v8021_v3  ;;  %17481 = vmatmul.mubr.msk.f32.vlgmr.msra.gmra.mxu1 %vm6078_vm4, %v8157_v43 }
 0xef4   :  { %17490 = vmatprep.subr.mxu0 %v8290_v56  ;;  %17483 = vmatprep.mubr.msk.f32.mxu1 %vm6078_vm4, %v8158_v44 }
 0xef5   :  { %17491 = vmatpush3.msra.mxu0 %v8290_v56  ;;  %17494 = vmatprep.mubr.msk.f32.mxu0 %vm6078_vm4, %v8294_v20 }
 0xef6   :  { %17492 = vmatprep.subr.mxu0 %v8289_v48 }
 0xef7   :  { %17493 = vmatpush3.msra.mxu0 %v8289_v48  ;;  %17484 = vmatmul.mubr.msk.f32.gmra.mxu1 %vm6078_vm4, %v8159_v19 }
 0xef8   :  { %17495 = vmatmul.mubr.msk.f32.vlgmr.msra.gmra.mxu0 %vm6078_vm4, %v8295_v32  ;;  %v8411_v32 = vpop.permute.xlu1 %8410 }
 0xef9   :  { %17497 = vmatprep.mubr.msk.f32.mxu0 %vm6078_vm4, %v8296_v37  ;;  %v8406_v37 = vpop.permute.xlu0 %8405 }
 0xefc   :  { %17498 = vmatmul.mubr.msk.f32.gmra.mxu0 %vm6078_vm4, %v8297_v0 }
 0xf8a   :  { %v17384_v10 = vpop.f32.mrf.mxu0 }
 0xf8c   :  { %v7349_v29 = vpop.f32.mrf.mxu0 }
 0xf8f   :  { %v17387_v53 = vpop.f32.mrf.mxu0  ;;  %v17398_v18 = vpop.f32.mrf.mxu1 }
 0xf90   :  { %v7452_v23 = vadd.f32 %v17398_v18, %v17384_v10 }
 0xf91   :  { %v7359_v63 = vpop.f32.mrf.mxu0  ;;  %v7446_v57 = vpop.f32.mrf.mxu1 }
 0xf92   :  { %v7447_v55 = vadd.f32 %v7446_v57, %v7349_v29 }
 0xf95   :  { %v17401_v61 = vpop.f32.mrf.mxu1  ;;  %v17412_v59 = vpop.f32.mrf.mxu0 }
 0xf96   :  { %v7600_v14 = vadd.f32 %v17412_v59, %v7452_v23  ;;  %v7462_v5 = vadd.f32 %v17401_v61, %v17387_v53 }
 0xf97   :  { %v7456_v39 = vpop.f32.mrf.mxu1  ;;  %v7580_v7 = vpop.f32.mrf.mxu0 }
 0xf98   :  { %v7599_v27 = vadd.f32 %v7580_v7, %v7447_v55  ;;  %v7457_v50 = vadd.f32 %v7456_v39, %v7359_v63 }
 0xf9b   :  { %v17415_v17 = vpop.f32.mrf.mxu0  ;;  %v17426_v1 = vpop.f32.mrf.mxu1 }
 0xf9c   :  { %v7738_v12 = vadd.f32 %v17426_v1, %v7600_v14  ;;  %v7602_v58 = vadd.f32 %v17415_v17, %v7462_v5 }
 0xf9d   :  { %v7590_v36 = vpop.f32.mrf.mxu0  ;;  %v7718_v35 = vpop.f32.mrf.mxu1 }
 0xf9e   :  { %v7737_v16 = vadd.f32 %v7718_v35, %v7599_v27  ;;  %v7601_v22 = vadd.f32 %v7590_v36, %v7457_v50  ;;  %v8504_v27 = vld [vmem:[#allocation50 + $0x8] sm:$0xff] }
 0xfa1   :  { %v17429_v41 = vpop.f32.mrf.mxu1  ;;  %v17440_v47 = vpop.f32.mrf.mxu0 }
 0xfa2   :  { %v7844_v25 = vadd.f32 %v17440_v47, %v7738_v12  ;;  %v7740_v43 = vadd.f32 %v17429_v41, %v7602_v58  ;;  %v8503_v12 = vld [vmem:[#allocation50] sm:$0xff] }
 0xfa3   :  { %v7728_v30 = vpop.f32.mrf.mxu1  ;;  %v7824_v26 = vpop.f32.mrf.mxu0 }
 0xfa4   :  { %v7843_v24 = vadd.f32 %v7824_v26, %v7737_v16  ;;  %v7739_v11 = vadd.f32 %v7728_v30, %v7601_v22  ;;  %v8416_v26 = vpop.permute.xlu0 %8415 }
 0xfa7   :  { %v17443_v34 = vpop.f32.mrf.mxu0  ;;  %v17454_v6 = vpop.f32.mrf.mxu1 }
 0xfa8   :  { %v7982_v15 = vadd.f32 %v17454_v6, %v7844_v25  ;;  %v7846_v0 = vadd.f32 %v17443_v34, %v7740_v43  ;;  %v8608_v43 = vld [vmem:[#allocation27] sm:$0xff] }
 0xfa9   :  { %v7834_v52 = vpop.f32.mrf.mxu0  ;;  %v7962_v46 = vpop.f32.mrf.mxu1 }
 0xfaa   :  { %v7981_v33 = vadd.f32 %v7962_v46, %v7843_v24  ;;  %v7845_v44 = vadd.f32 %v7834_v52, %v7739_v11  ;;  %v8421_v46 = vpop.permute.xlu1 %8420 }
 0xfad   :  { %v17457_v21 = vpop.f32.mrf.mxu1  ;;  %v17468_v13 = vpop.f32.mrf.mxu0 }
 0xfae   :  { %v8120_v2 = vadd.f32 %v17468_v13, %v7982_v15  ;;  %v7984_v57 = vadd.f32 %v17457_v21, %v7846_v0  ;;  %v8506_v21 = vld [vmem:[#allocation50 + $0x18] sm:$0xff]  ;;  %v8505_v13 = vld [vmem:[#allocation50 + $0x10] sm:$0xff] }
 0xfaf   :  { %v7972_v51 = vpop.f32.mrf.mxu1  ;;  %v8100_v4 = vpop.f32.mrf.mxu0  ;;  %17500 = vmatprep.subr.mxu1 %v8506_v21 }
 0xfb0   :  { %v8119_v56 = vadd.f32 %v8100_v4, %v7981_v33  ;;  %v7983_v10 = vadd.f32 %v7972_v51, %v7845_v44  ;;  %17501 = vmatpush3.msra.mxu1 %v8506_v21  ;;  %v8611_v44 = vld [vmem:[#allocation27 + $0x18] sm:$0xff]  ;;  %v8604_v21 = vld [vmem:[#allocation26] sm:$0xff] }
 0xfb1   :  { %17502 = vmatprep.subr.mxu1 %v8505_v13  ;;  %17522 = vmatprep.mubr.msk.f32.mxu0 %vm6078_vm4, %v8604_v21 }
 0xfb2   :  { %17503 = vmatpush3.msra.mxu1 %v8505_v13 }
 0xfb3   :  { %v17471_v49 = vpop.f32.mrf.mxu0  ;;  %v17482_v38 = vpop.f32.mrf.mxu1  ;;  %17504 = vmatprep.subr.mxu1 %v8504_v27 }
 0xfb4   :  { %v8258_v48 = vadd.f32 %v17482_v38, %v8120_v2  ;;  %v8122_v17 = vadd.f32 %v17471_v49, %v7984_v57  ;;  %17505 = vmatpush3.msra.mxu1 %v8504_v27 }
 0xfb5   :  { %v8110_v62 = vpop.f32.mrf.mxu0  ;;  %v8238_v3 = vpop.f32.mrf.mxu1  ;;  %17506 = vmatprep.subr.mxu1 %v8503_v12 }
 0xfb6   :  { %v8257_v29 = vadd.f32 %v8238_v3, %v8119_v56  ;;  %v8121_v61 = vadd.f32 %v8110_v62, %v7983_v10  ;;  %17507 = vmatpush3.msra.mxu1 %v8503_v12  ;;  %v8609_v3 = vld [vmem:[#allocation27 + $0x8] sm:$0xff]  ;;  %v8610_v56 = vld [vmem:[#allocation27 + $0x10] sm:$0xff] }
 0xfb7   :  { %v17485_v20 = vpop.f32.mrf.mxu1 }
 0xfb8   :  { %v17496_v19 = vpop.f32.mrf.mxu0  ;;  %v8260_v47 = vadd.f32 %v17485_v20, %v8122_v17  ;;  %v20462_v20 = vld [vmem:[#allocation3] sm:$0xff] }
 0xfb9   :  { %v8396_v53 = vadd.f32 %v17496_v19, %v8258_v48  ;;  %v8248_v18 = vpop.f32.mrf.mxu1  ;;  %v20456_v48 = vld [vmem:[#allocation3 + $0x8] sm:$0xff]  ;;  %v8733_v19 = vld [vmem:[#allocation51] sm:$0xff] }
 0xfba   :  { %v8376_v63 = vpop.f32.mrf.mxu0  ;;  %v8259_v36 = vadd.f32 %v8248_v18, %v8121_v61  ;;  %17528 = vmatprep.subr.mxu1 %v8733_v19 }
 0xfbb   :  { %v8424_v59 = vadd.f32 %v8411_v32, %v8396_v53  ;;  %v8395_v39 = vadd.f32 %v8376_v63, %v8257_v29 }
 0xfbc   :  { %v17499_v7 = vpop.f32.mrf.mxu0 }
 0xfbd   :  { %v8428_v1 = vmax.f32 %v8424_v59, 0.0  ;;  %v8423_v35 = vadd.f32 %v8406_v37, %v8395_v39  ;;  %v8398_v6 = vadd.f32 %v17499_v7, %v8260_v47 }
 0xfbe   :  { %v8386_v41 = vpop.f32.mrf.mxu0 }
 0xfbf   :  { %v8397_v30 = vadd.f32 %v8386_v41, %v8259_v36  ;;  %8449 = vrot.lane.b32.xlu1 %v8428_v1, %s18804_s11  ;;  %8437 = vrot.lane.b32.xlu0 %v8428_v1, %s18787_s22  ;;  %v8427_v34 = vmax.f32 %v8423_v35, 0.0  ;;  %v8426_v23 = vadd.f32 %v8421_v46, %v8398_v6 }
 0xfc1   :  { %v8425_v52 = vadd.f32 %v8416_v26, %v8397_v30  ;;  %v8430_v14 = vmax.f32 %v8426_v23, 0.0 }
 0xfc3   :  { %8447 = vrot.lane.b32.xlu1 %v8427_v34, %s18804_s11  ;;  %8435 = vrot.lane.b32.xlu0 %v8427_v34, %s18787_s22  ;;  %v8429_v55 = vmax.f32 %v8425_v52, 0.0 }
 0xfc7   :  { %8451 = vrot.lane.b32.xlu1 %v8429_v55, %s18804_s11  ;;  %8439 = vrot.lane.b32.xlu0 %v8429_v55, %s18787_s22 }
 0xfcb   :  { %8453 = vrot.lane.b32.xlu1 %v8430_v14, %s18804_s11  ;;  %8441 = vrot.lane.b32.xlu0 %v8430_v14, %s18787_s22 }
0x1031   :  { %v8450_v51 = vpop.permute.xlu1 %8449  ;;  %v8438_v4 = vpop.permute.xlu0 %8437 }
0x1032   :  { %v8460_v50 = vsel %vm6682_vm6, %v8438_v4, %v8450_v51 }
0x1033   :  { %v20429_v16 = vmax.f32 %v8428_v1, %v8460_v50 }
0x1035   :  { %v8448_v25 = vpop.permute.xlu1 %8447  ;;  %8485 = vrot.lane.b32.xlu1 %v20429_v16, %s18807_s15  ;;  %8473 = vrot.lane.b32.xlu0 %v20429_v16, %s18808_s6  ;;  %v8436_v5 = vpop.permute.xlu0 %8435 }
0x1036   :  { %v8459_v22 = vsel %vm6682_vm6, %v8436_v5, %v8448_v25  ;;  %v8606_v5 = vld [vmem:[#allocation26 + $0x10] sm:$0xff] }
0x1037   :  { %v20436_v24 = vmax.f32 %v8427_v34, %v8459_v22 }
0x1039   :  { %v8452_v15 = vpop.permute.xlu1 %8451  ;;  %8483 = vrot.lane.b32.xlu1 %v20436_v24, %s18807_s15  ;;  %8471 = vrot.lane.b32.xlu0 %v20436_v24, %s18808_s6  ;;  %v8440_v49 = vpop.permute.xlu0 %8439 }
0x103a   :  { %v8461_v38 = vsel %vm6682_vm6, %v8440_v49, %v8452_v15 }
0x103b   :  { %v20443_v58 = vmax.f32 %v8429_v55, %v8461_v38 }
0x103d   :  { %v8454_v11 = vpop.permute.xlu1 %8453  ;;  %8487 = vrot.lane.b32.xlu1 %v20443_v58, %s18807_s15  ;;  %8475 = vrot.lane.b32.xlu0 %v20443_v58, %s18808_s6  ;;  %v8442_v33 = vpop.permute.xlu0 %8441 }
0x103e   :  { %v8462_v2 = vsel %vm6682_vm6, %v8442_v33, %v8454_v11 }
0x103f   :  { %v20450_v62 = vmax.f32 %v8430_v14, %v8462_v2 }
0x1041   :  { %8489 = vrot.lane.b32.xlu1 %v20450_v62, %s18807_s15  ;;  %8477 = vrot.lane.b32.xlu0 %v20450_v62, %s18808_s6 }
0x1045   :  { %8619 = vperm.xlu1 %17997, %v8609_v3   ;;  %8614 = vperm.xlu0 %17976, %v8608_v43  }
0x1049   :  { %8629 = vperm.xlu1 %17997, %v8611_v44   ;;  %8624 = vperm.xlu0 %17976, %v8610_v56  }
0x104d   :  { %8917 = vrot.lane.b32.xlu1 %v20456_v48, %s18775_s23  ;;  %8899 = vrot.lane.b32.xlu0 %v20456_v48, %s18798_s2 }
0x1051   :  { %8915 = vrot.lane.b32.xlu1 %v20462_v20, %s18775_s23  ;;  %8897 = vrot.lane.b32.xlu0 %v20462_v20, %s18798_s2 }
0x1055   :  { %8867 = vrot.lane.b32.xlu1 %v20456_v48, %s18799_s7  ;;  %8849 = vrot.lane.b32.xlu0 %v20456_v48, %s18800_s0 }
0x1059   :  { %8865 = vrot.lane.b32.xlu1 %v20462_v20, %s18799_s7  ;;  %8847 = vrot.lane.b32.xlu0 %v20462_v20, %s18800_s0 }
0x105d   :  { %9131 = vrot.lane.b32.xlu1 %v20456_v48, %s18801_s10  ;;  %9113 = vrot.lane.b32.xlu0 %v20456_v48, %s18802_s5 }
0x1061   :  { %9129 = vrot.lane.b32.xlu1 %v20462_v20, %s18801_s10  ;;  %9111 = vrot.lane.b32.xlu0 %v20462_v20, %s18802_s5 }
0x1065   :  { %9265 = vrot.lane.b32.xlu1 %v20456_v48, %s18786_s18  ;;  %9247 = vrot.lane.b32.xlu0 %v20456_v48, %s18803_s20 }
0x1069   :  { %9263 = vrot.lane.b32.xlu1 %v20462_v20, %s18786_s18  ;;  %9245 = vrot.lane.b32.xlu0 %v20462_v20, %s18803_s20 }
0x106d   :  { %9485 = vrot.lane.b32.xlu1 %v20456_v48, %s18804_s11  ;;  %9467 = vrot.lane.b32.xlu0 %v20456_v48, %s18787_s22 }
0x1071   :  { %9483 = vrot.lane.b32.xlu1 %v20462_v20, %s18804_s11  ;;  %9465 = vrot.lane.b32.xlu0 %v20462_v20, %s18787_s22 }
0x1075   :  { %9619 = vrot.lane.b32.xlu1 %v20456_v48, %s18805_s3  ;;  %9601 = vrot.lane.b32.xlu0 %v20456_v48, %s18806_s19 }
0x1079   :  { %9617 = vrot.lane.b32.xlu1 %v20462_v20, %s18805_s3  ;;  %9599 = vrot.lane.b32.xlu0 %v20462_v20, %s18806_s19 }
0x107d   :  { %9753 = vrot.lane.b32.xlu1 %v20456_v48, %s18807_s15  ;;  %9735 = vrot.lane.b32.xlu0 %v20456_v48, %s18808_s6 }
0x1081   :  { %9751 = vrot.lane.b32.xlu1 %v20462_v20, %s18807_s15  ;;  %9733 = vrot.lane.b32.xlu0 %v20462_v20, %s18808_s6 }
0x1085   :  { %9887 = vrot.lane.b32.xlu1 %v20456_v48, %s18809_s29  ;;  %9869 = vrot.lane.b32.xlu0 %v20456_v48, %s18810_s12 }
0x10a7   :  { %v8486_v32 = vpop.permute.xlu1 %8485  ;;  %v8474_v37 = vpop.permute.xlu0 %8473 }
0x10a8   :  { %v8496_v0 = vsel %vm6928_vm12, %v8474_v37, %v8486_v32 }
0x10a9   :  { %v8500_v63 = vmax.f32 %v20429_v16, %v8496_v0  ;;  %v8605_v16 = vld [vmem:[#allocation26 + $0x8] sm:$0xff] }
0x10ab   :  { %v8484_v10 = vpop.permute.xlu1 %8483  ;;  %v8472_v29 = vpop.permute.xlu0 %8471 }
0x10ac   :  { %v8495_v53 = vsel %vm6928_vm12, %v8472_v29, %v8484_v10 }
0x10ad   :  { %v8499_v18 = vmax.f32 %v20436_v24, %v8495_v53  ;;  %v8607_v24 = vld [vmem:[#allocation26 + $0x18] sm:$0xff] }
0x10af   :  { %v8488_v57 = vpop.permute.xlu1 %8487  ;;  %17508 = vmatprep.mubr.msk.f32.mxu1 %vm6078_vm4, %v8499_v18  ;;  %v8476_v61 = vpop.permute.xlu0 %8475 }
0x10b0   :  { %v8497_v59 = vsel %vm6928_vm12, %v8476_v61, %v8488_v57  ;;  %17509 = vmatmul.mubr.msk.f32.vlgmr.msra.gmra.mxu1 %vm6078_vm4, %v8500_v63 }
0x10b1   :  { %v8501_v39 = vmax.f32 %v20443_v58, %v8497_v59  ;;  %17529 = vmatpush3.msra.mxu1 %v8733_v19 }
0x10b3   :  { %v8490_v7 = vpop.permute.xlu1 %8489  ;;  %17511 = vmatprep.mubr.msk.f32.mxu1 %vm6078_vm4, %v8501_v39  ;;  %v8478_v17 = vpop.permute.xlu0 %8477 }
0x10b4   :  { %v8498_v1 = vsel %vm6928_vm12, %v8478_v17, %v8490_v7 }
0x10b5   :  { %v8502_v36 = vmax.f32 %v20450_v62, %v8498_v1  ;;  %v8938_v1 = vld [vmem:[#allocation29 + $0x10] sm:$0xff] }
0x10b7   :  { %17512 = vmatmul.mubr.msk.f32.gmra.mxu1 %vm6078_vm4, %v8502_v36 }
0x10c0   :  { %v8620_v35 = vpop.permute.xlu1 %8619  ;;  %v8615_v41 = vpop.permute.xlu0 %8614 }
0x10c4   :  { %v8630_v47 = vpop.permute.xlu1 %8629  ;;  %v8625_v30 = vpop.permute.xlu0 %8624 }
0x10c8   :  { %v8918_v26 = vpop.permute.xlu1 %8917  ;;  %v8900_v34 = vpop.permute.xlu0 %8899 }
0x10c9   :  { %v8930_v4 = vsel %vm730_vm11, %v8900_v34, %v8918_v26 }
0x10ca   :  { %v8936_v25 = vmul.f32 %v8930_v4, %v19939_v8 }
0x10cc   :  { %v8916_v6 = vpop.permute.xlu1 %8915  ;;  %v8898_v52 = vpop.permute.xlu0 %8897 }
0x10cd   :  { %v8929_v50 = vsel %vm730_vm11, %v8898_v52, %v8916_v6 }
0x10ce   :  { %v8935_v22 = vmul.f32 %v8929_v50, %v19939_v8 }
0x10d0   :  { %v8868_v46 = vpop.permute.xlu1 %8867  ;;  %v8850_v23 = vpop.permute.xlu0 %8849 }
0x10d1   :  { %v8880_v55 = vsel %vm6095_vm8, %v8850_v23, %v8868_v46 }
0x10d2   :  { %v8886_v14 = vmul.f32 %v8880_v55, %v19949_v54 }
0x10d4   :  { %17551 = vmatprep.subr.mxu1 %v8886_v14  ;;  %v8866_v49 = vpop.permute.xlu1 %8865  ;;  %v8848_v38 = vpop.permute.xlu0 %8847 }
0x10d5   :  { %v8879_v62 = vsel %vm6095_vm8, %v8848_v38, %v8866_v49 }
0x10d6   :  { %v8885_v32 = vmul.f32 %v8879_v62, %v19949_v54 }
0x10d8   :  { %v20606_v18 = vpop.permute.xlu1 %9131  ;;  %v20608_v63 = vpop.permute.xlu0 %9113 }
0x10dc   :  { %v20614_v57 = vpop.permute.xlu1 %9129  ;;  %v20616_v61 = vpop.permute.xlu0 %9111 }
0x10e0   :  { %v20626_v59 = vpop.permute.xlu1 %9265  ;;  %v20628_v39 = vpop.permute.xlu0 %9247 }
0x10e4   :  { %v20634_v7 = vpop.permute.xlu1 %9263  ;;  %v20636_v17 = vpop.permute.xlu0 %9245 }
0x10e8   :  { %v20647_v36 = vpop.permute.xlu1 %9485 }
0x1170   :  { %v17510_v13 = vpop.f32.mrf.mxu1 }
0x1172   :  { %v8585_v27 = vpop.f32.mrf.mxu1 }
0x1177   :  { %v17513_v12 = vpop.f32.mrf.mxu1 }
0x1178   :  { %17514 = vmatprep.subr.mxu0 %v17513_v12 }
0x1179   :  { %v8595_v51 = vpop.f32.mrf.mxu1  ;;  %17515 = vmatpush3.msra.mxu0 %v17513_v12 }
0x117a   :  { %17516 = vmatprep.subr.mxu0 %v8595_v51 }
0x117b   :  { %17517 = vmatpush3.msra.mxu0 %v8595_v51 }
0x117c   :  { %17518 = vmatprep.subr.mxu0 %v17510_v13 }
0x117d   :  { %17519 = vmatpush3.msra.mxu0 %v17510_v13 }
0x117e   :  { %17520 = vmatprep.subr.mxu0 %v8585_v27 }
0x117f   :  { %17521 = vmatpush3.msra.mxu0 %v8585_v27 }
0x1180   :  { %17523 = vmatmul.mubr.msk.f32.vlgmr.msra.gmra.mxu0 %vm6078_vm4, %v8605_v16  ;;  %17536 = vmatprep.subr.mxu0 %v8936_v25 }
0x1181   :  { %17537 = vmatpush3.msra.mxu0 %v8936_v25  ;;  %17525 = vmatprep.mubr.msk.f32.mxu0 %vm6078_vm4, %v8606_v5 }
0x1182   :  { %17538 = vmatprep.subr.mxu0 %v8935_v22 }
0x1183   :  { %17539 = vmatpush3.msra.mxu0 %v8935_v22 }
0x1184   :  { %17526 = vmatmul.mubr.msk.f32.gmra.mxu0 %vm6078_vm4, %v8607_v24  ;;  %v9993_v24 = vld [vmem:[#allocation30] sm:$0xff] }
0x1185   :  { %17548 = vmatprep.mubr.msk.f32.mxu0 %vm8940_vm3, %v8938_v1 }
0x1240   :  { %v17524_v15 = vpop.f32.mrf.mxu0 }
0x1241   :  { %v8716_v58 = vadd.f32 %v17524_v15, %v8620_v35  ;;  %v20649_v35 = vpop.permute.xlu0 %9467  ;;  %v9994_v15 = vld [vmem:[#allocation30 + $0x8] sm:$0xff] }
0x1242   :  { %v8710_v11 = vpop.f32.mrf.mxu0 }
0x1243   :  { %v8711_v33 = vadd.f32 %v8710_v11, %v8615_v41  ;;  %v8730_v43 = vmax.f32 %v8716_v58, 0.0 }
0x1244   :  { %v17527_v2 = vpop.f32.mrf.mxu0 }
0x1245   :  { %v8729_v3 = vmax.f32 %v8711_v33, 0.0  ;;  %v8726_v44 = vadd.f32 %v17527_v2, %v8630_v47  ;;  %v8887_v47 = vld [vmem:[#allocation29] sm:$0xff]  ;;  %v20659_v26 = vpop.permute.xlu0 %9465 }
0x1246   :  { %v8720_v56 = vpop.f32.mrf.mxu0 }
0x1247   :  { %v8721_v19 = vadd.f32 %v8720_v56, %v8625_v30  ;;  %17530 = vmatprep.mubr.msk.f32.mxu1 %vm2378_vm14, %v8729_v3  ;;  %v8732_v0 = vmax.f32 %v8726_v44, 0.0  ;;  %v20657_v30 = vpop.permute.xlu1 %9483 }
0x1248   :  { %17531 = vmatmul.mubr.msk.f32.vlgmr.msra.gmra.mxu1 %vm2378_vm14, %v8730_v43 }
0x1249   :  { %v8731_v37 = vmax.f32 %v8721_v19, 0.0  ;;  %17552 = vmatpush3.msra.mxu1 %v8886_v14  ;;  %v20672_v6 = vpop.permute.xlu0 %9601 }
0x124a   :  { %17553 = vmatprep.subr.mxu1 %v8885_v32 }
0x124b   :  { %17554 = vmatpush3.msra.mxu1 %v8885_v32  ;;  %17533 = vmatprep.mubr.msk.f32.mxu1 %vm2378_vm14, %v8731_v37  ;;  %v20670_v34 = vpop.permute.xlu1 %9619 }
0x124c   :  { %17534 = vmatmul.mubr.msk.f32.gmra.mxu1 %vm2378_vm14, %v8732_v0 }
0x124d   :  { %17563 = vmatprep.mubr.msk.f32.mxu1 %vm8940_vm3, %v8887_v47  ;;  %v20680_v46 = vpop.permute.xlu0 %9599 }
0x124f   :  { %v20678_v52 = vpop.permute.xlu1 %9617 }
0x1251   :  { %v20692_v55 = vpop.permute.xlu0 %9735 }
0x1252   :  { %22273 = vst [vmem:[#allocation135_spill] sm:$0xff] %v20692_v55 }
0x1253   :  { %v20690_v23 = vpop.permute.xlu1 %9753 }
0x1254   :  { %22272 = vst [vmem:[#allocation134_spill] sm:$0xff] %v20690_v23 }
0x1255   :  { %v20700_v21 = vpop.permute.xlu0 %9733 }
0x1256   :  { %22275 = vst [vmem:[#allocation137_spill] sm:$0xff] %v20700_v21 }
0x1257   :  { %v20698_v14 = vpop.permute.xlu1 %9751 }
0x1258   :  { %22274 = vst [vmem:[#allocation136_spill] sm:$0xff] %v20698_v14 }
0x1259   :  { %v20712_v27 = vpop.permute.xlu0 %9869 }
0x125a   :  { %22277 = vst [vmem:[#allocation139_spill] sm:$0xff] %v20712_v27 }
0x125b   :  { %v20710_v13 = vpop.permute.xlu1 %9887 }
0x125c   :  { %22276 = vst [vmem:[#allocation138_spill] sm:$0xff] %v20710_v13 }
0x1308   :  { %v20548_v10 = vpop.f32.mrf.mxu1 }
0x1309   :  { %8909 = vrot.lane.b32.xlu1 %v20548_v10, %s18775_s23  ;;  %8891 = vrot.lane.b32.xlu0 %v20548_v10, %s18798_s2 }
0x130a   :  { %v20574_v29 = vpop.f32.mrf.mxu1 }
0x130c   :  { %v20600_v53 = vpop.f32.mrf.mxu1 }
0x130d   :  { %8859 = vrot.lane.b32.xlu1 %v20548_v10, %s18799_s7  ;;  %8841 = vrot.lane.b32.xlu0 %v20548_v10, %s18800_s0 }
0x130e   :  { %v20651_v41 = vpop.f32.mrf.mxu1 }
0x1311   :  { %9123 = vrot.lane.b32.xlu1 %v20548_v10, %s18801_s10  ;;  %9105 = vrot.lane.b32.xlu0 %v20548_v10, %s18802_s5 }
0x1315   :  { %9257 = vrot.lane.b32.xlu1 %v20548_v10, %s18786_s18  ;;  %9239 = vrot.lane.b32.xlu0 %v20548_v10, %s18803_s20 }
0x1319   :  { %9477 = vrot.lane.b32.xlu1 %v20548_v10, %s18804_s11  ;;  %9459 = vrot.lane.b32.xlu0 %v20548_v10, %s18787_s22 }
0x131d   :  { %9611 = vrot.lane.b32.xlu1 %v20548_v10, %s18805_s3  ;;  %9593 = vrot.lane.b32.xlu0 %v20548_v10, %s18806_s19 }
0x1321   :  { %8907 = vrot.lane.b32.xlu1 %v20574_v29, %s18775_s23  ;;  %8889 = vrot.lane.b32.xlu0 %v20574_v29, %s18798_s2 }
0x1325   :  { %8857 = vrot.lane.b32.xlu1 %v20574_v29, %s18799_s7  ;;  %8839 = vrot.lane.b32.xlu0 %v20574_v29, %s18800_s0 }
0x1329   :  { %9121 = vrot.lane.b32.xlu1 %v20574_v29, %s18801_s10  ;;  %9103 = vrot.lane.b32.xlu0 %v20574_v29, %s18802_s5 }
0x132d   :  { %9255 = vrot.lane.b32.xlu1 %v20574_v29, %s18786_s18  ;;  %9237 = vrot.lane.b32.xlu0 %v20574_v29, %s18803_s20 }
0x1331   :  { %9475 = vrot.lane.b32.xlu1 %v20574_v29, %s18804_s11  ;;  %9457 = vrot.lane.b32.xlu0 %v20574_v29, %s18787_s22 }
0x1335   :  { %9609 = vrot.lane.b32.xlu1 %v20574_v29, %s18805_s3  ;;  %9591 = vrot.lane.b32.xlu0 %v20574_v29, %s18806_s19 }
0x1339   :  { %8913 = vrot.lane.b32.xlu1 %v20600_v53, %s18775_s23  ;;  %8895 = vrot.lane.b32.xlu0 %v20600_v53, %s18798_s2 }
0x133d   :  { %8863 = vrot.lane.b32.xlu1 %v20600_v53, %s18799_s7  ;;  %8845 = vrot.lane.b32.xlu0 %v20600_v53, %s18800_s0 }
0x1341   :  { %9127 = vrot.lane.b32.xlu1 %v20600_v53, %s18801_s10  ;;  %9109 = vrot.lane.b32.xlu0 %v20600_v53, %s18802_s5 }
0x1345   :  { %9261 = vrot.lane.b32.xlu1 %v20600_v53, %s18786_s18  ;;  %9243 = vrot.lane.b32.xlu0 %v20600_v53, %s18803_s20 }
0x1349   :  { %9481 = vrot.lane.b32.xlu1 %v20600_v53, %s18804_s11  ;;  %9463 = vrot.lane.b32.xlu0 %v20600_v53, %s18787_s22 }
0x134d   :  { %9615 = vrot.lane.b32.xlu1 %v20600_v53, %s18805_s3  ;;  %9597 = vrot.lane.b32.xlu0 %v20600_v53, %s18806_s19 }
0x1351   :  { %9749 = vrot.lane.b32.xlu1 %v20600_v53, %s18807_s15  ;;  %9731 = vrot.lane.b32.xlu0 %v20600_v53, %s18808_s6 }
0x1355   :  { %8911 = vrot.lane.b32.xlu1 %v20651_v41, %s18775_s23  ;;  %8893 = vrot.lane.b32.xlu0 %v20651_v41, %s18798_s2 }
0x1359   :  { %9885 = vrot.lane.b32.xlu1 %v20462_v20, %s18809_s29  ;;  %9867 = vrot.lane.b32.xlu0 %v20462_v20, %s18810_s12 }
0x135d   :  { %8861 = vrot.lane.b32.xlu1 %v20651_v41, %s18799_s7  ;;  %8843 = vrot.lane.b32.xlu0 %v20651_v41, %s18800_s0 }
0x1361   :  { %9125 = vrot.lane.b32.xlu1 %v20651_v41, %s18801_s10  ;;  %9107 = vrot.lane.b32.xlu0 %v20651_v41, %s18802_s5 }
0x1365   :  { %9883 = vrot.lane.b32.xlu1 %v20600_v53, %s18809_s29  ;;  %9865 = vrot.lane.b32.xlu0 %v20600_v53, %s18810_s12 }
0x1369   :  { %9259 = vrot.lane.b32.xlu1 %v20651_v41, %s18786_s18  ;;  %9241 = vrot.lane.b32.xlu0 %v20651_v41, %s18803_s20 }
0x136d   :  { %9745 = vrot.lane.b32.xlu1 %v20548_v10, %s18807_s15  ;;  %9727 = vrot.lane.b32.xlu0 %v20548_v10, %s18808_s6 }
0x1371   :  { %9743 = vrot.lane.b32.xlu1 %v20574_v29, %s18807_s15  ;;  %9725 = vrot.lane.b32.xlu0 %v20574_v29, %s18808_s6 }
0x1375   :  { %9479 = vrot.lane.b32.xlu1 %v20651_v41, %s18804_s11  ;;  %9461 = vrot.lane.b32.xlu0 %v20651_v41, %s18787_s22 }
0x1379   :  { %9613 = vrot.lane.b32.xlu1 %v20651_v41, %s18805_s3  ;;  %9595 = vrot.lane.b32.xlu0 %v20651_v41, %s18806_s19 }
0x137b   :  { %v8910_v12 = vpop.permute.xlu1 %8909  ;;  %v8892_v51 = vpop.permute.xlu0 %8891 }
0x137d   :  { %9879 = vrot.lane.b32.xlu1 %v20548_v10, %s18809_s29  ;;  %9861 = vrot.lane.b32.xlu0 %v20548_v10, %s18810_s12 }
0x137f   :  { %v20722_v4 = vpop.permute.xlu1 %8859  ;;  %v20724_v50 = vpop.permute.xlu0 %8841 }
0x1381   :  { %9747 = vrot.lane.b32.xlu1 %v20651_v41, %s18807_s15  ;;  %9729 = vrot.lane.b32.xlu0 %v20651_v41, %s18808_s6 }
0x1383   :  { %v20730_v16 = vpop.permute.xlu1 %9123  ;;  %v20732_v25 = vpop.permute.xlu0 %9105 }
0x1385   :  { %9881 = vrot.lane.b32.xlu1 %v20651_v41, %s18809_s29  ;;  %9863 = vrot.lane.b32.xlu0 %v20651_v41, %s18810_s12 }
0x1387   :  { %v20738_v5 = vpop.permute.xlu1 %9257  ;;  %v20740_v22 = vpop.permute.xlu0 %9239 }
0x1389   :  { %9877 = vrot.lane.b32.xlu1 %v20574_v29, %s18809_s29  ;;  %9859 = vrot.lane.b32.xlu0 %v20574_v29, %s18810_s12 }
0x138b   :  { %v20746_v49 = vpop.permute.xlu1 %9477  ;;  %v20748_v38 = vpop.permute.xlu0 %9459 }
0x138d   :  { %9997 = vperm.xlu1 %17997, %v9993_v24   ;;  %10002 = vperm.xlu0 %17976, %v9994_v15  }
0x138f   :  { %v20750_v58 = vpop.permute.xlu1 %9611  ;;  %v20752_v11 = vpop.permute.xlu0 %9593 }
0x1390   :  { %22278 = vst [vmem:[#allocation140_spill] sm:$0xff] %v20750_v58  ;;  %22279 = vst [vmem:[#allocation141_spill] sm:$0xff] %v20752_v11 }
0x1393   :  { %v8908_v33 = vpop.permute.xlu1 %8907  ;;  %v8890_v2 = vpop.permute.xlu0 %8889 }
0x1394   :  { %v8925_v23 = vsel %vm730_vm11, %v8890_v2, %v8908_v33 }
0x1397   :  { %v20754_v62 = vpop.permute.xlu1 %8857  ;;  %v8840_v3 = vpop.permute.xlu0 %8839 }
0x139b   :  { %v20756_v43 = vpop.permute.xlu1 %9121  ;;  %v20758_v44 = vpop.permute.xlu0 %9103 }
0x139f   :  { %v20760_v56 = vpop.permute.xlu1 %9255  ;;  %v20762_v19 = vpop.permute.xlu0 %9237 }
0x13a3   :  { %v20764_v32 = vpop.permute.xlu1 %9475  ;;  %v20766_v37 = vpop.permute.xlu0 %9457 }
0x13a4   :  { %22280 = vst [vmem:[#allocation142_spill] sm:$0xff] %v20764_v32  ;;  %22281 = vst [vmem:[#allocation143_spill] sm:$0xff] %v20766_v37 }
0x13a7   :  { %v20768_v0 = vpop.permute.xlu1 %9609  ;;  %v20770_v1 = vpop.permute.xlu0 %9591 }
0x13a8   :  { %22282 = vst [vmem:[#allocation144_spill] sm:$0xff] %v20768_v0  ;;  %22283 = vst [vmem:[#allocation145_spill] sm:$0xff] %v20770_v1 }
0x13ab   :  { %v8914_v47 = vpop.permute.xlu1 %8913  ;;  %v8896_v24 = vpop.permute.xlu0 %8895 }
0x13ac   :  { %v8928_v15 = vsel %vm730_vm11, %v8896_v24, %v8914_v47 }
0x13ad   :  { %v8934_v45 = vmul.f32 %v8928_v15, %v19939_v8 }
0x13af   :  { %v8864_v60 = vpop.permute.xlu1 %8863  ;;  %17540 = vmatprep.subr.mxu0 %v8934_v45  ;;  %v8846_v27 = vpop.permute.xlu0 %8845 }
0x13b0   :  { %v8878_v13 = vsel %vm6095_vm8, %v8846_v27, %v8864_v60  ;;  %17541 = vmatpush3.msra.mxu0 %v8934_v45 }
0x13b1   :  { %v8884_v31 = vmul.f32 %v8878_v13, %v19949_v54 }
0x13b3   :  { %v9128_v21 = vpop.permute.xlu1 %9127  ;;  %17555 = vmatprep.subr.mxu1 %v8884_v31  ;;  %v9110_v14 = vpop.permute.xlu0 %9109 }
0x13b4   :  { %17556 = vmatpush3.msra.mxu1 %v8884_v31  ;;  %v8926_v31 = vsel %vm730_vm11, %v8892_v51, %v8910_v12  ;;  %v8931_v12 = vmul.f32 %v8925_v23, %v19939_v8  ;;  %v9143_v51 = vsel %vm6331_vm13, %v20616_v61, %v20614_v57  ;;  %v8875_v61 = vsel %vm6095_vm8, %v8840_v3, %v20754_v62 }
0x13b5   :  { %v8932_v37 = vmul.f32 %v8926_v31, %v19939_v8  ;;  %v9278_v62 = vsel %vm1240_vm2, %v20628_v39, %v20626_v59  ;;  %v8881_v3 = vmul.f32 %v8875_v61, %v19949_v54 }
0x13b7   :  { %v20776_v0 = vpop.permute.xlu1 %9261  ;;  %v20778_v1 = vpop.permute.xlu0 %9243 }
0x13bb   :  { %v20780_v11 = vpop.permute.xlu1 %9481  ;;  %v20782_v47 = vpop.permute.xlu0 %9463 }
0x13bf   :  { %v20784_v24 = vpop.permute.xlu1 %9615  ;;  %v20786_v15 = vpop.permute.xlu0 %9597 }
0x13c0   :  { %22284 = vst [vmem:[#allocation146_spill] sm:$0xff] %v20786_v15 }
0x13c3   :  { %v20788_v60 = vpop.permute.xlu1 %9749  ;;  %v20790_v45 = vpop.permute.xlu0 %9731 }
0x13c4   :  { %22285 = vst [vmem:[#allocation147_spill] sm:$0xff] %v20790_v45  ;;  %v9144_v45 = vsel %vm6331_vm13, %v20608_v63, %v20606_v18  ;;  %v8876_v18 = vsel %vm6095_vm8, %v20724_v50, %v20722_v4  ;;  %v9142_v63 = vsel %vm6331_vm13, %v9110_v14, %v9128_v21 }
0x13c5   :  { %v9150_v33 = vmul.f32 %v9144_v45, %v19972_v9  ;;  %v8882_v4 = vmul.f32 %v8876_v18, %v19949_v54  ;;  %v9148_v14 = vmul.f32 %v9142_v63, %v19972_v9  ;;  %v9273_v18 = vsel %vm1240_vm2, %v20762_v19, %v20760_v56 }
0x13c6   :  { %v9279_v56 = vmul.f32 %v9273_v18, %v19945_v42 }
0x13c7   :  { %v8912_v13 = vpop.permute.xlu1 %8911  ;;  %v8894_v27 = vpop.permute.xlu0 %8893 }
0x13c8   :  { %v8927_v58 = vsel %vm730_vm11, %v8894_v27, %v8912_v13  ;;  %v9152_v27 = vld [vmem:[#allocation29 + $0x20] sm:$0xff] }
0x13c9   :  { %v8933_v55 = vmul.f32 %v8927_v58, %v19939_v8  ;;  %v8939_v58 = vld [vmem:[#allocation29 + $0x18] sm:$0xff] }
0x13cb   :  { %v20797_v32 = vpop.permute.xlu1 %9885  ;;  %17542 = vmatprep.subr.mxu0 %v8933_v55  ;;  %v20799_v15 = vpop.permute.xlu0 %9867 }
0x13cc   :  { %17543 = vmatpush3.msra.mxu0 %v8933_v55  ;;  %v9149_v55 = vmul.f32 %v9143_v51, %v19972_v9 }
0x13cd   :  { %17544 = vmatprep.subr.mxu0 %v8932_v37 }
0x13ce   :  { %17545 = vmatpush3.msra.mxu0 %v8932_v37  ;;  %v9140_v37 = vsel %vm6331_vm13, %v20732_v25, %v20730_v16  ;;  %v8888_v16 = vld [vmem:[#allocation29 + $0x8] sm:$0xff]  ;;  %v9277_v25 = vsel %vm1240_vm2, %v20636_v17, %v20634_v7 }
0x13cf   :  { %v8862_v2 = vpop.permute.xlu1 %8861  ;;  %17546 = vmatprep.subr.mxu0 %v8931_v12  ;;  %v8844_v13 = vpop.permute.xlu0 %8843  ;;  %v9146_v51 = vmul.f32 %v9140_v37, %v19972_v9  ;;  %v9283_v7 = vmul.f32 %v9277_v25, %v19945_v42  ;;  %v9153_v17 = vld [vmem:[#allocation29 + $0x28] sm:$0xff]  ;;  %v22290_v25 = vld [vmem:[#allocation135_spill] sm:$0xff] }
0x13d0   :  { %v8877_v23 = vsel %vm6095_vm8, %v8844_v13, %v8862_v2  ;;  %17547 = vmatpush3.msra.mxu0 %v8931_v12  ;;  %v9139_v12 = vsel %vm6331_vm13, %v20758_v44, %v20756_v43  ;;  %v9276_v44 = vsel %vm1240_vm2, %v20778_v1, %v20776_v0  ;;  %v9274_v0 = vsel %vm1240_vm2, %v20740_v22, %v20738_v5 }
0x13d1   :  { %v8883_v57 = vmul.f32 %v8877_v23, %v19949_v54  ;;  %17549 = vmatmul.mubr.msk.f32.vlgmr.msra.gmra.mxu0 %vm8940_vm3, %v8939_v58  ;;  %17566 = vmatprep.subr.mxu0 %v9150_v33  ;;  %v9284_v58 = vmul.f32 %v9278_v62, %v19945_v42  ;;  %v9145_v43 = vmul.f32 %v9139_v12, %v19972_v9  ;;  %v22288_v62 = vld [vmem:[#allocation143_spill] sm:$0xff] }
0x13d2   :  { %17567 = vmatpush3.msra.mxu0 %v9150_v33  ;;  %17578 = vmatprep.mubr.msk.f32.mxu0 %vm8940_vm3, %v9152_v27  ;;  %v9282_v13 = vmul.f32 %v9276_v44, %v19945_v42  ;;  %v9280_v5 = vmul.f32 %v9274_v0, %v19945_v42  ;;  %v9498_v22 = vsel %vm6682_vm6, %v20649_v35, %v20647_v36  ;;  %v22295_v0 = vld [vmem:[#allocation144_spill] sm:$0xff] }
0x13d3   :  { %v9126_v21 = vpop.permute.xlu1 %9125  ;;  %17557 = vmatprep.subr.mxu1 %v8883_v57  ;;  %17568 = vmatprep.subr.mxu0 %v9149_v55  ;;  %v9108_v50 = vpop.permute.xlu0 %9107  ;;  %v9504_v36 = vmul.f32 %v9498_v22, %v19962_v28  ;;  %v9632_v35 = vsel %vm6805_vm5, %v20672_v6, %v20670_v34  ;;  %v9631_v34 = vsel %vm6805_vm5, %v20680_v46, %v20678_v52 }
0x13d4   :  { %v9141_v45 = vsel %vm6331_vm13, %v9108_v50, %v9126_v21  ;;  %17558 = vmatpush3.msra.mxu1 %v8883_v57  ;;  %17569 = vmatpush3.msra.mxu0 %v9149_v55  ;;  %v9287_v57 = vld [vmem:[#allocation29 + $0x38] sm:$0xff]  ;;  %v9638_v6 = vmul.f32 %v9632_v35, %v19981_v40  ;;  %v22286_v21 = vld [vmem:[#allocation146_spill] sm:$0xff]  ;;  %v9637_v37 = vmul.f32 %v9631_v34, %v19981_v40 }
0x13d5   :  { %v9147_v31 = vmul.f32 %v9141_v45, %v19972_v9  ;;  %17559 = vmatprep.subr.mxu1 %v8882_v4  ;;  %17570 = vmatprep.subr.mxu0 %v9148_v14  ;;  %v9630_v52 = vsel %vm6805_vm5, %v22286_v21, %v20784_v24  ;;  %v22287_v45 = vld [vmem:[#allocation142_spill] sm:$0xff]  ;;  %v9899_v34 = vsel %vm7051_vm9, %v20799_v15, %v20797_v32 }
0x13d6   :  { %17560 = vmatpush3.msra.mxu1 %v8882_v4  ;;  %17571 = vmatpush3.msra.mxu0 %v9148_v14  ;;  %v9372_v4 = vld [vmem:[#allocation29 + $0x40] sm:$0xff]  ;;  %v9373_v14 = vld [vmem:[#allocation29 + $0x48] sm:$0xff] }
0x13d7   :  { %v20838_v59 = vpop.permute.xlu1 %9883  ;;  %17561 = vmatprep.subr.mxu1 %v8881_v3  ;;  %17572 = vmatprep.subr.mxu0 %v9147_v31  ;;  %v20840_v39 = vpop.permute.xlu0 %9865 }
0x13d8   :  { %17562 = vmatpush3.msra.mxu1 %v8881_v3  ;;  %17573 = vmatpush3.msra.mxu0 %v9147_v31  ;;  %v9493_v3 = vsel %vm6682_vm6, %v22288_v62, %v22287_v45  ;;  %v9774_v45 = vld [vmem:[#allocation29 + $0x70] sm:$0xff]  ;;  %v9775_v62 = vld [vmem:[#allocation29 + $0x78] sm:$0xff] }
0x13d9   :  { %17564 = vmatmul.mubr.msk.f32.vlgmr.msra.gmra.mxu1 %vm8940_vm3, %v8888_v16  ;;  %17574 = vmatprep.subr.mxu0 %v9146_v51  ;;  %v22289_v16 = vld [vmem:[#allocation134_spill] sm:$0xff] }
0x13da   :  { %17581 = vmatprep.subr.mxu1 %v9284_v58  ;;  %17575 = vmatpush3.msra.mxu0 %v9146_v51  ;;  %v9766_v51 = vsel %vm6928_vm12, %v22290_v25, %v22289_v16 }
0x13db   :  { %17582 = vmatpush3.msra.mxu1 %v9284_v58  ;;  %v9260_v33 = vpop.permute.xlu1 %9259  ;;  %17576 = vmatprep.subr.mxu0 %v9145_v43  ;;  %v9242_v2 = vpop.permute.xlu0 %9241  ;;  %v22291_v58 = vld [vmem:[#allocation140_spill] sm:$0xff] }
0x13dc   :  { %17583 = vmatprep.subr.mxu1 %v9283_v7  ;;  %v9275_v27 = vsel %vm1240_vm2, %v9242_v2, %v9260_v33  ;;  %17577 = vmatpush3.msra.mxu0 %v9145_v43  ;;  %v22292_v43 = vld [vmem:[#allocation141_spill] sm:$0xff]  ;;  %v22293_v33 = vld [vmem:[#allocation136_spill] sm:$0xff] }
0x13dd   :  { %v9281_v1 = vmul.f32 %v9275_v27, %v19945_v42  ;;  %17584 = vmatpush3.msra.mxu1 %v9283_v7  ;;  %17579 = vmatmul.mubr.msk.f32.vlgmr.msra.gmra.mxu0 %vm8940_vm3, %v9153_v17  ;;  %v9628_v44 = vsel %vm6805_vm5, %v22292_v43, %v22291_v58  ;;  %v9499_v7 = vmul.f32 %v9493_v3, %v19962_v28  ;;  %v9506_v17 = vld [vmem:[#allocation29 + $0x50] sm:$0xff]  ;;  %v22294_v2 = vld [vmem:[#allocation137_spill] sm:$0xff]  ;;  %v9507_v27 = vld [vmem:[#allocation29 + $0x58] sm:$0xff] }
0x13de   :  { %17585 = vmatprep.subr.mxu1 %v9282_v13  ;;  %17596 = vmatprep.subr.mxu0 %v20456_v48  ;;  %v9908_v3 = vld [vmem:[#allocation29 + $0x80] sm:$0xff] }
0x13df   :  { %17586 = vmatpush3.msra.mxu1 %v9282_v13  ;;  %17597 = vmatpush3.msra.mxu0 %v20456_v48  ;;  %v20861_v63 = vpop.permute.xlu1 %9745  ;;  %v20863_v23 = vpop.permute.xlu0 %9727  ;;  %v9286_v48 = vld [vmem:[#allocation29 + $0x30] sm:$0xff]  ;;  %v9765_v13 = vsel %vm6928_vm12, %v22294_v2, %v22293_v33 }
0x13e0   :  { %17587 = vmatprep.subr.mxu1 %v9281_v1  ;;  %17598 = vmatprep.subr.mxu0 %v20462_v20  ;;  %v9762_v32 = vsel %vm6928_vm12, %v20863_v23, %v20861_v63 }
0x13e1   :  { %17588 = vmatpush3.msra.mxu1 %v9281_v1  ;;  %17599 = vmatpush3.msra.mxu0 %v20462_v20  ;;  %v9497_v20 = vsel %vm6682_vm6, %v20659_v26, %v20657_v30  ;;  %v9496_v30 = vsel %vm6682_vm6, %v20782_v47, %v20780_v11  ;;  %v22296_v1 = vld [vmem:[#allocation145_spill] sm:$0xff] }
0x13e2   :  { %17589 = vmatprep.subr.mxu1 %v9280_v5  ;;  %17600 = vmatprep.subr.mxu0 %v20600_v53  ;;  %v9502_v11 = vmul.f32 %v9496_v30, %v19962_v28  ;;  %v9627_v18 = vsel %vm6805_vm5, %v22296_v1, %v22295_v0 }
0x13e3   :  { %17590 = vmatpush3.msra.mxu1 %v9280_v5  ;;  %17601 = vmatpush3.msra.mxu0 %v20600_v53  ;;  %v20874_v19 = vpop.permute.xlu1 %9743  ;;  %v20876_v55 = vpop.permute.xlu0 %9725  ;;  %v9503_v53 = vmul.f32 %v9497_v20, %v19962_v28  ;;  %v22297_v5 = vld [vmem:[#allocation132_spill] sm:$0xff]  ;;  %v9633_v30 = vmul.f32 %v9627_v18, %v19981_v40 }
0x13e4   :  { %17591 = vmatprep.subr.mxu1 %v9279_v56  ;;  %17602 = vmatprep.subr.mxu0 %v20651_v41  ;;  %v9772_v22 = vmul.f32 %v9766_v51, %v22297_v5  ;;  %v9771_v20 = vmul.f32 %v9765_v13, %v22297_v5  ;;  %v9768_v63 = vmul.f32 %v9762_v32, %v22297_v5 }
0x13e5   :  { %17592 = vmatpush3.msra.mxu1 %v9279_v56  ;;  %17593 = vmatprep.mubr.msk.f32.mxu1 %vm8940_vm3, %v9286_v48  ;;  %v9634_v56 = vmul.f32 %v9628_v44, %v19981_v40 }
0x13e6   :  { %17603 = vmatpush3.msra.mxu0 %v20651_v41  ;;  %17594 = vmatmul.mubr.msk.f32.vlgmr.msra.gmra.mxu1 %vm8940_vm3, %v9287_v57 }
0x13e7   :  { %17604 = vmatprep.subr.mxu0 %v20548_v10  ;;  %17611 = vmatprep.subr.mxu1 %v9504_v36  ;;  %v9480_v26 = vpop.permute.xlu1 %9479  ;;  %v9462_v61 = vpop.permute.xlu0 %9461 }
0x13e8   :  { %17605 = vmatpush3.msra.mxu0 %v20548_v10  ;;  %17612 = vmatpush3.msra.mxu1 %v9504_v36  ;;  %v9495_v41 = vsel %vm6682_vm6, %v9462_v61, %v9480_v26  ;;  %v9494_v10 = vsel %vm6682_vm6, %v20748_v38, %v20746_v49  ;;  %v9636_v38 = vmul.f32 %v9630_v52, %v19981_v40  ;;  %v22298_v36 = vld [vmem:[#allocation138_spill] sm:$0xff]  ;;  %v22300_v26 = vld [vmem:[#allocation147_spill] sm:$0xff] }
0x13e9   :  { %17606 = vmatprep.subr.mxu0 %v20574_v29  ;;  %17613 = vmatprep.subr.mxu1 %v9503_v53  ;;  %v9501_v47 = vmul.f32 %v9495_v41, %v19962_v28  ;;  %v9500_v49 = vmul.f32 %v9494_v10, %v19962_v28  ;;  %v9764_v61 = vsel %vm6928_vm12, %v22300_v26, %v20788_v60  ;;  %v9640_v41 = vld [vmem:[#allocation29 + $0x60] sm:$0xff] }
0x13ea   :  { %17607 = vmatpush3.msra.mxu0 %v20574_v29  ;;  %17608 = vmatprep.mubr.msk.f32.mxu0 %vm8940_vm3, %v9372_v4  ;;  %v9770_v60 = vmul.f32 %v9764_v61, %v22297_v5  ;;  %v9898_v52 = vsel %vm7051_vm9, %v20840_v39, %v20838_v59 }
0x13eb   :  { %17614 = vmatpush3.msra.mxu1 %v9503_v53  ;;  %17609 = vmatmul.mubr.msk.f32.vlgmr.msra.gmra.mxu0 %vm8940_vm3, %v9373_v14  ;;  %v9614_v46 = vpop.permute.xlu1 %9613  ;;  %v9596_v50 = vpop.permute.xlu0 %9595  ;;  %v22299_v53 = vld [vmem:[#allocation139_spill] sm:$0xff]  ;;  %v9641_v14 = vld [vmem:[#allocation29 + $0x68] sm:$0xff] }
0x13ec   :  { %17615 = vmatprep.subr.mxu1 %v9502_v11  ;;  %17626 = vmatprep.subr.mxu0 %v9638_v6  ;;  %v9629_v29 = vsel %vm6805_vm5, %v9596_v50, %v9614_v46  ;;  %v9900_v35 = vsel %vm7051_vm9, %v22299_v53, %v22298_v36  ;;  %v9761_v50 = vsel %vm6928_vm12, %v20876_v55, %v20874_v19 }
0x13ed   :  { %17616 = vmatpush3.msra.mxu1 %v9502_v11  ;;  %17627 = vmatpush3.msra.mxu0 %v9638_v6  ;;  %v9635_v24 = vmul.f32 %v9629_v29, %v19981_v40  ;;  %v9767_v29 = vmul.f32 %v9761_v50, %v22297_v5  ;;  %v10329_v50 = vld [vmem:[#allocation32 + $0x30] sm:$0xff] }
0x13ee   :  { %17617 = vmatprep.subr.mxu1 %v9501_v47  ;;  %17628 = vmatprep.subr.mxu0 %v9637_v37 }
0x13ef   :  { %17618 = vmatpush3.msra.mxu1 %v9501_v47  ;;  %17629 = vmatpush3.msra.mxu0 %v9637_v37  ;;  %v20920_v31 = vpop.permute.xlu1 %9879  ;;  %v20922_v12 = vpop.permute.xlu0 %9861  ;;  %v22301_v47 = vld [vmem:[#allocation133_spill] sm:$0xff] }
0x13f0   :  { %17619 = vmatprep.subr.mxu1 %v9500_v49  ;;  %17630 = vmatprep.subr.mxu0 %v9636_v38  ;;  %v9906_v10 = vmul.f32 %v9900_v35, %v22301_v47  ;;  %v9905_v46 = vmul.f32 %v9899_v34, %v22301_v47  ;;  %v9904_v37 = vmul.f32 %v9898_v52, %v22301_v47  ;;  %v10046_v52 = vld [vmem:[#allocation32 + $0x10] sm:$0xff] }
0x13f1   :  { %17620 = vmatpush3.msra.mxu1 %v9500_v49  ;;  %17631 = vmatpush3.msra.mxu0 %v9636_v38  ;;  %v9896_v19 = vsel %vm7051_vm9, %v20922_v12, %v20920_v31 }
0x13f2   :  { %17621 = vmatprep.subr.mxu1 %v9499_v7  ;;  %17632 = vmatprep.subr.mxu0 %v9635_v24  ;;  %v9902_v49 = vmul.f32 %v9896_v19, %v22301_v47 }
0x13f3   :  { %17622 = vmatpush3.msra.mxu1 %v9499_v7  ;;  %17623 = vmatprep.mubr.msk.f32.mxu1 %vm8940_vm3, %v9506_v17  ;;  %v9748_v48 = vpop.permute.xlu1 %9747  ;;  %v9730_v57 = vpop.permute.xlu0 %9729 }
0x13f4   :  { %17633 = vmatpush3.msra.mxu0 %v9635_v24  ;;  %17624 = vmatmul.mubr.msk.f32.vlgmr.msra.gmra.mxu1 %vm8940_vm3, %v9507_v27  ;;  %v9763_v4 = vsel %vm6928_vm12, %v9730_v57, %v9748_v48  ;;  %v9909_v24 = vld [vmem:[#allocation29 + $0x88] sm:$0xff] }
0x13f5   :  { %17634 = vmatprep.subr.mxu0 %v9634_v56  ;;  %17641 = vmatprep.subr.mxu1 %v9772_v22  ;;  %v9769_v21 = vmul.f32 %v9763_v4, %v22297_v5 }
0x13f6   :  { %17635 = vmatpush3.msra.mxu0 %v9634_v56  ;;  %17642 = vmatpush3.msra.mxu1 %v9772_v22 }
0x13f7   :  { %17636 = vmatprep.subr.mxu0 %v9633_v30  ;;  %17643 = vmatprep.subr.mxu1 %v9771_v20  ;;  %v9882_v6 = vpop.permute.xlu1 %9881  ;;  %v9864_v11 = vpop.permute.xlu0 %9863 }
0x13f8   :  { %17637 = vmatpush3.msra.mxu0 %v9633_v30  ;;  %17638 = vmatprep.mubr.msk.f32.mxu0 %vm8940_vm3, %v9640_v41  ;;  %v9897_v15 = vsel %vm7051_vm9, %v9864_v11, %v9882_v6 }
0x13f9   :  { %17644 = vmatpush3.msra.mxu1 %v9771_v20  ;;  %17639 = vmatmul.mubr.msk.f32.vlgmr.msra.gmra.mxu0 %vm8940_vm3, %v9641_v14  ;;  %v9903_v23 = vmul.f32 %v9897_v15, %v22301_v47 }
0x13fa   :  { %17645 = vmatprep.subr.mxu1 %v9770_v60  ;;  %17656 = vmatprep.subr.mxu0 %v9906_v10 }
0x13fb   :  { %17646 = vmatpush3.msra.mxu1 %v9770_v60  ;;  %17657 = vmatpush3.msra.mxu0 %v9906_v10  ;;  %v9878_v59 = vpop.permute.xlu1 %9877  ;;  %v9860_v39 = vpop.permute.xlu0 %9859 }
0x13fc   :  { %17647 = vmatprep.subr.mxu1 %v9769_v21  ;;  %17658 = vmatprep.subr.mxu0 %v9905_v46  ;;  %v9895_v55 = vsel %vm7051_vm9, %v9860_v39, %v9878_v59  ;;  %v10909_v59 = vld [vmem:[#allocation33 + $0x8] sm:$0xff]  ;;  %v10908_v39 = vld [vmem:[#allocation33] sm:$0xff] }
0x13fd   :  { %17648 = vmatpush3.msra.mxu1 %v9769_v21  ;;  %17659 = vmatpush3.msra.mxu0 %v9905_v46  ;;  %v9901_v38 = vmul.f32 %v9895_v55, %v22301_v47 }
0x13fe   :  { %17649 = vmatprep.subr.mxu1 %v9768_v63  ;;  %17660 = vmatprep.subr.mxu0 %v9904_v37 }
0x13ff   :  { %17650 = vmatpush3.msra.mxu1 %v9768_v63  ;;  %17661 = vmatpush3.msra.mxu0 %v9904_v37  ;;  %v22302_v37 = vld [vmem:[#allocation124_spill] sm:$0xff] }
0x1400   :  { %17651 = vmatprep.subr.mxu1 %v9767_v29  ;;  %17662 = vmatprep.subr.mxu0 %v9903_v23 }
0x1401   :  { %17652 = vmatpush3.msra.mxu1 %v9767_v29  ;;  %17653 = vmatprep.mubr.msk.f32.mxu1 %vm8940_vm3, %v9774_v45 }
0x1402   :  { %17663 = vmatpush3.msra.mxu0 %v9903_v23  ;;  %17654 = vmatmul.mubr.msk.f32.vlgmr.msra.gmra.mxu1 %vm8940_vm3, %v9775_v62 }
0x1403   :  { %17664 = vmatprep.subr.mxu0 %v9902_v49  ;;  %17668 = vmatprep.mubr.msk.f32.mxu0 %vm8940_vm3, %v9908_v3 }
0x1404   :  { %17665 = vmatpush3.msra.mxu0 %v9902_v49  ;;  %17675 = vmatprep.mubr.msk.f32.mxu1 %vm715_vm1, %v10046_v52 }
0x1405   :  { %17666 = vmatprep.subr.mxu0 %v9901_v38 }
0x1406   :  { %17667 = vmatpush3.msra.mxu0 %v9901_v38 }
0x1407   :  { %17669 = vmatmul.mubr.msk.f32.vlgmr.msra.gmra.mxu0 %vm8940_vm3, %v9909_v24  ;;  %vm11040_vm3 = vcmask 195584  }
0x1408   :  { %v10003_v35 = vpop.permute.xlu0 %10002  ;;  %v9998_v32 = vpop.permute.xlu1 %9997  ;;  %17696 = vmatprep.mubr.msk.f32.mxu0 %vm715_vm1, %v10329_v50 }
0x1491   :  { %v17550_v31 = vpop.f32.mrf.mxu0 }
0x1493   :  { %v9013_v16 = vpop.f32.mrf.mxu0 }
0x1499   :  { %v17565_v12 = vpop.f32.mrf.mxu1 }
0x149a   :  { %v9100_v44 = vadd.f32 %v17565_v12, %v17550_v31 }
0x149b   :  { %v9094_v25 = vpop.f32.mrf.mxu1 }
0x149c   :  { %v9095_v61 = vadd.f32 %v9094_v25, %v9013_v16 }
0x149d   :  { %v17580_v51 = vpop.f32.mrf.mxu0 }
0x149e   :  { %v9236_v33 = vadd.f32 %v17580_v51, %v9100_v44 }
0x149f   :  { %v9226_v43 = vpop.f32.mrf.mxu0 }
0x14a0   :  { %v9235_v4 = vadd.f32 %v9226_v43, %v9095_v61 }
0x14a6   :  { %v17595_v58 = vpop.f32.mrf.mxu1 }
0x14a7   :  { %v9370_v13 = vadd.f32 %v17595_v58, %v9236_v33 }
0x14a8   :  { %v9360_v7 = vpop.f32.mrf.mxu1 }
0x14a9   :  { %v9369_v41 = vadd.f32 %v9360_v7, %v9235_v4 }
0x14ab   :  { %v17610_v17 = vpop.f32.mrf.mxu0 }
0x14ac   :  { %v9456_v0 = vadd.f32 %v17610_v17, %v9370_v13 }
0x14ad   :  { %v9446_v27 = vpop.f32.mrf.mxu0 }
0x14ae   :  { %v9455_v14 = vadd.f32 %v9446_v27, %v9369_v41 }
0x14b4   :  { %v17625_v2 = vpop.f32.mrf.mxu1 }
0x14b5   :  { %v9590_v22 = vadd.f32 %v17625_v2, %v9456_v0  ;;  %v10047_v0 = vld [vmem:[#allocation32 + $0x18] sm:$0xff] }
0x14b6   :  { %v9580_v1 = vpop.f32.mrf.mxu1 }
0x14b7   :  { %v9589_v34 = vadd.f32 %v9580_v1, %v9455_v14 }
0x14b9   :  { %v17640_v18 = vpop.f32.mrf.mxu0 }
0x14ba   :  { %v9724_v48 = vadd.f32 %v17640_v18, %v9590_v22 }
0x14bb   :  { %v9714_v57 = vpop.f32.mrf.mxu0 }
0x14bc   :  { %v9723_v11 = vadd.f32 %v9714_v57, %v9589_v34  ;;  %v10415_v34 = vld [vmem:[#allocation32 + $0x40] sm:$0xff] }
0x14c2   :  { %v17655_v56 = vpop.f32.mrf.mxu1 }
0x14c3   :  { %v9858_v20 = vadd.f32 %v17655_v56, %v9724_v48  ;;  %v10027_v56 = vld [vmem:[#allocation32] sm:$0xff] }
0x14c4   :  { %v9848_v6 = vpop.f32.mrf.mxu1 }
0x14c5   :  { %v9857_v60 = vadd.f32 %v9848_v6, %v9723_v11 }
0x14c7   :  { %v17670_v36 = vpop.f32.mrf.mxu0 }
0x14c8   :  { %v9992_v53 = vadd.f32 %v17670_v36, %v9858_v20 }
0x14c9   :  { %v9982_v10 = vpop.f32.mrf.mxu0 }
0x14ca   :  { %v10006_v30 = vadd.f32 %v10003_v35, %v9992_v53  ;;  %v9991_v21 = vadd.f32 %v9982_v10, %v9857_v60  ;;  %v10330_v60 = vld [vmem:[#allocation32 + $0x38] sm:$0xff] }
0x14cc   :  { %v20983_v26 = vmax.f32 %v10006_v30, 0.0  ;;  %v10005_v15 = vadd.f32 %v9998_v32, %v9991_v21  ;;  %v10227_v30 = vld [vmem:[#allocation32 + $0x20] sm:$0xff] }
0x14ce   :  { %10037 = vrot.lane.b32.xlu1 %v20983_v26, %s18775_s23  ;;  %10031 = vrot.lane.b32.xlu0 %v20983_v26, %s18798_s2  ;;  %v21018_v46 = vmax.f32 %v10005_v15, 0.0  ;;  %v10416_v15 = vld [vmem:[#allocation32 + $0x48] sm:$0xff] }
0x14d2   :  { %10019 = vrot.lane.b32.xlu1 %v20983_v26, %s18799_s7  ;;  %10013 = vrot.lane.b32.xlu0 %v20983_v26, %s18800_s0 }
0x14d6   :  { %10218 = vrot.lane.b32.xlu1 %v20983_v26, %s18801_s10  ;;  %10212 = vrot.lane.b32.xlu0 %v20983_v26, %s18802_s5 }
0x14da   :  { %10320 = vrot.lane.b32.xlu1 %v20983_v26, %s18786_s18  ;;  %10314 = vrot.lane.b32.xlu0 %v20983_v26, %s18803_s20 }
0x14de   :  { %10508 = vrot.lane.b32.xlu1 %v20983_v26, %s18804_s11  ;;  %10502 = vrot.lane.b32.xlu0 %v20983_v26, %s18787_s22 }
0x14e2   :  { %10610 = vrot.lane.b32.xlu1 %v20983_v26, %s18805_s3  ;;  %10604 = vrot.lane.b32.xlu0 %v20983_v26, %s18806_s19 }
0x14e6   :  { %10712 = vrot.lane.b32.xlu1 %v20983_v26, %s18807_s15  ;;  %10706 = vrot.lane.b32.xlu0 %v20983_v26, %s18808_s6 }
0x14ea   :  { %10814 = vrot.lane.b32.xlu1 %v20983_v26, %s18809_s29  ;;  %10808 = vrot.lane.b32.xlu0 %v20983_v26, %s18810_s12 }
0x14ee   :  { %10035 = vrot.lane.b32.xlu1 %v21018_v46, %s18775_s23  ;;  %10029 = vrot.lane.b32.xlu0 %v21018_v46, %s18798_s2 }
0x14f2   :  { %10017 = vrot.lane.b32.xlu1 %v21018_v46, %s18799_s7  ;;  %10011 = vrot.lane.b32.xlu0 %v21018_v46, %s18800_s0 }
0x14f6   :  { %10216 = vrot.lane.b32.xlu1 %v21018_v46, %s18801_s10  ;;  %10210 = vrot.lane.b32.xlu0 %v21018_v46, %s18802_s5 }
0x14fa   :  { %10318 = vrot.lane.b32.xlu1 %v21018_v46, %s18786_s18  ;;  %10312 = vrot.lane.b32.xlu0 %v21018_v46, %s18803_s20 }
0x14fe   :  { %10506 = vrot.lane.b32.xlu1 %v21018_v46, %s18804_s11  ;;  %10500 = vrot.lane.b32.xlu0 %v21018_v46, %s18787_s22 }
0x1502   :  { %10608 = vrot.lane.b32.xlu1 %v21018_v46, %s18805_s3  ;;  %10602 = vrot.lane.b32.xlu0 %v21018_v46, %s18806_s19 }
0x1506   :  { %10710 = vrot.lane.b32.xlu1 %v21018_v46, %s18807_s15  ;;  %10704 = vrot.lane.b32.xlu0 %v21018_v46, %s18808_s6 }
0x150a   :  { %10812 = vrot.lane.b32.xlu1 %v21018_v46, %s18809_s29  ;;  %10806 = vrot.lane.b32.xlu0 %v21018_v46, %s18810_s12 }
0x150e   :  { %10917 = vperm.xlu1 %17997, %v10909_v59   ;;  %10912 = vperm.xlu0 %17976, %v10908_v39   ;;  %v10517_v39 = vld [vmem:[#allocation32 + $0x50] sm:$0xff] }
0x1512   :  { %11017 = vrot.lane.b32.xlu1 %v22302_v37, %s18793_s26  ;;  %11030 = vrot.lane.b32.xlu0 %v22302_v37, %s18748_s1 }
0x1516   :  { %11191 = vrot.lane.b32.xlu1 %v22302_v37, %s18794_s28  ;;  %11443 = vrot.lane.b32.xlu0 %v22302_v37, %s18787_s22 }
0x151a   :  { %11279 = vrot.lane.b32.xlu1 %v22302_v37, %s18786_s18  ;;  %11531 = vrot.lane.b32.xlu0 %v22302_v37, %s18795_s21 }
0x1540   :  { %v10038_v63 = vpop.permute.xlu1 %10037  ;;  %v10032_v23 = vpop.permute.xlu0 %10031 }
0x1541   :  { %v10042_v29 = vsel %vm730_vm11, %v10032_v23, %v10038_v63  ;;  %v10619_v63 = vld [vmem:[#allocation32 + $0x60] sm:$0xff] }
0x1542   :  { %v10044_v19 = vmul.f32 %v10042_v29, %v19939_v8 }
0x1544   :  { %v10020_v55 = vpop.permute.xlu1 %10019  ;;  %17671 = vmatprep.subr.mxu1 %v10044_v19  ;;  %v10014_v45 = vpop.permute.xlu0 %10013 }
0x1545   :  { %17672 = vmatpush3.msra.mxu1 %v10044_v19  ;;  %v10024_v2 = vsel %vm6095_vm8, %v10014_v45, %v10020_v55  ;;  %v10518_v19 = vld [vmem:[#allocation32 + $0x58] sm:$0xff] }
0x1546   :  { %v10026_v1 = vmul.f32 %v10024_v2, %v19949_v54 }
0x1548   :  { %v10219_v62 = vpop.permute.xlu1 %10218  ;;  %v10213_v3 = vpop.permute.xlu0 %10212 }
0x1549   :  { %v10223_v48 = vsel %vm6331_vm13, %v10213_v3, %v10219_v62  ;;  %v10721_v62 = vld [vmem:[#allocation32 + $0x70] sm:$0xff]  ;;  %v10620_v3 = vld [vmem:[#allocation32 + $0x68] sm:$0xff] }
0x154a   :  { %v10225_v36 = vmul.f32 %v10223_v48, %v19972_v9 }
0x154c   :  { %v10321_v49 = vpop.permute.xlu1 %10320  ;;  %v10315_v38 = vpop.permute.xlu0 %10314 }
0x154d   :  { %v10325_v24 = vsel %vm1240_vm2, %v10315_v38, %v10321_v49 }
0x154e   :  { %v10327_v31 = vmul.f32 %v10325_v24, %v19945_v42 }
0x1550   :  { %v10509_v12 = vpop.permute.xlu1 %10508  ;;  %17692 = vmatprep.subr.mxu0 %v10327_v31  ;;  %v10503_v16 = vpop.permute.xlu0 %10502 }
0x1551   :  { %17693 = vmatpush3.msra.mxu0 %v10327_v31  ;;  %v10513_v6 = vsel %vm6682_vm6, %v10503_v16, %v10509_v12  ;;  %v10823_v31 = vld [vmem:[#allocation32 + $0x80] sm:$0xff]  ;;  %v10722_v16 = vld [vmem:[#allocation32 + $0x78] sm:$0xff] }
0x1552   :  { %v10515_v21 = vmul.f32 %v10513_v6, %v19962_v28 }
0x1554   :  { %v10611_v25 = vpop.permute.xlu1 %10610  ;;  %v10605_v51 = vpop.permute.xlu0 %10604 }
0x1555   :  { %v10615_v10 = vsel %vm6805_vm5, %v10605_v51, %v10611_v25 }
0x1556   :  { %v10617_v50 = vmul.f32 %v10615_v10, %v19981_v40 }
0x1558   :  { %v10713_v58 = vpop.permute.xlu1 %10712  ;;  %v10707_v43 = vpop.permute.xlu0 %10706 }
0x155c   :  { %v21069_v44 = vpop.permute.xlu1 %10814  ;;  %v21071_v7 = vpop.permute.xlu0 %10808 }
0x1560   :  { %v10036_v17 = vpop.permute.xlu1 %10035  ;;  %v10030_v33 = vpop.permute.xlu0 %10029 }
0x1561   :  { %v10041_v13 = vsel %vm730_vm11, %v10030_v33, %v10036_v17  ;;  %v22304_v33 = vld [vmem:[#allocation91_spill] sm:$0xff] }
0x1562   :  { %v10043_v27 = vmul.f32 %v10041_v13, %v19939_v8  ;;  %v10028_v8 = vld [vmem:[#allocation32 + $0x8] sm:$0xff]  ;;  %v10926_v13 = vld [vmem:[%s18994_s25 + $0x10] sm:$0xff] }
0x1564   :  { %v10018_v18 = vpop.permute.xlu1 %10017  ;;  %17673 = vmatprep.subr.mxu1 %v10043_v27  ;;  %v10012_v22 = vpop.permute.xlu0 %10011 }
0x1565   :  { %v10023_v57 = vsel %vm6095_vm8, %v10012_v22, %v10018_v18  ;;  %17674 = vmatpush3.msra.mxu1 %v10043_v27  ;;  %v10925_v27 = vld [vmem:[%s18994_s25 + $0x8] sm:$0xff] }
0x1566   :  { %v10025_v20 = vmul.f32 %v10023_v57, %v19949_v54  ;;  %17676 = vmatmul.mubr.msk.f32.vlgmr.msra.gmra.mxu1 %vm715_vm1, %v10047_v0  ;;  %17678 = vmatprep.subr.mxu1 %v10026_v1  ;;  %v10228_v54 = vld [vmem:[#allocation32 + $0x28] sm:$0xff]  ;;  %v10924_v0 = vld [vmem:[%s18994_s25] sm:$0xff] }
0x1567   :  { %17679 = vmatpush3.msra.mxu1 %v10026_v1  ;;  %17682 = vmatprep.mubr.msk.f32.mxu1 %vm715_vm1, %v10027_v56 }
0x1568   :  { %v10217_v53 = vpop.permute.xlu1 %10216  ;;  %17680 = vmatprep.subr.mxu1 %v10025_v20  ;;  %v10211_v35 = vpop.permute.xlu0 %10210 }
0x1569   :  { %v10222_v61 = vsel %vm6331_vm13, %v10211_v35, %v10217_v53  ;;  %17681 = vmatpush3.msra.mxu1 %v10025_v20 }
0x156a   :  { %v10224_v4 = vmul.f32 %v10222_v61, %v19972_v9  ;;  %17683 = vmatmul.mubr.msk.f32.vlgmr.msra.gmra.mxu1 %vm715_vm1, %v10028_v8  ;;  %17685 = vmatprep.subr.mxu1 %v10225_v36 }
0x156b   :  { %17686 = vmatpush3.msra.mxu1 %v10225_v36  ;;  %17689 = vmatprep.mubr.msk.f32.mxu1 %vm715_vm1, %v10227_v30 }
0x156c   :  { %v10319_v41 = vpop.permute.xlu1 %10318  ;;  %17687 = vmatprep.subr.mxu1 %v10224_v4  ;;  %v10313_v14 = vpop.permute.xlu0 %10312 }
0x156d   :  { %v10324_v11 = vsel %vm1240_vm2, %v10313_v14, %v10319_v41  ;;  %17688 = vmatpush3.msra.mxu1 %v10224_v4 }
0x156e   :  { %v10326_v9 = vmul.f32 %v10324_v11, %v19945_v42  ;;  %17690 = vmatmul.mubr.msk.f32.vlgmr.msra.gmra.mxu1 %vm715_vm1, %v10228_v54  ;;  %17699 = vmatprep.subr.mxu1 %v20983_v26 }
0x156f   :  { %17700 = vmatpush3.msra.mxu1 %v20983_v26  ;;  %17703 = vmatprep.mubr.msk.f32.mxu1 %vm715_vm1, %v10415_v34  ;;  %v10717_v26 = vsel %vm6928_vm12, %v10707_v43, %v10713_v58 }
0x1570   :  { %v10507_v52 = vpop.permute.xlu1 %10506  ;;  %17694 = vmatprep.subr.mxu0 %v10326_v9  ;;  %17701 = vmatprep.subr.mxu1 %v21018_v46  ;;  %v10501_v32 = vpop.permute.xlu0 %10500  ;;  %v10719_v55 = vmul.f32 %v10717_v26, %v22297_v5 }
0x1571   :  { %v10512_v42 = vsel %vm6682_vm6, %v10501_v32, %v10507_v52  ;;  %17695 = vmatpush3.msra.mxu0 %v10326_v9  ;;  %17702 = vmatpush3.msra.mxu1 %v21018_v46  ;;  %v10819_v46 = vsel %vm7051_vm9, %v21071_v7, %v21069_v44  ;;  %v22303_v44 = vmov 0.0   ;;  %vm22324_vm6 = vcmask 916480  }
0x1572   :  { %v10514_v59 = vmul.f32 %v10512_v42, %v19962_v28  ;;  %17697 = vmatmul.mubr.msk.f32.vlgmr.msra.gmra.mxu0 %vm715_vm1, %v10330_v60  ;;  %17706 = vmatprep.subr.mxu0 %v10515_v21  ;;  %v10821_v49 = vmul.f32 %v10819_v46, %v22301_v47 }
0x1573   :  { %17713 = vmatprep.subr.mxu1 %v10617_v50  ;;  %17704 = vmatmul.mubr.msk.f32.vlgmr.msra.gmra.mxu1 %vm715_vm1, %v10416_v15 }
0x1574   :  { %17707 = vmatpush3.msra.mxu0 %v10515_v21  ;;  %17714 = vmatpush3.msra.mxu1 %v10617_v50  ;;  %v10609_v23 = vpop.permute.xlu1 %10608  ;;  %v10603_v29 = vpop.permute.xlu0 %10602 }
0x1575   :  { %17708 = vmatprep.subr.mxu0 %v10514_v59  ;;  %v10614_v28 = vsel %vm6805_vm5, %v10603_v29, %v10609_v23  ;;  %17710 = vmatprep.mubr.msk.f32.mxu0 %vm715_vm1, %v10517_v39 }
0x1576   :  { %v10616_v45 = vmul.f32 %v10614_v28, %v19981_v40  ;;  %17709 = vmatpush3.msra.mxu0 %v10514_v59  ;;  %17717 = vmatprep.mubr.msk.f32.mxu1 %vm715_vm1, %v10619_v63 }
0x1577   :  { %17711 = vmatmul.mubr.msk.f32.vlgmr.msra.gmra.mxu0 %vm715_vm1, %v10518_v19  ;;  %17720 = vmatprep.subr.mxu0 %v10719_v55 }
0x1578   :  { %17721 = vmatpush3.msra.mxu0 %v10719_v55  ;;  %v10711_v38 = vpop.permute.xlu1 %10710  ;;  %17715 = vmatprep.subr.mxu1 %v10616_v45  ;;  %v10705_v24 = vpop.permute.xlu0 %10704 }
0x1579   :  { %v10716_v12 = vsel %vm6928_vm12, %v10705_v24, %v10711_v38  ;;  %17716 = vmatpush3.msra.mxu1 %v10616_v45  ;;  %17724 = vmatprep.mubr.msk.f32.mxu0 %vm715_vm1, %v10721_v62 }
0x157a   :  { %v10718_v40 = vmul.f32 %v10716_v12, %v22297_v5  ;;  %17718 = vmatmul.mubr.msk.f32.vlgmr.msra.gmra.mxu1 %vm715_vm1, %v10620_v3  ;;  %17727 = vmatprep.subr.mxu1 %v10821_v49  ;;  %v10824_v5 = vld [vmem:[#allocation32 + $0x88] sm:$0xff]  ;;  %v22305_v3 = vld [vmem:[#allocation128_spill] sm:$0xff] }
0x157b   :  { %17728 = vmatpush3.msra.mxu1 %v10821_v49  ;;  %17731 = vmatprep.mubr.msk.f32.mxu1 %vm715_vm1, %v10823_v31  ;;  %v11791_v31 = vld [vmem:[#allocation36] sm:$0xff] }
0x157c   :  { %v10813_v25 = vpop.permute.xlu1 %10812  ;;  %17722 = vmatprep.subr.mxu0 %v10718_v40  ;;  %v10807_v51 = vpop.permute.xlu0 %10806 }
0x157d   :  { %v10818_v58 = vsel %vm7051_vm9, %v10807_v51, %v10813_v25  ;;  %17723 = vmatpush3.msra.mxu0 %v10718_v40  ;;  %vm22316_vm9 = vcmask 1039360  }
0x157e   :  { %v10820_v43 = vmul.f32 %v10818_v58, %v22301_v47  ;;  %17725 = vmatmul.mubr.msk.f32.vlgmr.msra.gmra.mxu0 %vm715_vm1, %v10722_v16  ;;  %v10927_v47 = vld [vmem:[%s18994_s25 + $0x18] sm:$0xff]  ;;  %vm22317_vm12 = vmmov %vm22316_vm9  ;;  %s22326_s25 = smov 111  }
0x157f   :  { %17734 = vmatprep.subr.mxu0 %v10927_v47  ;;  %vm22318_vm13 = vmmov %vm22316_vm9 }
0x1580   :  { %17729 = vmatprep.subr.mxu1 %v10820_v43  ;;  %17735 = vmatpush3.msra.mxu0 %v10927_v47 }
0x1581   :  { %17730 = vmatpush3.msra.mxu1 %v10820_v43  ;;  %17736 = vmatprep.subr.mxu0 %v10926_v13 }
0x1582   :  { %17732 = vmatmul.mubr.msk.f32.vlgmr.msra.gmra.mxu1 %vm715_vm1, %v10824_v5  ;;  %17745 = vmatprep.subr.mxu1 %v22303_v44 }
0x1583   :  { %17751 = vmatprep.mubr.msk.f32.mxu1 %vm18792_vm15, %v22303_v44  ;;  %17737 = vmatpush3.msra.mxu0 %v10926_v13  ;;  %v11039_v13 = vld [vmem:[#allocation35 + $0x8] sm:$0xff] }
0x1584   :  { %17738 = vmatprep.subr.mxu0 %v10925_v27 }
0x1585   :  { %17739 = vmatpush3.msra.mxu0 %v10925_v27  ;;  %v22306_v27 = vld [vmem:[#allocation126_spill] sm:$0xff] }
0x1586   :  { %17740 = vmatprep.subr.mxu0 %v10924_v0 }
0x1587   :  { %17741 = vmatpush3.msra.mxu0 %v10924_v0 }
0x1588   :  { %17763 = vmatprep.subr.mxu0 %v22303_v44 }
0x1589   :  { %v10913_v7 = vpop.permute.xlu0 %10912  ;;  %v10918_v10 = vpop.permute.xlu1 %10917 }
0x158d   :  { %v11031_v17 = vpop.permute.xlu0 %11030  ;;  %v11018_v59 = vpop.permute.xlu1 %11017 }
0x158e   :  { %v11037_v2 = vmul.f32 %v11031_v17, %v22304_v33  ;;  %v11024_v0 = vmul.f32 %v11018_v59, %v22306_v27 }
0x1590   :  { %17746 = vmatpush3.msra.mxu1 %v11037_v2 }
0x1591   :  { %17747 = vmatprep.subr.mxu1 %v22303_v44  ;;  %v11192_v28 = vpop.permute.xlu1 %11191  ;;  %v11444_v12 = vpop.permute.xlu0 %11443 }
0x1592   :  { %v11198_v49 = vmul.f32 %v11192_v28, %v22305_v3 }
0x1595   :  { %v11280_v40 = vpop.permute.xlu1 %11279  ;;  %v21179_v16 = vpop.permute.xlu0 %11531 }
0x1626   :  { %v17677_v1 = vpop.f32.mrf.mxu1 }
0x1628   :  { %v10120_v18 = vpop.f32.mrf.mxu1 }
0x162a   :  { %v17684_v22 = vpop.f32.mrf.mxu1 }
0x162b   :  { %v10207_v48 = vadd.f32 %v17684_v22, %v17677_v1 }
0x162c   :  { %v10201_v56 = vpop.f32.mrf.mxu1 }
0x162d   :  { %v10202_v20 = vadd.f32 %v10201_v56, %v10120_v18 }
0x162e   :  { %v17691_v57 = vpop.f32.mrf.mxu1 }
0x162f   :  { %v10311_v8 = vadd.f32 %v17691_v57, %v10207_v48  ;;  %v11025_v48 = vld [vmem:[#allocation35] sm:$0xff] }
0x1630   :  { %v10301_v36 = vpop.f32.mrf.mxu1 }
0x1631   :  { %v10310_v61 = vadd.f32 %v10301_v36, %v10202_v20 }
0x1632   :  { %v17698_v53 = vpop.f32.mrf.mxu0 }
0x1633   :  { %v17705_v30 = vpop.f32.mrf.mxu1  ;;  %v10413_v4 = vadd.f32 %v17698_v53, %v10311_v8  ;;  %v22307_v8 = vld [vmem:[#allocation125_spill] sm:$0xff] }
0x1634   :  { %v10403_v35 = vpop.f32.mrf.mxu0  ;;  %v11286_v36 = vmul.f32 %v11280_v40, %v22307_v8 }
0x1635   :  { %v10412_v54 = vadd.f32 %v10403_v35, %v10310_v61  ;;  %v10489_v41 = vpop.f32.mrf.mxu1  ;;  %v10499_v34 = vadd.f32 %v17705_v30, %v10413_v4  ;;  %v11200_v35 = vld [vmem:[#allocation35 + $0x10] sm:$0xff] }
0x1637   :  { %v17712_v14 = vpop.f32.mrf.mxu0  ;;  %v10498_v11 = vadd.f32 %v10489_v41, %v10412_v54  ;;  %v11288_v41 = vld [vmem:[#allocation35 + $0x18] sm:$0xff] }
0x1638   :  { %v10601_v60 = vadd.f32 %v17712_v14, %v10499_v34  ;;  %v22308_v34 = vld [vmem:[#allocation127_spill] sm:$0xff] }
0x1639   :  { %v10591_v9 = vpop.f32.mrf.mxu0 }
0x163a   :  { %v17719_v6 = vpop.f32.mrf.mxu1  ;;  %v10600_v32 = vadd.f32 %v10591_v9, %v10498_v11  ;;  %v22309_v9 = vld [vmem:[#allocation130_spill] sm:$0xff] }
0x163b   :  { %v10703_v15 = vadd.f32 %v17719_v6, %v10601_v60  ;;  %v11450_v6 = vmul.f32 %v11444_v12, %v22308_v34  ;;  %v11538_v60 = vmul.f32 %v21179_v16, %v22309_v9 }
0x163c   :  { %v10693_v21 = vpop.f32.mrf.mxu1 }
0x163d   :  { %v10702_v42 = vadd.f32 %v10693_v21, %v10600_v32 }
0x163e   :  { %v17726_v52 = vpop.f32.mrf.mxu0 }
0x163f   :  { %v10805_v26 = vadd.f32 %v17726_v52, %v10703_v15  ;;  %v11452_v15 = vld [vmem:[#allocation35 + $0x28] sm:$0xff] }
0x1640   :  { %v10795_v50 = vpop.f32.mrf.mxu0 }
0x1641   :  { %v10804_v63 = vadd.f32 %v10795_v50, %v10702_v42 }
0x1642   :  { %v17733_v39 = vpop.f32.mrf.mxu1 }
0x1643   :  { %v10907_v23 = vadd.f32 %v17733_v39, %v10805_v26  ;;  %v22310_v26 = vld [vmem:[#allocation129_spill] sm:$0xff]  ;;  %v11540_v39 = vld [vmem:[#allocation35 + $0x30] sm:$0xff] }
0x1644   :  { %v10897_v29 = vpop.f32.mrf.mxu1 }
0x1645   :  { %v10906_v19 = vadd.f32 %v10897_v29, %v10804_v63  ;;  %v10921_v55 = vadd.f32 %v10918_v10, %v10907_v23  ;;  %v22311_v29 = vld [vmem:[#allocation131_spill] sm:$0xff] }
0x1647   :  { %v10920_v46 = vadd.f32 %v10913_v7, %v10906_v19  ;;  %v10923_v62 = vmax.f32 %v10921_v55, 0.0 }
0x1649   :  { %v10922_v45 = vmax.f32 %v10920_v46, 0.0 }
0x164b   :  { %17742 = vmatprep.mubr.msk.f32.mxu0 %vm6078_vm4, %v10922_v45  ;;  %v11628_v45 = vld [vmem:[#allocation35 + $0x38] sm:$0xff] }
0x164c   :  { %17743 = vmatmul.mubr.msk.f32.vlgmr.msra.gmra.mxu0 %vm6078_vm4, %v10923_v62 }
0x164d   :  { %17764 = vmatpush3.msra.mxu0 %v11198_v49  ;;  %17769 = vmatprep.mubr.msk.f32.mxu0 %vm18792_vm15, %v22303_v44  ;;  %v11716_v49 = vld [vmem:[#allocation35 + $0x40] sm:$0xff] }
0x164e   :  { %17765 = vmatprep.subr.mxu0 %v22303_v44 }
0x170c   :  { %v21139_v38 = vpop.f32.mrf.mxu0 }
0x170d   :  { %11015 = vrot.lane.b32.xlu0 %v21139_v38, %s18793_s26  ;;  %11028 = vrot.lane.b32.xlu1 %v21139_v38, %s18748_s1 }
0x170e   :  { %v21149_v24 = vpop.f32.mrf.mxu0 }
0x1711   :  { %11277 = vrot.lane.b32.xlu0 %v21139_v38, %s18786_s18  ;;  %11189 = vrot.lane.b32.xlu1 %v21139_v38, %s18794_s28 }
0x1715   :  { %11441 = vrot.lane.b32.xlu1 %v21139_v38, %s18787_s22  ;;  %11026 = vrot.lane.b32.xlu0 %v21149_v24, %s18748_s1 }
0x1719   :  { %11617 = vrot.lane.b32.xlu1 %v21139_v38, %s18797_s14  ;;  %11013 = vrot.lane.b32.xlu0 %v21149_v24, %s18793_s26 }
0x171d   :  { %11275 = vrot.lane.b32.xlu1 %v21149_v24, %s18786_s18  ;;  %11187 = vrot.lane.b32.xlu0 %v21149_v24, %s18794_s28 }
0x1721   :  { %11439 = vrot.lane.b32.xlu1 %v21149_v24, %s18787_s22  ;;  %11529 = vrot.lane.b32.xlu0 %v21139_v38, %s18795_s21 }
0x1725   :  { %11527 = vrot.lane.b32.xlu1 %v21149_v24, %s18795_s21  ;;  %11619 = vrot.lane.b32.xlu0 %v22302_v37, %s18797_s14 }
0x1729   :  { %11615 = vrot.lane.b32.xlu1 %v21149_v24, %s18797_s14  ;;  %11707 = vrot.lane.b32.xlu0 %v22302_v37, %s18796_s27 }
0x172d   :  { %11703 = vrot.lane.b32.xlu1 %v21149_v24, %s18796_s27  ;;  %11705 = vrot.lane.b32.xlu0 %v21139_v38, %s18796_s27 }
0x1731   :  { %11794 = vperm.xlu0 %17976, %v11791_v31  }
0x177f   :  { %v11029_v25 = vpop.permute.xlu1 %11028  ;;  %v11016_v51 = vpop.permute.xlu0 %11015 }
0x1780   :  { %v11036_v58 = vmul.f32 %v11029_v25, %v22304_v33  ;;  %v11023_v22 = vmul.f32 %v11016_v51, %v22306_v27 }
0x1782   :  { %17748 = vmatpush3.msra.mxu1 %v11036_v58 }
0x1783   :  { %v11190_v43 = vpop.permute.xlu1 %11189  ;;  %v11278_v5 = vpop.permute.xlu0 %11277  ;;  %17749 = vmatprep.subr.mxu1 %v22303_v44 }
0x1784   :  { %v11197_v7 = vmul.f32 %v11190_v43, %v22305_v3  ;;  %v11285_v30 = vmul.f32 %v11278_v5, %v22307_v8 }
0x1786   :  { %17766 = vmatpush3.msra.mxu0 %v11197_v7 }
0x1787   :  { %v11442_v17 = vpop.permute.xlu1 %11441  ;;  %v11027_v2 = vpop.permute.xlu0 %11026  ;;  %17767 = vmatprep.subr.mxu0 %v22303_v44 }
0x1788   :  { %v11035_v47 = vmul.f32 %v11027_v2, %v22304_v33  ;;  %v11449_v10 = vmul.f32 %v11442_v17, %v22308_v34 }
0x178a   :  { %17750 = vmatpush3.msra.mxu1 %v11035_v47 }
0x178b   :  { %v21187_v1 = vpop.permute.xlu1 %11617  ;;  %17752 = vmatmul.mubr.msk.f32.vlgmr.msra.gmra.mxu1 %vm11040_vm3, %v11039_v13  ;;  %17754 = vmatprep.subr.mxu1 %v22303_v44  ;;  %v11014_v18 = vpop.permute.xlu0 %11013 }
0x178c   :  { %17755 = vmatpush3.msra.mxu1 %v11024_v0  ;;  %17760 = vmatprep.mubr.msk.f32.mxu1 %vm18792_vm15, %v22303_v44  ;;  %v11022_v56 = vmul.f32 %v11014_v18, %v22306_v27  ;;  %v11625_v23 = vmul.f32 %v21187_v1, %v22310_v26 }
0x178d   :  { %17756 = vmatprep.subr.mxu1 %v22303_v44 }
0x178e   :  { %17757 = vmatpush3.msra.mxu1 %v11023_v22 }
0x178f   :  { %v11276_v57 = vpop.permute.xlu1 %11275  ;;  %17758 = vmatprep.subr.mxu1 %v22303_v44  ;;  %v11188_v20 = vpop.permute.xlu0 %11187 }
0x1790   :  { %v11196_v53 = vmul.f32 %v11188_v20, %v22305_v3  ;;  %17759 = vmatpush3.msra.mxu1 %v11022_v56  ;;  %v11284_v54 = vmul.f32 %v11276_v57, %v22307_v8 }
0x1791   :  { %17761 = vmatmul.mubr.msk.f32.vlgmr.msra.gmra.mxu1 %vm11040_vm3, %v11025_v48  ;;  %17772 = vmatprep.subr.mxu1 %v22303_v44 }
0x1792   :  { %17768 = vmatpush3.msra.mxu0 %v11196_v53  ;;  %17773 = vmatpush3.msra.mxu1 %v11286_v36 }
0x1793   :  { %v11440_v61 = vpop.permute.xlu1 %11439  ;;  %17770 = vmatmul.mubr.msk.f32.vlgmr.msra.gmra.mxu0 %vm11040_vm3, %v11200_v35  ;;  %17774 = vmatprep.subr.mxu1 %v22303_v44  ;;  %v11530_v4 = vpop.permute.xlu0 %11529 }
0x1794   :  { %17781 = vmatprep.subr.mxu0 %v22303_v44  ;;  %17775 = vmatpush3.msra.mxu1 %v11285_v30  ;;  %v11448_v52 = vmul.f32 %v11440_v61, %v22308_v34  ;;  %v11537_v32 = vmul.f32 %v11530_v4, %v22309_v9  ;;  %v12513_v4 = vld [vmem:[#allocation39] sm:$0xff] }
0x1795   :  { %17782 = vmatpush3.msra.mxu0 %v22302_v37  ;;  %17776 = vmatprep.subr.mxu1 %v22303_v44  ;;  %v11364_v37 = vld [vmem:[#allocation35 + $0x20] sm:$0xff] }
0x1796   :  { %17783 = vmatprep.subr.mxu0 %v22303_v44  ;;  %17777 = vmatpush3.msra.mxu1 %v11284_v54 }
0x1797   :  { %17778 = vmatprep.mubr.msk.f32.mxu1 %vm18792_vm15, %v22303_v44  ;;  %17784 = vmatpush3.msra.mxu0 %v21139_v38  ;;  %v11620_v14 = vpop.permute.xlu0 %11619  ;;  %v11528_v11 = vpop.permute.xlu1 %11527 }
0x1798   :  { %17779 = vmatmul.mubr.msk.f32.vlgmr.msra.gmra.mxu1 %vm11040_vm3, %v11288_v41  ;;  %17785 = vmatprep.subr.mxu0 %v22303_v44  ;;  %v11536_v42 = vmul.f32 %v11528_v11, %v22309_v9  ;;  %v11626_v59 = vmul.f32 %v11620_v14, %v22310_v26  ;;  %v11804_v11 = vld [vmem:[#allocation38] sm:$0xff] }
0x1799   :  { %17790 = vmatprep.subr.mxu1 %v22303_v44  ;;  %17786 = vmatpush3.msra.mxu0 %v21149_v24 }
0x179a   :  { %17787 = vmatprep.mubr.msk.f32.mxu0 %vm18792_vm15, %v22303_v44  ;;  %17791 = vmatpush3.msra.mxu1 %v11450_v6 }
0x179b   :  { %17788 = vmatmul.mubr.msk.f32.vlgmr.msra.gmra.mxu0 %vm11040_vm3, %v11364_v37  ;;  %17792 = vmatprep.subr.mxu1 %v22303_v44  ;;  %v11708_v21 = vpop.permute.xlu0 %11707  ;;  %v11616_v50 = vpop.permute.xlu1 %11615  ;;  %v11810_v37 = vld [vmem:[#allocation38 + $0x8] sm:$0xff] }
0x179c   :  { %17799 = vmatprep.subr.mxu0 %v22303_v44  ;;  %17793 = vmatpush3.msra.mxu1 %v11449_v10  ;;  %v11714_v19 = vmul.f32 %v11708_v21, %v22311_v29  ;;  %v11624_v46 = vmul.f32 %v11616_v50, %v22310_v26  ;;  %v12118_v50 = vld [vmem:[#allocation38 + $0x20] sm:$0xff] }
0x179d   :  { %17800 = vmatpush3.msra.mxu0 %v11538_v60  ;;  %17794 = vmatprep.subr.mxu1 %v22303_v44 }
0x179e   :  { %17801 = vmatprep.subr.mxu0 %v22303_v44  ;;  %17795 = vmatpush3.msra.mxu1 %v11448_v52 }
0x179f   :  { %17796 = vmatprep.mubr.msk.f32.mxu1 %vm18792_vm15, %v22303_v44  ;;  %17802 = vmatpush3.msra.mxu0 %v11537_v32  ;;  %v11706_v63 = vpop.permute.xlu0 %11705  ;;  %v11704_v28 = vpop.permute.xlu1 %11703 }
0x17a0   :  { %17797 = vmatmul.mubr.msk.f32.vlgmr.msra.gmra.mxu1 %vm11040_vm3, %v11452_v15  ;;  %17803 = vmatprep.subr.mxu0 %v22303_v44  ;;  %v11713_v55 = vmul.f32 %v11706_v63, %v22311_v29  ;;  %v11712_v62 = vmul.f32 %v11704_v28, %v22311_v29  ;;  %v12278_v63 = vld [vmem:[#allocation38 + $0x30] sm:$0xff]  ;;  %v12583_v28 = vld [vmem:[#allocation53 + $0x1f0] sm:$0xff] }
0x17a1   :  { %17808 = vmatprep.subr.mxu1 %v22303_v44  ;;  %17804 = vmatpush3.msra.mxu0 %v11536_v42  ;;  %v12198_v42 = vld [vmem:[#allocation38 + $0x28] sm:$0xff] }
0x17a2   :  { %17805 = vmatprep.mubr.msk.f32.mxu0 %vm18792_vm15, %v22303_v44  ;;  %17809 = vmatpush3.msra.mxu1 %v11626_v59 }
0x17a3   :  { %17806 = vmatmul.mubr.msk.f32.vlgmr.msra.gmra.mxu0 %vm11040_vm3, %v11540_v39  ;;  %17810 = vmatprep.subr.mxu1 %v22303_v44 }
0x17a4   :  { %17817 = vmatprep.subr.mxu0 %v22303_v44  ;;  %17811 = vmatpush3.msra.mxu1 %v11625_v23  ;;  %v12358_v23 = vld [vmem:[#allocation38 + $0x38] sm:$0xff] }
0x17a5   :  { %17818 = vmatpush3.msra.mxu0 %v11714_v19  ;;  %17812 = vmatprep.subr.mxu1 %v22303_v44  ;;  %v12582_v19 = vld [vmem:[#allocation53 + $0x1e8] sm:$0xff] }
0x17a6   :  { %17819 = vmatprep.subr.mxu0 %v22303_v44  ;;  %17813 = vmatpush3.msra.mxu1 %v11624_v46  ;;  %v12578_v46 = vld [vmem:[#allocation53 + $0x1c8] sm:$0xff] }
0x17a7   :  { %17814 = vmatprep.mubr.msk.f32.mxu1 %vm18792_vm15, %v22303_v44  ;;  %17820 = vmatpush3.msra.mxu0 %v11713_v55  ;;  %v12581_v55 = vld [vmem:[#allocation53 + $0x1e0] sm:$0xff] }
0x17a8   :  { %17815 = vmatmul.mubr.msk.f32.vlgmr.msra.gmra.mxu1 %vm11040_vm3, %v11628_v45  ;;  %17821 = vmatprep.subr.mxu0 %v22303_v44  ;;  %v12577_v45 = vld [vmem:[#allocation53 + $0x1c0] sm:$0xff] }
0x17a9   :  { %17822 = vmatpush3.msra.mxu0 %v11712_v62  ;;  %17823 = vmatprep.mubr.msk.f32.mxu0 %vm18792_vm15, %v22303_v44  ;;  %v12580_v62 = vld [vmem:[#allocation53 + $0x1d8] sm:$0xff] }
0x17aa   :  { %17824 = vmatmul.mubr.msk.f32.vlgmr.msra.gmra.mxu0 %vm11040_vm3, %v11716_v49  ;;  %17826 = vmatprep.subr.mxu1 %v22303_v44  ;;  %v12574_v49 = vld [vmem:[#allocation53 + $0x1a8] sm:$0xff]  ;;  %vm12824_vm3 = vcmask 97280  }
0x17ab   :  { %17831 = vmatprep.subr.mxu0 %v22303_v44  ;;  %17828 = vmatprep.mubr.msk.f32.mxu1 %vm18792_vm15, %v22303_v44 }
0x17ac   :  { %17833 = vmatprep.mubr.msk.f32.mxu0 %vm18792_vm15, %v22303_v44  ;;  %v11795_v53 = vpop.permute.xlu0 %11794 }
0x184b   :  { %v11110_v38 = vpop.f32.mrf.mxu1 }
0x184d   :  { %v17753_v24 = vpop.f32.mrf.mxu1 }
0x184e   :  { %v12573_v24 = vld [vmem:[#allocation53 + $0x1a0] sm:$0xff] }
0x1851   :  { %v11183_v31 = vpop.f32.mrf.mxu1 }
0x1852   :  { %v11184_v25 = vadd.f32 %v11183_v31, %v11110_v38  ;;  %v12579_v38 = vld [vmem:[#allocation53 + $0x1d0] sm:$0xff]  ;;  %v12576_v31 = vld [vmem:[#allocation53 + $0x1b8] sm:$0xff] }
0x1853   :  { %v17762_v12 = vpop.f32.mrf.mxu1  ;;  %v11270_v40 = vpop.f32.mrf.mxu0 }
0x1854   :  { %v11274_v43 = vadd.f32 %v11270_v40, %v11184_v25  ;;  %v12570_v12 = vld [vmem:[#allocation53 + $0x188] sm:$0xff]  ;;  %v12575_v40 = vld [vmem:[#allocation53 + $0x1b0] sm:$0xff]  ;;  %v12572_v25 = vld [vmem:[#allocation53 + $0x198] sm:$0xff] }
0x1855   :  { %v17771_v16 = vpop.f32.mrf.mxu0 }
0x1856   :  { %v12569_v16 = vld [vmem:[#allocation53 + $0x180] sm:$0xff] }
0x1858   :  { %v11358_v51 = vpop.f32.mrf.mxu1 }
0x1859   :  { %v11362_v7 = vadd.f32 %v11358_v51, %v11274_v43  ;;  %v12566_v51 = vld [vmem:[#allocation53 + $0x168] sm:$0xff]  ;;  %v12568_v43 = vld [vmem:[#allocation53 + $0x178] sm:$0xff] }
0x185a   :  { %v17780_v58 = vpop.f32.mrf.mxu1 }
0x185b   :  { %v11434_v5 = vpop.f32.mrf.mxu0  ;;  %v12571_v58 = vld [vmem:[#allocation53 + $0x190] sm:$0xff] }
0x185c   :  { %v11438_v47 = vadd.f32 %v11434_v5, %v11362_v7  ;;  %v12565_v5 = vld [vmem:[#allocation53 + $0x160] sm:$0xff]  ;;  %v12567_v7 = vld [vmem:[#allocation53 + $0x170] sm:$0xff] }
0x185d   :  { %v17789_v17 = vpop.f32.mrf.mxu0 }
0x185e   :  { %v12562_v17 = vld [vmem:[#allocation53 + $0x148] sm:$0xff] }
0x1860   :  { %v11522_v2 = vpop.f32.mrf.mxu1 }
0x1861   :  { %v11526_v0 = vadd.f32 %v11522_v2, %v11438_v47  ;;  %v12564_v2 = vld [vmem:[#allocation53 + $0x158] sm:$0xff]  ;;  %v12561_v47 = vld [vmem:[#allocation53 + $0x140] sm:$0xff] }
0x1862   :  { %v17798_v13 = vpop.f32.mrf.mxu1 }
0x1863   :  { %v11610_v1 = vpop.f32.mrf.mxu0  ;;  %v12563_v13 = vld [vmem:[#allocation53 + $0x150] sm:$0xff] }
0x1864   :  { %v11614_v22 = vadd.f32 %v11610_v1, %v11526_v0  ;;  %v12558_v0 = vld [vmem:[#allocation53 + $0x128] sm:$0xff]  ;;  %v12560_v1 = vld [vmem:[#allocation53 + $0x138] sm:$0xff] }
0x1865   :  { %v17807_v18 = vpop.f32.mrf.mxu0 }
0x1866   :  { %v12557_v18 = vld [vmem:[#allocation53 + $0x120] sm:$0xff] }
0x1868   :  { %v11698_v56 = vpop.f32.mrf.mxu1 }
0x1869   :  { %v11702_v48 = vadd.f32 %v11698_v56, %v11614_v22  ;;  %v12559_v22 = vld [vmem:[#allocation53 + $0x130] sm:$0xff]  ;;  %v12554_v56 = vld [vmem:[#allocation53 + $0x108] sm:$0xff] }
0x186a   :  { %v17816_v57 = vpop.f32.mrf.mxu1  ;;  %v11786_v20 = vpop.f32.mrf.mxu0 }
0x186b   :  { %v11790_v36 = vadd.f32 %v11786_v20, %v11702_v48  ;;  %v12556_v48 = vld [vmem:[#allocation53 + $0x118] sm:$0xff]  ;;  %v12553_v57 = vld [vmem:[#allocation53 + $0x100] sm:$0xff]  ;;  %v12555_v20 = vld [vmem:[#allocation53 + $0x110] sm:$0xff] }
0x186c   :  { %v17825_v35 = vpop.f32.mrf.mxu0 }
0x186d   :  { %v11797_v30 = vadd.f32 %v11795_v53, %v11790_v36  ;;  %v12550_v36 = vld [vmem:[#allocation53 + $0xe8] sm:$0xff]  ;;  %v12552_v53 = vld [vmem:[#allocation53 + $0xf8] sm:$0xff]  ;;  %v12549_v35 = vld [vmem:[#allocation53 + $0xe0] sm:$0xff] }
0x186f   :  { %v11798_v61 = vmax.f32 %v11797_v30, 0.0  ;;  %v12551_v30 = vld [vmem:[#allocation53 + $0xf0] sm:$0xff] }
0x1871   :  { %11800 = vrot.lane.b32.xlu0 %v11798_v61, %s18793_s26  ;;  %11805 = vrot.lane.b32.xlu1 %v11798_v61, %s18748_s1 }
0x1875   :  { %12037 = vrot.lane.b32.xlu0 %v11798_v61, %s18786_s18  ;;  %11957 = vrot.lane.b32.xlu1 %v11798_v61, %s18794_s28 }
0x1879   :  { %12273 = vrot.lane.b32.xlu0 %v11798_v61, %s18795_s21  ;;  %12193 = vrot.lane.b32.xlu1 %v11798_v61, %s18787_s22 }
0x187d   :  { %12433 = vrot.lane.b32.xlu0 %v11798_v61, %s18796_s27  ;;  %12353 = vrot.lane.b32.xlu1 %v11798_v61, %s18797_s14 }
0x1881   :  { %12516 = vperm.xlu1 %17997, %v12513_v4   ;;  %v12548_v4 = vld [vmem:[#allocation53 + $0xd8] sm:$0xff] }
0x18e3   :  { %v11801_v54 = vpop.permute.xlu0 %11800  ;;  %v11806_v41 = vpop.permute.xlu1 %11805 }
0x18e4   :  { %v11803_v14 = vmul.f32 %v11801_v54, %v22306_v27  ;;  %v11808_v6 = vmul.f32 %v11806_v41, %v22304_v33  ;;  %v12042_v27 = vld [vmem:[#allocation38 + $0x18] sm:$0xff]  ;;  %v11962_v33 = vld [vmem:[#allocation38 + $0x10] sm:$0xff]  ;;  %v12545_v54 = vld [vmem:[#allocation53 + $0xc0] sm:$0xff] }
0x18e5   :  { %v12547_v41 = vld [vmem:[#allocation53 + $0xd0] sm:$0xff] }
0x18e6   :  { %17827 = vmatpush3.msra.mxu1 %v11808_v6  ;;  %17832 = vmatpush3.msra.mxu0 %v11803_v14  ;;  %v12542_v14 = vld [vmem:[#allocation53 + $0xa8] sm:$0xff]  ;;  %v12544_v6 = vld [vmem:[#allocation53 + $0xb8] sm:$0xff] }
0x18e7   :  { %17834 = vmatmul.mubr.msk.f32.vlgmr.msra.gmra.mxu0 %vm2378_vm14, %v11804_v11  ;;  %v12038_v10 = vpop.permute.xlu0 %12037  ;;  %17829 = vmatmul.mubr.msk.f32.vlgmr.msra.gmra.mxu1 %vm2378_vm14, %v11810_v37  ;;  %v11958_v60 = vpop.permute.xlu1 %11957  ;;  %v12541_v11 = vld [vmem:[#allocation53 + $0xa0] sm:$0xff]  ;;  %v12543_v37 = vld [vmem:[#allocation53 + $0xb0] sm:$0xff] }
0x18e8   :  { %v12040_v21 = vmul.f32 %v12038_v10, %v22307_v8  ;;  %v11960_v52 = vmul.f32 %v11958_v60, %v22305_v3  ;;  %17836 = vmatprep.subr.mxu1 %v22303_v44  ;;  %17841 = vmatprep.subr.mxu0 %v22303_v44  ;;  %v12538_v10 = vld [vmem:[#allocation53 + $0x88] sm:$0xff]  ;;  %v12540_v60 = vld [vmem:[#allocation53 + $0x98] sm:$0xff] }
0x18e9   :  { %17838 = vmatprep.mubr.msk.f32.mxu1 %vm18792_vm15, %v22303_v44  ;;  %17843 = vmatprep.mubr.msk.f32.mxu0 %vm18792_vm15, %v22303_v44 }
0x18ea   :  { %17837 = vmatpush3.msra.mxu1 %v11960_v52  ;;  %17842 = vmatpush3.msra.mxu0 %v12040_v21  ;;  %v12537_v21 = vld [vmem:[#allocation53 + $0x80] sm:$0xff]  ;;  %v12539_v52 = vld [vmem:[#allocation53 + $0x90] sm:$0xff] }
0x18eb   :  { %17844 = vmatmul.mubr.msk.f32.vlgmr.msra.gmra.mxu0 %vm2378_vm14, %v12042_v27  ;;  %v12274_v32 = vpop.permute.xlu0 %12273  ;;  %17839 = vmatmul.mubr.msk.f32.vlgmr.msra.gmra.mxu1 %vm2378_vm14, %v11962_v33  ;;  %v12194_v3 = vpop.permute.xlu1 %12193  ;;  %v12534_v27 = vld [vmem:[#allocation53 + $0x68] sm:$0xff]  ;;  %v12536_v33 = vld [vmem:[#allocation53 + $0x78] sm:$0xff] }
0x18ec   :  { %v12276_v8 = vmul.f32 %v12274_v32, %v22309_v9  ;;  %17846 = vmatprep.subr.mxu1 %v22303_v44  ;;  %v12196_v15 = vmul.f32 %v12194_v3, %v22308_v34  ;;  %17851 = vmatprep.subr.mxu0 %v22303_v44  ;;  %v12533_v32 = vld [vmem:[#allocation53 + $0x60] sm:$0xff]  ;;  %v12535_v3 = vld [vmem:[#allocation53 + $0x70] sm:$0xff] }
0x18ed   :  { %17847 = vmatpush3.msra.mxu1 %v11798_v61  ;;  %17848 = vmatprep.mubr.msk.f32.mxu1 %vm18792_vm15, %v22303_v44  ;;  %v12546_v61 = vld [vmem:[#allocation53 + $0xc8] sm:$0xff] }
0x18ee   :  { %17852 = vmatpush3.msra.mxu0 %v12196_v15  ;;  %17853 = vmatprep.mubr.msk.f32.mxu0 %vm18792_vm15, %v22303_v44  ;;  %v12532_v15 = vld [vmem:[#allocation53 + $0x58] sm:$0xff] }
0x18ef   :  { %17856 = vmatprep.subr.mxu1 %v22303_v44  ;;  %v12434_v59 = vpop.permute.xlu0 %12433  ;;  %17849 = vmatmul.mubr.msk.f32.vlgmr.msra.gmra.mxu1 %vm2378_vm14, %v12118_v50  ;;  %v12354_v9 = vpop.permute.xlu1 %12353  ;;  %v12529_v50 = vld [vmem:[#allocation53 + $0x40] sm:$0xff] }
0x18f0   :  { %v12436_v34 = vmul.f32 %v12434_v59, %v22311_v29  ;;  %17854 = vmatmul.mubr.msk.f32.vlgmr.msra.gmra.mxu0 %vm2378_vm14, %v12198_v42  ;;  %17857 = vmatpush3.msra.mxu1 %v12276_v8  ;;  %v12356_v39 = vmul.f32 %v12354_v9, %v22310_v26  ;;  %v12584_v29 = vld [vmem:[#allocation53 + $0x1f8] sm:$0xff]  ;;  %v12530_v8 = vld [vmem:[#allocation53 + $0x48] sm:$0xff]  ;;  %v12531_v42 = vld [vmem:[#allocation53 + $0x50] sm:$0xff] }
0x18f1   :  { %17861 = vmatprep.subr.mxu0 %v22303_v44  ;;  %17858 = vmatprep.mubr.msk.f32.mxu1 %vm18792_vm15, %v22303_v44  ;;  %v12438_v26 = vld [vmem:[#allocation38 + $0x40] sm:$0xff]  ;;  %v12526_v59 = vld [vmem:[#allocation53 + $0x28] sm:$0xff] }
0x18f2   :  { %17862 = vmatpush3.msra.mxu0 %v12356_v39  ;;  %17863 = vmatprep.mubr.msk.f32.mxu0 %vm18792_vm15, %v22303_v44  ;;  %v12528_v9 = vld [vmem:[#allocation53 + $0x38] sm:$0xff]  ;;  %v12527_v39 = vld [vmem:[#allocation53 + $0x30] sm:$0xff] }
0x18f3   :  { %17866 = vmatprep.subr.mxu1 %v22303_v44  ;;  %17859 = vmatmul.mubr.msk.f32.vlgmr.msra.gmra.mxu1 %vm2378_vm14, %v12278_v63  ;;  %v12522_v63 = vld [vmem:[#allocation53 + $0x8] sm:$0xff] }
0x18f4   :  { %17864 = vmatmul.mubr.msk.f32.vlgmr.msra.gmra.mxu0 %vm2378_vm14, %v12358_v23  ;;  %17867 = vmatpush3.msra.mxu1 %v12436_v34  ;;  %v12525_v34 = vld [vmem:[#allocation53 + $0x20] sm:$0xff]  ;;  %v12524_v23 = vld [vmem:[#allocation53 + $0x18] sm:$0xff] }
0x18f5   :  { %17868 = vmatprep.mubr.msk.f32.mxu1 %vm18792_vm15, %v22303_v44  ;;  %12585 = vmatprep.subr.mxu0 %v12582_v19  ;;  %v12521_v19 = vld [vmem:[#allocation53] sm:$0xff]  ;;  %vm22320_vm15 = vcmask 924672  }
0x18f6   :  { %12656 = vmatprep.subr.mxu1 %v12584_v29  ;;  %12586 = vmatpush1.msra.mxu0 %v12581_v55  ;;  %v12523_v29 = vld [vmem:[#allocation53 + $0x10] sm:$0xff]  ;;  %v21311_v55 = vld [vmem:[%s22209_s17 + $0x8] sm:$0xff]  ;;  %vm22321_vm4 = vmmov %vm22320_vm15 }
0x18f7   :  { %17869 = vmatmul.mubr.msk.f32.vlgmr.msra.gmra.mxu1 %vm2378_vm14, %v12438_v26  ;;  %12587 = vmatprep.subr.mxu0 %v12578_v46  ;;  %v21314_v26 = vld [vmem:[%s22209_s17] sm:$0xff]  ;;  %v21318_v46 = vcombine.high %v21311_v55, %v21311_v55  ;;  %vm22319_vm14 = vmmov %vm22316_vm9 }
0x18f8   :  { %12657 = vmatpush1.msra.mxu1 %v12583_v28  ;;  %12588 = vmatpush1.msra.mxu0 %v12577_v45  ;;  %v21326_v28 = vcombine.high %v21314_v26, %v21314_v26  ;;  %vm22322_vm8 = vmmov %vm22321_vm4 }
0x18f9   :  { %12658 = vmatprep.subr.mxu1 %v12580_v62  ;;  %12589 = vmatprep.subr.mxu0 %v12574_v49  ;;  %vm22323_vm5 = vmmov %vm22321_vm4 }
0x18fa   :  { %12659 = vmatpush1.msra.mxu1 %v12579_v38  ;;  %12590 = vmatpush1.msra.mxu0 %v12573_v24 }
0x18fb   :  { %12660 = vmatprep.subr.mxu1 %v12576_v31  ;;  %12591 = vmatprep.subr.mxu0 %v12570_v12 }
0x18fc   :  { %12661 = vmatpush1.msra.mxu1 %v12575_v40  ;;  %12592 = vmatpush1.msra.mxu0 %v12569_v16 }
0x18fd   :  { %12662 = vmatprep.subr.mxu1 %v12572_v25  ;;  %12593 = vmatprep.subr.mxu0 %v12566_v51 }
0x18fe   :  { %12663 = vmatpush1.msra.mxu1 %v12571_v58  ;;  %12649 = vmatprep.mubr.f32.mxu0 %v22303_v44 }
0x18ff   :  { %12664 = vmatprep.subr.mxu1 %v12568_v43  ;;  %12720 = vmatprep.mubr.f32.mxu1 %v22303_v44 }
0x1900   :  { %12594 = vmatpush1.msra.mxu0 %v12565_v5  ;;  %12665 = vmatpush1.msra.mxu1 %v12567_v7 }
0x1901   :  { %12595 = vmatprep.subr.mxu0 %v12562_v17  ;;  %12666 = vmatprep.subr.mxu1 %v12564_v2 }
0x1902   :  { %12596 = vmatpush1.msra.mxu0 %v12561_v47  ;;  %12667 = vmatpush1.msra.mxu1 %v12563_v13 }
0x1903   :  { %12597 = vmatprep.subr.mxu0 %v12558_v0  ;;  %12668 = vmatprep.subr.mxu1 %v12560_v1 }
0x1904   :  { %12598 = vmatpush1.msra.mxu0 %v12557_v18  ;;  %12669 = vmatpush1.msra.mxu1 %v12559_v22 }
0x1905   :  { %12599 = vmatprep.subr.mxu0 %v12554_v56  ;;  %12670 = vmatprep.subr.mxu1 %v12556_v48 }
0x1906   :  { %12600 = vmatpush1.msra.mxu0 %v12553_v57  ;;  %12671 = vmatpush1.msra.mxu1 %v12555_v20  ;;  %v12517_v57 = vpop.permute.xlu1 %12516 }
0x1907   :  { %12601 = vmatprep.subr.mxu0 %v12550_v36  ;;  %12672 = vmatprep.subr.mxu1 %v12552_v53 }
0x1908   :  { %12602 = vmatpush1.msra.mxu0 %v12549_v35  ;;  %12673 = vmatpush1.msra.mxu1 %v12551_v30 }
0x1909   :  { %12603 = vmatprep.subr.mxu0 %v12546_v61  ;;  %12674 = vmatprep.subr.mxu1 %v12548_v4 }
0x190a   :  { %12604 = vmatpush1.msra.mxu0 %v12545_v54  ;;  %12675 = vmatpush1.msra.mxu1 %v12547_v41  ;;  %v22312_v41 = vld [vmem:[#allocation98_spill] sm:$0xff] }
0x190b   :  { %12605 = vmatprep.subr.mxu0 %v12542_v14  ;;  %12676 = vmatprep.subr.mxu1 %v12544_v6 }
0x190c   :  { %12606 = vmatpush1.msra.mxu0 %v12541_v11  ;;  %12677 = vmatpush1.msra.mxu1 %v12543_v37 }
0x190d   :  { %12607 = vmatprep.subr.mxu0 %v12538_v10  ;;  %12678 = vmatprep.subr.mxu1 %v12540_v60  ;;  %v22313_v10 = vld [vmem:[#allocation94_spill] sm:$0xff] }
0x190e   :  { %12608 = vmatpush1.msra.mxu0 %v12537_v21  ;;  %12679 = vmatpush1.msra.mxu1 %v12539_v52  ;;  %v22314_v21 = vld [vmem:[#allocation96_spill] sm:$0xff] }
0x190f   :  { %12609 = vmatprep.subr.mxu0 %v12534_v27  ;;  %12680 = vmatprep.subr.mxu1 %v12536_v33  ;;  %v22315_v27 = vld [vmem:[#allocation92_spill] sm:$0xff] }
0x1910   :  { %12610 = vmatpush1.msra.mxu0 %v12533_v32  ;;  %12681 = vmatpush1.msra.mxu1 %v12535_v3 }
0x1911   :  { %12611 = vmatprep.subr.mxu0 %v12530_v8  ;;  %12682 = vmatprep.subr.mxu1 %v12532_v15 }
0x1912   :  { %12612 = vmatpush1.msra.mxu0 %v12529_v50  ;;  %12683 = vmatpush1.msra.mxu1 %v12531_v42 }
0x1913   :  { %12613 = vmatprep.subr.mxu0 %v12526_v59  ;;  %12684 = vmatprep.subr.mxu1 %v12528_v9 }
0x1914   :  { %12614 = vmatpush1.msra.mxu0 %v12525_v34  ;;  %12685 = vmatpush1.msra.mxu1 %v12527_v39 }
0x1915   :  { %12615 = vmatprep.subr.mxu0 %v12522_v63  ;;  %12686 = vmatprep.subr.mxu1 %v12524_v23 }
0x1916   :  { %12616 = vmatpush1.msra.mxu0 %v12521_v19  ;;  %12687 = vmatpush1.msra.mxu1 %v12523_v29 }
0x1917   :  { %12792 = vrot.lane.b32.xlu1 %v21314_v26, %s18783_s13  ;;  %12782 = vrot.lane.b32.xlu0 %v21318_v46, %s18783_s13 }
0x191b   :  { %12796 = vrot.lane.b32.xlu1 %v21311_v55, %s18783_s13  ;;  %12794 = vrot.lane.b32.xlu0 %v21326_v28, %s18783_s13 }
0x191f   :  { %12749 = vrot.lane.b32.xlu1 %v21314_v26, %s18784_s24  ;;  %12736 = vrot.lane.b32.xlu0 %v21318_v46, %s18784_s24 }
0x1923   :  { %12753 = vrot.lane.b32.xlu1 %v21311_v55, %s18784_s24  ;;  %12751 = vrot.lane.b32.xlu0 %v21326_v28, %s18784_s24 }
0x1927   :  { %13151 = vrot.lane.b32.xlu1 %v21314_v26, %s18785_s16  ;;  %13141 = vrot.lane.b32.xlu0 %v21318_v46, %s18785_s16 }
0x192b   :  { %13155 = vrot.lane.b32.xlu1 %v21311_v55, %s18785_s16  ;;  %13153 = vrot.lane.b32.xlu0 %v21326_v28, %s18785_s16 }
0x192f   :  { %13356 = vrot.lane.b32.xlu1 %v21314_v26, %s18786_s18  ;;  %13346 = vrot.lane.b32.xlu0 %v21318_v46, %s18786_s18 }
0x1933   :  { %13360 = vrot.lane.b32.xlu1 %v21311_v55, %s18786_s18  ;;  %13358 = vrot.lane.b32.xlu0 %v21326_v28, %s18786_s18 }
0x1937   :  { %13718 = vrot.lane.b32.xlu1 %v21326_v28, %s18787_s22  ;;  %13716 = vrot.lane.b32.xlu0 %v21314_v26, %s18787_s22 }
0x193b   :  { %13722 = vrot.lane.b32.xlu1 %v21318_v46, %s18787_s22  ;;  %13720 = vrot.lane.b32.xlu0 %v21311_v55, %s18787_s22 }
0x193f   :  { %13923 = vrot.lane.b32.xlu1 %v21326_v28, %s18788_s30  ;;  %13921 = vrot.lane.b32.xlu0 %v21314_v26, %s18788_s30 }
0x1943   :  { %13927 = vrot.lane.b32.xlu1 %v21318_v46, %s18788_s30  ;;  %13925 = vrot.lane.b32.xlu0 %v21311_v55, %s18788_s30 }
0x1947   :  { %14128 = vrot.lane.b32.xlu1 %v21326_v28, %s18789_s8  ;;  %14126 = vrot.lane.b32.xlu0 %v21314_v26, %s18789_s8 }
0x194b   :  { %14132 = vrot.lane.b32.xlu1 %v21318_v46, %s18789_s8  ;;  %14130 = vrot.lane.b32.xlu0 %v21311_v55, %s18789_s8 }
0x1989   :  { %v12783_v35 = vpop.permute.xlu0 %12782  ;;  %v12793_v30 = vpop.permute.xlu1 %12792 }
0x198a   :  { %v12813_v61 = vsel %vm715_vm1, %v12783_v35, %v12793_v30 }
0x198b   :  { %v12818_v14 = vmul.f32 %v12813_v61, %v22312_v41 }
0x198d   :  { %v12795_v4 = vpop.permute.xlu0 %12794  ;;  %v12797_v54 = vpop.permute.xlu1 %12796 }
0x198e   :  { %v12801_v6 = vsel %vm715_vm1, %v12793_v30, %v12795_v4  ;;  %v12802_v11 = vsel %vm715_vm1, %v12795_v4, %v12797_v54  ;;  %v12803_v37 = vsel %vm715_vm1, %v12797_v54, %v12783_v35 }
0x198f   :  { %v12819_v60 = vmul.f32 %v12801_v6, %v22313_v10  ;;  %v12820_v52 = vmul.f32 %v12802_v11, %v22314_v21  ;;  %v12821_v33 = vmul.f32 %v12803_v37, %v22315_v27 }
0x1991   :  { %16549 = vmatprep.subr.msk.mxu0 %vm734_vm7, %v12819_v60  ;;  %16552 = vmatprep.subr.msk.mxu1 %vm734_vm7, %v12821_v33  ;;  %v12750_v32 = vpop.permute.xlu1 %12749  ;;  %v21394_v3 = vpop.permute.xlu0 %12736 }
0x1992   :  { %v21400_v15 = vsel %vm692_vm10, %v21394_v3, %v12750_v32 }
0x1995   :  { %v21396_v8 = vpop.permute.xlu1 %12753  ;;  %v21402_v50 = vpop.permute.xlu0 %12751 }
0x1996   :  { %v21406_v59 = vsel %vm692_vm10, %v12750_v32, %v21402_v50 }
0x1999   :  { %v13152_v42 = vpop.permute.xlu1 %13151  ;;  %v21408_v9 = vpop.permute.xlu0 %13141 }
0x199a   :  { %v21414_v39 = vsel %vm1055_vm0, %v21408_v9, %v13152_v42 }
0x199d   :  { %v21410_v34 = vpop.permute.xlu1 %13155  ;;  %v21416_v63 = vpop.permute.xlu0 %13153 }
0x199e   :  { %v21420_v19 = vsel %vm1055_vm0, %v13152_v42, %v21416_v63 }
0x19a1   :  { %v13357_v23 = vpop.permute.xlu1 %13356  ;;  %v21422_v29 = vpop.permute.xlu0 %13346 }
0x19a7   :  { %v11880_v45 = vpop.f32.mrf.mxu1  ;;  %v11953_v62 = vpop.f32.mrf.mxu0 }
0x19a8   :  { %v11954_v24 = vadd.f32 %v11953_v62, %v11880_v45  ;;  %v21424_v45 = vpop.permute.xlu1 %13360  ;;  %v21428_v62 = vsel %vm1240_vm2, %v21422_v29, %v13357_v23 }
0x19a9   :  { %v17830_v49 = vpop.f32.mrf.mxu1  ;;  %v17835_v38 = vpop.f32.mrf.mxu0 }
0x19aa   :  { %v21430_v49 = vpop.permute.xlu0 %13358 }
0x19ab   :  { %v12032_v31 = vpop.f32.mrf.mxu1  ;;  %v12112_v12 = vpop.f32.mrf.mxu0 }
0x19ac   :  { %v12036_v40 = vadd.f32 %v12032_v31, %v11954_v24  ;;  %v13719_v38 = vpop.permute.xlu1 %13718  ;;  %v21434_v24 = vsel %vm1240_vm2, %v13357_v23, %v21430_v49 }
0x19ad   :  { %v17840_v16 = vpop.f32.mrf.mxu1  ;;  %v17845_v25 = vpop.f32.mrf.mxu0 }
0x19ae   :  { %v12116_v51 = vadd.f32 %v12112_v12, %v12036_v40  ;;  %v13717_v31 = vpop.permute.xlu0 %13716 }
0x19af   :  { %v12188_v58 = vpop.f32.mrf.mxu1  ;;  %v21437_v40 = vsel %vm22316_vm9, %v13717_v31, %v13719_v38 }
0x19b0   :  { %v12192_v43 = vadd.f32 %v12188_v58, %v12116_v51  ;;  %v12268_v5 = vpop.f32.mrf.mxu0  ;;  %v13723_v12 = vpop.permute.xlu1 %13722 }
0x19b1   :  { %v17850_v7 = vpop.f32.mrf.mxu1  ;;  %v21440_v16 = vsel %vm22317_vm12, %v13723_v12, %v13717_v31  ;;  %vm22340_vm12 = vmmov %vm22316_vm9 }
0x19b2   :  { %v12272_v17 = vadd.f32 %v12268_v5, %v12192_v43  ;;  %v17855_v2 = vpop.f32.mrf.mxu0  ;;  %v13721_v25 = vpop.permute.xlu0 %13720 }
0x19b3   :  { %v12348_v47 = vpop.f32.mrf.mxu1  ;;  %v21443_v58 = vsel %vm22318_vm13, %v13719_v38, %v13721_v25  ;;  %v21446_v43 = vsel %vm22319_vm14, %v13721_v25, %v13723_v12  ;;  %v12760_v38 = vsel %vm692_vm10, %v21396_v8, %v21394_v3  ;;  %vm22342_vm13 = vmmov %vm22316_vm9 }
0x19b4   :  { %v12352_v13 = vadd.f32 %v12348_v47, %v12272_v17  ;;  %v12428_v0 = vpop.f32.mrf.mxu0  ;;  %v13924_v51 = vpop.permute.xlu1 %13923  ;;  %vm22345_vm14 = vmmov %vm22316_vm9 }
0x19b5   :  { %v17860_v1 = vpop.f32.mrf.mxu1 }
0x19b6   :  { %v12432_v18 = vadd.f32 %v12428_v0, %v12352_v13  ;;  %v17865_v22 = vpop.f32.mrf.mxu0  ;;  %v13922_v5 = vpop.permute.xlu0 %13921 }
0x19b7   :  { %v12508_v56 = vpop.f32.mrf.mxu1  ;;  %v21449_v17 = vsel %vm22320_vm15, %v13922_v5, %v13924_v51  ;;  %vm22347_vm15 = vmmov %vm22321_vm4 }
0x19b8   :  { %v12512_v48 = vadd.f32 %v12508_v56, %v12432_v18  ;;  %v13928_v7 = vpop.permute.xlu1 %13927 }
0x19b9   :  { %v17870_v20 = vpop.f32.mrf.mxu1  ;;  %v21452_v2 = vsel %vm22321_vm4, %v13928_v7, %v13922_v5 }
0x19ba   :  { %v12519_v36 = vadd.f32 %v12517_v57, %v12512_v48  ;;  %v13926_v47 = vpop.permute.xlu0 %13925 }
0x19bb   :  { %v21455_v13 = vsel %vm22322_vm8, %v13924_v51, %v13926_v47  ;;  %v21458_v0 = vsel %vm22323_vm5, %v13926_v47, %v13928_v7  ;;  %v12759_v7 = vsel %vm692_vm10, %v21402_v50, %v21396_v8  ;;  %vm22349_vm8 = vmmov %vm22321_vm4 }
0x19bc   :  { %v12520_v53 = vmax.f32 %v12519_v36, 0.0  ;;  %v21460_v1 = vpop.permute.xlu1 %14128  ;;  %v14528_v36 = vld [vmem:[#allocation42] sm:$0xf]  ;;  %vm22352_vm5 = vmmov %vm22321_vm4 }
0x19be   :  { %12650 = vmatmul.mubr.f32.vlgmr.msra.gmra.mxu0 %v12520_v53  ;;  %12721 = vmatmul.mubr.f32.vlgmr.msra.gmra.mxu1 %v12520_v53  ;;  %v21462_v18 = vpop.permute.xlu0 %14126 }
0x19bf   :  { %12975 = vmatprep.mubr.f32.mxu1 %v22303_v44  ;;  %12904 = vmatprep.mubr.f32.mxu0 %v22303_v44  ;;  %v21467_v22 = vsel %vm22324_vm6, %v21462_v18, %v21460_v1 }
0x19c0   :  { %16550 = vmatpush1.msk.msra.mxu0 %vm734_vm7, %v12818_v14  ;;  %16553 = vmatpush1.msk.msra.mxu1 %vm734_vm7, %v12820_v52  ;;  %22325 = vst [vmem:[#allocation146_spill] sm:$0xff] %v21467_v22  ;;  %v21551_v35 = vpop.permute.xlu1 %14132 }
0x19c2   :  { %v21549_v53 = vpop.permute.xlu0 %14130 }
0x1a7e   :  { %v21469_v56 = vpop.f32.mrf.mxu0  ;;  %v21475_v48 = vpop.f32.mrf.mxu1 }
0x1a7f   :  { %13708 = vrot.lane.b32.xlu0 %v21469_v56, %s18787_s22  ;;  %12786 = vrot.lane.b32.xlu1 %v21469_v56, %s18783_s13 }
0x1a80   :  { %v21493_v57 = vpop.f32.mrf.mxu1  ;;  %v21499_v20 = vpop.f32.mrf.mxu0 }
0x1a83   :  { %13712 = vrot.lane.b32.xlu0 %v21475_v48, %s18787_s22  ;;  %12790 = vrot.lane.b32.xlu1 %v21475_v48, %s18783_s13 }
0x1a87   :  { %13913 = vrot.lane.b32.xlu0 %v21469_v56, %s18788_s30  ;;  %12743 = vrot.lane.b32.xlu1 %v21469_v56, %s18784_s24 }
0x1a8b   :  { %13917 = vrot.lane.b32.xlu0 %v21475_v48, %s18788_s30  ;;  %12747 = vrot.lane.b32.xlu1 %v21475_v48, %s18784_s24 }
0x1a8f   :  { %14118 = vrot.lane.b32.xlu0 %v21469_v56, %s18789_s8  ;;  %13145 = vrot.lane.b32.xlu1 %v21469_v56, %s18785_s16 }
0x1a93   :  { %12780 = vrot.lane.b32.xlu0 %v21493_v57, %s18783_s13  ;;  %13149 = vrot.lane.b32.xlu1 %v21475_v48, %s18785_s16 }
0x1a97   :  { %13350 = vrot.lane.b32.xlu1 %v21469_v56, %s18786_s18  ;;  %12788 = vrot.lane.b32.xlu0 %v21499_v20, %s18783_s13 }
0x1a9b   :  { %13354 = vrot.lane.b32.xlu1 %v21475_v48, %s18786_s18  ;;  %12734 = vrot.lane.b32.xlu0 %v21493_v57, %s18784_s24 }
0x1a9f   :  { %14333 = vrot.lane.b32.xlu1 %v21326_v28, %s22326_s25  ;;  %12745 = vrot.lane.b32.xlu0 %v21499_v20, %s18784_s24 }
0x1aa3   :  { %14337 = vrot.lane.b32.xlu1 %v21318_v46, %s22326_s25  ;;  %13139 = vrot.lane.b32.xlu0 %v21493_v57, %s18785_s16 }
0x1aa7   :  { %13710 = vrot.lane.b32.xlu1 %v21499_v20, %s18787_s22  ;;  %13147 = vrot.lane.b32.xlu0 %v21499_v20, %s18785_s16 }
0x1aab   :  { %13714 = vrot.lane.b32.xlu1 %v21493_v57, %s18787_s22  ;;  %13344 = vrot.lane.b32.xlu0 %v21493_v57, %s18786_s18 }
0x1aaf   :  { %13915 = vrot.lane.b32.xlu1 %v21499_v20, %s18788_s30  ;;  %13352 = vrot.lane.b32.xlu0 %v21499_v20, %s18786_s18 }
0x1ab3   :  { %13919 = vrot.lane.b32.xlu1 %v21493_v57, %s18788_s30  ;;  %14122 = vrot.lane.b32.xlu0 %v21475_v48, %s18789_s8 }
0x1ab7   :  { %14120 = vrot.lane.b32.xlu1 %v21499_v20, %s18789_s8  ;;  %14331 = vrot.lane.b32.xlu0 %v21314_v26, %s22326_s25 }
0x1abb   :  { %14124 = vrot.lane.b32.xlu1 %v21493_v57, %s18789_s8  ;;  %14335 = vrot.lane.b32.xlu0 %v21311_v55, %s22326_s25 }
0x1abf   :  { %14325 = vrot.lane.b32.xlu1 %v21499_v20, %s22326_s25  ;;  %14323 = vrot.lane.b32.xlu0 %v21469_v56, %s22326_s25 }
0x1ac3   :  { %14329 = vrot.lane.b32.xlu1 %v21493_v57, %s22326_s25  ;;  %14327 = vrot.lane.b32.xlu0 %v21475_v48, %s22326_s25 }
0x1ac7   :  { %14531 = vperm.xlu0 %17976, %v14528_v36  }
0x1af1   :  { %v21553_v30 = vpop.permute.xlu0 %13708  ;;  %v12787_v61 = vpop.permute.xlu1 %12786 }
0x1af5   :  { %v21555_v4 = vpop.permute.xlu0 %13712  ;;  %v12791_v54 = vpop.permute.xlu1 %12790 }
0x1af9   :  { %v21557_v14 = vpop.permute.xlu0 %13913  ;;  %v12744_v6 = vpop.permute.xlu1 %12743 }
0x1afd   :  { %v21559_v11 = vpop.permute.xlu0 %13917  ;;  %v12748_v37 = vpop.permute.xlu1 %12747 }
0x1b01   :  { %v21561_v60 = vpop.permute.xlu0 %14118  ;;  %v21563_v52 = vpop.permute.xlu1 %13145 }
0x1b05   :  { %v12781_v33 = vpop.permute.xlu0 %12780  ;;  %v21565_v32 = vpop.permute.xlu1 %13149 }
0x1b06   :  { %v12800_v42 = vsel %vm715_vm1, %v12791_v54, %v12781_v33  ;;  %v12812_v31 = vsel %vm715_vm1, %v12781_v33, %v12787_v61 }
0x1b07   :  { %v12817_v23 = vmul.f32 %v12800_v42, %v22315_v27  ;;  %v22327_v42 = vld [vmem:[#allocation100_spill] sm:$0xff]  ;;  %v12814_v33 = vmul.f32 %v12812_v31, %v22312_v41 }
0x1b08   :  { %v12778_v3 = vmul.f32 %v12760_v38, %v22327_v42  ;;  %v12823_v27 = vld [vmem:[#allocation41 + $0x4] sm:$0xf]  ;;  %v22330_v38 = vld [vmem:[#allocation103_spill] sm:$0xff] }
0x1b09   :  { %v12789_v12 = vpop.permute.xlu0 %12788  ;;  %12941 = vmatprep.subr.mxu1 %v12817_v23  ;;  %v21573_v25 = vpop.permute.xlu1 %13350  ;;  %v22328_v23 = vld [vmem:[#allocation101_spill] sm:$0xff]  ;;  %v12775_v31 = vmul.f32 %v21400_v15, %v22330_v38 }
0x1b0a   :  { %v12798_v51 = vsel %vm715_vm1, %v12787_v61, %v12789_v12  ;;  %v12799_v5 = vsel %vm715_vm1, %v12789_v12, %v12791_v54  ;;  %v12776_v22 = vmul.f32 %v21406_v59, %v22328_v23  ;;  %v22329_v12 = vld [vmem:[#allocation102_spill] sm:$0xff]  ;;  %v13162_v59 = vsel %vm1055_vm0, %v21410_v34, %v21408_v9 }
0x1b0b   :  { %v12815_v47 = vmul.f32 %v12798_v51, %v22313_v10  ;;  %v12816_v36 = vmul.f32 %v12799_v5, %v22314_v21  ;;  %v12777_v8 = vmul.f32 %v12759_v7, %v22329_v12 }
0x1b0d   :  { %v12735_v61 = vpop.permute.xlu0 %12734  ;;  %12870 = vmatprep.subr.mxu0 %v12815_v47  ;;  %12942 = vmatpush1.msra.mxu1 %v12816_v36  ;;  %v21586_v54 = vpop.permute.xlu1 %13354 }
0x1b0e   :  { %v12757_v50 = vsel %vm692_vm10, %v12748_v37, %v12735_v61  ;;  %12871 = vmatpush1.msra.mxu0 %v12814_v33  ;;  %16558 = vmatprep.subr.msk.mxu1 %vm734_vm7, %v12778_v3  ;;  %v12769_v5 = vsel %vm692_vm10, %v12735_v61, %v12744_v6  ;;  %v22331_v3 = vld [vmem:[#allocation110_spill] sm:$0xff] }
0x1b0f   :  { %v12774_v51 = vmul.f32 %v12757_v50, %v22327_v42  ;;  %16554 = vmatmul.mubr.msk.f32.vlgmr.msra.gmra.mxu1 %vm12824_vm3, %v12823_v27  ;;  %16555 = vmatprep.subr.msk.mxu0 %vm734_vm7, %v12776_v22  ;;  %v13180_v33 = vmul.f32 %v13162_v59, %v22331_v3  ;;  %v12771_v61 = vmul.f32 %v12769_v5, %v22330_v38 }
0x1b10   :  { %16559 = vmatpush1.msk.msra.mxu1 %vm734_vm7, %v12777_v8  ;;  %16551 = vmatmul.mubr.msk.f32.vlgmr.msra.gmra.mxu0 %vm12824_vm3, %v12823_v27  ;;  %v13161_v27 = vsel %vm1055_vm0, %v21416_v63, %v21410_v34  ;;  %v12779_v8 = vld [vmem:[#allocation41] sm:$0xf]  ;;  %v22334_v63 = vld [vmem:[#allocation111_spill] sm:$0xff] }
0x1b11   :  { %16556 = vmatpush1.msk.msra.mxu0 %vm734_vm7, %v12775_v31  ;;  %v12746_v7 = vpop.permute.xlu0 %12745  ;;  %13098 = vmatprep.subr.mxu1 %v12774_v51  ;;  %v21603_v15 = vpop.permute.xlu1 %14333  ;;  %v22333_v51 = vld [vmem:[#allocation109_spill] sm:$0xff]  ;;  %v13177_v59 = vmul.f32 %v21414_v39, %v22334_v63  ;;  %v13367_v39 = vsel %vm1240_vm2, %v21424_v45, %v21422_v29 }
0x1b12   :  { %v12755_v47 = vsel %vm692_vm10, %v12744_v6, %v12746_v7  ;;  %v12756_v22 = vsel %vm692_vm10, %v12746_v7, %v12748_v37  ;;  %13132 = vmatprep.mubr.f32.mxu1 %v22303_v44  ;;  %13061 = vmatprep.mubr.f32.mxu0 %v22303_v44  ;;  %v22332_v6 = vld [vmem:[#allocation108_spill] sm:$0xff]  ;;  %v13179_v7 = vmul.f32 %v13161_v27, %v22333_v51 }
0x1b13   :  { %v12772_v9 = vmul.f32 %v12755_v47, %v22328_v23  ;;  %v12773_v36 = vmul.f32 %v12756_v22, %v22329_v12  ;;  %v13178_v37 = vmul.f32 %v21420_v19, %v22332_v6 }
0x1b15   :  { %v13140_v50 = vpop.permute.xlu0 %13139  ;;  %13027 = vmatprep.subr.mxu0 %v12772_v9  ;;  %13099 = vmatpush1.msra.mxu1 %v12773_v36  ;;  %v21618_v31 = vpop.permute.xlu1 %14337 }
0x1b16   :  { %v13159_v34 = vsel %vm1055_vm0, %v21565_v32, %v13140_v50  ;;  %13028 = vmatpush1.msra.mxu0 %v12771_v61  ;;  %16564 = vmatprep.subr.msk.mxu1 %vm734_vm7, %v13180_v33  ;;  %v13171_v19 = vsel %vm1055_vm0, %v13140_v50, %v21563_v52  ;;  %v13366_v61 = vsel %vm1240_vm2, %v21430_v49, %v21424_v45  ;;  %v13182_v50 = vld [vmem:[#allocation41 + $0x8] sm:$0xf]  ;;  %v22338_v49 = vld [vmem:[#allocation99_spill] sm:$0xff] }
0x1b17   :  { %v13176_v5 = vmul.f32 %v13159_v34, %v22331_v3  ;;  %16560 = vmatmul.mubr.msk.f32.vlgmr.msra.gmra.mxu1 %vm12824_vm3, %v12779_v8  ;;  %16561 = vmatprep.subr.msk.mxu0 %vm734_vm7, %v13178_v37  ;;  %v13173_v29 = vmul.f32 %v13171_v19, %v22334_v63  ;;  %v22336_v34 = vld [vmem:[#allocation95_spill] sm:$0xff]  ;;  %v13382_v19 = vmul.f32 %v21428_v62, %v22338_v49 }
0x1b18   :  { %16565 = vmatpush1.msk.msra.mxu1 %vm734_vm7, %v13179_v7  ;;  %16557 = vmatmul.mubr.msk.f32.vlgmr.msra.gmra.mxu0 %vm12824_vm3, %v12779_v8  ;;  %v22335_v8 = vld [vmem:[#allocation93_spill] sm:$0xff] }
0x1b19   :  { %16562 = vmatpush1.msk.msra.mxu0 %vm734_vm7, %v13177_v59  ;;  %v13148_v47 = vpop.permute.xlu0 %13147  ;;  %13299 = vmatprep.subr.mxu1 %v13176_v5  ;;  %v21634_v22 = vpop.permute.xlu1 %13710  ;;  %v13385_v37 = vmul.f32 %v13367_v39, %v22335_v8  ;;  %v13383_v59 = vmul.f32 %v21434_v24, %v22336_v34  ;;  %v22337_v5 = vld [vmem:[#allocation97_spill] sm:$0xff] }
0x1b1a   :  { %v13157_v27 = vsel %vm1055_vm0, %v21563_v52, %v13148_v47  ;;  %v13158_v9 = vsel %vm1055_vm0, %v13148_v47, %v21565_v32  ;;  %13262 = vmatprep.mubr.f32.mxu0 %v22303_v44  ;;  %13333 = vmatprep.mubr.f32.mxu1 %v22303_v44  ;;  %v13384_v47 = vmul.f32 %v13366_v61, %v22337_v5  ;;  %v13387_v61 = vld [vmem:[#allocation41 + $0xc] sm:$0xf] }
0x1b1b   :  { %v13174_v36 = vmul.f32 %v13157_v27, %v22332_v6  ;;  %v13175_v33 = vmul.f32 %v13158_v9, %v22333_v51 }
0x1b1d   :  { %v13345_v52 = vpop.permute.xlu0 %13344  ;;  %13228 = vmatprep.subr.mxu0 %v13174_v36  ;;  %13300 = vmatpush1.msra.mxu1 %v13175_v33  ;;  %v13715_v32 = vpop.permute.xlu1 %13714 }
0x1b1e   :  { %v13364_v7 = vsel %vm1240_vm2, %v21586_v54, %v13345_v52  ;;  %13229 = vmatpush1.msra.mxu0 %v13173_v29  ;;  %16570 = vmatprep.subr.msk.mxu1 %vm734_vm7, %v13385_v37  ;;  %v13376_v39 = vsel %vm1240_vm2, %v13345_v52, %v21573_v25 }
0x1b1f   :  { %v13381_v45 = vmul.f32 %v13364_v7, %v22335_v8  ;;  %16563 = vmatmul.mubr.msk.f32.vlgmr.msra.gmra.mxu0 %vm12824_vm3, %v13182_v50  ;;  %16566 = vmatmul.mubr.msk.f32.vlgmr.msra.gmra.mxu1 %vm12824_vm3, %v13182_v50  ;;  %v13378_v29 = vmul.f32 %v13376_v39, %v22338_v49  ;;  %v22339_v50 = vld [vmem:[#allocation104_spill] sm:$0xff] }
0x1b20   :  { %16567 = vmatprep.subr.msk.mxu0 %vm734_vm7, %v13383_v59  ;;  %16571 = vmatpush1.msk.msra.mxu1 %vm734_vm7, %v13384_v47  ;;  %v22344_v59 = vld [vmem:[#allocation105_spill] sm:$0xff] }
0x1b21   :  { %v13353_v24 = vpop.permute.xlu0 %13352  ;;  %v21667_v27 = vpop.permute.xlu1 %13915  ;;  %16568 = vmatpush1.msk.msra.mxu0 %vm734_vm7, %v13382_v19  ;;  %13504 = vmatprep.subr.mxu1 %v13381_v45  ;;  %v13748_v47 = vmul.f32 %v21446_v43, %v22344_v59  ;;  %v13724_v45 = vsel %vm22345_vm14, %v21553_v30, %v21634_v22  ;;  %vm22357_vm14 = vmmov %vm22324_vm6 }
0x1b22   :  { %v13362_v9 = vsel %vm1240_vm2, %v21573_v25, %v13353_v24  ;;  %v13363_v62 = vsel %vm1240_vm2, %v13353_v24, %v21586_v54  ;;  %13538 = vmatprep.mubr.f32.mxu1 %v22303_v44  ;;  %13467 = vmatprep.mubr.f32.mxu0 %v22303_v44  ;;  %v13930_v39 = vsel %vm22347_vm15, %v21667_v27, %v21559_v11  ;;  %vm22361_vm15 = vmmov %vm22324_vm6 }
0x1b23   :  { %v13379_v36 = vmul.f32 %v13362_v9, %v22336_v34  ;;  %v13380_v33 = vmul.f32 %v13363_v62, %v22337_v5  ;;  %v22348_v9 = vld [vmem:[#allocation116_spill] sm:$0xff] }
0x1b24   :  { %v13952_v62 = vmul.f32 %v21455_v13, %v22348_v9  ;;  %v14151_v13 = vsel %vm22324_vm6, %v21551_v35, %v21462_v18 }
0x1b25   :  { %v21679_v37 = vpop.permute.xlu0 %14122  ;;  %13433 = vmatprep.subr.mxu0 %v13379_v36  ;;  %13505 = vmatpush1.msra.mxu1 %v13380_v33  ;;  %v13920_v25 = vpop.permute.xlu1 %13919 }
0x1b26   :  { %13434 = vmatpush1.msra.mxu0 %v13378_v29  ;;  %16572 = vmatmul.mubr.msk.f32.vlgmr.msra.gmra.mxu1 %vm12824_vm3, %v13387_v61  ;;  %v13945_v24 = vsel %vm22321_vm4, %v13920_v25, %v21557_v14  ;;  %v13931_v36 = vsel %vm22349_vm8, %v21559_v11, %v13920_v25  ;;  %v13948_v11 = vmul.f32 %v13930_v39, %v22348_v9  ;;  %vm22363_vm4 = vcmask 908288   ;;  %vm22364_vm8 = vmmov %vm22324_vm6 }
0x1b27   :  { %16576 = vmatprep.subr.msk.mxu1 %vm734_vm7, %v21318_v46  ;;  %16569 = vmatmul.mubr.msk.f32.vlgmr.msra.gmra.mxu0 %vm12824_vm3, %v13387_v61  ;;  %v13550_v46 = vld [vmem:[#allocation41 + $0x10] sm:$0xf]  ;;  %v22350_v61 = vld [vmem:[#allocation119_spill] sm:$0xff] }
0x1b28   :  { %16573 = vmatprep.subr.msk.mxu0 %vm734_vm7, %v21326_v28  ;;  %16577 = vmatpush1.msk.msra.mxu1 %vm734_vm7, %v21311_v55  ;;  %v13749_v28 = vmul.f32 %v21440_v16, %v22339_v50  ;;  %v13725_v55 = vsel %vm22316_vm9, %v21634_v22, %v21555_v4  ;;  %v22343_v16 = vld [vmem:[#allocation107_spill] sm:$0xff]  ;;  %v22346_v22 = vld [vmem:[#allocation118_spill] sm:$0xff]  ;;  %v13951_v29 = vmul.f32 %v21449_v17, %v22350_v61  ;;  %vm22353_vm9 = vmmov %vm22324_vm6 }
0x1b29   :  { %16574 = vmatpush1.msk.msra.mxu0 %vm734_vm7, %v21314_v26  ;;  %13663 = vmatprep.subr.mxu1 %v21493_v57  ;;  %v21692_v54 = vpop.permute.xlu0 %14331  ;;  %v21694_v52 = vpop.permute.xlu1 %14120  ;;  %v13740_v26 = vsel %vm22340_vm12, %v13715_v32, %v21553_v30  ;;  %v22341_v57 = vld [vmem:[#allocation106_spill] sm:$0xff]  ;;  %v13742_v43 = vmul.f32 %v13724_v45, %v22343_v16  ;;  %v13954_v19 = vmul.f32 %v21452_v2, %v22346_v22  ;;  %vm22354_vm12 = vmmov %vm22324_vm6 }
0x1b2a   :  { %13592 = vmatprep.subr.mxu0 %v21499_v20  ;;  %13664 = vmatpush1.msra.mxu1 %v21475_v48  ;;  %v13747_v7 = vmul.f32 %v21443_v58, %v22341_v57  ;;  %v13726_v20 = vsel %vm22342_vm13, %v21555_v4, %v13715_v32  ;;  %v13746_v48 = vmul.f32 %v21437_v40, %v22343_v16  ;;  %v13751_v30 = vld [vmem:[#allocation41 + $0x14] sm:$0xf]  ;;  %vm22356_vm13 = vmmov %vm22324_vm6 }
0x1b2b   :  { %13697 = vmatprep.mubr.f32.mxu1 %v22303_v44  ;;  %13593 = vmatpush1.msra.mxu0 %v21469_v56  ;;  %v13743_v56 = vmul.f32 %v13725_v55, %v22341_v57  ;;  %v13745_v32 = vmul.f32 %v13740_v26, %v22339_v50  ;;  %v13744_v40 = vmul.f32 %v13726_v20, %v22344_v59  ;;  %v22355_v26 = vld [vmem:[#allocation112_spill] sm:$0xff]  ;;  %vm22366_vm6 = vmmov %vm22363_vm4 }
0x1b2c   :  { %13626 = vmatprep.mubr.f32.mxu0 %v22303_v44  ;;  %16578 = vmatmul.mubr.msk.f32.vlgmr.msra.gmra.mxu1 %vm12824_vm3, %v13550_v46  ;;  %v13929_v55 = vsel %vm22352_vm5, %v21557_v14, %v21667_v27  ;;  %v13950_v25 = vmul.f32 %v13945_v24, %v22346_v22  ;;  %v14138_v17 = vsel %vm22353_vm9, %v21460_v1, %v21549_v53  ;;  %v13956_v27 = vld [vmem:[#allocation41 + $0x18] sm:$0xf]  ;;  %vm22365_vm5 = vmmov %vm22363_vm4 }
0x1b2d   :  { %16582 = vmatprep.subr.msk.mxu1 %vm734_vm7, %v13749_v28  ;;  %v21721_v58 = vpop.permute.xlu0 %14335  ;;  %v14125_v4 = vpop.permute.xlu1 %14124  ;;  %16575 = vmatmul.mubr.msk.f32.vlgmr.msra.gmra.mxu0 %vm12824_vm3, %v13550_v46  ;;  %v22351_v46 = vld [vmem:[#allocation117_spill] sm:$0xff]  ;;  %v14139_v18 = vsel %vm22354_vm12, %v21549_v53, %v21551_v35  ;;  %v13947_v14 = vmul.f32 %v13929_v55, %v22350_v61  ;;  %v14135_v1 = vsel %vm22356_vm13, %v21694_v52, %v21679_v37  ;;  %v22360_v35 = vld [vmem:[#allocation114_spill] sm:$0xff]  ;;  %vm22367_vm9 = vmmov %vm22363_vm4 }
0x1b2e   :  { %16579 = vmatprep.subr.msk.mxu0 %vm734_vm7, %v13747_v7  ;;  %16583 = vmatpush1.msk.msra.mxu1 %vm734_vm7, %v13748_v47  ;;  %v13953_v28 = vmul.f32 %v21458_v0, %v22351_v46  ;;  %v13949_v0 = vmul.f32 %v13931_v36, %v22351_v46  ;;  %v14159_v7 = vmul.f32 %v14151_v13, %v22355_v26  ;;  %v22359_v47 = vld [vmem:[#allocation146_spill] sm:$0xff]  ;;  %vm22368_vm12 = vmmov %vm22363_vm4  ;;  %v14161_v55 = vld [vmem:[#allocation41 + $0x1c] sm:$0xf] }
0x1b2f   :  { %16580 = vmatpush1.msk.msra.mxu0 %vm734_vm7, %v13746_v48  ;;  %13868 = vmatprep.subr.mxu1 %v13745_v32  ;;  %v14150_v20 = vsel %vm22357_vm14, %v14125_v4, %v21561_v60  ;;  %v22358_v48 = vld [vmem:[#allocation115_spill] sm:$0xff]  ;;  %v14157_v45 = vmul.f32 %v14138_v17, %v22360_v35  ;;  %v14134_v39 = vsel %vm22364_vm8, %v21561_v60, %v21694_v52  ;;  %vm22369_vm13 = vmmov %vm22363_vm4  ;;  %v22370_v13 = vld [vmem:[#allocation122_spill] sm:$0xff] }
0x1b30   :  { %13797 = vmatprep.subr.mxu0 %v13743_v56  ;;  %13869 = vmatpush1.msra.mxu1 %v13744_v40  ;;  %v14156_v53 = vmul.f32 %v22359_v47, %v22358_v48  ;;  %v14136_v56 = vsel %vm22361_vm15, %v21679_v37, %v14125_v4  ;;  %v14153_v37 = vmul.f32 %v14135_v1, %v22360_v35  ;;  %vm22372_vm14 = vmmov %vm22363_vm4 }
0x1b31   :  { %13902 = vmatprep.mubr.f32.mxu1 %v22303_v44  ;;  %13798 = vmatpush1.msra.mxu0 %v13742_v43  ;;  %v14324_v2 = vpop.permute.xlu0 %14323  ;;  %v14326_v33 = vpop.permute.xlu1 %14325  ;;  %v22362_v43 = vld [vmem:[#allocation113_spill] sm:$0xff]  ;;  %v14343_v4 = vsel %vm22365_vm5, %v21603_v15, %v21721_v58  ;;  %v14155_v24 = vmul.f32 %v14150_v20, %v22355_v26  ;;  %v14342_v36 = vsel %vm22368_vm12, %v21692_v54, %v21603_v15  ;;  %vm22373_vm15 = vmmov %vm22363_vm4 }
0x1b32   :  { %13831 = vmatprep.mubr.f32.mxu0 %v22303_v44  ;;  %16584 = vmatmul.mubr.msk.f32.vlgmr.msra.gmra.mxu1 %vm12824_vm3, %v13751_v30  ;;  %v14339_v15 = vsel %vm22373_vm15, %v14324_v2, %v14326_v33  ;;  %vm22396_vm15 = vmmov %vm22372_vm14 }
0x1b33   :  { %16588 = vmatprep.subr.msk.mxu1 %vm734_vm7, %v13954_v19  ;;  %16581 = vmatmul.mubr.msk.f32.vlgmr.msra.gmra.mxu0 %vm12824_vm3, %v13751_v30  ;;  %v14158_v30 = vmul.f32 %v14139_v18, %v22362_v43  ;;  %v14356_v19 = vsel %vm22363_vm4, %v21618_v31, %v21692_v54 }
0x1b34   :  { %16585 = vmatprep.subr.msk.mxu0 %vm734_vm7, %v13952_v62  ;;  %16589 = vmatpush1.msk.msra.mxu1 %vm734_vm7, %v13953_v28  ;;  %v14154_v62 = vmul.f32 %v14136_v56, %v22362_v43  ;;  %v14344_v28 = vsel %vm22369_vm13, %v21721_v58, %v21618_v31  ;;  %v22374_v31 = vld [vmem:[#allocation123_spill] sm:$0xff] }
0x1b35   :  { %16586 = vmatpush1.msk.msra.mxu0 %vm734_vm7, %v13951_v29  ;;  %14073 = vmatprep.subr.mxu1 %v13950_v25  ;;  %v14328_v32 = vpop.permute.xlu0 %14327  ;;  %v14330_v40 = vpop.permute.xlu1 %14329  ;;  %v14152_v29 = vmul.f32 %v14134_v39, %v22358_v48  ;;  %v22371_v25 = vld [vmem:[#allocation120_spill] sm:$0xff]  ;;  %v14361_v58 = vmul.f32 %v14342_v36, %v22374_v31 }
0x1b36   :  { %14002 = vmatprep.subr.mxu0 %v13948_v11  ;;  %14074 = vmatpush1.msra.mxu1 %v13949_v0  ;;  %v14340_v60 = vsel %vm22366_vm6, %v14326_v33, %v14328_v32  ;;  %v14355_v52 = vsel %vm22367_vm9, %v14330_v40, %v14324_v2  ;;  %v14364_v11 = vmul.f32 %v14356_v19, %v22370_v13  ;;  %v14366_v33 = vld [vmem:[#allocation41 + $0x20] sm:$0xf]  ;;  %vm22387_vm6 = vcmask 916480  }
0x1b37   :  { %14107 = vmatprep.mubr.f32.mxu1 %v22303_v44  ;;  %14003 = vmatpush1.msra.mxu0 %v13947_v14  ;;  %v14362_v17 = vmul.f32 %v14343_v4, %v22371_v25  ;;  %v14341_v0 = vsel %vm22372_vm14, %v14328_v32, %v14330_v40  ;;  %v14358_v54 = vmul.f32 %v14340_v60, %v22371_v25  ;;  %v22375_v14 = vld [vmem:[#allocation121_spill] sm:$0xff]  ;;  %vm22388_vm9 = vmmov %vm22387_vm6 }
0x1b38   :  { %14036 = vmatprep.mubr.f32.mxu0 %v22303_v44  ;;  %16590 = vmatmul.mubr.msk.f32.vlgmr.msra.gmra.mxu1 %vm12824_vm3, %v13956_v27  ;;  %v14360_v18 = vmul.f32 %v14355_v52, %v22370_v13  ;;  %v14357_v2 = vmul.f32 %v14339_v15, %v22374_v31  ;;  %vm22389_vm12 = vmmov %vm22387_vm6 }
0x1b39   :  { %16594 = vmatprep.subr.msk.mxu1 %vm734_vm7, %v14159_v7  ;;  %16587 = vmatmul.mubr.msk.f32.vlgmr.msra.gmra.mxu0 %vm12824_vm3, %v13956_v27  ;;  %v14363_v27 = vmul.f32 %v14344_v28, %v22375_v14  ;;  %v14359_v7 = vmul.f32 %v14341_v0, %v22375_v14  ;;  %vm22393_vm13 = vmmov %vm22387_vm6 }
0x1b3a   :  { %16591 = vmatprep.subr.msk.mxu0 %vm734_vm7, %v14157_v45  ;;  %16595 = vmatpush1.msk.msra.mxu1 %vm734_vm7, %v14158_v30 }
0x1b3b   :  { %16592 = vmatpush1.msk.msra.mxu0 %vm734_vm7, %v14156_v53  ;;  %14278 = vmatprep.subr.mxu1 %v14155_v24 }
0x1b3c   :  { %14207 = vmatprep.subr.mxu0 %v14153_v37  ;;  %14279 = vmatpush1.msra.mxu1 %v14154_v62 }
0x1b3d   :  { %14312 = vmatprep.mubr.f32.mxu1 %v22303_v44  ;;  %14208 = vmatpush1.msra.mxu0 %v14152_v29 }
0x1b3e   :  { %14241 = vmatprep.mubr.f32.mxu0 %v22303_v44  ;;  %16596 = vmatmul.mubr.msk.f32.vlgmr.msra.gmra.mxu1 %vm12824_vm3, %v14161_v55 }
0x1b3f   :  { %16600 = vmatprep.subr.msk.mxu1 %vm734_vm7, %v14364_v11  ;;  %16593 = vmatmul.mubr.msk.f32.vlgmr.msra.gmra.mxu0 %vm12824_vm3, %v14161_v55 }
0x1b40   :  { %16597 = vmatprep.subr.msk.mxu0 %vm734_vm7, %v14362_v17  ;;  %16601 = vmatpush1.msk.msra.mxu1 %vm734_vm7, %v14363_v27 }
0x1b41   :  { %16598 = vmatpush1.msk.msra.mxu0 %vm734_vm7, %v14361_v58  ;;  %14483 = vmatprep.subr.mxu1 %v14360_v18 }
0x1b42   :  { %14412 = vmatprep.subr.mxu0 %v14358_v54  ;;  %14446 = vmatprep.mubr.f32.mxu0 %v22303_v44 }
0x1b43   :  { %14413 = vmatpush1.msra.mxu0 %v14357_v2  ;;  %14484 = vmatpush1.msra.mxu1 %v14359_v7 }
0x1b44   :  { %14517 = vmatprep.mubr.f32.mxu1 %v22303_v44  ;;  %16599 = vmatmul.mubr.msk.f32.vlgmr.msra.gmra.mxu0 %vm12824_vm3, %v14366_v33 }
0x1b45   :  { %16602 = vmatmul.mubr.msk.f32.vlgmr.msra.gmra.mxu1 %vm12824_vm3, %v14366_v33  ;;  %14670 = vmatprep.mubr.f32.mxu0 %v22303_v44  ;;  %vm22381_vm3 = vcmask 924672  }
0x1b46   :  { %14741 = vmatprep.mubr.f32.mxu1 %v22303_v44  ;;  %vm22382_vm4 = vmmov %vm22381_vm3 }
0x1b47   :  { %vm22383_vm8 = vmmov %vm22381_vm3 }
0x1b48   :  { %vm22384_vm5 = vmmov %vm22381_vm3 }
0x1bcf   :  { %v12977_v1 = vpop.f32.mrf.mxu1 }
0x1bd0   :  { %v12906_v20 = vpop.f32.mrf.mxu0 }
0x1bd1   :  { %v12979_v47 = vpop.f32.mrf.mxu1 }
0x1bd2   :  { %v12908_v53 = vpop.f32.mrf.mxu0 }
0x1bd7   :  { %v13134_v45 = vpop.f32.mrf.mxu1 }
0x1bd8   :  { %v13063_v56 = vpop.f32.mrf.mxu0  ;;  %v13135_v0 = vadd.f32 %v13134_v45, %v12977_v1 }
0x1bd9   :  { %v13136_v32 = vpop.f32.mrf.mxu1  ;;  %v13064_v54 = vadd.f32 %v13063_v56, %v12906_v20 }
0x1bda   :  { %v13065_v40 = vpop.f32.mrf.mxu0  ;;  %v13137_v25 = vadd.f32 %v13136_v32, %v12979_v47 }
0x1bdb   :  { %v13066_v56 = vadd.f32 %v13065_v40, %v12908_v53 }
0x1bdf   :  { %v13335_v30 = vpop.f32.mrf.mxu1  ;;  %v13264_v19 = vpop.f32.mrf.mxu0 }
0x1be0   :  { %v13340_v58 = vadd.f32 %v13264_v19, %v13064_v54  ;;  %v13342_v27 = vadd.f32 %v13335_v30, %v13135_v0 }
0x1be1   :  { %v13337_v39 = vpop.f32.mrf.mxu1  ;;  %v13266_v37 = vpop.f32.mrf.mxu0 }
0x1be2   :  { %v13343_v9 = vadd.f32 %v13337_v39, %v13137_v25 }
0x1be6   :  { %v13540_v4 = vpop.f32.mrf.mxu1 }
0x1be7   :  { %v13469_v24 = vpop.f32.mrf.mxu0  ;;  %v13547_v33 = vadd.f32 %v13540_v4, %v13342_v27 }
0x1be8   :  { %v13542_v62 = vpop.f32.mrf.mxu1  ;;  %v13545_v31 = vadd.f32 %v13469_v24, %v13340_v58  ;;  %v13341_v24 = vadd.f32 %v13266_v37, %v13066_v56 }
0x1be9   :  { %v13471_v60 = vpop.f32.mrf.mxu0  ;;  %v13548_v19 = vadd.f32 %v13542_v62, %v13343_v9 }
0x1bec   :  { %v13699_v52 = vpop.f32.mrf.mxu1 }
0x1bed   :  { %v13628_v36 = vpop.f32.mrf.mxu0  ;;  %v13706_v13 = vadd.f32 %v13699_v52, %v13547_v33  ;;  %v13546_v52 = vadd.f32 %v13471_v60, %v13341_v24 }
0x1bee   :  { %v13701_v29 = vpop.f32.mrf.mxu1  ;;  %v13704_v48 = vadd.f32 %v13628_v36, %v13545_v31  ;;  %v14532_v31 = vpop.permute.xlu0 %14531 }
0x1bef   :  { %v13630_v28 = vpop.f32.mrf.mxu0  ;;  %v13707_v58 = vadd.f32 %v13701_v29, %v13548_v19 }
0x1bf0   :  { %v13705_v36 = vadd.f32 %v13630_v28, %v13546_v52  ;;  %v16168_v28 = vld [vmem:[#allocation45] sm:$0xf] }
0x1bf2   :  { %v13904_v55 = vpop.f32.mrf.mxu1 }
0x1bf3   :  { %v13833_v11 = vpop.f32.mrf.mxu0  ;;  %v13911_v35 = vadd.f32 %v13904_v55, %v13706_v13 }
0x1bf4   :  { %v13906_v17 = vpop.f32.mrf.mxu1  ;;  %v13909_v26 = vadd.f32 %v13833_v11, %v13704_v48 }
0x1bf5   :  { %v13835_v15 = vpop.f32.mrf.mxu0  ;;  %v13912_v13 = vadd.f32 %v13906_v17, %v13707_v58  ;;  %v14590_v58 = vld [vmem:[#allocation44 + $0x4] sm:$0xf] }
0x1bf6   :  { %v13910_v53 = vadd.f32 %v13835_v15, %v13705_v36 }
0x1bf8   :  { %v14109_v18 = vpop.f32.mrf.mxu1 }
0x1bf9   :  { %v14038_v7 = vpop.f32.mrf.mxu0  ;;  %v14116_v1 = vadd.f32 %v14109_v18, %v13911_v35 }
0x1bfa   :  { %v14111_v2 = vpop.f32.mrf.mxu1  ;;  %v14114_v45 = vadd.f32 %v14038_v7, %v13909_v26 }
0x1bfb   :  { %v14040_v14 = vpop.f32.mrf.mxu0  ;;  %v14117_v55 = vadd.f32 %v14111_v2, %v13912_v13 }
0x1bfe   :  { %v14314_v43 = vpop.f32.mrf.mxu1 }
0x1bff   :  { %v14243_v61 = vpop.f32.mrf.mxu0  ;;  %v14321_v30 = vadd.f32 %v14314_v43, %v14116_v1 }
0x1c00   :  { %v14316_v46 = vpop.f32.mrf.mxu1  ;;  %v14319_v0 = vadd.f32 %v14243_v61, %v14114_v45  ;;  %v14115_v61 = vadd.f32 %v14040_v14, %v13910_v53  ;;  %v22376_v45 = vld [vmem:[#allocation92_spill] sm:$0xff] }
0x1c01   :  { %v14245_v20 = vpop.f32.mrf.mxu0  ;;  %v14322_v9 = vadd.f32 %v14316_v46, %v14117_v55 }
0x1c02   :  { %v14320_v37 = vadd.f32 %v14245_v20, %v14115_v61 }
0x1c04   :  { %v14448_v54 = vpop.f32.mrf.mxu0 }
0x1c05   :  { %v14519_v4 = vpop.f32.mrf.mxu1  ;;  %v14524_v47 = vadd.f32 %v14448_v54, %v14319_v0 }
0x1c06   :  { %v14526_v32 = vadd.f32 %v14519_v4, %v14321_v30  ;;  %v14450_v39 = vpop.f32.mrf.mxu0 }
0x1c07   :  { %v14534_v48 = vadd.f32 %v14532_v31, %v14524_v47  ;;  %v14521_v35 = vpop.f32.mrf.mxu1  ;;  %v14525_v62 = vadd.f32 %v14450_v39, %v14320_v37 }
0x1c08   :  { %v14536_v26 = vadd.f32 %v14532_v31, %v14526_v32  ;;  %v14527_v40 = vadd.f32 %v14521_v35, %v14322_v9 }
0x1c09   :  { %v21835_v25 = vmax.f32 %v14534_v48, 0.0  ;;  %v14535_v14 = vadd.f32 %v14532_v31, %v14525_v62 }
0x1c0a   :  { %v21841_v43 = vmax.f32 %v14536_v26, 0.0  ;;  %v14537_v46 = vadd.f32 %v14532_v31, %v14527_v40  ;;  %v14567_v26 = vld [vmem:[#allocation44] sm:$0xf] }
0x1c0b   :  { %15432 = vrot.lane.b32.xlu1 %v21835_v25, %s18787_s22  ;;  %14571 = vrot.lane.b32.xlu0 %v21835_v25, %s18783_s13  ;;  %v21857_v29 = vmax.f32 %v14535_v14, 0.0  ;;  %v14927_v14 = vld [vmem:[#allocation44 + $0x8] sm:$0xf] }
0x1c0c   :  { %v21851_v60 = vmax.f32 %v14537_v46, 0.0 }
0x1c0f   :  { %15436 = vrot.lane.b32.xlu1 %v21841_v43, %s18787_s22  ;;  %14575 = vrot.lane.b32.xlu0 %v21841_v43, %s18783_s13 }
0x1c13   :  { %15616 = vrot.lane.b32.xlu1 %v21835_v25, %s18788_s30  ;;  %14549 = vrot.lane.b32.xlu0 %v21835_v25, %s18784_s24 }
0x1c17   :  { %14553 = vrot.lane.b32.xlu0 %v21841_v43, %s18784_s24  ;;  %14568 = vrot.lane.b32.xlu1 %v21851_v60, %s18783_s13 }
0x1c1b   :  { %14908 = vrot.lane.b32.xlu0 %v21835_v25, %s18785_s16  ;;  %14573 = vrot.lane.b32.xlu1 %v21857_v29, %s18783_s13 }
0x1c1f   :  { %14912 = vrot.lane.b32.xlu0 %v21841_v43, %s18785_s16  ;;  %14543 = vrot.lane.b32.xlu1 %v21851_v60, %s18784_s24 }
0x1c23   :  { %15092 = vrot.lane.b32.xlu0 %v21835_v25, %s18786_s18  ;;  %14551 = vrot.lane.b32.xlu1 %v21857_v29, %s18784_s24 }
0x1c27   :  { %15096 = vrot.lane.b32.xlu0 %v21841_v43, %s18786_s18  ;;  %14905 = vrot.lane.b32.xlu1 %v21851_v60, %s18785_s16 }
0x1c2b   :  { %15434 = vrot.lane.b32.xlu0 %v21857_v29, %s18787_s22  ;;  %14910 = vrot.lane.b32.xlu1 %v21857_v29, %s18785_s16 }
0x1c2f   :  { %15438 = vrot.lane.b32.xlu0 %v21851_v60, %s18787_s22  ;;  %15089 = vrot.lane.b32.xlu1 %v21851_v60, %s18786_s18 }
0x1c33   :  { %15618 = vrot.lane.b32.xlu0 %v21857_v29, %s18788_s30  ;;  %15094 = vrot.lane.b32.xlu1 %v21857_v29, %s18786_s18 }
0x1c37   :  { %15622 = vrot.lane.b32.xlu0 %v21851_v60, %s18788_s30  ;;  %15620 = vrot.lane.b32.xlu1 %v21841_v43, %s18788_s30 }
0x1c3b   :  { %15802 = vrot.lane.b32.xlu0 %v21857_v29, %s18789_s8  ;;  %15800 = vrot.lane.b32.xlu1 %v21835_v25, %s18789_s8 }
0x1c3f   :  { %15806 = vrot.lane.b32.xlu0 %v21851_v60, %s18789_s8  ;;  %15804 = vrot.lane.b32.xlu1 %v21841_v43, %s18789_s8 }
0x1c43   :  { %15986 = vrot.lane.b32.xlu0 %v21857_v29, %s22326_s25  ;;  %15984 = vrot.lane.b32.xlu1 %v21835_v25, %s22326_s25 }
0x1c47   :  { %15990 = vrot.lane.b32.xlu0 %v21851_v60, %s22326_s25  ;;  %15988 = vrot.lane.b32.xlu1 %v21841_v43, %s22326_s25 }
0x1c4b   :  { %16171 = vperm.xlu1 %17997, %v16168_v28  }
0x1c7d   :  { %v14572_v11 = vpop.permute.xlu0 %14571  ;;  %v21907_v17 = vpop.permute.xlu1 %15432 }
0x1c81   :  { %v14576_v15 = vpop.permute.xlu0 %14575  ;;  %v21909_v18 = vpop.permute.xlu1 %15436 }
0x1c85   :  { %v14550_v27 = vpop.permute.xlu0 %14549  ;;  %v21911_v7 = vpop.permute.xlu1 %15616 }
0x1c89   :  { %v14554_v2 = vpop.permute.xlu0 %14553  ;;  %v14569_v33 = vpop.permute.xlu1 %14568 }
0x1c8a   :  { %v14579_v1 = vsel %vm715_vm1, %v14576_v15, %v14569_v33  ;;  %v14584_v56 = vsel %vm715_vm1, %v14569_v33, %v14572_v11 }
0x1c8b   :  { %v14588_v20 = vmul.f32 %v14579_v1, %v22376_v45  ;;  %v14585_v47 = vmul.f32 %v14584_v56, %v22312_v41  ;;  %v15111_v45 = vld [vmem:[#allocation44 + $0xc] sm:$0xf] }
0x1c8d   :  { %v14909_v19 = vpop.permute.xlu0 %14908  ;;  %16606 = vmatprep.subr.msk.mxu1 %vm734_vm7, %v14588_v20  ;;  %v14574_v30 = vpop.permute.xlu1 %14573 }
0x1c8e   :  { %v14577_v0 = vsel %vm715_vm1, %v14572_v11, %v14574_v30  ;;  %v14578_v54 = vsel %vm715_vm1, %v14574_v30, %v14576_v15  ;;  %vm22377_vm1 = vcmask 1039360  }
0x1c8f   :  { %v14586_v4 = vmul.f32 %v14577_v0, %v22313_v10  ;;  %v14587_v24 = vmul.f32 %v14578_v54, %v22314_v21 }
0x1c91   :  { %v14913_v32 = vpop.permute.xlu0 %14912  ;;  %16603 = vmatprep.subr.msk.mxu0 %vm734_vm7, %v14586_v4  ;;  %16607 = vmatpush1.msk.msra.mxu1 %vm734_vm7, %v14587_v24  ;;  %v14544_v31 = vpop.permute.xlu1 %14543 }
0x1c92   :  { %v14557_v52 = vsel %vm692_vm10, %v14554_v2, %v14544_v31  ;;  %16604 = vmatpush1.msk.msra.mxu0 %vm734_vm7, %v14585_v47  ;;  %16608 = vmatmul.mubr.msk.f32.vlgmr.msra.gmra.mxu1 %vm730_vm11, %v14590_v58  ;;  %v14562_v41 = vsel %vm692_vm10, %v14544_v31, %v14550_v27 }
0x1c93   :  { %v14566_v13 = vmul.f32 %v14557_v52, %v22327_v42  ;;  %16605 = vmatmul.mubr.msk.f32.vlgmr.msra.gmra.mxu0 %vm730_vm11, %v14590_v58  ;;  %14898 = vmatprep.mubr.f32.mxu1 %v22303_v44  ;;  %v14563_v35 = vmul.f32 %v14562_v41, %v22330_v38  ;;  %v22385_v58 = vld [vmem:[#allocation116_spill] sm:$0xff]  ;;  %v22390_v41 = vld [vmem:[#allocation119_spill] sm:$0xff] }
0x1c94   :  { %14827 = vmatprep.mubr.f32.mxu0 %v22303_v44 }
0x1c95   :  { %v15093_v10 = vpop.permute.xlu0 %15092  ;;  %16612 = vmatprep.subr.msk.mxu1 %vm734_vm7, %v14566_v13  ;;  %v14552_v21 = vpop.permute.xlu1 %14551 }
0x1c96   :  { %v14555_v48 = vsel %vm692_vm10, %v14550_v27, %v14552_v21  ;;  %v14556_v36 = vsel %vm692_vm10, %v14552_v21, %v14554_v2  ;;  %vm22378_vm10 = vmmov %vm22377_vm1  ;;  %v22391_v21 = vld [vmem:[#allocation112_spill] sm:$0xff] }
0x1c97   :  { %v14564_v55 = vmul.f32 %v14555_v48, %v22328_v23  ;;  %v14565_v42 = vmul.f32 %v14556_v36, %v22329_v12  ;;  %v22392_v36 = vld [vmem:[#allocation114_spill] sm:$0xff] }
0x1c99   :  { %v15097_v53 = vpop.permute.xlu0 %15096  ;;  %16609 = vmatprep.subr.msk.mxu0 %vm734_vm7, %v14564_v55  ;;  %16613 = vmatpush1.msk.msra.mxu1 %vm734_vm7, %v14565_v42  ;;  %v14906_v9 = vpop.permute.xlu1 %14905 }
0x1c9a   :  { %v14916_v61 = vsel %vm1055_vm0, %v14913_v32, %v14906_v9  ;;  %16610 = vmatpush1.msk.msra.mxu0 %vm734_vm7, %v14563_v35  ;;  %16614 = vmatmul.mubr.msk.f32.vlgmr.msra.gmra.mxu1 %vm730_vm11, %v14567_v26  ;;  %v14921_v23 = vsel %vm1055_vm0, %v14906_v9, %v14909_v19 }
0x1c9b   :  { %v14925_v40 = vmul.f32 %v14916_v61, %v22331_v3  ;;  %16611 = vmatmul.mubr.msk.f32.vlgmr.msra.gmra.mxu0 %vm730_vm11, %v14567_v26  ;;  %15078 = vmatprep.mubr.f32.mxu1 %v22303_v44  ;;  %v14922_v46 = vmul.f32 %v14921_v23, %v22334_v63  ;;  %v22394_v26 = vld [vmem:[#allocation113_spill] sm:$0xff] }
0x1c9c   :  { %15007 = vmatprep.mubr.f32.mxu0 %v22303_v44 }
0x1c9d   :  { %v15435_v12 = vpop.permute.xlu0 %15434  ;;  %16618 = vmatprep.subr.msk.mxu1 %vm734_vm7, %v14925_v40  ;;  %v14911_v38 = vpop.permute.xlu1 %14910  ;;  %v22395_v40 = vld [vmem:[#allocation115_spill] sm:$0xff] }
0x1c9e   :  { %v14914_v39 = vsel %vm1055_vm0, %v14909_v19, %v14911_v38  ;;  %v14915_v37 = vsel %vm1055_vm0, %v14911_v38, %v14913_v32  ;;  %v15441_v19 = vsel %vm22378_vm10, %v15435_v12, %v21909_v18  ;;  %vm22379_vm0 = vmmov %vm22377_vm1  ;;  %v22386_v32 = vld [vmem:[#allocation117_spill] sm:$0xff] }
0x1c9f   :  { %v14923_v62 = vmul.f32 %v14914_v39, %v22332_v6  ;;  %v14924_v3 = vmul.f32 %v14915_v37, %v22333_v51  ;;  %v15450_v54 = vmul.f32 %v15441_v19, %v22341_v57 }
0x1ca1   :  { %v15439_v28 = vpop.permute.xlu0 %15438  ;;  %16615 = vmatprep.subr.msk.mxu0 %vm734_vm7, %v14923_v62  ;;  %16619 = vmatpush1.msk.msra.mxu1 %vm734_vm7, %v14924_v3  ;;  %v15090_v11 = vpop.permute.xlu1 %15089 }
0x1ca2   :  { %v15100_v15 = vsel %vm1240_vm2, %v15097_v53, %v15090_v11  ;;  %16616 = vmatpush1.msk.msra.mxu0 %vm734_vm7, %v14922_v46  ;;  %16620 = vmatmul.mubr.msk.f32.vlgmr.msra.gmra.mxu1 %vm730_vm11, %v14927_v14  ;;  %v15105_v6 = vsel %vm1240_vm2, %v15090_v11, %v15093_v10  ;;  %v15448_v20 = vsel %vm22377_vm1, %v15439_v28, %v21907_v17  ;;  %vm22397_vm1 = vmmov %vm22372_vm14  ;;  %v22400_v11 = vld [vmem:[#allocation120_spill] sm:$0xff] }
0x1ca3   :  { %v15109_v27 = vmul.f32 %v15100_v15, %v22335_v8  ;;  %16617 = vmatmul.mubr.msk.f32.vlgmr.msra.gmra.mxu0 %vm730_vm11, %v14927_v14  ;;  %15262 = vmatprep.mubr.f32.mxu1 %v22303_v44  ;;  %v15106_v56 = vmul.f32 %v15105_v6, %v22338_v49  ;;  %vm22398_vm10 = vmmov %vm22397_vm1  ;;  %v22399_v14 = vld [vmem:[#allocation122_spill] sm:$0xff] }
0x1ca4   :  { %15191 = vmatprep.mubr.f32.mxu0 %v22303_v44 }
0x1ca5   :  { %v15619_v51 = vpop.permute.xlu0 %15618  ;;  %16624 = vmatprep.subr.msk.mxu1 %vm734_vm7, %v15109_v27  ;;  %v15095_v63 = vpop.permute.xlu1 %15094  ;;  %v22401_v27 = vld [vmem:[#allocation121_spill] sm:$0xff] }
0x1ca6   :  { %v15098_v2 = vsel %vm1240_vm2, %v15093_v10, %v15095_v63  ;;  %v15099_v33 = vsel %vm1240_vm2, %v15095_v63, %v15097_v53  ;;  %vm22380_vm2 = vmmov %vm22379_vm0  ;;  %v15638_v53 = vld [vmem:[#allocation44 + $0x18] sm:$0xf] }
0x1ca7   :  { %v15107_v8 = vmul.f32 %v15098_v2, %v22336_v34  ;;  %v15108_v1 = vmul.f32 %v15099_v33, %v22337_v5  ;;  %v15442_v34 = vsel %vm22379_vm0, %v21909_v18, %v15439_v28  ;;  %v15452_v5 = vmul.f32 %v15448_v20, %v22339_v50  ;;  %v15274_v50 = vld [vmem:[#allocation44 + $0x10] sm:$0xf]  ;;  %v16006_v2 = vld [vmem:[#allocation44 + $0x20] sm:$0xf] }
0x1ca8   :  { %v15440_v49 = vsel %vm22380_vm2, %v21907_v17, %v15435_v12  ;;  %v15451_v57 = vmul.f32 %v15442_v34, %v22344_v59  ;;  %v15454_v59 = vld [vmem:[#allocation44 + $0x14] sm:$0xf]  ;;  %v15822_v12 = vld [vmem:[#allocation44 + $0x1c] sm:$0xf] }
0x1ca9   :  { %v15623_v30 = vpop.permute.xlu0 %15622  ;;  %16621 = vmatprep.subr.msk.mxu0 %vm734_vm7, %v15107_v8  ;;  %16625 = vmatpush1.msk.msra.mxu1 %vm734_vm7, %v15108_v1  ;;  %v15621_v0 = vpop.permute.xlu1 %15620 }
0x1caa   :  { %16622 = vmatpush1.msk.msra.mxu0 %vm734_vm7, %v15106_v56  ;;  %16626 = vmatmul.mubr.msk.f32.vlgmr.msra.gmra.mxu1 %vm730_vm11, %v15111_v45  ;;  %v15632_v4 = vsel %vm22381_vm3, %v15623_v30, %v21911_v7  ;;  %v15625_v18 = vsel %vm22382_vm4, %v15619_v51, %v15621_v0  ;;  %v15626_v24 = vsel %vm22383_vm8, %v15621_v0, %v15623_v30 }
0x1cab   :  { %16630 = vmatprep.subr.msk.mxu1 %vm734_vm7, %v21851_v60  ;;  %16623 = vmatmul.mubr.msk.f32.vlgmr.msra.gmra.mxu0 %vm730_vm11, %v15111_v45  ;;  %v15634_v47 = vmul.f32 %v15625_v18, %v22385_v58  ;;  %v15635_v31 = vmul.f32 %v15626_v24, %v22386_v32 }
0x1cac   :  { %16627 = vmatprep.subr.msk.mxu0 %vm734_vm7, %v21857_v29  ;;  %16631 = vmatpush1.msk.msra.mxu1 %vm734_vm7, %v21841_v43  ;;  %v15449_v43 = vmul.f32 %v15440_v49, %v22343_v16  ;;  %v15636_v29 = vmul.f32 %v15632_v4, %v22346_v22 }
0x1cad   :  { %16628 = vmatpush1.msk.msra.mxu0 %vm734_vm7, %v21835_v25  ;;  %16636 = vmatprep.subr.msk.mxu1 %vm734_vm7, %v15452_v5  ;;  %v15803_v60 = vpop.permute.xlu0 %15802  ;;  %v15801_v17 = vpop.permute.xlu1 %15800  ;;  %v15624_v25 = vsel %vm22384_vm5, %v21911_v7, %v15619_v51  ;;  %v22402_v51 = vld [vmem:[#allocation123_spill] sm:$0xff] }
0x1cae   :  { %15421 = vmatprep.mubr.f32.mxu1 %v22303_v44  ;;  %16633 = vmatprep.subr.msk.mxu0 %vm734_vm7, %v15450_v54  ;;  %v15633_v10 = vmul.f32 %v15624_v25, %v22390_v41  ;;  %v15808_v42 = vsel %vm22393_vm13, %v15801_v17, %v15803_v60 }
0x1caf   :  { %15350 = vmatprep.mubr.f32.mxu0 %v22303_v44  ;;  %16632 = vmatmul.mubr.msk.f32.vlgmr.msra.gmra.mxu1 %vm730_vm11, %v15274_v50  ;;  %v15817_v23 = vmul.f32 %v15808_v42, %v22395_v40 }
0x1cb0   :  { %16637 = vmatpush1.msk.msra.mxu1 %vm734_vm7, %v15451_v57  ;;  %16629 = vmatmul.mubr.msk.f32.vlgmr.msra.gmra.mxu0 %vm730_vm11, %v15274_v50 }
0x1cb1   :  { %16634 = vmatpush1.msk.msra.mxu0 %vm734_vm7, %v15449_v43  ;;  %16642 = vmatprep.subr.msk.mxu1 %vm734_vm7, %v15636_v29  ;;  %v15807_v16 = vpop.permute.xlu0 %15806  ;;  %v15805_v22 = vpop.permute.xlu1 %15804 }
0x1cb2   :  { %16639 = vmatprep.subr.msk.mxu0 %vm734_vm7, %v15634_v47  ;;  %v15816_v52 = vsel %vm22387_vm6, %v15807_v16, %v15801_v17  ;;  %15605 = vmatprep.mubr.f32.mxu1 %v22303_v44  ;;  %v15809_v7 = vsel %vm22388_vm9, %v15803_v60, %v15805_v22  ;;  %v15810_v13 = vsel %vm22389_vm12, %v15805_v22, %v15807_v16 }
0x1cb3   :  { %v15820_v48 = vmul.f32 %v15816_v52, %v22391_v21  ;;  %v15818_v55 = vmul.f32 %v15809_v7, %v22392_v36  ;;  %15534 = vmatprep.mubr.f32.mxu0 %v22303_v44  ;;  %16638 = vmatmul.mubr.msk.f32.vlgmr.msra.gmra.mxu1 %vm730_vm11, %v15454_v59  ;;  %v15819_v35 = vmul.f32 %v15810_v13, %v22394_v26 }
0x1cb4   :  { %16643 = vmatpush1.msk.msra.mxu1 %vm734_vm7, %v15635_v31  ;;  %16635 = vmatmul.mubr.msk.f32.vlgmr.msra.gmra.mxu0 %vm730_vm11, %v15454_v59 }
0x1cb5   :  { %16640 = vmatpush1.msk.msra.mxu0 %vm734_vm7, %v15633_v10  ;;  %v15987_v9 = vpop.permute.xlu0 %15986  ;;  %15789 = vmatprep.mubr.f32.mxu1 %v22303_v44  ;;  %v15985_v61 = vpop.permute.xlu1 %15984 }
0x1cb6   :  { %16645 = vmatprep.subr.msk.mxu0 %vm734_vm7, %v15818_v55  ;;  %16648 = vmatprep.subr.msk.mxu1 %vm734_vm7, %v15820_v48  ;;  %v15992_v38 = vsel %vm22372_vm14, %v15985_v61, %v15987_v9 }
0x1cb7   :  { %15718 = vmatprep.mubr.f32.mxu0 %v22303_v44  ;;  %16644 = vmatmul.mubr.msk.f32.vlgmr.msra.gmra.mxu1 %vm730_vm11, %v15638_v53  ;;  %v16001_v63 = vmul.f32 %v15992_v38, %v22402_v51 }
0x1cb8   :  { %16649 = vmatpush1.msk.msra.mxu1 %vm734_vm7, %v15819_v35  ;;  %16641 = vmatmul.mubr.msk.f32.vlgmr.msra.gmra.mxu0 %vm730_vm11, %v15638_v53 }
0x1cb9   :  { %16646 = vmatpush1.msk.msra.mxu0 %vm734_vm7, %v15817_v23  ;;  %v15991_v39 = vpop.permute.xlu0 %15990  ;;  %15973 = vmatprep.mubr.f32.mxu1 %v22303_v44  ;;  %v15989_v37 = vpop.permute.xlu1 %15988 }
0x1cba   :  { %v16000_v62 = vsel %vm22396_vm15, %v15991_v39, %v15985_v61  ;;  %v15993_v3 = vsel %vm22397_vm1, %v15987_v9, %v15989_v37  ;;  %v15994_v46 = vsel %vm22398_vm10, %v15989_v37, %v15991_v39  ;;  %15902 = vmatprep.mubr.f32.mxu0 %v22303_v44 }
0x1cbb   :  { %v16004_v28 = vmul.f32 %v16000_v62, %v22399_v14  ;;  %v16002_v15 = vmul.f32 %v15993_v3, %v22400_v11  ;;  %v16003_v6 = vmul.f32 %v15994_v46, %v22401_v27  ;;  %16650 = vmatmul.mubr.msk.f32.vlgmr.msra.gmra.mxu1 %vm730_vm11, %v15822_v12 }
0x1cbc   :  { %16647 = vmatmul.mubr.msk.f32.vlgmr.msra.gmra.mxu0 %vm730_vm11, %v15822_v12  ;;  %16157 = vmatprep.mubr.f32.mxu1 %v22303_v44 }
0x1cbd   :  { %16651 = vmatprep.subr.msk.mxu0 %vm734_vm7, %v16002_v15  ;;  %16654 = vmatprep.subr.msk.mxu1 %vm734_vm7, %v16004_v28 }
0x1cbe   :  { %16652 = vmatpush1.msk.msra.mxu0 %vm734_vm7, %v16001_v63  ;;  %16086 = vmatprep.mubr.f32.mxu0 %v22303_v44 }
0x1cbf   :  { %16655 = vmatpush1.msk.msra.mxu1 %vm734_vm7, %v16003_v6 }
0x1cc0   :  { %16653 = vmatmul.mubr.msk.f32.vlgmr.msra.gmra.mxu0 %vm730_vm11, %v16006_v2  ;;  %16656 = vmatmul.mubr.msk.f32.vlgmr.msra.gmra.mxu1 %vm730_vm11, %v16006_v2 }
0x1cc6   :  { %v16172_v6 = vpop.permute.xlu1 %16171 }
0x1d52   :  { %v14743_v33 = vpop.f32.mrf.mxu1 }
0x1d53   :  { %v14672_v8 = vpop.f32.mrf.mxu0 }
0x1d54   :  { %v14745_v1 = vpop.f32.mrf.mxu1 }
0x1d55   :  { %v14674_v45 = vpop.f32.mrf.mxu0 }
0x1d5a   :  { %v14900_v20 = vpop.f32.mrf.mxu1 }
0x1d5b   :  { %v14829_v56 = vpop.f32.mrf.mxu0  ;;  %v14901_v17 = vadd.f32 %v14900_v20, %v14743_v33 }
0x1d5c   :  { %v14902_v19 = vpop.f32.mrf.mxu1  ;;  %v14830_v43 = vadd.f32 %v14829_v56, %v14672_v8 }
0x1d5d   :  { %v14831_v30 = vpop.f32.mrf.mxu0  ;;  %v14903_v58 = vadd.f32 %v14902_v19, %v14745_v1 }
0x1d5e   :  { %v14832_v47 = vadd.f32 %v14831_v30, %v14674_v45 }
0x1d62   :  { %v15080_v0 = vpop.f32.mrf.mxu1 }
0x1d63   :  { %v15009_v34 = vpop.f32.mrf.mxu0  ;;  %v15087_v59 = vadd.f32 %v15080_v0, %v14901_v17 }
0x1d64   :  { %v15082_v5 = vpop.f32.mrf.mxu1  ;;  %v15085_v32 = vadd.f32 %v15009_v34, %v14830_v43 }
0x1d65   :  { %v15011_v49 = vpop.f32.mrf.mxu0  ;;  %v15088_v22 = vadd.f32 %v15082_v5, %v14903_v58 }
0x1d66   :  { %v15086_v52 = vadd.f32 %v15011_v49, %v14832_v47 }
0x1d6a   :  { %v15264_v54 = vpop.f32.mrf.mxu1 }
0x1d6b   :  { %v15193_v44 = vpop.f32.mrf.mxu0  ;;  %v15271_v7 = vadd.f32 %v15264_v54, %v15087_v59 }
0x1d6c   :  { %v15266_v4 = vpop.f32.mrf.mxu1  ;;  %v15269_v13 = vadd.f32 %v15193_v44, %v15085_v32 }
0x1d6d   :  { %v15195_v50 = vpop.f32.mrf.mxu0  ;;  %v15272_v21 = vadd.f32 %v15266_v4, %v15088_v22 }
0x1d6e   :  { %v15270_v48 = vadd.f32 %v15195_v50, %v15086_v52 }
0x1d6f   :  { %v15423_v18 = vpop.f32.mrf.mxu1 }
0x1d70   :  { %v15352_v60 = vpop.f32.mrf.mxu0  ;;  %v15430_v36 = vadd.f32 %v15423_v18, %v15271_v7 }
0x1d71   :  { %v15425_v57 = vpop.f32.mrf.mxu1  ;;  %v15428_v55 = vadd.f32 %v15352_v60, %v15269_v13 }
0x1d72   :  { %v15354_v24 = vpop.f32.mrf.mxu0  ;;  %v15431_v35 = vadd.f32 %v15425_v57, %v15272_v21 }
0x1d73   :  { %v15607_v29 = vpop.f32.mrf.mxu1  ;;  %v15429_v53 = vadd.f32 %v15354_v24, %v15270_v48 }
0x1d74   :  { %v15536_v25 = vpop.f32.mrf.mxu0  ;;  %v15614_v9 = vadd.f32 %v15607_v29, %v15430_v36 }
0x1d75   :  { %v15609_v31 = vpop.f32.mrf.mxu1  ;;  %v15612_v61 = vadd.f32 %v15536_v25, %v15428_v55 }
0x1d76   :  { %v15538_v16 = vpop.f32.mrf.mxu0  ;;  %v15615_v12 = vadd.f32 %v15609_v31, %v15431_v35 }
0x1d77   :  { %v15791_v41 = vpop.f32.mrf.mxu1  ;;  %v15613_v38 = vadd.f32 %v15538_v16, %v15429_v53 }
0x1d78   :  { %v15720_v10 = vpop.f32.mrf.mxu0  ;;  %v15798_v39 = vadd.f32 %v15791_v41, %v15614_v9 }
0x1d79   :  { %v15793_v42 = vpop.f32.mrf.mxu1  ;;  %v15796_v37 = vadd.f32 %v15720_v10, %v15612_v61 }
0x1d7a   :  { %v15722_v26 = vpop.f32.mrf.mxu0  ;;  %v15799_v46 = vadd.f32 %v15793_v42, %v15615_v12 }
0x1d7b   :  { %v15975_v40 = vpop.f32.mrf.mxu1  ;;  %v15797_v14 = vadd.f32 %v15722_v26, %v15613_v38 }
0x1d7c   :  { %v15904_v23 = vpop.f32.mrf.mxu0  ;;  %v15982_v28 = vadd.f32 %v15975_v40, %v15798_v39 }
0x1d7d   :  { %v15977_v62 = vpop.f32.mrf.mxu1  ;;  %v15980_v11 = vadd.f32 %v15904_v23, %v15796_v37 }
0x1d7e   :  { %v15906_v3 = vpop.f32.mrf.mxu0  ;;  %v15983_v51 = vadd.f32 %v15977_v62, %v15799_v46 }
0x1d7f   :  { %v15981_v63 = vadd.f32 %v15906_v3, %v15797_v14 }
0x1d80   :  { %v16088_v15 = vpop.f32.mrf.mxu0  ;;  %v16159_v27 = vpop.f32.mrf.mxu1 }
0x1d81   :  { %v16164_v2 = vadd.f32 %v16088_v15, %v15980_v11  ;;  %v16166_v33 = vadd.f32 %v16159_v27, %v15982_v28 }
0x1d82   :  { %v16090_v8 = vpop.f32.mrf.mxu0  ;;  %v16161_v1 = vpop.f32.mrf.mxu1 }
0x1d83   :  { %v16174_v45 = vadd.f32 %v16172_v6, %v16164_v2  ;;  %v16176_v20 = vadd.f32 %v16172_v6, %v16166_v33  ;;  %v16165_v56 = vadd.f32 %v16090_v8, %v15981_v63  ;;  %v16167_v19 = vadd.f32 %v16161_v1, %v15983_v51 }
0x1d85   :  { %v16175_v30 = vadd.f32 %v16172_v6, %v16165_v56  ;;  %v16177_v0 = vadd.f32 %v16172_v6, %v16167_v19  ;;  %v16178_v34 = vmax.f32 %v16174_v45, 0.0  ;;  %v16180_v5 = vmax.f32 %v16176_v20, 0.0 }
0x1d87   :  { %v16179_v49 = vmax.f32 %v16175_v30, 0.0  ;;  %v16181_v54 = vmax.f32 %v16177_v0, 0.0 }
0x1d89   :  { %v16186_v44 = vcombine.low %v16178_v34, %v16179_v49  ;;  %v16187_v4 = vcombine.low %v16180_v5, %v16181_v54 }
0x1d8b   :  { %16190 = vst [vmem:[%s19004_s4] sm:$0xff] %v16186_v44  ;;  %16191 = vst [vmem:[%s19004_s4 + $0x8] sm:$0xff] %v16187_v4 }
0x1d8c   :  { %16196 = vsyncpa [#allocation5], 1 }
0x1d8d   :  { %16197 = vsyncpa [#allocation7], 1 }
0x1d8e   :  { %16198 = vsyncpa [#allocation10], 1 }
0x1d8f   :  { %16199 = vsyncpa [#allocation13], 1 }
0x1d90   :  { %16200 = vsyncpa [#allocation16], 1 }
0x1d91   :  { %16201 = vsyncpa [#allocation19], 1 }
0x1d92   :  { %16202 = vsyncpa [#allocation22], 1 }
0x1d93   :  { %16203 = vsyncpa [#allocation25], 1 }
0x1d94   :  { %16204 = vsyncpa [#allocation28], 1 }
0x1d95   :  { %16205 = vsyncpa [#allocation31], 1 }
0x1d96   :  { %16206 = vsyncpa [#allocation34], 1 }
0x1d97   :  { %16207 = vsyncpa [#allocation37], 1 }
0x1d98   :  { %16208 = vsyncpa [#allocation40], 1 }
0x1d99   :  { %16209 = vsyncpa [#allocation43], 1 }
0x1d9a   :  { %16210 = vsyncpa [#allocation46], 1 }
0x1d9b   :  { %16211 = vsyncpa [#allocation49], 1 }
0x1d9c   :  { %16212 = vsyncpa [#allocation52], 1 }

</bundles_post_ra>
